<compile_context>
chip_gen: v6e
topology: v6e:2x2x1
jax: 0.10.0
libtpu: 0.0.40
codegen_flags: <defaults>
</compile_context>

<pallas_src>
import functools

import numpy as np
import jax
import jax.numpy as jnp
from jax.experimental import pallas as pl
from jax.experimental.pallas import tpu as pltpu


# --------------------------- in-kernel helpers ------------------------------

def _ln(x, g, b, eps):
    """Row-wise LayerNorm over the last dim (matches nn.LayerNorm(dim), eps=1e-5)."""
    x = x.astype(jnp.float32)
    mu = jnp.mean(x, axis=-1, keepdims=True)
    var = jnp.mean(jnp.square(x - mu), axis=-1, keepdims=True)
    return (x - mu) * jax.lax.rsqrt(var + eps) * g.astype(jnp.float32) + b.astype(jnp.float32)


def _mm(x, w):
    """(Bt, M, K) @ (K, N) -> (Bt, M, N), f32 accumulation on the MXU."""
    return jax.lax.dot_general(x, w, (((2,), (0,)), ((), ())),
                               preferred_element_type=jnp.float32)


_SQRT_HALF = 0.7071067811865476


def _erf_approx(x):
    # Abramowitz & Stegun 7.1.26 rational approximation, |err| < 1.5e-7.
    # TODO(synk): lax.erf has no guaranteed Mosaic lowering, so exact-GELU's erf
    # is evaluated with this in-kernel polynomial (error far below test tol).
    pp = 0.3275911
    a1, a2, a3, a4, a5 = 0.254829592, -0.284496736, 1.421413741, -1.453152027, 1.061405429
    sgn = jnp.where(x >= 0.0, 1.0, -1.0)
    ax = jnp.abs(x)
    t = 1.0 / (1.0 + pp * ax)
    poly = ((((a5 * t + a4) * t + a3) * t + a2) * t + a1) * t
    return sgn * (1.0 - poly * jnp.exp(-ax * ax))


def _gelu_exact(x):
    # nn.GELU() default = exact (erf) GELU.
    return 0.5 * x * (1.0 + _erf_approx(x * _SQRT_HALF))


def _mha_proj(q, k, v, w_proj, b_proj, num_heads):
    """Multi-head attention with the head-merge fused into the output proj.

    q (pre-scaled): (Bt, Lq, C); k/v: (Bt, Lk, C).  Heads are contiguous
    head_dim chunks along C (exactly the fused-Linear column order, matching
    PyTorch's reshape(..., nh, hd).permute(...)).  Instead of concatenating
    per-head outputs (lane stitching), each head's (p_h @ v_h) is projected
    through its own row block of w_proj and summed — MXU work only.
    Softmax denominator uses an exact divide.
    """
    C = q.shape[-1]
    hd = C // num_heads
    out = None
    for h in range(num_heads):
        lo, hi = h * hd, (h + 1) * hd
        s = jax.lax.dot_general(q[..., lo:hi], k[..., lo:hi],
                                (((2,), (2,)), ((0,), (0,))),
                                preferred_element_type=jnp.float32)
        s = s - jnp.max(s, axis=-1, keepdims=True)
        p = jnp.exp(s)
        p = p / jnp.sum(p, axis=-1, keepdims=True)          # exact divide
        o_h = jax.lax.dot_general(p, v[..., lo:hi],
                                  (((2,), (1,)), ((0,), (0,))),
                                  preferred_element_type=jnp.float32)
        part = jax.lax.dot_general(o_h, w_proj[lo:hi, :],
                                   (((2,), (0,)), ((), ())),
                                   preferred_element_type=jnp.float32)
        out = part if out is None else out + part
    return out + b_proj


# ------------------------------ fused kernel --------------------------------

def _fused_kernel(x_ref, qry_ref, vg_ref, kvw_ref, kvb_ref, wcat_ref,
                  fc2w_ref, vlay_ref, o_ref, *, num_heads, depth, eps):
    f32 = jnp.float32
    Bt, C, HW = x_ref.shape
    Q = qry_ref.shape[0]
    hidden = fc2w_ref.shape[1]
    hd = C // num_heads
    scale = hd ** -0.5

    # NCHW -> token-major inside the kernel (per-batch 2-D transposes, XLU
    # slot) so the wrapper does not launch a separate XLA transpose kernel.
    feats = jnp.stack([x_ref[b].astype(f32).T for b in range(Bt)], axis=0)   # (Bt, HW, C)
    feats = _ln(feats, vg_ref[0], vg_ref[1], eps)                            # norm_features

    cls = jnp.broadcast_to(qry_ref[...].astype(f32)[None], (Bt, Q, C))

    # Loop-invariant feature-side kv projection, hoisted out of the depth loop
    # as ONE lane-dense (C, depth*2C) matmul.
    kv_all = _mm(feats, kvw_ref[...]) + kvb_ref[...]                         # (Bt, HW, D*2C)

    # Static column offsets inside the packed buffers (in elements).
    fc1w_o, qkvw_o = 0, hidden
    qw_o, cw_o, sw_o = hidden + 3 * C, hidden + 4 * C, hidden + 5 * C
    n1g_o, n1b_o, n2g_o, n2b_o, n3g_o, n3b_o = 0, C, 2 * C, 3 * C, 4 * C, 5 * C
    qb_o, cb_o, qkvb_o, sb_o = 6 * C, 7 * C, 8 * C, 11 * C
    fc1b_o, fc2b_o = 12 * C, 12 * C + hidden

    for l in range(depth):                       # branch_depth is static: unroll
        wl = wcat_ref[l]                          # (C, hidden + 6C)
        vl = vlay_ref[l]                          # (13C + hidden,)
        kv = kv_all[..., l * 2 * C:(l + 1) * 2 * C]
        k, v = kv[..., :C], kv[..., C:]

        # -- cross-attention: query tokens attend to the features --
        qn = _ln(cls, vl[n1g_o:n1g_o + C], vl[n1b_o:n1b_o + C], eps)          # norm1
        q = (_mm(qn, wl[:, qw_o:qw_o + C]) + vl[qb_o:qb_o + C]) * scale       # to_q, scale folded in
        cls = cls + _mha_proj(q, k, v, wl[:, cw_o:cw_o + C], vl[cb_o:cb_o + C], num_heads)

        # -- self-attention over the query tokens --
        qn = _ln(cls, vl[n2g_o:n2g_o + C], vl[n2b_o:n2b_o + C], eps)          # norm2
        qkv = _mm(qn, wl[:, qkvw_o:qkvw_o + 3 * C]) + vl[qkvb_o:qkvb_o + 3 * C]
        q = qkv[..., :C] * scale
        cls = cls + _mha_proj(q, qkv[..., C:2 * C], qkv[..., 2 * C:],
                              wl[:, sw_o:sw_o + C], vl[sb_o:sb_o + C], num_heads)

        # -- MLP: fc1 -> exact GELU -> fc2 --
        qn = _ln(cls, vl[n3g_o:n3g_o + C], vl[n3b_o:n3b_o + C], eps)          # norm3
        h = _gelu_exact(_mm(qn, wl[:, fc1w_o:fc1w_o + hidden]) + vl[fc1b_o:fc1b_o + hidden])
        cls = cls + _mm(h, fc2w_ref[l]) + vl[fc2b_o:fc2b_o + C]

    cls = _ln(cls, vg_ref[2], vg_ref[3], eps)                                 # norm_embs
    # pred^T = cls @ feats^T -> (Bt, Q, HW): already the (B, Q, H, W) layout
    # the module returns, so the wrapper reshape is free.
    pred = jax.lax.dot_general(cls, feats, (((2,), (2,)), ((0,), (0,))),
                               preferred_element_type=f32)
    o_ref[...] = pred.astype(o_ref.dtype)


# ---------------------- one-time parameter packing ---------------------------

def pack_params(params):
    """Concatenate the ~26 module parameters into 7 packed buffers.

    Run ONCE outside the per-step jit so the fused kernel sees only a handful
    of pallas_call inputs (fewer BlockSpec windows / DMA descriptors).
    """
    D, C, _ = params['q_w'].shape
    hidden = params['fc1_w'].shape[-1]

    v_global = jnp.concatenate([
        params['norm_feat_g'].reshape(1, C), params['norm_feat_b'].reshape(1, C),
        params['norm_embs_g'].reshape(1, C), params['norm_embs_b'].reshape(1, C)], axis=0)

    # Loop-invariant kv projection, pre-laid-out lane-dense: (C, D*2C).
    kvw_all = params['kv_w'].transpose(1, 0, 2).reshape(C, D * 2 * C)
    kvb_all = params['kv_b'].reshape(1, D * 2 * C)

    # All per-layer weight matrices with C input rows: (D, C, hidden + 6C).
    # Column order: fc1 | qkv | q | cross_proj | self_proj  (fc1 first so the
    # widest matmul gets a 128-aligned, lane-dense RHS at hidden=4C=128).
    w_cat = jnp.concatenate([params['fc1_w'], params['qkv_w'], params['q_w'],
                             params['cross_proj_w'], params['self_proj_w']], axis=-1)

    # All per-layer LN gammas/betas and biases: (D, 13C + hidden).
    v_layer = jnp.concatenate([
        params['norm1_g'].reshape(D, C), params['norm1_b'].reshape(D, C),
        params['norm2_g'].reshape(D, C), params['norm2_b'].reshape(D, C),
        params['norm3_g'].reshape(D, C), params['norm3_b'].reshape(D, C),
        params['q_b'].reshape(D, C), params['cross_proj_b'].reshape(D, C),
        params['qkv_b'].reshape(D, 3 * C), params['self_proj_b'].reshape(D, C),
        params['fc1_b'].reshape(D, hidden), params['fc2_b'].reshape(D, C)], axis=-1)

    return {
        'queries': params['queries'].reshape(-1, C),     # (Q, C)
        'v_global': v_global,                            # (4, C)
        'kvw_all': kvw_all,                              # (C, D*2C)
        'kvb_all': kvb_all,                              # (1, D*2C)
        'w_cat': w_cat,                                  # (D, C, hidden+6C)
        'fc2_w': params['fc2_w'],                        # (D, hidden, C)
        'v_layer': v_layer,                              # (D, 13C+hidden)
    }


# ------------------------------ wrapper --------------------------------------

def _num_tensorcores():
    # v7x has 2 TensorCores per chip; v5e/v6e have 1.  On a single-TC chip the
    # grid is a serial loop, so we pack the whole batch into one grid step.
    try:
        kind = jax.devices()[0].device_kind.lower()
    except Exception:
        return 1
    return 2 if ("v7" in kind or "7x" in kind) else 1


def transformer_learner_pallas(features_nchw, packed, num_heads, eps=1e-5):
    """features_nchw: (B, dim, H, W) -> (B, num_queries, H, W)."""
    B, C, H, W = features_nchw.shape
    HW = H * W
    x = features_nchw.reshape(B, C, HW)          # contiguous reshape (free); transpose is in-kernel

    D = packed['w_cat'].shape[0]
    Q = packed['queries'].shape[0]

    num_tc = _num_tensorcores()
    G = num_tc if (B >= num_tc and B % num_tc == 0) else 1
    Bt = B // G

    def const_spec(a):
        nd = a.ndim
        return pl.BlockSpec(a.shape, lambda g, _nd=nd: (0,) * _nd)

    consts = [packed['queries'], packed['v_global'], packed['kvw_all'],
              packed['kvb_all'], packed['w_cat'], packed['fc2_w'],
              packed['v_layer']]

    in_specs = [pl.BlockSpec((Bt, C, HW), lambda g: (g, 0, 0))]
    in_specs += [const_spec(a) for a in consts]
    out_spec = pl.BlockSpec((Bt, Q, HW), lambda g: (g, 0, 0))

    kernel = functools.partial(_fused_kernel, num_heads=num_heads, depth=D, eps=eps)
    pred_t = pl.pallas_call(
        kernel,
        out_shape=jax.ShapeDtypeStruct((B, Q, HW), features_nchw.dtype),
        grid=(G,),
        in_specs=in_specs,
        out_specs=out_spec,
        compiler_params=pltpu.CompilerParams(dimension_semantics=("parallel",)),
    )(x, *consts)
    return pred_t.reshape(B, Q, H, W)


# ------------------------ pure-JAX reference (for checking) ------------------

def transformer_learner_ref(features_nchw, params, num_heads, eps=1e-5):
    B, C, H, W = features_nchw.shape
    HW = H * W
    nh = num_heads
    hd = C // nh
    scale = hd ** -0.5

    def ln(x, g, b):
        mu = jnp.mean(x, axis=-1, keepdims=True)
        var = jnp.mean(jnp.square(x - mu), axis=-1, keepdims=True)
        return (x - mu) * jax.lax.rsqrt(var + eps) * g + b

    def mha(q, k, v):
        Lq, Lk = q.shape[1], k.shape[1]
        qh = q.reshape(B, Lq, nh, hd).transpose(0, 2, 1, 3)
        kh = k.reshape(B, Lk, nh, hd).transpose(0, 2, 1, 3)
        vh = v.reshape(B, Lk, nh, hd).transpose(0, 2, 1, 3)
        s = jnp.einsum('bhqd,bhkd->bhqk', qh, kh) * scale
        p = jax.nn.softmax(s, axis=-1)
        o = jnp.einsum('bhqk,bhkd->bhqd', p, vh)
        return o.transpose(0, 2, 1, 3).reshape(B, Lq, C)

    feats = features_nchw.reshape(B, C, HW).transpose(0, 2, 1)
    feats = ln(feats, params['norm_feat_g'], params['norm_feat_b'])
    Qn = params['queries'].shape[1]
    cls = jnp.broadcast_to(params['queries'], (B, Qn, C))
    depth = params['kv_w'].shape[0]

    for l in range(depth):
        qn = ln(cls, params['norm1_g'][l], params['norm1_b'][l])
        kv = feats @ params['kv_w'][l] + params['kv_b'][l]
        k, v = kv[..., :C], kv[..., C:]
        q = qn @ params['q_w'][l] + params['q_b'][l]
        cls = cls + (mha(q, k, v) @ params['cross_proj_w'][l] + params['cross_proj_b'][l])

        qn = ln(cls, params['norm2_g'][l], params['norm2_b'][l])
        qkv = qn @ params['qkv_w'][l] + params['qkv_b'][l]
        q, k, v = qkv[..., :C], qkv[..., C:2 * C], qkv[..., 2 * C:]
        cls = cls + (mha(q, k, v) @ params['self_proj_w'][l] + params['self_proj_b'][l])

        qn = ln(cls, params['norm3_g'][l], params['norm3_b'][l])
        h = jax.nn.gelu(qn @ params['fc1_w'][l] + params['fc1_b'][l], approximate=False)
        cls = cls + (h @ params['fc2_w'][l] + params['fc2_b'][l])

    cls = ln(cls, params['norm_embs_g'], params['norm_embs_b'])
    pred = jnp.einsum('bnc,bqc->bnq', feats, cls)              # features @ cls^T
    return pred.transpose(0, 2, 1).reshape(B, Qn, H, W)


# ------------------------------ init -----------------------------------------

def init_params(key, dim, num_heads, num_queries, branch_depth, mlp_ratio=4.0):
    hidden = int(dim * mlp_ratio)
    D = branch_depth
    keys = iter(jax.random.split(key, 16))

    def normal(shape, std=0.02):
        return jax.random.normal(next(keys), shape, jnp.float32) * std

    ones = lambda s: jnp.ones(s, jnp.float32)
    zeros = lambda s: jnp.zeros(s, jnp.float32)

    return {
        # PyTorch inits self.queries to zeros; use a deterministic random init
        # here so the synthetic forward pass is non-degenerate.
        'queries': normal((1, num_queries, dim)),
        'norm_feat_g': ones((1, dim)), 'norm_feat_b': zeros((1, dim)),
        'norm_embs_g': ones((1, dim)), 'norm_embs_b': zeros((1, dim)),
        # per-layer params stacked along a leading depth axis
        'norm1_g': ones((D, 1, dim)), 'norm1_b': zeros((D, 1, dim)),
        'norm2_g': ones((D, 1, dim)), 'norm2_b': zeros((D, 1, dim)),
        'norm3_g': ones((D, 1, dim)), 'norm3_b': zeros((D, 1, dim)),
        'kv_w': normal((D, dim, 2 * dim)), 'kv_b': normal((D, 1, 2 * dim)),
        'q_w': normal((D, dim, dim)), 'q_b': normal((D, 1, dim)),
        'cross_proj_w': normal((D, dim, dim)), 'cross_proj_b': normal((D, 1, dim)),
        'qkv_w': normal((D, dim, 3 * dim)), 'qkv_b': normal((D, 1, 3 * dim)),
        'self_proj_w': normal((D, dim, dim)), 'self_proj_b': normal((D, 1, dim)),
        'fc1_w': normal((D, dim, hidden)), 'fc1_b': normal((D, 1, hidden)),
        'fc2_w': normal((D, hidden, dim)), 'fc2_b': normal((D, 1, dim)),
    }


# ------------------------------ main ------------------------------------------

if __name__ == "__main__":
    dim, num_heads, num_queries, branch_depth = 32, 4, 8, 2
    B, H, W = 2, 8, 8

    key = jax.random.PRNGKey(0)
    kp, kx = jax.random.split(key)
    params = init_params(kp, dim, num_heads, num_queries, branch_depth)
    features = jax.random.normal(kx, (B, dim, H, W), jnp.float32)

    packed = pack_params(params)                     # one-time packing, outside the per-step jit
    fwd = jax.jit(functools.partial(transformer_learner_pallas, num_heads=num_heads))
    pred = fwd(features, packed)
    jax.block_until_ready(pred)
    assert pred.shape == (B, num_queries, H, W)

    # High-precision reference (f32 MXU passes) for a fair comparison.
    with jax.default_matmul_precision("highest"):
        ref = jax.jit(functools.partial(transformer_learner_ref, num_heads=num_heads))(features, params)

    # Tolerance tightened from 2e-2 after removing the approximate reciprocal;
    # remaining budget covers MXU f32 pass decomposition + the in-kernel erf
    # polynomial (|err| < 1.5e-7).
    np.testing.assert_allclose(np.asarray(pred), np.asarray(ref), rtol=1e-2, atol=1e-2)

    print("KERNEL_OK")
</pallas_src>

<mosaic_0001>
module attributes {stable_mosaic.version = 11 : i64} {
  func.func @_fused_kernel(%arg0: i32, %arg1: memref<2x32x64xf32, #tpu.memory_space<vmem>>, %arg2: memref<8x32xf32, #tpu.memory_space<vmem>>, %arg3: memref<4x32xf32, #tpu.memory_space<vmem>>, %arg4: memref<32x128xf32, #tpu.memory_space<vmem>>, %arg5: memref<1x128xf32, #tpu.memory_space<vmem>>, %arg6: memref<2x32x320xf32, #tpu.memory_space<vmem>>, %arg7: memref<2x128x32xf32, #tpu.memory_space<vmem>>, %arg8: memref<2x544xf32, #tpu.memory_space<vmem>>, %arg9: memref<2x8x64xf32, #tpu.memory_space<vmem>>) attributes {dimension_semantics = [#tpu.dimension_semantics<parallel>], iteration_bounds = array<i64: 1>, scalar_prefetch = 0 : i64, scratch_operands = 0 : i64, tpu.core_type = #tpu.core_type<tc>, window_params = [{transform_indices = @transform_0, window_bounds = array<i64: 2, 32, 64>}, {pipeline_mode = #tpu.pipeline_mode<synchronous>, transform_indices = @transform_1, window_bounds = array<i64: 8, 32>}, {pipeline_mode = #tpu.pipeline_mode<synchronous>, transform_indices = @transform_2, window_bounds = array<i64: 4, 32>}, {pipeline_mode = #tpu.pipeline_mode<synchronous>, transform_indices = @transform_3, window_bounds = array<i64: 32, 128>}, {pipeline_mode = #tpu.pipeline_mode<synchronous>, transform_indices = @transform_4, window_bounds = array<i64: 1, 128>}, {pipeline_mode = #tpu.pipeline_mode<synchronous>, transform_indices = @transform_5, window_bounds = array<i64: 2, 32, 320>}, {pipeline_mode = #tpu.pipeline_mode<synchronous>, transform_indices = @transform_6, window_bounds = array<i64: 2, 128, 32>}, {pipeline_mode = #tpu.pipeline_mode<synchronous>, transform_indices = @transform_7, window_bounds = array<i64: 2, 544>}, {transform_indices = @transform_8, window_bounds = array<i64: 2, 8, 64>}]} {
    %c0 = arith.constant 0 : index
    %c0_0 = arith.constant 0 : index
    %c0_1 = arith.constant 0 : index
    %0 = vector.load %arg1[%c0, %c0_0, %c0_1] : memref<2x32x64xf32, #tpu.memory_space<vmem>>, vector<1x32x64xf32>
    %1 = vector.shape_cast %0 : vector<1x32x64xf32> to vector<32x64xf32>
    %2 = tpu.transpose %1, [1, 0] : vector<32x64xf32> -> vector<64x32xf32>
    %c1 = arith.constant 1 : index
    %c0_2 = arith.constant 0 : index
    %c0_3 = arith.constant 0 : index
    %3 = vector.load %arg1[%c1, %c0_2, %c0_3] : memref<2x32x64xf32, #tpu.memory_space<vmem>>, vector<1x32x64xf32>
    %4 = vector.shape_cast %3 : vector<1x32x64xf32> to vector<32x64xf32>
    %5 = tpu.transpose %4, [1, 0] : vector<32x64xf32> -> vector<64x32xf32>
    %6 = vector.shape_cast %2 : vector<64x32xf32> to vector<1x64x32xf32>
    %7 = vector.shape_cast %5 : vector<64x32xf32> to vector<1x64x32xf32>
    %8 = tpu.concatenate %6, %7 in 0 : vector<1x64x32xf32>, vector<1x64x32xf32> -> vector<2x64x32xf32>
    %c0_4 = arith.constant 0 : index
    %c0_5 = arith.constant 0 : index
    %9 = vector.load %arg3[%c0_4, %c0_5] : memref<4x32xf32, #tpu.memory_space<vmem>>, vector<1x32xf32>
    %10 = vector.shape_cast %9 : vector<1x32xf32> to vector<32xf32>
    %c1_6 = arith.constant 1 : index
    %c0_7 = arith.constant 0 : index
    %11 = vector.load %arg3[%c1_6, %c0_7] : memref<4x32xf32, #tpu.memory_space<vmem>>, vector<1x32xf32>
    %12 = vector.shape_cast %11 : vector<1x32xf32> to vector<32xf32>
    %cst = arith.constant dense<0.000000e+00> : vector<2x64xf32>
    %13 = vector.multi_reduction <add>, %8, %cst [2] : vector<2x64x32xf32> to vector<2x64xf32>
    %14 = vector.shape_cast %13 : vector<2x64xf32> to vector<2x64x1xf32>
    %cst_8 = arith.constant 3.200000e+01 : f32
    %15 = vector.broadcast %cst_8 : f32 to vector<2x64x1xf32>
    %16 = arith.divf %14, %15 : vector<2x64x1xf32>
    %17 = vector.broadcast %16 : vector<2x64x1xf32> to vector<2x64x32xf32>
    %18 = arith.subf %8, %17 : vector<2x64x32xf32>
    %19 = arith.mulf %18, %18 : vector<2x64x32xf32>
    %cst_9 = arith.constant dense<0.000000e+00> : vector<2x64xf32>
    %20 = vector.multi_reduction <add>, %19, %cst_9 [2] : vector<2x64x32xf32> to vector<2x64xf32>
    %21 = vector.shape_cast %20 : vector<2x64xf32> to vector<2x64x1xf32>
    %cst_10 = arith.constant 3.200000e+01 : f32
    %22 = vector.broadcast %cst_10 : f32 to vector<2x64x1xf32>
    %23 = arith.divf %21, %22 : vector<2x64x1xf32>
    %24 = vector.broadcast %16 : vector<2x64x1xf32> to vector<2x64x32xf32>
    %25 = arith.subf %8, %24 : vector<2x64x32xf32>
    %cst_11 = arith.constant 9.99999974E-6 : f32
    %26 = vector.broadcast %cst_11 : f32 to vector<2x64x1xf32>
    %27 = arith.addf %23, %26 : vector<2x64x1xf32>
    %28 = math.rsqrt %27 : vector<2x64x1xf32>
    %29 = vector.broadcast %28 : vector<2x64x1xf32> to vector<2x64x32xf32>
    %30 = arith.mulf %25, %29 : vector<2x64x32xf32>
    %31 = vector.shape_cast %10 : vector<32xf32> to vector<1x1x32xf32>
    %32 = vector.broadcast %31 : vector<1x1x32xf32> to vector<2x64x32xf32>
    %33 = arith.mulf %30, %32 : vector<2x64x32xf32>
    %34 = vector.shape_cast %12 : vector<32xf32> to vector<1x1x32xf32>
    %35 = vector.broadcast %34 : vector<1x1x32xf32> to vector<2x64x32xf32>
    %36 = arith.addf %33, %35 : vector<2x64x32xf32>
    %c0_12 = arith.constant 0 : index
    %c0_13 = arith.constant 0 : index
    %37 = vector.load %arg2[%c0_12, %c0_13] : memref<8x32xf32, #tpu.memory_space<vmem>>, vector<8x32xf32>
    %38 = vector.shape_cast %37 : vector<8x32xf32> to vector<1x8x32xf32>
    %39 = vector.shape_cast %38 : vector<1x8x32xf32> to vector<1x8x32xf32>
    %40 = vector.broadcast %39 : vector<1x8x32xf32> to vector<2x8x32xf32>
    %c0_14 = arith.constant 0 : index
    %c0_15 = arith.constant 0 : index
    %41 = vector.load %arg4[%c0_14, %c0_15] : memref<32x128xf32, #tpu.memory_space<vmem>>, vector<32x128xf32>
    %cst_16 = arith.constant dense<0.000000e+00> : vector<2x64x128xf32>
    %42 = tpu.matmul %36, %41, %cst_16 {dimension_numbers = #tpu.dot_dimension_numbers<[2], [0], [0, 1], [1], [0, 0, 0, 1, 1, 1], [], []>} : vector<2x64x32xf32>, vector<32x128xf32>, vector<2x64x128xf32> -> vector<2x64x128xf32>
    %c0_17 = arith.constant 0 : index
    %c0_18 = arith.constant 0 : index
    %43 = vector.load %arg5[%c0_17, %c0_18] : memref<1x128xf32, #tpu.memory_space<vmem>>, vector<1x128xf32>
    %44 = vector.shape_cast %43 : vector<1x128xf32> to vector<1x1x128xf32>
    %45 = vector.broadcast %44 : vector<1x1x128xf32> to vector<2x64x128xf32>
    %46 = arith.addf %42, %45 : vector<2x64x128xf32>
    %c0_19 = arith.constant 0 : index
    %c0_20 = arith.constant 0 : index
    %c0_21 = arith.constant 0 : index
    %47 = vector.load %arg6[%c0_19, %c0_20, %c0_21] : memref<2x32x320xf32, #tpu.memory_space<vmem>>, vector<1x32x320xf32>
    %48 = vector.shape_cast %47 : vector<1x32x320xf32> to vector<32x320xf32>
    %c0_22 = arith.constant 0 : index
    %c0_23 = arith.constant 0 : index
    %49 = vector.load %arg8[%c0_22, %c0_23] : memref<2x544xf32, #tpu.memory_space<vmem>>, vector<1x544xf32>
    %50 = vector.shape_cast %49 : vector<1x544xf32> to vector<544xf32>
    %51 = vector.extract_strided_slice %46 {offsets = [0, 0, 0], sizes = [2, 64, 64], strides = [1, 1, 1]} : vector<2x64x128xf32> to vector<2x64x64xf32>
    %52 = vector.extract_strided_slice %51 {offsets = [0, 0, 0], sizes = [2, 64, 32], strides = [1, 1, 1]} : vector<2x64x64xf32> to vector<2x64x32xf32>
    %53 = vector.extract_strided_slice %51 {offsets = [0, 0, 32], sizes = [2, 64, 32], strides = [1, 1, 1]} : vector<2x64x64xf32> to vector<2x64x32xf32>
    %54 = vector.extract_strided_slice %50 {offsets = [0], sizes = [32], strides = [1]} : vector<544xf32> to vector<32xf32>
    %55 = vector.extract_strided_slice %50 {offsets = [32], sizes = [32], strides = [1]} : vector<544xf32> to vector<32xf32>
    %cst_24 = arith.constant dense<0.000000e+00> : vector<2x8xf32>
    %56 = vector.multi_reduction <add>, %40, %cst_24 [2] : vector<2x8x32xf32> to vector<2x8xf32>
    %57 = vector.shape_cast %56 : vector<2x8xf32> to vector<2x8x1xf32>
    %cst_25 = arith.constant 3.200000e+01 : f32
    %58 = vector.broadcast %cst_25 : f32 to vector<2x8x1xf32>
    %59 = arith.divf %57, %58 : vector<2x8x1xf32>
    %60 = vector.broadcast %59 : vector<2x8x1xf32> to vector<2x8x32xf32>
    %61 = arith.subf %40, %60 : vector<2x8x32xf32>
    %62 = arith.mulf %61, %61 : vector<2x8x32xf32>
    %cst_26 = arith.constant dense<0.000000e+00> : vector<2x8xf32>
    %63 = vector.multi_reduction <add>, %62, %cst_26 [2] : vector<2x8x32xf32> to vector<2x8xf32>
    %64 = vector.shape_cast %63 : vector<2x8xf32> to vector<2x8x1xf32>
    %cst_27 = arith.constant 3.200000e+01 : f32
    %65 = vector.broadcast %cst_27 : f32 to vector<2x8x1xf32>
    %66 = arith.divf %64, %65 : vector<2x8x1xf32>
    %67 = vector.broadcast %59 : vector<2x8x1xf32> to vector<2x8x32xf32>
    %68 = arith.subf %40, %67 : vector<2x8x32xf32>
    %cst_28 = arith.constant 9.99999974E-6 : f32
    %69 = vector.broadcast %cst_28 : f32 to vector<2x8x1xf32>
    %70 = arith.addf %66, %69 : vector<2x8x1xf32>
    %71 = math.rsqrt %70 : vector<2x8x1xf32>
    %72 = vector.broadcast %71 : vector<2x8x1xf32> to vector<2x8x32xf32>
    %73 = arith.mulf %68, %72 : vector<2x8x32xf32>
    %74 = vector.shape_cast %54 : vector<32xf32> to vector<1x1x32xf32>
    %75 = vector.broadcast %74 : vector<1x1x32xf32> to vector<2x8x32xf32>
    %76 = arith.mulf %73, %75 : vector<2x8x32xf32>
    %77 = vector.shape_cast %55 : vector<32xf32> to vector<1x1x32xf32>
    %78 = vector.broadcast %77 : vector<1x1x32xf32> to vector<2x8x32xf32>
    %79 = arith.addf %76, %78 : vector<2x8x32xf32>
    %80 = vector.extract_strided_slice %48 {offsets = [0, 224], sizes = [32, 32], strides = [1, 1]} : vector<32x320xf32> to vector<32x32xf32>
    %cst_29 = arith.constant dense<0.000000e+00> : vector<2x8x32xf32>
    %81 = tpu.matmul %79, %80, %cst_29 {dimension_numbers = #tpu.dot_dimension_numbers<[2], [0], [0, 1], [1], [0, 0, 0, 1, 1, 1], [], []>} : vector<2x8x32xf32>, vector<32x32xf32>, vector<2x8x32xf32> -> vector<2x8x32xf32>
    %82 = vector.extract_strided_slice %50 {offsets = [192], sizes = [32], strides = [1]} : vector<544xf32> to vector<32xf32>
    %83 = vector.shape_cast %82 : vector<32xf32> to vector<1x1x32xf32>
    %84 = vector.broadcast %83 : vector<1x1x32xf32> to vector<2x8x32xf32>
    %85 = arith.addf %81, %84 : vector<2x8x32xf32>
    %cst_30 = arith.constant 0.353553385 : f32
    %86 = vector.broadcast %cst_30 : f32 to vector<2x8x32xf32>
    %87 = arith.mulf %85, %86 : vector<2x8x32xf32>
    %88 = vector.extract_strided_slice %48 {offsets = [0, 256], sizes = [32, 32], strides = [1, 1]} : vector<32x320xf32> to vector<32x32xf32>
    %89 = vector.extract_strided_slice %50 {offsets = [224], sizes = [32], strides = [1]} : vector<544xf32> to vector<32xf32>
    %90 = vector.extract_strided_slice %87 {offsets = [0, 0, 0], sizes = [2, 8, 8], strides = [1, 1, 1]} : vector<2x8x32xf32> to vector<2x8x8xf32>
    %91 = vector.extract_strided_slice %52 {offsets = [0, 0, 0], sizes = [2, 64, 8], strides = [1, 1, 1]} : vector<2x64x32xf32> to vector<2x64x8xf32>
    %cst_31 = arith.constant dense<0.000000e+00> : vector<2x8x64xf32>
    %92 = tpu.matmul %90, %91, %cst_31 {dimension_numbers = #tpu.dot_dimension_numbers<[2], [2], [1], [1], [0, 0, 0, 1, 1, 1], [0], [0]>} : vector<2x8x8xf32>, vector<2x64x8xf32>, vector<2x8x64xf32> -> vector<2x8x64xf32>
    %cst_32 = arith.constant dense<0xFF800000> : vector<2x8xf32>
    %93 = vector.multi_reduction <maximumf>, %92, %cst_32 [2] : vector<2x8x64xf32> to vector<2x8xf32>
    %94 = vector.shape_cast %93 : vector<2x8xf32> to vector<2x8x1xf32>
    %95 = vector.broadcast %94 : vector<2x8x1xf32> to vector<2x8x64xf32>
    %96 = arith.subf %92, %95 : vector<2x8x64xf32>
    %97 = math.exp %96 : vector<2x8x64xf32>
    %cst_33 = arith.constant dense<0.000000e+00> : vector<2x8xf32>
    %98 = vector.multi_reduction <add>, %97, %cst_33 [2] : vector<2x8x64xf32> to vector<2x8xf32>
    %99 = vector.shape_cast %98 : vector<2x8xf32> to vector<2x8x1xf32>
    %100 = vector.broadcast %99 : vector<2x8x1xf32> to vector<2x8x64xf32>
    %101 = arith.divf %97, %100 : vector<2x8x64xf32>
    %102 = vector.extract_strided_slice %53 {offsets = [0, 0, 0], sizes = [2, 64, 8], strides = [1, 1, 1]} : vector<2x64x32xf32> to vector<2x64x8xf32>
    %cst_34 = arith.constant dense<0.000000e+00> : vector<2x8x8xf32>
    %103 = tpu.matmul %101, %102, %cst_34 {dimension_numbers = #tpu.dot_dimension_numbers<[2], [1], [1], [2], [0, 0, 0, 1, 1, 2], [0], [0]>} : vector<2x8x64xf32>, vector<2x64x8xf32>, vector<2x8x8xf32> -> vector<2x8x8xf32>
    %104 = vector.extract_strided_slice %88 {offsets = [0, 0], sizes = [8, 32], strides = [1, 1]} : vector<32x32xf32> to vector<8x32xf32>
    %cst_35 = arith.constant dense<0.000000e+00> : vector<2x8x32xf32>
    %105 = tpu.matmul %103, %104, %cst_35 {dimension_numbers = #tpu.dot_dimension_numbers<[2], [0], [0, 1], [1], [0, 0, 0, 1, 1, 1], [], []>} : vector<2x8x8xf32>, vector<8x32xf32>, vector<2x8x32xf32> -> vector<2x8x32xf32>
    %106 = vector.extract_strided_slice %87 {offsets = [0, 0, 8], sizes = [2, 8, 8], strides = [1, 1, 1]} : vector<2x8x32xf32> to vector<2x8x8xf32>
    %107 = vector.extract_strided_slice %52 {offsets = [0, 0, 8], sizes = [2, 64, 8], strides = [1, 1, 1]} : vector<2x64x32xf32> to vector<2x64x8xf32>
    %cst_36 = arith.constant dense<0.000000e+00> : vector<2x8x64xf32>
    %108 = tpu.matmul %106, %107, %cst_36 {dimension_numbers = #tpu.dot_dimension_numbers<[2], [2], [1], [1], [0, 0, 0, 1, 1, 1], [0], [0]>} : vector<2x8x8xf32>, vector<2x64x8xf32>, vector<2x8x64xf32> -> vector<2x8x64xf32>
    %cst_37 = arith.constant dense<0xFF800000> : vector<2x8xf32>
    %109 = vector.multi_reduction <maximumf>, %108, %cst_37 [2] : vector<2x8x64xf32> to vector<2x8xf32>
    %110 = vector.shape_cast %109 : vector<2x8xf32> to vector<2x8x1xf32>
    %111 = vector.broadcast %110 : vector<2x8x1xf32> to vector<2x8x64xf32>
    %112 = arith.subf %108, %111 : vector<2x8x64xf32>
    %113 = math.exp %112 : vector<2x8x64xf32>
    %cst_38 = arith.constant dense<0.000000e+00> : vector<2x8xf32>
    %114 = vector.multi_reduction <add>, %113, %cst_38 [2] : vector<2x8x64xf32> to vector<2x8xf32>
    %115 = vector.shape_cast %114 : vector<2x8xf32> to vector<2x8x1xf32>
    %116 = vector.broadcast %115 : vector<2x8x1xf32> to vector<2x8x64xf32>
    %117 = arith.divf %113, %116 : vector<2x8x64xf32>
    %118 = vector.extract_strided_slice %53 {offsets = [0, 0, 8], sizes = [2, 64, 8], strides = [1, 1, 1]} : vector<2x64x32xf32> to vector<2x64x8xf32>
    %cst_39 = arith.constant dense<0.000000e+00> : vector<2x8x8xf32>
    %119 = tpu.matmul %117, %118, %cst_39 {dimension_numbers = #tpu.dot_dimension_numbers<[2], [1], [1], [2], [0, 0, 0, 1, 1, 2], [0], [0]>} : vector<2x8x64xf32>, vector<2x64x8xf32>, vector<2x8x8xf32> -> vector<2x8x8xf32>
    %120 = vector.extract_strided_slice %88 {offsets = [8, 0], sizes = [8, 32], strides = [1, 1]} : vector<32x32xf32> to vector<8x32xf32>
    %cst_40 = arith.constant dense<0.000000e+00> : vector<2x8x32xf32>
    %121 = tpu.matmul %119, %120, %cst_40 {dimension_numbers = #tpu.dot_dimension_numbers<[2], [0], [0, 1], [1], [0, 0, 0, 1, 1, 1], [], []>} : vector<2x8x8xf32>, vector<8x32xf32>, vector<2x8x32xf32> -> vector<2x8x32xf32>
    %122 = arith.addf %105, %121 : vector<2x8x32xf32>
    %123 = vector.extract_strided_slice %87 {offsets = [0, 0, 16], sizes = [2, 8, 8], strides = [1, 1, 1]} : vector<2x8x32xf32> to vector<2x8x8xf32>
    %124 = vector.extract_strided_slice %52 {offsets = [0, 0, 16], sizes = [2, 64, 8], strides = [1, 1, 1]} : vector<2x64x32xf32> to vector<2x64x8xf32>
    %cst_41 = arith.constant dense<0.000000e+00> : vector<2x8x64xf32>
    %125 = tpu.matmul %123, %124, %cst_41 {dimension_numbers = #tpu.dot_dimension_numbers<[2], [2], [1], [1], [0, 0, 0, 1, 1, 1], [0], [0]>} : vector<2x8x8xf32>, vector<2x64x8xf32>, vector<2x8x64xf32> -> vector<2x8x64xf32>
    %cst_42 = arith.constant dense<0xFF800000> : vector<2x8xf32>
    %126 = vector.multi_reduction <maximumf>, %125, %cst_42 [2] : vector<2x8x64xf32> to vector<2x8xf32>
    %127 = vector.shape_cast %126 : vector<2x8xf32> to vector<2x8x1xf32>
    %128 = vector.broadcast %127 : vector<2x8x1xf32> to vector<2x8x64xf32>
    %129 = arith.subf %125, %128 : vector<2x8x64xf32>
    %130 = math.exp %129 : vector<2x8x64xf32>
    %cst_43 = arith.constant dense<0.000000e+00> : vector<2x8xf32>
    %131 = vector.multi_reduction <add>, %130, %cst_43 [2] : vector<2x8x64xf32> to vector<2x8xf32>
    %132 = vector.shape_cast %131 : vector<2x8xf32> to vector<2x8x1xf32>
    %133 = vector.broadcast %132 : vector<2x8x1xf32> to vector<2x8x64xf32>
    %134 = arith.divf %130, %133 : vector<2x8x64xf32>
    %135 = vector.extract_strided_slice %53 {offsets = [0, 0, 16], sizes = [2, 64, 8], strides = [1, 1, 1]} : vector<2x64x32xf32> to vector<2x64x8xf32>
    %cst_44 = arith.constant dense<0.000000e+00> : vector<2x8x8xf32>
    %136 = tpu.matmul %134, %135, %cst_44 {dimension_numbers = #tpu.dot_dimension_numbers<[2], [1], [1], [2], [0, 0, 0, 1, 1, 2], [0], [0]>} : vector<2x8x64xf32>, vector<2x64x8xf32>, vector<2x8x8xf32> -> vector<2x8x8xf32>
    %137 = vector.extract_strided_slice %88 {offsets = [16, 0], sizes = [8, 32], strides = [1, 1]} : vector<32x32xf32> to vector<8x32xf32>
    %cst_45 = arith.constant dense<0.000000e+00> : vector<2x8x32xf32>
    %138 = tpu.matmul %136, %137, %cst_45 {dimension_numbers = #tpu.dot_dimension_numbers<[2], [0], [0, 1], [1], [0, 0, 0, 1, 1, 1], [], []>} : vector<2x8x8xf32>, vector<8x32xf32>, vector<2x8x32xf32> -> vector<2x8x32xf32>
    %139 = arith.addf %122, %138 : vector<2x8x32xf32>
    %140 = vector.extract_strided_slice %87 {offsets = [0, 0, 24], sizes = [2, 8, 8], strides = [1, 1, 1]} : vector<2x8x32xf32> to vector<2x8x8xf32>
    %141 = vector.extract_strided_slice %52 {offsets = [0, 0, 24], sizes = [2, 64, 8], strides = [1, 1, 1]} : vector<2x64x32xf32> to vector<2x64x8xf32>
    %cst_46 = arith.constant dense<0.000000e+00> : vector<2x8x64xf32>
    %142 = tpu.matmul %140, %141, %cst_46 {dimension_numbers = #tpu.dot_dimension_numbers<[2], [2], [1], [1], [0, 0, 0, 1, 1, 1], [0], [0]>} : vector<2x8x8xf32>, vector<2x64x8xf32>, vector<2x8x64xf32> -> vector<2x8x64xf32>
    %cst_47 = arith.constant dense<0xFF800000> : vector<2x8xf32>
    %143 = vector.multi_reduction <maximumf>, %142, %cst_47 [2] : vector<2x8x64xf32> to vector<2x8xf32>
    %144 = vector.shape_cast %143 : vector<2x8xf32> to vector<2x8x1xf32>
    %145 = vector.broadcast %144 : vector<2x8x1xf32> to vector<2x8x64xf32>
    %146 = arith.subf %142, %145 : vector<2x8x64xf32>
    %147 = math.exp %146 : vector<2x8x64xf32>
    %cst_48 = arith.constant dense<0.000000e+00> : vector<2x8xf32>
    %148 = vector.multi_reduction <add>, %147, %cst_48 [2] : vector<2x8x64xf32> to vector<2x8xf32>
    %149 = vector.shape_cast %148 : vector<2x8xf32> to vector<2x8x1xf32>
    %150 = vector.broadcast %149 : vector<2x8x1xf32> to vector<2x8x64xf32>
    %151 = arith.divf %147, %150 : vector<2x8x64xf32>
    %152 = vector.extract_strided_slice %53 {offsets = [0, 0, 24], sizes = [2, 64, 8], strides = [1, 1, 1]} : vector<2x64x32xf32> to vector<2x64x8xf32>
    %cst_49 = arith.constant dense<0.000000e+00> : vector<2x8x8xf32>
    %153 = tpu.matmul %151, %152, %cst_49 {dimension_numbers = #tpu.dot_dimension_numbers<[2], [1], [1], [2], [0, 0, 0, 1, 1, 2], [0], [0]>} : vector<2x8x64xf32>, vector<2x64x8xf32>, vector<2x8x8xf32> -> vector<2x8x8xf32>
    %154 = vector.extract_strided_slice %88 {offsets = [24, 0], sizes = [8, 32], strides = [1, 1]} : vector<32x32xf32> to vector<8x32xf32>
    %cst_50 = arith.constant dense<0.000000e+00> : vector<2x8x32xf32>
    %155 = tpu.matmul %153, %154, %cst_50 {dimension_numbers = #tpu.dot_dimension_numbers<[2], [0], [0, 1], [1], [0, 0, 0, 1, 1, 1], [], []>} : vector<2x8x8xf32>, vector<8x32xf32>, vector<2x8x32xf32> -> vector<2x8x32xf32>
    %156 = arith.addf %139, %155 : vector<2x8x32xf32>
    %157 = vector.shape_cast %89 : vector<32xf32> to vector<1x1x32xf32>
    %158 = vector.broadcast %157 : vector<1x1x32xf32> to vector<2x8x32xf32>
    %159 = arith.addf %156, %158 : vector<2x8x32xf32>
    %160 = arith.addf %40, %159 : vector<2x8x32xf32>
    %161 = vector.extract_strided_slice %50 {offsets = [64], sizes = [32], strides = [1]} : vector<544xf32> to vector<32xf32>
    %162 = vector.extract_strided_slice %50 {offsets = [96], sizes = [32], strides = [1]} : vector<544xf32> to vector<32xf32>
    %cst_51 = arith.constant dense<0.000000e+00> : vector<2x8xf32>
    %163 = vector.multi_reduction <add>, %160, %cst_51 [2] : vector<2x8x32xf32> to vector<2x8xf32>
    %164 = vector.shape_cast %163 : vector<2x8xf32> to vector<2x8x1xf32>
    %cst_52 = arith.constant 3.200000e+01 : f32
    %165 = vector.broadcast %cst_52 : f32 to vector<2x8x1xf32>
    %166 = arith.divf %164, %165 : vector<2x8x1xf32>
    %167 = vector.broadcast %166 : vector<2x8x1xf32> to vector<2x8x32xf32>
    %168 = arith.subf %160, %167 : vector<2x8x32xf32>
    %169 = arith.mulf %168, %168 : vector<2x8x32xf32>
    %cst_53 = arith.constant dense<0.000000e+00> : vector<2x8xf32>
    %170 = vector.multi_reduction <add>, %169, %cst_53 [2] : vector<2x8x32xf32> to vector<2x8xf32>
    %171 = vector.shape_cast %170 : vector<2x8xf32> to vector<2x8x1xf32>
    %cst_54 = arith.constant 3.200000e+01 : f32
    %172 = vector.broadcast %cst_54 : f32 to vector<2x8x1xf32>
    %173 = arith.divf %171, %172 : vector<2x8x1xf32>
    %174 = vector.broadcast %166 : vector<2x8x1xf32> to vector<2x8x32xf32>
    %175 = arith.subf %160, %174 : vector<2x8x32xf32>
    %cst_55 = arith.constant 9.99999974E-6 : f32
    %176 = vector.broadcast %cst_55 : f32 to vector<2x8x1xf32>
    %177 = arith.addf %173, %176 : vector<2x8x1xf32>
    %178 = math.rsqrt %177 : vector<2x8x1xf32>
    %179 = vector.broadcast %178 : vector<2x8x1xf32> to vector<2x8x32xf32>
    %180 = arith.mulf %175, %179 : vector<2x8x32xf32>
    %181 = vector.shape_cast %161 : vector<32xf32> to vector<1x1x32xf32>
    %182 = vector.broadcast %181 : vector<1x1x32xf32> to vector<2x8x32xf32>
    %183 = arith.mulf %180, %182 : vector<2x8x32xf32>
    %184 = vector.shape_cast %162 : vector<32xf32> to vector<1x1x32xf32>
    %185 = vector.broadcast %184 : vector<1x1x32xf32> to vector<2x8x32xf32>
    %186 = arith.addf %183, %185 : vector<2x8x32xf32>
    %187 = vector.extract_strided_slice %48 {offsets = [0, 128], sizes = [32, 96], strides = [1, 1]} : vector<32x320xf32> to vector<32x96xf32>
    %cst_56 = arith.constant dense<0.000000e+00> : vector<2x8x96xf32>
    %188 = tpu.matmul %186, %187, %cst_56 {dimension_numbers = #tpu.dot_dimension_numbers<[2], [0], [0, 1], [1], [0, 0, 0, 1, 1, 1], [], []>} : vector<2x8x32xf32>, vector<32x96xf32>, vector<2x8x96xf32> -> vector<2x8x96xf32>
    %189 = vector.extract_strided_slice %50 {offsets = [256], sizes = [96], strides = [1]} : vector<544xf32> to vector<96xf32>
    %190 = vector.shape_cast %189 : vector<96xf32> to vector<1x1x96xf32>
    %191 = vector.broadcast %190 : vector<1x1x96xf32> to vector<2x8x96xf32>
    %192 = arith.addf %188, %191 : vector<2x8x96xf32>
    %193 = vector.extract_strided_slice %192 {offsets = [0, 0, 0], sizes = [2, 8, 32], strides = [1, 1, 1]} : vector<2x8x96xf32> to vector<2x8x32xf32>
    %cst_57 = arith.constant 0.353553385 : f32
    %194 = vector.broadcast %cst_57 : f32 to vector<2x8x32xf32>
    %195 = arith.mulf %193, %194 : vector<2x8x32xf32>
    %196 = vector.extract_strided_slice %192 {offsets = [0, 0, 32], sizes = [2, 8, 32], strides = [1, 1, 1]} : vector<2x8x96xf32> to vector<2x8x32xf32>
    %197 = vector.extract_strided_slice %192 {offsets = [0, 0, 64], sizes = [2, 8, 32], strides = [1, 1, 1]} : vector<2x8x96xf32> to vector<2x8x32xf32>
    %198 = vector.extract_strided_slice %48 {offsets = [0, 288], sizes = [32, 32], strides = [1, 1]} : vector<32x320xf32> to vector<32x32xf32>
    %199 = vector.extract_strided_slice %50 {offsets = [352], sizes = [32], strides = [1]} : vector<544xf32> to vector<32xf32>
    %200 = vector.extract_strided_slice %195 {offsets = [0, 0, 0], sizes = [2, 8, 8], strides = [1, 1, 1]} : vector<2x8x32xf32> to vector<2x8x8xf32>
    %201 = vector.extract_strided_slice %196 {offsets = [0, 0, 0], sizes = [2, 8, 8], strides = [1, 1, 1]} : vector<2x8x32xf32> to vector<2x8x8xf32>
    %cst_58 = arith.constant dense<0.000000e+00> : vector<2x8x8xf32>
    %202 = tpu.matmul %200, %201, %cst_58 {dimension_numbers = #tpu.dot_dimension_numbers<[2], [2], [1], [1], [0, 0, 0, 1, 1, 1], [0], [0]>} : vector<2x8x8xf32>, vector<2x8x8xf32>, vector<2x8x8xf32> -> vector<2x8x8xf32>
    %cst_59 = arith.constant dense<0xFF800000> : vector<2x8xf32>
    %203 = vector.multi_reduction <maximumf>, %202, %cst_59 [2] : vector<2x8x8xf32> to vector<2x8xf32>
    %204 = vector.shape_cast %203 : vector<2x8xf32> to vector<2x8x1xf32>
    %205 = vector.broadcast %204 : vector<2x8x1xf32> to vector<2x8x8xf32>
    %206 = arith.subf %202, %205 : vector<2x8x8xf32>
    %207 = math.exp %206 : vector<2x8x8xf32>
    %cst_60 = arith.constant dense<0.000000e+00> : vector<2x8xf32>
    %208 = vector.multi_reduction <add>, %207, %cst_60 [2] : vector<2x8x8xf32> to vector<2x8xf32>
    %209 = vector.shape_cast %208 : vector<2x8xf32> to vector<2x8x1xf32>
    %210 = vector.broadcast %209 : vector<2x8x1xf32> to vector<2x8x8xf32>
    %211 = arith.divf %207, %210 : vector<2x8x8xf32>
    %212 = vector.extract_strided_slice %197 {offsets = [0, 0, 0], sizes = [2, 8, 8], strides = [1, 1, 1]} : vector<2x8x32xf32> to vector<2x8x8xf32>
    %cst_61 = arith.constant dense<0.000000e+00> : vector<2x8x8xf32>
    %213 = tpu.matmul %211, %212, %cst_61 {dimension_numbers = #tpu.dot_dimension_numbers<[2], [1], [1], [2], [0, 0, 0, 1, 1, 2], [0], [0]>} : vector<2x8x8xf32>, vector<2x8x8xf32>, vector<2x8x8xf32> -> vector<2x8x8xf32>
    %214 = vector.extract_strided_slice %198 {offsets = [0, 0], sizes = [8, 32], strides = [1, 1]} : vector<32x32xf32> to vector<8x32xf32>
    %cst_62 = arith.constant dense<0.000000e+00> : vector<2x8x32xf32>
    %215 = tpu.matmul %213, %214, %cst_62 {dimension_numbers = #tpu.dot_dimension_numbers<[2], [0], [0, 1], [1], [0, 0, 0, 1, 1, 1], [], []>} : vector<2x8x8xf32>, vector<8x32xf32>, vector<2x8x32xf32> -> vector<2x8x32xf32>
    %216 = vector.extract_strided_slice %195 {offsets = [0, 0, 8], sizes = [2, 8, 8], strides = [1, 1, 1]} : vector<2x8x32xf32> to vector<2x8x8xf32>
    %217 = vector.extract_strided_slice %196 {offsets = [0, 0, 8], sizes = [2, 8, 8], strides = [1, 1, 1]} : vector<2x8x32xf32> to vector<2x8x8xf32>
    %cst_63 = arith.constant dense<0.000000e+00> : vector<2x8x8xf32>
    %218 = tpu.matmul %216, %217, %cst_63 {dimension_numbers = #tpu.dot_dimension_numbers<[2], [2], [1], [1], [0, 0, 0, 1, 1, 1], [0], [0]>} : vector<2x8x8xf32>, vector<2x8x8xf32>, vector<2x8x8xf32> -> vector<2x8x8xf32>
    %cst_64 = arith.constant dense<0xFF800000> : vector<2x8xf32>
    %219 = vector.multi_reduction <maximumf>, %218, %cst_64 [2] : vector<2x8x8xf32> to vector<2x8xf32>
    %220 = vector.shape_cast %219 : vector<2x8xf32> to vector<2x8x1xf32>
    %221 = vector.broadcast %220 : vector<2x8x1xf32> to vector<2x8x8xf32>
    %222 = arith.subf %218, %221 : vector<2x8x8xf32>
    %223 = math.exp %222 : vector<2x8x8xf32>
    %cst_65 = arith.constant dense<0.000000e+00> : vector<2x8xf32>
    %224 = vector.multi_reduction <add>, %223, %cst_65 [2] : vector<2x8x8xf32> to vector<2x8xf32>
    %225 = vector.shape_cast %224 : vector<2x8xf32> to vector<2x8x1xf32>
    %226 = vector.broadcast %225 : vector<2x8x1xf32> to vector<2x8x8xf32>
    %227 = arith.divf %223, %226 : vector<2x8x8xf32>
    %228 = vector.extract_strided_slice %197 {offsets = [0, 0, 8], sizes = [2, 8, 8], strides = [1, 1, 1]} : vector<2x8x32xf32> to vector<2x8x8xf32>
    %cst_66 = arith.constant dense<0.000000e+00> : vector<2x8x8xf32>
    %229 = tpu.matmul %227, %228, %cst_66 {dimension_numbers = #tpu.dot_dimension_numbers<[2], [1], [1], [2], [0, 0, 0, 1, 1, 2], [0], [0]>} : vector<2x8x8xf32>, vector<2x8x8xf32>, vector<2x8x8xf32> -> vector<2x8x8xf32>
    %230 = vector.extract_strided_slice %198 {offsets = [8, 0], sizes = [8, 32], strides = [1, 1]} : vector<32x32xf32> to vector<8x32xf32>
    %cst_67 = arith.constant dense<0.000000e+00> : vector<2x8x32xf32>
    %231 = tpu.matmul %229, %230, %cst_67 {dimension_numbers = #tpu.dot_dimension_numbers<[2], [0], [0, 1], [1], [0, 0, 0, 1, 1, 1], [], []>} : vector<2x8x8xf32>, vector<8x32xf32>, vector<2x8x32xf32> -> vector<2x8x32xf32>
    %232 = arith.addf %215, %231 : vector<2x8x32xf32>
    %233 = vector.extract_strided_slice %195 {offsets = [0, 0, 16], sizes = [2, 8, 8], strides = [1, 1, 1]} : vector<2x8x32xf32> to vector<2x8x8xf32>
    %234 = vector.extract_strided_slice %196 {offsets = [0, 0, 16], sizes = [2, 8, 8], strides = [1, 1, 1]} : vector<2x8x32xf32> to vector<2x8x8xf32>
    %cst_68 = arith.constant dense<0.000000e+00> : vector<2x8x8xf32>
    %235 = tpu.matmul %233, %234, %cst_68 {dimension_numbers = #tpu.dot_dimension_numbers<[2], [2], [1], [1], [0, 0, 0, 1, 1, 1], [0], [0]>} : vector<2x8x8xf32>, vector<2x8x8xf32>, vector<2x8x8xf32> -> vector<2x8x8xf32>
    %cst_69 = arith.constant dense<0xFF800000> : vector<2x8xf32>
    %236 = vector.multi_reduction <maximumf>, %235, %cst_69 [2] : vector<2x8x8xf32> to vector<2x8xf32>
    %237 = vector.shape_cast %236 : vector<2x8xf32> to vector<2x8x1xf32>
    %238 = vector.broadcast %237 : vector<2x8x1xf32> to vector<2x8x8xf32>
    %239 = arith.subf %235, %238 : vector<2x8x8xf32>
    %240 = math.exp %239 : vector<2x8x8xf32>
    %cst_70 = arith.constant dense<0.000000e+00> : vector<2x8xf32>
    %241 = vector.multi_reduction <add>, %240, %cst_70 [2] : vector<2x8x8xf32> to vector<2x8xf32>
    %242 = vector.shape_cast %241 : vector<2x8xf32> to vector<2x8x1xf32>
    %243 = vector.broadcast %242 : vector<2x8x1xf32> to vector<2x8x8xf32>
    %244 = arith.divf %240, %243 : vector<2x8x8xf32>
    %245 = vector.extract_strided_slice %197 {offsets = [0, 0, 16], sizes = [2, 8, 8], strides = [1, 1, 1]} : vector<2x8x32xf32> to vector<2x8x8xf32>
    %cst_71 = arith.constant dense<0.000000e+00> : vector<2x8x8xf32>
    %246 = tpu.matmul %244, %245, %cst_71 {dimension_numbers = #tpu.dot_dimension_numbers<[2], [1], [1], [2], [0, 0, 0, 1, 1, 2], [0], [0]>} : vector<2x8x8xf32>, vector<2x8x8xf32>, vector<2x8x8xf32> -> vector<2x8x8xf32>
    %247 = vector.extract_strided_slice %198 {offsets = [16, 0], sizes = [8, 32], strides = [1, 1]} : vector<32x32xf32> to vector<8x32xf32>
    %cst_72 = arith.constant dense<0.000000e+00> : vector<2x8x32xf32>
    %248 = tpu.matmul %246, %247, %cst_72 {dimension_numbers = #tpu.dot_dimension_numbers<[2], [0], [0, 1], [1], [0, 0, 0, 1, 1, 1], [], []>} : vector<2x8x8xf32>, vector<8x32xf32>, vector<2x8x32xf32> -> vector<2x8x32xf32>
    %249 = arith.addf %232, %248 : vector<2x8x32xf32>
    %250 = vector.extract_strided_slice %195 {offsets = [0, 0, 24], sizes = [2, 8, 8], strides = [1, 1, 1]} : vector<2x8x32xf32> to vector<2x8x8xf32>
    %251 = vector.extract_strided_slice %196 {offsets = [0, 0, 24], sizes = [2, 8, 8], strides = [1, 1, 1]} : vector<2x8x32xf32> to vector<2x8x8xf32>
    %cst_73 = arith.constant dense<0.000000e+00> : vector<2x8x8xf32>
    %252 = tpu.matmul %250, %251, %cst_73 {dimension_numbers = #tpu.dot_dimension_numbers<[2], [2], [1], [1], [0, 0, 0, 1, 1, 1], [0], [0]>} : vector<2x8x8xf32>, vector<2x8x8xf32>, vector<2x8x8xf32> -> vector<2x8x8xf32>
    %cst_74 = arith.constant dense<0xFF800000> : vector<2x8xf32>
    %253 = vector.multi_reduction <maximumf>, %252, %cst_74 [2] : vector<2x8x8xf32> to vector<2x8xf32>
    %254 = vector.shape_cast %253 : vector<2x8xf32> to vector<2x8x1xf32>
    %255 = vector.broadcast %254 : vector<2x8x1xf32> to vector<2x8x8xf32>
    %256 = arith.subf %252, %255 : vector<2x8x8xf32>
    %257 = math.exp %256 : vector<2x8x8xf32>
    %cst_75 = arith.constant dense<0.000000e+00> : vector<2x8xf32>
    %258 = vector.multi_reduction <add>, %257, %cst_75 [2] : vector<2x8x8xf32> to vector<2x8xf32>
    %259 = vector.shape_cast %258 : vector<2x8xf32> to vector<2x8x1xf32>
    %260 = vector.broadcast %259 : vector<2x8x1xf32> to vector<2x8x8xf32>
    %261 = arith.divf %257, %260 : vector<2x8x8xf32>
    %262 = vector.extract_strided_slice %197 {offsets = [0, 0, 24], sizes = [2, 8, 8], strides = [1, 1, 1]} : vector<2x8x32xf32> to vector<2x8x8xf32>
    %cst_76 = arith.constant dense<0.000000e+00> : vector<2x8x8xf32>
    %263 = tpu.matmul %261, %262, %cst_76 {dimension_numbers = #tpu.dot_dimension_numbers<[2], [1], [1], [2], [0, 0, 0, 1, 1, 2], [0], [0]>} : vector<2x8x8xf32>, vector<2x8x8xf32>, vector<2x8x8xf32> -> vector<2x8x8xf32>
    %264 = vector.extract_strided_slice %198 {offsets = [24, 0], sizes = [8, 32], strides = [1, 1]} : vector<32x32xf32> to vector<8x32xf32>
    %cst_77 = arith.constant dense<0.000000e+00> : vector<2x8x32xf32>
    %265 = tpu.matmul %263, %264, %cst_77 {dimension_numbers = #tpu.dot_dimension_numbers<[2], [0], [0, 1], [1], [0, 0, 0, 1, 1, 1], [], []>} : vector<2x8x8xf32>, vector<8x32xf32>, vector<2x8x32xf32> -> vector<2x8x32xf32>
    %266 = arith.addf %249, %265 : vector<2x8x32xf32>
    %267 = vector.shape_cast %199 : vector<32xf32> to vector<1x1x32xf32>
    %268 = vector.broadcast %267 : vector<1x1x32xf32> to vector<2x8x32xf32>
    %269 = arith.addf %266, %268 : vector<2x8x32xf32>
    %270 = arith.addf %160, %269 : vector<2x8x32xf32>
    %271 = vector.extract_strided_slice %50 {offsets = [128], sizes = [32], strides = [1]} : vector<544xf32> to vector<32xf32>
    %272 = vector.extract_strided_slice %50 {offsets = [160], sizes = [32], strides = [1]} : vector<544xf32> to vector<32xf32>
    %cst_78 = arith.constant dense<0.000000e+00> : vector<2x8xf32>
    %273 = vector.multi_reduction <add>, %270, %cst_78 [2] : vector<2x8x32xf32> to vector<2x8xf32>
    %274 = vector.shape_cast %273 : vector<2x8xf32> to vector<2x8x1xf32>
    %cst_79 = arith.constant 3.200000e+01 : f32
    %275 = vector.broadcast %cst_79 : f32 to vector<2x8x1xf32>
    %276 = arith.divf %274, %275 : vector<2x8x1xf32>
    %277 = vector.broadcast %276 : vector<2x8x1xf32> to vector<2x8x32xf32>
    %278 = arith.subf %270, %277 : vector<2x8x32xf32>
    %279 = arith.mulf %278, %278 : vector<2x8x32xf32>
    %cst_80 = arith.constant dense<0.000000e+00> : vector<2x8xf32>
    %280 = vector.multi_reduction <add>, %279, %cst_80 [2] : vector<2x8x32xf32> to vector<2x8xf32>
    %281 = vector.shape_cast %280 : vector<2x8xf32> to vector<2x8x1xf32>
    %cst_81 = arith.constant 3.200000e+01 : f32
    %282 = vector.broadcast %cst_81 : f32 to vector<2x8x1xf32>
    %283 = arith.divf %281, %282 : vector<2x8x1xf32>
    %284 = vector.broadcast %276 : vector<2x8x1xf32> to vector<2x8x32xf32>
    %285 = arith.subf %270, %284 : vector<2x8x32xf32>
    %cst_82 = arith.constant 9.99999974E-6 : f32
    %286 = vector.broadcast %cst_82 : f32 to vector<2x8x1xf32>
    %287 = arith.addf %283, %286 : vector<2x8x1xf32>
    %288 = math.rsqrt %287 : vector<2x8x1xf32>
    %289 = vector.broadcast %288 : vector<2x8x1xf32> to vector<2x8x32xf32>
    %290 = arith.mulf %285, %289 : vector<2x8x32xf32>
    %291 = vector.shape_cast %271 : vector<32xf32> to vector<1x1x32xf32>
    %292 = vector.broadcast %291 : vector<1x1x32xf32> to vector<2x8x32xf32>
    %293 = arith.mulf %290, %292 : vector<2x8x32xf32>
    %294 = vector.shape_cast %272 : vector<32xf32> to vector<1x1x32xf32>
    %295 = vector.broadcast %294 : vector<1x1x32xf32> to vector<2x8x32xf32>
    %296 = arith.addf %293, %295 : vector<2x8x32xf32>
    %297 = vector.extract_strided_slice %48 {offsets = [0, 0], sizes = [32, 128], strides = [1, 1]} : vector<32x320xf32> to vector<32x128xf32>
    %cst_83 = arith.constant dense<0.000000e+00> : vector<2x8x128xf32>
    %298 = tpu.matmul %296, %297, %cst_83 {dimension_numbers = #tpu.dot_dimension_numbers<[2], [0], [0, 1], [1], [0, 0, 0, 1, 1, 1], [], []>} : vector<2x8x32xf32>, vector<32x128xf32>, vector<2x8x128xf32> -> vector<2x8x128xf32>
    %299 = vector.extract_strided_slice %50 {offsets = [384], sizes = [128], strides = [1]} : vector<544xf32> to vector<128xf32>
    %300 = vector.shape_cast %299 : vector<128xf32> to vector<1x1x128xf32>
    %301 = vector.broadcast %300 : vector<1x1x128xf32> to vector<2x8x128xf32>
    %302 = arith.addf %298, %301 : vector<2x8x128xf32>
    %cst_84 = arith.constant 5.000000e-01 : f32
    %303 = vector.broadcast %cst_84 : f32 to vector<2x8x128xf32>
    %304 = arith.mulf %303, %302 : vector<2x8x128xf32>
    %cst_85 = arith.constant 0.707106769 : f32
    %305 = vector.broadcast %cst_85 : f32 to vector<2x8x128xf32>
    %306 = arith.mulf %302, %305 : vector<2x8x128xf32>
    %cst_86 = arith.constant 0.000000e+00 : f32
    %307 = vector.broadcast %cst_86 : f32 to vector<2x8x128xf32>
    %308 = arith.cmpf oge, %306, %307 : vector<2x8x128xf32>
    %cst_87 = arith.constant 1.000000e+00 : f32
    %cst_88 = arith.constant -1.000000e+00 : f32
    %309 = vector.broadcast %cst_87 : f32 to vector<2x8x128xf32>
    %310 = vector.broadcast %cst_88 : f32 to vector<2x8x128xf32>
    %311 = arith.select %308, %309, %310 : vector<2x8x128xi1>, vector<2x8x128xf32>
    %312 = math.absf %306 : vector<2x8x128xf32>
    %cst_89 = arith.constant 0.327591091 : f32
    %313 = vector.broadcast %cst_89 : f32 to vector<2x8x128xf32>
    %314 = arith.mulf %313, %312 : vector<2x8x128xf32>
    %cst_90 = arith.constant 1.000000e+00 : f32
    %315 = vector.broadcast %cst_90 : f32 to vector<2x8x128xf32>
    %316 = arith.addf %315, %314 : vector<2x8x128xf32>
    %cst_91 = arith.constant 1.000000e+00 : f32
    %317 = vector.broadcast %cst_91 : f32 to vector<2x8x128xf32>
    %318 = arith.divf %317, %316 : vector<2x8x128xf32>
    %cst_92 = arith.constant 1.06140542 : f32
    %319 = vector.broadcast %cst_92 : f32 to vector<2x8x128xf32>
    %320 = arith.mulf %319, %318 : vector<2x8x128xf32>
    %cst_93 = arith.constant -1.45315206 : f32
    %321 = vector.broadcast %cst_93 : f32 to vector<2x8x128xf32>
    %322 = arith.addf %320, %321 : vector<2x8x128xf32>
    %323 = arith.mulf %322, %318 : vector<2x8x128xf32>
    %cst_94 = arith.constant 1.42141378 : f32
    %324 = vector.broadcast %cst_94 : f32 to vector<2x8x128xf32>
    %325 = arith.addf %323, %324 : vector<2x8x128xf32>
    %326 = arith.mulf %325, %318 : vector<2x8x128xf32>
    %cst_95 = arith.constant -0.284496725 : f32
    %327 = vector.broadcast %cst_95 : f32 to vector<2x8x128xf32>
    %328 = arith.addf %326, %327 : vector<2x8x128xf32>
    %329 = arith.mulf %328, %318 : vector<2x8x128xf32>
    %cst_96 = arith.constant 0.254829586 : f32
    %330 = vector.broadcast %cst_96 : f32 to vector<2x8x128xf32>
    %331 = arith.addf %329, %330 : vector<2x8x128xf32>
    %332 = arith.mulf %331, %318 : vector<2x8x128xf32>
    %cst_97 = arith.constant 0.000000e+00 : f32
    %333 = vector.broadcast %cst_97 : f32 to vector<2x8x128xf32>
    %334 = arith.subf %333, %312 : vector<2x8x128xf32>
    %335 = arith.mulf %334, %312 : vector<2x8x128xf32>
    %336 = math.exp %335 : vector<2x8x128xf32>
    %337 = arith.mulf %332, %336 : vector<2x8x128xf32>
    %cst_98 = arith.constant 1.000000e+00 : f32
    %338 = vector.broadcast %cst_98 : f32 to vector<2x8x128xf32>
    %339 = arith.subf %338, %337 : vector<2x8x128xf32>
    %340 = arith.mulf %311, %339 : vector<2x8x128xf32>
    %cst_99 = arith.constant 1.000000e+00 : f32
    %341 = vector.broadcast %cst_99 : f32 to vector<2x8x128xf32>
    %342 = arith.addf %341, %340 : vector<2x8x128xf32>
    %343 = arith.mulf %304, %342 : vector<2x8x128xf32>
    %c0_100 = arith.constant 0 : index
    %c0_101 = arith.constant 0 : index
    %c0_102 = arith.constant 0 : index
    %344 = vector.load %arg7[%c0_100, %c0_101, %c0_102] : memref<2x128x32xf32, #tpu.memory_space<vmem>>, vector<1x128x32xf32>
    %345 = vector.shape_cast %344 : vector<1x128x32xf32> to vector<128x32xf32>
    %cst_103 = arith.constant dense<0.000000e+00> : vector<2x8x32xf32>
    %346 = tpu.matmul %343, %345, %cst_103 {dimension_numbers = #tpu.dot_dimension_numbers<[2], [0], [0, 1], [1], [0, 0, 0, 1, 1, 1], [], []>} : vector<2x8x128xf32>, vector<128x32xf32>, vector<2x8x32xf32> -> vector<2x8x32xf32>
    %347 = arith.addf %270, %346 : vector<2x8x32xf32>
    %348 = vector.extract_strided_slice %50 {offsets = [512], sizes = [32], strides = [1]} : vector<544xf32> to vector<32xf32>
    %349 = vector.shape_cast %348 : vector<32xf32> to vector<1x1x32xf32>
    %350 = vector.broadcast %349 : vector<1x1x32xf32> to vector<2x8x32xf32>
    %351 = arith.addf %347, %350 : vector<2x8x32xf32>
    %c1_104 = arith.constant 1 : index
    %c0_105 = arith.constant 0 : index
    %c0_106 = arith.constant 0 : index
    %352 = vector.load %arg6[%c1_104, %c0_105, %c0_106] : memref<2x32x320xf32, #tpu.memory_space<vmem>>, vector<1x32x320xf32>
    %353 = vector.shape_cast %352 : vector<1x32x320xf32> to vector<32x320xf32>
    %c1_107 = arith.constant 1 : index
    %c0_108 = arith.constant 0 : index
    %354 = vector.load %arg8[%c1_107, %c0_108] : memref<2x544xf32, #tpu.memory_space<vmem>>, vector<1x544xf32>
    %355 = vector.shape_cast %354 : vector<1x544xf32> to vector<544xf32>
    %356 = vector.extract_strided_slice %46 {offsets = [0, 0, 64], sizes = [2, 64, 64], strides = [1, 1, 1]} : vector<2x64x128xf32> to vector<2x64x64xf32>
    %357 = vector.extract_strided_slice %356 {offsets = [0, 0, 0], sizes = [2, 64, 32], strides = [1, 1, 1]} : vector<2x64x64xf32> to vector<2x64x32xf32>
    %358 = vector.extract_strided_slice %356 {offsets = [0, 0, 32], sizes = [2, 64, 32], strides = [1, 1, 1]} : vector<2x64x64xf32> to vector<2x64x32xf32>
    %359 = vector.extract_strided_slice %355 {offsets = [0], sizes = [32], strides = [1]} : vector<544xf32> to vector<32xf32>
    %360 = vector.extract_strided_slice %355 {offsets = [32], sizes = [32], strides = [1]} : vector<544xf32> to vector<32xf32>
    %cst_109 = arith.constant dense<0.000000e+00> : vector<2x8xf32>
    %361 = vector.multi_reduction <add>, %351, %cst_109 [2] : vector<2x8x32xf32> to vector<2x8xf32>
    %362 = vector.shape_cast %361 : vector<2x8xf32> to vector<2x8x1xf32>
    %cst_110 = arith.constant 3.200000e+01 : f32
    %363 = vector.broadcast %cst_110 : f32 to vector<2x8x1xf32>
    %364 = arith.divf %362, %363 : vector<2x8x1xf32>
    %365 = vector.broadcast %364 : vector<2x8x1xf32> to vector<2x8x32xf32>
    %366 = arith.subf %351, %365 : vector<2x8x32xf32>
    %367 = arith.mulf %366, %366 : vector<2x8x32xf32>
    %cst_111 = arith.constant dense<0.000000e+00> : vector<2x8xf32>
    %368 = vector.multi_reduction <add>, %367, %cst_111 [2] : vector<2x8x32xf32> to vector<2x8xf32>
    %369 = vector.shape_cast %368 : vector<2x8xf32> to vector<2x8x1xf32>
    %cst_112 = arith.constant 3.200000e+01 : f32
    %370 = vector.broadcast %cst_112 : f32 to vector<2x8x1xf32>
    %371 = arith.divf %369, %370 : vector<2x8x1xf32>
    %372 = vector.broadcast %364 : vector<2x8x1xf32> to vector<2x8x32xf32>
    %373 = arith.subf %351, %372 : vector<2x8x32xf32>
    %cst_113 = arith.constant 9.99999974E-6 : f32
    %374 = vector.broadcast %cst_113 : f32 to vector<2x8x1xf32>
    %375 = arith.addf %371, %374 : vector<2x8x1xf32>
    %376 = math.rsqrt %375 : vector<2x8x1xf32>
    %377 = vector.broadcast %376 : vector<2x8x1xf32> to vector<2x8x32xf32>
    %378 = arith.mulf %373, %377 : vector<2x8x32xf32>
    %379 = vector.shape_cast %359 : vector<32xf32> to vector<1x1x32xf32>
    %380 = vector.broadcast %379 : vector<1x1x32xf32> to vector<2x8x32xf32>
    %381 = arith.mulf %378, %380 : vector<2x8x32xf32>
    %382 = vector.shape_cast %360 : vector<32xf32> to vector<1x1x32xf32>
    %383 = vector.broadcast %382 : vector<1x1x32xf32> to vector<2x8x32xf32>
    %384 = arith.addf %381, %383 : vector<2x8x32xf32>
    %385 = vector.extract_strided_slice %353 {offsets = [0, 224], sizes = [32, 32], strides = [1, 1]} : vector<32x320xf32> to vector<32x32xf32>
    %cst_114 = arith.constant dense<0.000000e+00> : vector<2x8x32xf32>
    %386 = tpu.matmul %384, %385, %cst_114 {dimension_numbers = #tpu.dot_dimension_numbers<[2], [0], [0, 1], [1], [0, 0, 0, 1, 1, 1], [], []>} : vector<2x8x32xf32>, vector<32x32xf32>, vector<2x8x32xf32> -> vector<2x8x32xf32>
    %387 = vector.extract_strided_slice %355 {offsets = [192], sizes = [32], strides = [1]} : vector<544xf32> to vector<32xf32>
    %388 = vector.shape_cast %387 : vector<32xf32> to vector<1x1x32xf32>
    %389 = vector.broadcast %388 : vector<1x1x32xf32> to vector<2x8x32xf32>
    %390 = arith.addf %386, %389 : vector<2x8x32xf32>
    %cst_115 = arith.constant 0.353553385 : f32
    %391 = vector.broadcast %cst_115 : f32 to vector<2x8x32xf32>
    %392 = arith.mulf %390, %391 : vector<2x8x32xf32>
    %393 = vector.extract_strided_slice %353 {offsets = [0, 256], sizes = [32, 32], strides = [1, 1]} : vector<32x320xf32> to vector<32x32xf32>
    %394 = vector.extract_strided_slice %355 {offsets = [224], sizes = [32], strides = [1]} : vector<544xf32> to vector<32xf32>
    %395 = vector.extract_strided_slice %392 {offsets = [0, 0, 0], sizes = [2, 8, 8], strides = [1, 1, 1]} : vector<2x8x32xf32> to vector<2x8x8xf32>
    %396 = vector.extract_strided_slice %357 {offsets = [0, 0, 0], sizes = [2, 64, 8], strides = [1, 1, 1]} : vector<2x64x32xf32> to vector<2x64x8xf32>
    %cst_116 = arith.constant dense<0.000000e+00> : vector<2x8x64xf32>
    %397 = tpu.matmul %395, %396, %cst_116 {dimension_numbers = #tpu.dot_dimension_numbers<[2], [2], [1], [1], [0, 0, 0, 1, 1, 1], [0], [0]>} : vector<2x8x8xf32>, vector<2x64x8xf32>, vector<2x8x64xf32> -> vector<2x8x64xf32>
    %cst_117 = arith.constant dense<0xFF800000> : vector<2x8xf32>
    %398 = vector.multi_reduction <maximumf>, %397, %cst_117 [2] : vector<2x8x64xf32> to vector<2x8xf32>
    %399 = vector.shape_cast %398 : vector<2x8xf32> to vector<2x8x1xf32>
    %400 = vector.broadcast %399 : vector<2x8x1xf32> to vector<2x8x64xf32>
    %401 = arith.subf %397, %400 : vector<2x8x64xf32>
    %402 = math.exp %401 : vector<2x8x64xf32>
    %cst_118 = arith.constant dense<0.000000e+00> : vector<2x8xf32>
    %403 = vector.multi_reduction <add>, %402, %cst_118 [2] : vector<2x8x64xf32> to vector<2x8xf32>
    %404 = vector.shape_cast %403 : vector<2x8xf32> to vector<2x8x1xf32>
    %405 = vector.broadcast %404 : vector<2x8x1xf32> to vector<2x8x64xf32>
    %406 = arith.divf %402, %405 : vector<2x8x64xf32>
    %407 = vector.extract_strided_slice %358 {offsets = [0, 0, 0], sizes = [2, 64, 8], strides = [1, 1, 1]} : vector<2x64x32xf32> to vector<2x64x8xf32>
    %cst_119 = arith.constant dense<0.000000e+00> : vector<2x8x8xf32>
    %408 = tpu.matmul %406, %407, %cst_119 {dimension_numbers = #tpu.dot_dimension_numbers<[2], [1], [1], [2], [0, 0, 0, 1, 1, 2], [0], [0]>} : vector<2x8x64xf32>, vector<2x64x8xf32>, vector<2x8x8xf32> -> vector<2x8x8xf32>
    %409 = vector.extract_strided_slice %393 {offsets = [0, 0], sizes = [8, 32], strides = [1, 1]} : vector<32x32xf32> to vector<8x32xf32>
    %cst_120 = arith.constant dense<0.000000e+00> : vector<2x8x32xf32>
    %410 = tpu.matmul %408, %409, %cst_120 {dimension_numbers = #tpu.dot_dimension_numbers<[2], [0], [0, 1], [1], [0, 0, 0, 1, 1, 1], [], []>} : vector<2x8x8xf32>, vector<8x32xf32>, vector<2x8x32xf32> -> vector<2x8x32xf32>
    %411 = vector.extract_strided_slice %392 {offsets = [0, 0, 8], sizes = [2, 8, 8], strides = [1, 1, 1]} : vector<2x8x32xf32> to vector<2x8x8xf32>
    %412 = vector.extract_strided_slice %357 {offsets = [0, 0, 8], sizes = [2, 64, 8], strides = [1, 1, 1]} : vector<2x64x32xf32> to vector<2x64x8xf32>
    %cst_121 = arith.constant dense<0.000000e+00> : vector<2x8x64xf32>
    %413 = tpu.matmul %411, %412, %cst_121 {dimension_numbers = #tpu.dot_dimension_numbers<[2], [2], [1], [1], [0, 0, 0, 1, 1, 1], [0], [0]>} : vector<2x8x8xf32>, vector<2x64x8xf32>, vector<2x8x64xf32> -> vector<2x8x64xf32>
    %cst_122 = arith.constant dense<0xFF800000> : vector<2x8xf32>
    %414 = vector.multi_reduction <maximumf>, %413, %cst_122 [2] : vector<2x8x64xf32> to vector<2x8xf32>
    %415 = vector.shape_cast %414 : vector<2x8xf32> to vector<2x8x1xf32>
    %416 = vector.broadcast %415 : vector<2x8x1xf32> to vector<2x8x64xf32>
    %417 = arith.subf %413, %416 : vector<2x8x64xf32>
    %418 = math.exp %417 : vector<2x8x64xf32>
    %cst_123 = arith.constant dense<0.000000e+00> : vector<2x8xf32>
    %419 = vector.multi_reduction <add>, %418, %cst_123 [2] : vector<2x8x64xf32> to vector<2x8xf32>
    %420 = vector.shape_cast %419 : vector<2x8xf32> to vector<2x8x1xf32>
    %421 = vector.broadcast %420 : vector<2x8x1xf32> to vector<2x8x64xf32>
    %422 = arith.divf %418, %421 : vector<2x8x64xf32>
    %423 = vector.extract_strided_slice %358 {offsets = [0, 0, 8], sizes = [2, 64, 8], strides = [1, 1, 1]} : vector<2x64x32xf32> to vector<2x64x8xf32>
    %cst_124 = arith.constant dense<0.000000e+00> : vector<2x8x8xf32>
    %424 = tpu.matmul %422, %423, %cst_124 {dimension_numbers = #tpu.dot_dimension_numbers<[2], [1], [1], [2], [0, 0, 0, 1, 1, 2], [0], [0]>} : vector<2x8x64xf32>, vector<2x64x8xf32>, vector<2x8x8xf32> -> vector<2x8x8xf32>
    %425 = vector.extract_strided_slice %393 {offsets = [8, 0], sizes = [8, 32], strides = [1, 1]} : vector<32x32xf32> to vector<8x32xf32>
    %cst_125 = arith.constant dense<0.000000e+00> : vector<2x8x32xf32>
    %426 = tpu.matmul %424, %425, %cst_125 {dimension_numbers = #tpu.dot_dimension_numbers<[2], [0], [0, 1], [1], [0, 0, 0, 1, 1, 1], [], []>} : vector<2x8x8xf32>, vector<8x32xf32>, vector<2x8x32xf32> -> vector<2x8x32xf32>
    %427 = arith.addf %410, %426 : vector<2x8x32xf32>
    %428 = vector.extract_strided_slice %392 {offsets = [0, 0, 16], sizes = [2, 8, 8], strides = [1, 1, 1]} : vector<2x8x32xf32> to vector<2x8x8xf32>
    %429 = vector.extract_strided_slice %357 {offsets = [0, 0, 16], sizes = [2, 64, 8], strides = [1, 1, 1]} : vector<2x64x32xf32> to vector<2x64x8xf32>
    %cst_126 = arith.constant dense<0.000000e+00> : vector<2x8x64xf32>
    %430 = tpu.matmul %428, %429, %cst_126 {dimension_numbers = #tpu.dot_dimension_numbers<[2], [2], [1], [1], [0, 0, 0, 1, 1, 1], [0], [0]>} : vector<2x8x8xf32>, vector<2x64x8xf32>, vector<2x8x64xf32> -> vector<2x8x64xf32>
    %cst_127 = arith.constant dense<0xFF800000> : vector<2x8xf32>
    %431 = vector.multi_reduction <maximumf>, %430, %cst_127 [2] : vector<2x8x64xf32> to vector<2x8xf32>
    %432 = vector.shape_cast %431 : vector<2x8xf32> to vector<2x8x1xf32>
    %433 = vector.broadcast %432 : vector<2x8x1xf32> to vector<2x8x64xf32>
    %434 = arith.subf %430, %433 : vector<2x8x64xf32>
    %435 = math.exp %434 : vector<2x8x64xf32>
    %cst_128 = arith.constant dense<0.000000e+00> : vector<2x8xf32>
    %436 = vector.multi_reduction <add>, %435, %cst_128 [2] : vector<2x8x64xf32> to vector<2x8xf32>
    %437 = vector.shape_cast %436 : vector<2x8xf32> to vector<2x8x1xf32>
    %438 = vector.broadcast %437 : vector<2x8x1xf32> to vector<2x8x64xf32>
    %439 = arith.divf %435, %438 : vector<2x8x64xf32>
    %440 = vector.extract_strided_slice %358 {offsets = [0, 0, 16], sizes = [2, 64, 8], strides = [1, 1, 1]} : vector<2x64x32xf32> to vector<2x64x8xf32>
    %cst_129 = arith.constant dense<0.000000e+00> : vector<2x8x8xf32>
    %441 = tpu.matmul %439, %440, %cst_129 {dimension_numbers = #tpu.dot_dimension_numbers<[2], [1], [1], [2], [0, 0, 0, 1, 1, 2], [0], [0]>} : vector<2x8x64xf32>, vector<2x64x8xf32>, vector<2x8x8xf32> -> vector<2x8x8xf32>
    %442 = vector.extract_strided_slice %393 {offsets = [16, 0], sizes = [8, 32], strides = [1, 1]} : vector<32x32xf32> to vector<8x32xf32>
    %cst_130 = arith.constant dense<0.000000e+00> : vector<2x8x32xf32>
    %443 = tpu.matmul %441, %442, %cst_130 {dimension_numbers = #tpu.dot_dimension_numbers<[2], [0], [0, 1], [1], [0, 0, 0, 1, 1, 1], [], []>} : vector<2x8x8xf32>, vector<8x32xf32>, vector<2x8x32xf32> -> vector<2x8x32xf32>
    %444 = arith.addf %427, %443 : vector<2x8x32xf32>
    %445 = vector.extract_strided_slice %392 {offsets = [0, 0, 24], sizes = [2, 8, 8], strides = [1, 1, 1]} : vector<2x8x32xf32> to vector<2x8x8xf32>
    %446 = vector.extract_strided_slice %357 {offsets = [0, 0, 24], sizes = [2, 64, 8], strides = [1, 1, 1]} : vector<2x64x32xf32> to vector<2x64x8xf32>
    %cst_131 = arith.constant dense<0.000000e+00> : vector<2x8x64xf32>
    %447 = tpu.matmul %445, %446, %cst_131 {dimension_numbers = #tpu.dot_dimension_numbers<[2], [2], [1], [1], [0, 0, 0, 1, 1, 1], [0], [0]>} : vector<2x8x8xf32>, vector<2x64x8xf32>, vector<2x8x64xf32> -> vector<2x8x64xf32>
    %cst_132 = arith.constant dense<0xFF800000> : vector<2x8xf32>
    %448 = vector.multi_reduction <maximumf>, %447, %cst_132 [2] : vector<2x8x64xf32> to vector<2x8xf32>
    %449 = vector.shape_cast %448 : vector<2x8xf32> to vector<2x8x1xf32>
    %450 = vector.broadcast %449 : vector<2x8x1xf32> to vector<2x8x64xf32>
    %451 = arith.subf %447, %450 : vector<2x8x64xf32>
    %452 = math.exp %451 : vector<2x8x64xf32>
    %cst_133 = arith.constant dense<0.000000e+00> : vector<2x8xf32>
    %453 = vector.multi_reduction <add>, %452, %cst_133 [2] : vector<2x8x64xf32> to vector<2x8xf32>
    %454 = vector.shape_cast %453 : vector<2x8xf32> to vector<2x8x1xf32>
    %455 = vector.broadcast %454 : vector<2x8x1xf32> to vector<2x8x64xf32>
    %456 = arith.divf %452, %455 : vector<2x8x64xf32>
    %457 = vector.extract_strided_slice %358 {offsets = [0, 0, 24], sizes = [2, 64, 8], strides = [1, 1, 1]} : vector<2x64x32xf32> to vector<2x64x8xf32>
    %cst_134 = arith.constant dense<0.000000e+00> : vector<2x8x8xf32>
    %458 = tpu.matmul %456, %457, %cst_134 {dimension_numbers = #tpu.dot_dimension_numbers<[2], [1], [1], [2], [0, 0, 0, 1, 1, 2], [0], [0]>} : vector<2x8x64xf32>, vector<2x64x8xf32>, vector<2x8x8xf32> -> vector<2x8x8xf32>
    %459 = vector.extract_strided_slice %393 {offsets = [24, 0], sizes = [8, 32], strides = [1, 1]} : vector<32x32xf32> to vector<8x32xf32>
    %cst_135 = arith.constant dense<0.000000e+00> : vector<2x8x32xf32>
    %460 = tpu.matmul %458, %459, %cst_135 {dimension_numbers = #tpu.dot_dimension_numbers<[2], [0], [0, 1], [1], [0, 0, 0, 1, 1, 1], [], []>} : vector<2x8x8xf32>, vector<8x32xf32>, vector<2x8x32xf32> -> vector<2x8x32xf32>
    %461 = arith.addf %444, %460 : vector<2x8x32xf32>
    %462 = vector.shape_cast %394 : vector<32xf32> to vector<1x1x32xf32>
    %463 = vector.broadcast %462 : vector<1x1x32xf32> to vector<2x8x32xf32>
    %464 = arith.addf %461, %463 : vector<2x8x32xf32>
    %465 = arith.addf %351, %464 : vector<2x8x32xf32>
    %466 = vector.extract_strided_slice %355 {offsets = [64], sizes = [32], strides = [1]} : vector<544xf32> to vector<32xf32>
    %467 = vector.extract_strided_slice %355 {offsets = [96], sizes = [32], strides = [1]} : vector<544xf32> to vector<32xf32>
    %cst_136 = arith.constant dense<0.000000e+00> : vector<2x8xf32>
    %468 = vector.multi_reduction <add>, %465, %cst_136 [2] : vector<2x8x32xf32> to vector<2x8xf32>
    %469 = vector.shape_cast %468 : vector<2x8xf32> to vector<2x8x1xf32>
    %cst_137 = arith.constant 3.200000e+01 : f32
    %470 = vector.broadcast %cst_137 : f32 to vector<2x8x1xf32>
    %471 = arith.divf %469, %470 : vector<2x8x1xf32>
    %472 = vector.broadcast %471 : vector<2x8x1xf32> to vector<2x8x32xf32>
    %473 = arith.subf %465, %472 : vector<2x8x32xf32>
    %474 = arith.mulf %473, %473 : vector<2x8x32xf32>
    %cst_138 = arith.constant dense<0.000000e+00> : vector<2x8xf32>
    %475 = vector.multi_reduction <add>, %474, %cst_138 [2] : vector<2x8x32xf32> to vector<2x8xf32>
    %476 = vector.shape_cast %475 : vector<2x8xf32> to vector<2x8x1xf32>
    %cst_139 = arith.constant 3.200000e+01 : f32
    %477 = vector.broadcast %cst_139 : f32 to vector<2x8x1xf32>
    %478 = arith.divf %476, %477 : vector<2x8x1xf32>
    %479 = vector.broadcast %471 : vector<2x8x1xf32> to vector<2x8x32xf32>
    %480 = arith.subf %465, %479 : vector<2x8x32xf32>
    %cst_140 = arith.constant 9.99999974E-6 : f32
    %481 = vector.broadcast %cst_140 : f32 to vector<2x8x1xf32>
    %482 = arith.addf %478, %481 : vector<2x8x1xf32>
    %483 = math.rsqrt %482 : vector<2x8x1xf32>
    %484 = vector.broadcast %483 : vector<2x8x1xf32> to vector<2x8x32xf32>
    %485 = arith.mulf %480, %484 : vector<2x8x32xf32>
    %486 = vector.shape_cast %466 : vector<32xf32> to vector<1x1x32xf32>
    %487 = vector.broadcast %486 : vector<1x1x32xf32> to vector<2x8x32xf32>
    %488 = arith.mulf %485, %487 : vector<2x8x32xf32>
    %489 = vector.shape_cast %467 : vector<32xf32> to vector<1x1x32xf32>
    %490 = vector.broadcast %489 : vector<1x1x32xf32> to vector<2x8x32xf32>
    %491 = arith.addf %488, %490 : vector<2x8x32xf32>
    %492 = vector.extract_strided_slice %353 {offsets = [0, 128], sizes = [32, 96], strides = [1, 1]} : vector<32x320xf32> to vector<32x96xf32>
    %cst_141 = arith.constant dense<0.000000e+00> : vector<2x8x96xf32>
    %493 = tpu.matmul %491, %492, %cst_141 {dimension_numbers = #tpu.dot_dimension_numbers<[2], [0], [0, 1], [1], [0, 0, 0, 1, 1, 1], [], []>} : vector<2x8x32xf32>, vector<32x96xf32>, vector<2x8x96xf32> -> vector<2x8x96xf32>
    %494 = vector.extract_strided_slice %355 {offsets = [256], sizes = [96], strides = [1]} : vector<544xf32> to vector<96xf32>
    %495 = vector.shape_cast %494 : vector<96xf32> to vector<1x1x96xf32>
    %496 = vector.broadcast %495 : vector<1x1x96xf32> to vector<2x8x96xf32>
    %497 = arith.addf %493, %496 : vector<2x8x96xf32>
    %498 = vector.extract_strided_slice %497 {offsets = [0, 0, 0], sizes = [2, 8, 32], strides = [1, 1, 1]} : vector<2x8x96xf32> to vector<2x8x32xf32>
    %cst_142 = arith.constant 0.353553385 : f32
    %499 = vector.broadcast %cst_142 : f32 to vector<2x8x32xf32>
    %500 = arith.mulf %498, %499 : vector<2x8x32xf32>
    %501 = vector.extract_strided_slice %497 {offsets = [0, 0, 32], sizes = [2, 8, 32], strides = [1, 1, 1]} : vector<2x8x96xf32> to vector<2x8x32xf32>
    %502 = vector.extract_strided_slice %497 {offsets = [0, 0, 64], sizes = [2, 8, 32], strides = [1, 1, 1]} : vector<2x8x96xf32> to vector<2x8x32xf32>
    %503 = vector.extract_strided_slice %353 {offsets = [0, 288], sizes = [32, 32], strides = [1, 1]} : vector<32x320xf32> to vector<32x32xf32>
    %504 = vector.extract_strided_slice %355 {offsets = [352], sizes = [32], strides = [1]} : vector<544xf32> to vector<32xf32>
    %505 = vector.extract_strided_slice %500 {offsets = [0, 0, 0], sizes = [2, 8, 8], strides = [1, 1, 1]} : vector<2x8x32xf32> to vector<2x8x8xf32>
    %506 = vector.extract_strided_slice %501 {offsets = [0, 0, 0], sizes = [2, 8, 8], strides = [1, 1, 1]} : vector<2x8x32xf32> to vector<2x8x8xf32>
    %cst_143 = arith.constant dense<0.000000e+00> : vector<2x8x8xf32>
    %507 = tpu.matmul %505, %506, %cst_143 {dimension_numbers = #tpu.dot_dimension_numbers<[2], [2], [1], [1], [0, 0, 0, 1, 1, 1], [0], [0]>} : vector<2x8x8xf32>, vector<2x8x8xf32>, vector<2x8x8xf32> -> vector<2x8x8xf32>
    %cst_144 = arith.constant dense<0xFF800000> : vector<2x8xf32>
    %508 = vector.multi_reduction <maximumf>, %507, %cst_144 [2] : vector<2x8x8xf32> to vector<2x8xf32>
    %509 = vector.shape_cast %508 : vector<2x8xf32> to vector<2x8x1xf32>
    %510 = vector.broadcast %509 : vector<2x8x1xf32> to vector<2x8x8xf32>
    %511 = arith.subf %507, %510 : vector<2x8x8xf32>
    %512 = math.exp %511 : vector<2x8x8xf32>
    %cst_145 = arith.constant dense<0.000000e+00> : vector<2x8xf32>
    %513 = vector.multi_reduction <add>, %512, %cst_145 [2] : vector<2x8x8xf32> to vector<2x8xf32>
    %514 = vector.shape_cast %513 : vector<2x8xf32> to vector<2x8x1xf32>
    %515 = vector.broadcast %514 : vector<2x8x1xf32> to vector<2x8x8xf32>
    %516 = arith.divf %512, %515 : vector<2x8x8xf32>
    %517 = vector.extract_strided_slice %502 {offsets = [0, 0, 0], sizes = [2, 8, 8], strides = [1, 1, 1]} : vector<2x8x32xf32> to vector<2x8x8xf32>
    %cst_146 = arith.constant dense<0.000000e+00> : vector<2x8x8xf32>
    %518 = tpu.matmul %516, %517, %cst_146 {dimension_numbers = #tpu.dot_dimension_numbers<[2], [1], [1], [2], [0, 0, 0, 1, 1, 2], [0], [0]>} : vector<2x8x8xf32>, vector<2x8x8xf32>, vector<2x8x8xf32> -> vector<2x8x8xf32>
    %519 = vector.extract_strided_slice %503 {offsets = [0, 0], sizes = [8, 32], strides = [1, 1]} : vector<32x32xf32> to vector<8x32xf32>
    %cst_147 = arith.constant dense<0.000000e+00> : vector<2x8x32xf32>
    %520 = tpu.matmul %518, %519, %cst_147 {dimension_numbers = #tpu.dot_dimension_numbers<[2], [0], [0, 1], [1], [0, 0, 0, 1, 1, 1], [], []>} : vector<2x8x8xf32>, vector<8x32xf32>, vector<2x8x32xf32> -> vector<2x8x32xf32>
    %521 = vector.extract_strided_slice %500 {offsets = [0, 0, 8], sizes = [2, 8, 8], strides = [1, 1, 1]} : vector<2x8x32xf32> to vector<2x8x8xf32>
    %522 = vector.extract_strided_slice %501 {offsets = [0, 0, 8], sizes = [2, 8, 8], strides = [1, 1, 1]} : vector<2x8x32xf32> to vector<2x8x8xf32>
    %cst_148 = arith.constant dense<0.000000e+00> : vector<2x8x8xf32>
    %523 = tpu.matmul %521, %522, %cst_148 {dimension_numbers = #tpu.dot_dimension_numbers<[2], [2], [1], [1], [0, 0, 0, 1, 1, 1], [0], [0]>} : vector<2x8x8xf32>, vector<2x8x8xf32>, vector<2x8x8xf32> -> vector<2x8x8xf32>
    %cst_149 = arith.constant dense<0xFF800000> : vector<2x8xf32>
    %524 = vector.multi_reduction <maximumf>, %523, %cst_149 [2] : vector<2x8x8xf32> to vector<2x8xf32>
    %525 = vector.shape_cast %524 : vector<2x8xf32> to vector<2x8x1xf32>
    %526 = vector.broadcast %525 : vector<2x8x1xf32> to vector<2x8x8xf32>
    %527 = arith.subf %523, %526 : vector<2x8x8xf32>
    %528 = math.exp %527 : vector<2x8x8xf32>
    %cst_150 = arith.constant dense<0.000000e+00> : vector<2x8xf32>
    %529 = vector.multi_reduction <add>, %528, %cst_150 [2] : vector<2x8x8xf32> to vector<2x8xf32>
    %530 = vector.shape_cast %529 : vector<2x8xf32> to vector<2x8x1xf32>
    %531 = vector.broadcast %530 : vector<2x8x1xf32> to vector<2x8x8xf32>
    %532 = arith.divf %528, %531 : vector<2x8x8xf32>
    %533 = vector.extract_strided_slice %502 {offsets = [0, 0, 8], sizes = [2, 8, 8], strides = [1, 1, 1]} : vector<2x8x32xf32> to vector<2x8x8xf32>
    %cst_151 = arith.constant dense<0.000000e+00> : vector<2x8x8xf32>
    %534 = tpu.matmul %532, %533, %cst_151 {dimension_numbers = #tpu.dot_dimension_numbers<[2], [1], [1], [2], [0, 0, 0, 1, 1, 2], [0], [0]>} : vector<2x8x8xf32>, vector<2x8x8xf32>, vector<2x8x8xf32> -> vector<2x8x8xf32>
    %535 = vector.extract_strided_slice %503 {offsets = [8, 0], sizes = [8, 32], strides = [1, 1]} : vector<32x32xf32> to vector<8x32xf32>
    %cst_152 = arith.constant dense<0.000000e+00> : vector<2x8x32xf32>
    %536 = tpu.matmul %534, %535, %cst_152 {dimension_numbers = #tpu.dot_dimension_numbers<[2], [0], [0, 1], [1], [0, 0, 0, 1, 1, 1], [], []>} : vector<2x8x8xf32>, vector<8x32xf32>, vector<2x8x32xf32> -> vector<2x8x32xf32>
    %537 = arith.addf %520, %536 : vector<2x8x32xf32>
    %538 = vector.extract_strided_slice %500 {offsets = [0, 0, 16], sizes = [2, 8, 8], strides = [1, 1, 1]} : vector<2x8x32xf32> to vector<2x8x8xf32>
    %539 = vector.extract_strided_slice %501 {offsets = [0, 0, 16], sizes = [2, 8, 8], strides = [1, 1, 1]} : vector<2x8x32xf32> to vector<2x8x8xf32>
    %cst_153 = arith.constant dense<0.000000e+00> : vector<2x8x8xf32>
    %540 = tpu.matmul %538, %539, %cst_153 {dimension_numbers = #tpu.dot_dimension_numbers<[2], [2], [1], [1], [0, 0, 0, 1, 1, 1], [0], [0]>} : vector<2x8x8xf32>, vector<2x8x8xf32>, vector<2x8x8xf32> -> vector<2x8x8xf32>
    %cst_154 = arith.constant dense<0xFF800000> : vector<2x8xf32>
    %541 = vector.multi_reduction <maximumf>, %540, %cst_154 [2] : vector<2x8x8xf32> to vector<2x8xf32>
    %542 = vector.shape_cast %541 : vector<2x8xf32> to vector<2x8x1xf32>
    %543 = vector.broadcast %542 : vector<2x8x1xf32> to vector<2x8x8xf32>
    %544 = arith.subf %540, %543 : vector<2x8x8xf32>
    %545 = math.exp %544 : vector<2x8x8xf32>
    %cst_155 = arith.constant dense<0.000000e+00> : vector<2x8xf32>
    %546 = vector.multi_reduction <add>, %545, %cst_155 [2] : vector<2x8x8xf32> to vector<2x8xf32>
    %547 = vector.shape_cast %546 : vector<2x8xf32> to vector<2x8x1xf32>
    %548 = vector.broadcast %547 : vector<2x8x1xf32> to vector<2x8x8xf32>
    %549 = arith.divf %545, %548 : vector<2x8x8xf32>
    %550 = vector.extract_strided_slice %502 {offsets = [0, 0, 16], sizes = [2, 8, 8], strides = [1, 1, 1]} : vector<2x8x32xf32> to vector<2x8x8xf32>
    %cst_156 = arith.constant dense<0.000000e+00> : vector<2x8x8xf32>
    %551 = tpu.matmul %549, %550, %cst_156 {dimension_numbers = #tpu.dot_dimension_numbers<[2], [1], [1], [2], [0, 0, 0, 1, 1, 2], [0], [0]>} : vector<2x8x8xf32>, vector<2x8x8xf32>, vector<2x8x8xf32> -> vector<2x8x8xf32>
    %552 = vector.extract_strided_slice %503 {offsets = [16, 0], sizes = [8, 32], strides = [1, 1]} : vector<32x32xf32> to vector<8x32xf32>
    %cst_157 = arith.constant dense<0.000000e+00> : vector<2x8x32xf32>
    %553 = tpu.matmul %551, %552, %cst_157 {dimension_numbers = #tpu.dot_dimension_numbers<[2], [0], [0, 1], [1], [0, 0, 0, 1, 1, 1], [], []>} : vector<2x8x8xf32>, vector<8x32xf32>, vector<2x8x32xf32> -> vector<2x8x32xf32>
    %554 = arith.addf %537, %553 : vector<2x8x32xf32>
    %555 = vector.extract_strided_slice %500 {offsets = [0, 0, 24], sizes = [2, 8, 8], strides = [1, 1, 1]} : vector<2x8x32xf32> to vector<2x8x8xf32>
    %556 = vector.extract_strided_slice %501 {offsets = [0, 0, 24], sizes = [2, 8, 8], strides = [1, 1, 1]} : vector<2x8x32xf32> to vector<2x8x8xf32>
    %cst_158 = arith.constant dense<0.000000e+00> : vector<2x8x8xf32>
    %557 = tpu.matmul %555, %556, %cst_158 {dimension_numbers = #tpu.dot_dimension_numbers<[2], [2], [1], [1], [0, 0, 0, 1, 1, 1], [0], [0]>} : vector<2x8x8xf32>, vector<2x8x8xf32>, vector<2x8x8xf32> -> vector<2x8x8xf32>
    %cst_159 = arith.constant dense<0xFF800000> : vector<2x8xf32>
    %558 = vector.multi_reduction <maximumf>, %557, %cst_159 [2] : vector<2x8x8xf32> to vector<2x8xf32>
    %559 = vector.shape_cast %558 : vector<2x8xf32> to vector<2x8x1xf32>
    %560 = vector.broadcast %559 : vector<2x8x1xf32> to vector<2x8x8xf32>
    %561 = arith.subf %557, %560 : vector<2x8x8xf32>
    %562 = math.exp %561 : vector<2x8x8xf32>
    %cst_160 = arith.constant dense<0.000000e+00> : vector<2x8xf32>
    %563 = vector.multi_reduction <add>, %562, %cst_160 [2] : vector<2x8x8xf32> to vector<2x8xf32>
    %564 = vector.shape_cast %563 : vector<2x8xf32> to vector<2x8x1xf32>
    %565 = vector.broadcast %564 : vector<2x8x1xf32> to vector<2x8x8xf32>
    %566 = arith.divf %562, %565 : vector<2x8x8xf32>
    %567 = vector.extract_strided_slice %502 {offsets = [0, 0, 24], sizes = [2, 8, 8], strides = [1, 1, 1]} : vector<2x8x32xf32> to vector<2x8x8xf32>
    %cst_161 = arith.constant dense<0.000000e+00> : vector<2x8x8xf32>
    %568 = tpu.matmul %566, %567, %cst_161 {dimension_numbers = #tpu.dot_dimension_numbers<[2], [1], [1], [2], [0, 0, 0, 1, 1, 2], [0], [0]>} : vector<2x8x8xf32>, vector<2x8x8xf32>, vector<2x8x8xf32> -> vector<2x8x8xf32>
    %569 = vector.extract_strided_slice %503 {offsets = [24, 0], sizes = [8, 32], strides = [1, 1]} : vector<32x32xf32> to vector<8x32xf32>
    %cst_162 = arith.constant dense<0.000000e+00> : vector<2x8x32xf32>
    %570 = tpu.matmul %568, %569, %cst_162 {dimension_numbers = #tpu.dot_dimension_numbers<[2], [0], [0, 1], [1], [0, 0, 0, 1, 1, 1], [], []>} : vector<2x8x8xf32>, vector<8x32xf32>, vector<2x8x32xf32> -> vector<2x8x32xf32>
    %571 = arith.addf %554, %570 : vector<2x8x32xf32>
    %572 = vector.shape_cast %504 : vector<32xf32> to vector<1x1x32xf32>
    %573 = vector.broadcast %572 : vector<1x1x32xf32> to vector<2x8x32xf32>
    %574 = arith.addf %571, %573 : vector<2x8x32xf32>
    %575 = arith.addf %465, %574 : vector<2x8x32xf32>
    %576 = vector.extract_strided_slice %355 {offsets = [128], sizes = [32], strides = [1]} : vector<544xf32> to vector<32xf32>
    %577 = vector.extract_strided_slice %355 {offsets = [160], sizes = [32], strides = [1]} : vector<544xf32> to vector<32xf32>
    %cst_163 = arith.constant dense<0.000000e+00> : vector<2x8xf32>
    %578 = vector.multi_reduction <add>, %575, %cst_163 [2] : vector<2x8x32xf32> to vector<2x8xf32>
    %579 = vector.shape_cast %578 : vector<2x8xf32> to vector<2x8x1xf32>
    %cst_164 = arith.constant 3.200000e+01 : f32
    %580 = vector.broadcast %cst_164 : f32 to vector<2x8x1xf32>
    %581 = arith.divf %579, %580 : vector<2x8x1xf32>
    %582 = vector.broadcast %581 : vector<2x8x1xf32> to vector<2x8x32xf32>
    %583 = arith.subf %575, %582 : vector<2x8x32xf32>
    %584 = arith.mulf %583, %583 : vector<2x8x32xf32>
    %cst_165 = arith.constant dense<0.000000e+00> : vector<2x8xf32>
    %585 = vector.multi_reduction <add>, %584, %cst_165 [2] : vector<2x8x32xf32> to vector<2x8xf32>
    %586 = vector.shape_cast %585 : vector<2x8xf32> to vector<2x8x1xf32>
    %cst_166 = arith.constant 3.200000e+01 : f32
    %587 = vector.broadcast %cst_166 : f32 to vector<2x8x1xf32>
    %588 = arith.divf %586, %587 : vector<2x8x1xf32>
    %589 = vector.broadcast %581 : vector<2x8x1xf32> to vector<2x8x32xf32>
    %590 = arith.subf %575, %589 : vector<2x8x32xf32>
    %cst_167 = arith.constant 9.99999974E-6 : f32
    %591 = vector.broadcast %cst_167 : f32 to vector<2x8x1xf32>
    %592 = arith.addf %588, %591 : vector<2x8x1xf32>
    %593 = math.rsqrt %592 : vector<2x8x1xf32>
    %594 = vector.broadcast %593 : vector<2x8x1xf32> to vector<2x8x32xf32>
    %595 = arith.mulf %590, %594 : vector<2x8x32xf32>
    %596 = vector.shape_cast %576 : vector<32xf32> to vector<1x1x32xf32>
    %597 = vector.broadcast %596 : vector<1x1x32xf32> to vector<2x8x32xf32>
    %598 = arith.mulf %595, %597 : vector<2x8x32xf32>
    %599 = vector.shape_cast %577 : vector<32xf32> to vector<1x1x32xf32>
    %600 = vector.broadcast %599 : vector<1x1x32xf32> to vector<2x8x32xf32>
    %601 = arith.addf %598, %600 : vector<2x8x32xf32>
    %602 = vector.extract_strided_slice %353 {offsets = [0, 0], sizes = [32, 128], strides = [1, 1]} : vector<32x320xf32> to vector<32x128xf32>
    %cst_168 = arith.constant dense<0.000000e+00> : vector<2x8x128xf32>
    %603 = tpu.matmul %601, %602, %cst_168 {dimension_numbers = #tpu.dot_dimension_numbers<[2], [0], [0, 1], [1], [0, 0, 0, 1, 1, 1], [], []>} : vector<2x8x32xf32>, vector<32x128xf32>, vector<2x8x128xf32> -> vector<2x8x128xf32>
    %604 = vector.extract_strided_slice %355 {offsets = [384], sizes = [128], strides = [1]} : vector<544xf32> to vector<128xf32>
    %605 = vector.shape_cast %604 : vector<128xf32> to vector<1x1x128xf32>
    %606 = vector.broadcast %605 : vector<1x1x128xf32> to vector<2x8x128xf32>
    %607 = arith.addf %603, %606 : vector<2x8x128xf32>
    %cst_169 = arith.constant 5.000000e-01 : f32
    %608 = vector.broadcast %cst_169 : f32 to vector<2x8x128xf32>
    %609 = arith.mulf %608, %607 : vector<2x8x128xf32>
    %cst_170 = arith.constant 0.707106769 : f32
    %610 = vector.broadcast %cst_170 : f32 to vector<2x8x128xf32>
    %611 = arith.mulf %607, %610 : vector<2x8x128xf32>
    %cst_171 = arith.constant 0.000000e+00 : f32
    %612 = vector.broadcast %cst_171 : f32 to vector<2x8x128xf32>
    %613 = arith.cmpf oge, %611, %612 : vector<2x8x128xf32>
    %cst_172 = arith.constant 1.000000e+00 : f32
    %cst_173 = arith.constant -1.000000e+00 : f32
    %614 = vector.broadcast %cst_172 : f32 to vector<2x8x128xf32>
    %615 = vector.broadcast %cst_173 : f32 to vector<2x8x128xf32>
    %616 = arith.select %613, %614, %615 : vector<2x8x128xi1>, vector<2x8x128xf32>
    %617 = math.absf %611 : vector<2x8x128xf32>
    %cst_174 = arith.constant 0.327591091 : f32
    %618 = vector.broadcast %cst_174 : f32 to vector<2x8x128xf32>
    %619 = arith.mulf %618, %617 : vector<2x8x128xf32>
    %cst_175 = arith.constant 1.000000e+00 : f32
    %620 = vector.broadcast %cst_175 : f32 to vector<2x8x128xf32>
    %621 = arith.addf %620, %619 : vector<2x8x128xf32>
    %cst_176 = arith.constant 1.000000e+00 : f32
    %622 = vector.broadcast %cst_176 : f32 to vector<2x8x128xf32>
    %623 = arith.divf %622, %621 : vector<2x8x128xf32>
    %cst_177 = arith.constant 1.06140542 : f32
    %624 = vector.broadcast %cst_177 : f32 to vector<2x8x128xf32>
    %625 = arith.mulf %624, %623 : vector<2x8x128xf32>
    %cst_178 = arith.constant -1.45315206 : f32
    %626 = vector.broadcast %cst_178 : f32 to vector<2x8x128xf32>
    %627 = arith.addf %625, %626 : vector<2x8x128xf32>
    %628 = arith.mulf %627, %623 : vector<2x8x128xf32>
    %cst_179 = arith.constant 1.42141378 : f32
    %629 = vector.broadcast %cst_179 : f32 to vector<2x8x128xf32>
    %630 = arith.addf %628, %629 : vector<2x8x128xf32>
    %631 = arith.mulf %630, %623 : vector<2x8x128xf32>
    %cst_180 = arith.constant -0.284496725 : f32
    %632 = vector.broadcast %cst_180 : f32 to vector<2x8x128xf32>
    %633 = arith.addf %631, %632 : vector<2x8x128xf32>
    %634 = arith.mulf %633, %623 : vector<2x8x128xf32>
    %cst_181 = arith.constant 0.254829586 : f32
    %635 = vector.broadcast %cst_181 : f32 to vector<2x8x128xf32>
    %636 = arith.addf %634, %635 : vector<2x8x128xf32>
    %637 = arith.mulf %636, %623 : vector<2x8x128xf32>
    %cst_182 = arith.constant 0.000000e+00 : f32
    %638 = vector.broadcast %cst_182 : f32 to vector<2x8x128xf32>
    %639 = arith.subf %638, %617 : vector<2x8x128xf32>
    %640 = arith.mulf %639, %617 : vector<2x8x128xf32>
    %641 = math.exp %640 : vector<2x8x128xf32>
    %642 = arith.mulf %637, %641 : vector<2x8x128xf32>
    %cst_183 = arith.constant 1.000000e+00 : f32
    %643 = vector.broadcast %cst_183 : f32 to vector<2x8x128xf32>
    %644 = arith.subf %643, %642 : vector<2x8x128xf32>
    %645 = arith.mulf %616, %644 : vector<2x8x128xf32>
    %cst_184 = arith.constant 1.000000e+00 : f32
    %646 = vector.broadcast %cst_184 : f32 to vector<2x8x128xf32>
    %647 = arith.addf %646, %645 : vector<2x8x128xf32>
    %648 = arith.mulf %609, %647 : vector<2x8x128xf32>
    %c1_185 = arith.constant 1 : index
    %c0_186 = arith.constant 0 : index
    %c0_187 = arith.constant 0 : index
    %649 = vector.load %arg7[%c1_185, %c0_186, %c0_187] : memref<2x128x32xf32, #tpu.memory_space<vmem>>, vector<1x128x32xf32>
    %650 = vector.shape_cast %649 : vector<1x128x32xf32> to vector<128x32xf32>
    %cst_188 = arith.constant dense<0.000000e+00> : vector<2x8x32xf32>
    %651 = tpu.matmul %648, %650, %cst_188 {dimension_numbers = #tpu.dot_dimension_numbers<[2], [0], [0, 1], [1], [0, 0, 0, 1, 1, 1], [], []>} : vector<2x8x128xf32>, vector<128x32xf32>, vector<2x8x32xf32> -> vector<2x8x32xf32>
    %652 = arith.addf %575, %651 : vector<2x8x32xf32>
    %653 = vector.extract_strided_slice %355 {offsets = [512], sizes = [32], strides = [1]} : vector<544xf32> to vector<32xf32>
    %654 = vector.shape_cast %653 : vector<32xf32> to vector<1x1x32xf32>
    %655 = vector.broadcast %654 : vector<1x1x32xf32> to vector<2x8x32xf32>
    %656 = arith.addf %652, %655 : vector<2x8x32xf32>
    %c2 = arith.constant 2 : index
    %c0_189 = arith.constant 0 : index
    %657 = vector.load %arg3[%c2, %c0_189] : memref<4x32xf32, #tpu.memory_space<vmem>>, vector<1x32xf32>
    %658 = vector.shape_cast %657 : vector<1x32xf32> to vector<32xf32>
    %c3 = arith.constant 3 : index
    %c0_190 = arith.constant 0 : index
    %659 = vector.load %arg3[%c3, %c0_190] : memref<4x32xf32, #tpu.memory_space<vmem>>, vector<1x32xf32>
    %660 = vector.shape_cast %659 : vector<1x32xf32> to vector<32xf32>
    %cst_191 = arith.constant dense<0.000000e+00> : vector<2x8xf32>
    %661 = vector.multi_reduction <add>, %656, %cst_191 [2] : vector<2x8x32xf32> to vector<2x8xf32>
    %662 = vector.shape_cast %661 : vector<2x8xf32> to vector<2x8x1xf32>
    %cst_192 = arith.constant 3.200000e+01 : f32
    %663 = vector.broadcast %cst_192 : f32 to vector<2x8x1xf32>
    %664 = arith.divf %662, %663 : vector<2x8x1xf32>
    %665 = vector.broadcast %664 : vector<2x8x1xf32> to vector<2x8x32xf32>
    %666 = arith.subf %656, %665 : vector<2x8x32xf32>
    %667 = arith.mulf %666, %666 : vector<2x8x32xf32>
    %cst_193 = arith.constant dense<0.000000e+00> : vector<2x8xf32>
    %668 = vector.multi_reduction <add>, %667, %cst_193 [2] : vector<2x8x32xf32> to vector<2x8xf32>
    %669 = vector.shape_cast %668 : vector<2x8xf32> to vector<2x8x1xf32>
    %cst_194 = arith.constant 3.200000e+01 : f32
    %670 = vector.broadcast %cst_194 : f32 to vector<2x8x1xf32>
    %671 = arith.divf %669, %670 : vector<2x8x1xf32>
    %672 = vector.broadcast %664 : vector<2x8x1xf32> to vector<2x8x32xf32>
    %673 = arith.subf %656, %672 : vector<2x8x32xf32>
    %cst_195 = arith.constant 9.99999974E-6 : f32
    %674 = vector.broadcast %cst_195 : f32 to vector<2x8x1xf32>
    %675 = arith.addf %671, %674 : vector<2x8x1xf32>
    %676 = math.rsqrt %675 : vector<2x8x1xf32>
    %677 = vector.broadcast %676 : vector<2x8x1xf32> to vector<2x8x32xf32>
    %678 = arith.mulf %673, %677 : vector<2x8x32xf32>
    %679 = vector.shape_cast %658 : vector<32xf32> to vector<1x1x32xf32>
    %680 = vector.broadcast %679 : vector<1x1x32xf32> to vector<2x8x32xf32>
    %681 = arith.mulf %678, %680 : vector<2x8x32xf32>
    %682 = vector.shape_cast %660 : vector<32xf32> to vector<1x1x32xf32>
    %683 = vector.broadcast %682 : vector<1x1x32xf32> to vector<2x8x32xf32>
    %684 = arith.addf %681, %683 : vector<2x8x32xf32>
    %cst_196 = arith.constant dense<0.000000e+00> : vector<2x8x64xf32>
    %685 = tpu.matmul %684, %36, %cst_196 {dimension_numbers = #tpu.dot_dimension_numbers<[2], [2], [1], [1], [0, 0, 0, 1, 1, 1], [0], [0]>} : vector<2x8x32xf32>, vector<2x64x32xf32>, vector<2x8x64xf32> -> vector<2x8x64xf32>
    %c0_197 = arith.constant 0 : index
    %c0_198 = arith.constant 0 : index
    %c0_199 = arith.constant 0 : index
    %686 = vector.load %arg9[%c0_197, %c0_198, %c0_199] : memref<2x8x64xf32, #tpu.memory_space<vmem>>, vector<2x8x64xf32>
    tpu.vector_store %arg9[%c0_197, %c0_198, %c0_199], %685 {strides = array<i32>} : memref<2x8x64xf32, #tpu.memory_space<vmem>>, vector<2x8x64xf32>,
    return
  }
  func.func @transform_0(%arg0: i32) -> (i32, i32, i32) {
    %c0_i32 = arith.constant 0 : i32
    %c0_i32_0 = arith.constant 0 : i32
    %c0_i32_1 = arith.constant 0 : i32
    return %arg0, %c0_i32, %c0_i32_0 : i32, i32, i32
  }
  func.func @transform_1(%arg0: i32) -> (i32, i32) {
    %c0_i32 = arith.constant 0 : i32
    %c0_i32_0 = arith.constant 0 : i32
    %c0_i32_1 = arith.constant 0 : i32
    return %c0_i32, %c0_i32_0 : i32, i32
  }
  func.func @transform_2(%arg0: i32) -> (i32, i32) {
    %c0_i32 = arith.constant 0 : i32
    %c0_i32_0 = arith.constant 0 : i32
    %c0_i32_1 = arith.constant 0 : i32
    return %c0_i32, %c0_i32_0 : i32, i32
  }
  func.func @transform_3(%arg0: i32) -> (i32, i32) {
    %c0_i32 = arith.constant 0 : i32
    %c0_i32_0 = arith.constant 0 : i32
    %c0_i32_1 = arith.constant 0 : i32
    return %c0_i32, %c0_i32_0 : i32, i32
  }
  func.func @transform_4(%arg0: i32) -> (i32, i32) {
    %c0_i32 = arith.constant 0 : i32
    %c0_i32_0 = arith.constant 0 : i32
    %c0_i32_1 = arith.constant 0 : i32
    return %c0_i32, %c0_i32_0 : i32, i32
  }
  func.func @transform_5(%arg0: i32) -> (i32, i32, i32) {
    %c0_i32 = arith.constant 0 : i32
    %c0_i32_0 = arith.constant 0 : i32
    %c0_i32_1 = arith.constant 0 : i32
    %c0_i32_2 = arith.constant 0 : i32
    return %c0_i32, %c0_i32_0, %c0_i32_1 : i32, i32, i32
  }
  func.func @transform_6(%arg0: i32) -> (i32, i32, i32) {
    %c0_i32 = arith.constant 0 : i32
    %c0_i32_0 = arith.constant 0 : i32
    %c0_i32_1 = arith.constant 0 : i32
    %c0_i32_2 = arith.constant 0 : i32
    return %c0_i32, %c0_i32_0, %c0_i32_1 : i32, i32, i32
  }
  func.func @transform_7(%arg0: i32) -> (i32, i32) {
    %c0_i32 = arith.constant 0 : i32
    %c0_i32_0 = arith.constant 0 : i32
    %c0_i32_1 = arith.constant 0 : i32
    return %c0_i32, %c0_i32_0 : i32, i32
  }
  func.func @transform_8(%arg0: i32) -> (i32, i32, i32) {
    %c0_i32 = arith.constant 0 : i32
    %c0_i32_0 = arith.constant 0 : i32
    %c0_i32_1 = arith.constant 0 : i32
    return %arg0, %c0_i32, %c0_i32_0 : i32, i32, i32
  }
}

</mosaic_0001>

<bundles_post_ra>
// kernel: transformer_learner_pallas.1
= control target key start
LH: loop header
LB: loop body
LE: loop exit
PB: predicated region body
PF: predicated region fallthrough
CT: control target
= control target key end

     0   :  { %vm104_vm0 = vcmask 261120   ;;  %s11433_s9 = smov 32   ;;  %s11434_s18 = smov 96   ;;  %vm11437_vm1 = vmmov 0   ;;  %vm700_vm2 = vcmask 64512   ;;  %vm895_vm3 = vcmask 523264   ;;  %s13838_s0 = inlined_call_operand.vmem [shape: f32[2,32,64], index: 0, kind: input, shape index: {}]   ;;  %s13839_s1 = inlined_call_operand.vmem [shape: f32[8,32], index: 1, kind: input, shape index: {}]   ;;  %s13840_s3 = inlined_call_operand.vmem [shape: f32[32,128], index: 3, kind: input, shape index: {}]   ;;  %s13841_s5 = inlined_call_operand.vmem [shape: f32[2,32,320], index: 5, kind: input, shape index: {}]   ;;  %s13842_s7 = inlined_call_operand.vmem [shape: f32[2,544], index: 7, kind: input, shape index: {}]   ;;  %s13843_s2 = inlined_call_operand.vmem [shape: f32[4,32], index: 2, kind: input, shape index: {}]   ;;  %s13844_s4 = inlined_call_operand.vmem [shape: f32[1,128], index: 4, kind: input, shape index: {}]   ;;  %s13845_s6 = inlined_call_operand.vmem [shape: f32[2,128,32], index: 6, kind: input, shape index: {}]   ;;  %s13846_s8 = inlined_call_operand.vmem [shape: f32[2,8,64], index: 8, kind: output, shape index: {}]  }
   0x1   :  { %v29_v0 = vld [vmem:[%s13838_s0] sm:$0xff]  ;;  %v30_v2 = vld [vmem:[%s13838_s0 + $0x8] sm:$0xff]  ;;  %v31_v4 = vld [vmem:[%s13838_s0 + $0x10] sm:$0xff]  ;;  %s11435_s19 = smov 64   ;;  %s11439_s25 = smov 88  }
   0x2   :  { %33 = vxpose.xlu0.b32.start [1/4] (short) (narrow) %v29_v0, 64  ;;  %v9310_v1 = vld [vmem:[%s13838_s0 + $0x20] sm:$0xff]  ;;  %v9311_v3 = vld [vmem:[%s13838_s0 + $0x28] sm:$0xff]  ;;  %v9312_v5 = vld [vmem:[%s13838_s0 + $0x30] sm:$0xff]  ;;  %s11440_s26 = smov 112   ;;  %s11441_s30 = smov 80  }
   0x3   :  { %70 = vxpose.xlu1.b32.start [1/4] (short) (narrow) %v9310_v1, 64  ;;  %v32_v6 = vld [vmem:[%s13838_s0 + $0x18] sm:$0xff]  ;;  %v11568_v38 = vld [vmem:[%s13839_s1] sm:$0xff]  ;;  %s11442_s10 = smov 104   ;;  %s11443_s13 = smov 72  }
   0x4   :  { %v9313_v7 = vld [vmem:[%s13838_s0 + $0x38] sm:$0xff]  ;;  %v572_v40 = vsel %vm104_vm0, %v11568_v38, 0.0  ;;  %s11445_s14 = smov 48   ;;  %s11446_s15 = smov 40  }
   0x5   :  { %s11448_s29 = smov 24   ;;  %s11449_s17 = smov 16  }
   0x6   :  { %34 = vxpose.xlu0.b32.cont [2/4] (short) (narrow) %v30_v2, 64  ;;  %s11450_s21 = smov 8  }
   0x7   :  { %71 = vxpose.xlu1.b32.cont [2/4] (short) (narrow) %v9311_v3, 64 }
   0xa   :  { %35 = vxpose.xlu0.b32.cont [3/4] (short) (narrow) %v31_v4, 64 }
   0xb   :  { %72 = vxpose.xlu1.b32.cont [3/4] (short) (narrow) %v9312_v5, 64 }
   0xe   :  { %36 = vxpose.xlu0.b32.end [4/4] (short) (narrow) %v32_v6, 64 }
   0xf   :  { %73 = vxpose.xlu1.b32.end [4/4] (short) (narrow) %v9313_v7, 64 }
  0x7e   :  { %v49_v8 = vpop.trf.xlu0 }
  0x7f   :  { %v105_v9 = vsel %vm104_vm0, %v49_v8, 0.0  ;;  %v11521_v10 = vpop.trf.xlu1 }
  0x80   :  { %106 = vadd.xlane.f32.xlu0 %v105_v9  ;;  %v129_v29 = vsel %vm104_vm0, %v11521_v10, 0.0 }
  0x82   :  { %v50_v11 = vpop.trf.xlu0 }
  0x83   :  { %v108_v12 = vsel %vm104_vm0, %v50_v11, 0.0  ;;  %v11524_v13 = vpop.trf.xlu1 }
  0x84   :  { %109 = vadd.xlane.f32.xlu1 %v108_v12  ;;  %v132_v32 = vsel %vm104_vm0, %v11524_v13, 0.0 }
  0x86   :  { %v51_v14 = vpop.trf.xlu0 }
  0x87   :  { %v111_v15 = vsel %vm104_vm0, %v51_v14, 0.0  ;;  %v11527_v16 = vpop.trf.xlu1 }
  0x88   :  { %112 = vadd.xlane.f32.xlu1 %v111_v15  ;;  %v135_v31 = vsel %vm104_vm0, %v11527_v16, 0.0 }
  0x8a   :  { %v52_v17 = vpop.trf.xlu0 }
  0x8b   :  { %v114_v18 = vsel %vm104_vm0, %v52_v17, 0.0  ;;  %v11530_v20 = vpop.trf.xlu1 }
  0x8c   :  { %115 = vadd.xlane.f32.xlu1 %v114_v18  ;;  %v138_v35 = vsel %vm104_vm0, %v11530_v20, 0.0 }
  0x8e   :  { %v53_v19 = vpop.trf.xlu0 }
  0x8f   :  { %v117_v21 = vsel %vm104_vm0, %v53_v19, 0.0  ;;  %v11537_v24 = vpop.trf.xlu1 }
  0x90   :  { %118 = vadd.xlane.f32.xlu0 %v117_v21  ;;  %v141_v34 = vsel %vm104_vm0, %v11537_v24, 0.0 }
  0x92   :  { %v11533_v22 = vpop.trf.xlu0 }
  0x93   :  { %v120_v23 = vsel %vm104_vm0, %v11533_v22, 0.0  ;;  %v11545_v28 = vpop.trf.xlu1 }
  0x94   :  { %121 = vadd.xlane.f32.xlu1 %v120_v23  ;;  %v144_v39 = vsel %vm104_vm0, %v11545_v28, 0.0 }
  0x96   :  { %v11539_v25 = vpop.trf.xlu0 }
  0x97   :  { %v123_v26 = vsel %vm104_vm0, %v11539_v25, 0.0  ;;  %v11555_v33 = vpop.trf.xlu1 }
  0x98   :  { %124 = vadd.xlane.f32.xlu0 %v123_v26  ;;  %v147_v36 = vsel %vm104_vm0, %v11555_v33, 0.0 }
  0x9a   :  { %v11543_v27 = vpop.trf.xlu0 }
  0x9b   :  { %v126_v30 = vsel %vm104_vm0, %v11543_v27, 0.0  ;;  %v11563_v37 = vpop.trf.xlu1 }
  0x9c   :  { %130 = vadd.xlane.f32.xlu0 %v129_v29  ;;  %127 = vadd.xlane.f32.xlu1 %v126_v30  ;;  %v150_v41 = vsel %vm104_vm0, %v11563_v37, 0.0 }
  0xa0   :  { %136 = vadd.xlane.f32.xlu0 %v135_v31  ;;  %133 = vadd.xlane.f32.xlu1 %v132_v32 }
  0xa4   :  { %142 = vadd.xlane.f32.xlu0 %v141_v34  ;;  %139 = vadd.xlane.f32.xlu1 %v138_v35 }
  0xa8   :  { %148 = vadd.xlane.f32.xlu0 %v147_v36  ;;  %145 = vadd.xlane.f32.xlu1 %v144_v39 }
  0xac   :  { %573 = vadd.xlane.f32.xlu0 %v572_v40  ;;  %151 = vadd.xlane.f32.xlu1 %v150_v41 }
 0x109   :  { %v107_v42 = vpop.xlane.xlu0 %106 }
 0x10a   :  { %v154_v43 = vmul.f32 0.03125, %v107_v42 }
 0x10c   :  { %v11576_v44 = vsub.f32 %v49_v8, %v154_v43 }
 0x10d   :  { %v110_v45 = vpop.xlane.xlu1 %109 }
 0x10e   :  { %v155_v46 = vmul.f32 0.03125, %v110_v45  ;;  %v186_v47 = vmul.f32 %v11576_v44, %v11576_v44 }
 0x110   :  { %v11580_v48 = vsub.f32 %v50_v11, %v155_v46  ;;  %v202_v49 = vsel %vm104_vm0, %v186_v47, 0.0  ;;  %v357_v47 = vld [vmem:[%s13840_s3 + $0x10] sm:$0xff] }
 0x111   :  { %v113_v50 = vpop.xlane.xlu1 %112  ;;  %203 = vadd.xlane.f32.xlu1 %v202_v49 }
 0x112   :  { %v156_v51 = vmul.f32 0.03125, %v113_v50  ;;  %v187_v52 = vmul.f32 %v11580_v48, %v11580_v48 }
 0x114   :  { %v11585_v53 = vsub.f32 %v51_v14, %v156_v51  ;;  %v205_v54 = vsel %vm104_vm0, %v187_v52, 0.0 }
 0x115   :  { %v116_v55 = vpop.xlane.xlu1 %115  ;;  %206 = vadd.xlane.f32.xlu0 %v205_v54  ;;  %v356_v54 = vld [vmem:[%s13840_s3 + $0x8] sm:$0xff] }
 0x116   :  { %v157_v56 = vmul.f32 0.03125, %v116_v55  ;;  %v188_v57 = vmul.f32 %v11585_v53, %v11585_v53 }
 0x118   :  { %v11590_v58 = vsub.f32 %v52_v17, %v157_v56  ;;  %v208_v59 = vsel %vm104_vm0, %v188_v57, 0.0 }
 0x119   :  { %209 = vadd.xlane.f32.xlu1 %v208_v59  ;;  %v119_v60 = vpop.xlane.xlu0 %118 }
 0x11a   :  { %v158_v61 = vmul.f32 0.03125, %v119_v60  ;;  %v189_v62 = vmul.f32 %v11590_v58, %v11590_v58  ;;  %v355_v60 = vld [vmem:[%s13840_s3] sm:$0xff] }
 0x11c   :  { %v11595_v63 = vsub.f32 %v53_v19, %v158_v61  ;;  %v211_v0 = vsel %vm104_vm0, %v189_v62, 0.0 }
 0x11d   :  { %v122_v1 = vpop.xlane.xlu1 %121  ;;  %212 = vadd.xlane.f32.xlu0 %v211_v0 }
 0x11e   :  { %v159_v2 = vmul.f32 0.03125, %v122_v1  ;;  %v190_v3 = vmul.f32 %v11595_v63, %v11595_v63 }
 0x120   :  { %v11601_v4 = vsub.f32 %v11533_v22, %v159_v2  ;;  %v214_v5 = vsel %vm104_vm0, %v190_v3, 0.0 }
 0x121   :  { %215 = vadd.xlane.f32.xlu1 %v214_v5  ;;  %v125_v6 = vpop.xlane.xlu0 %124 }
 0x122   :  { %v160_v7 = vmul.f32 0.03125, %v125_v6  ;;  %v191_v8 = vmul.f32 %v11601_v4, %v11601_v4 }
 0x124   :  { %v11607_v9 = vsub.f32 %v11539_v25, %v160_v7  ;;  %v217_v11 = vsel %vm104_vm0, %v191_v8, 0.0 }
 0x125   :  { %218 = vadd.xlane.f32.xlu0 %v217_v11  ;;  %v128_v12 = vpop.xlane.xlu1 %127  ;;  %v131_v14 = vpop.xlane.xlu0 %130 }
 0x126   :  { %v161_v15 = vmul.f32 0.03125, %v128_v12  ;;  %v162_v17 = vmul.f32 0.03125, %v131_v14  ;;  %v192_v18 = vmul.f32 %v11607_v9, %v11607_v9  ;;  %v566_v12 = vld [vmem:[%s13841_s5 + $0x38] sm:$0xff] }
 0x128   :  { %v11613_v19 = vsub.f32 %v11543_v27, %v161_v15  ;;  %v11616_v21 = vsub.f32 %v11521_v10, %v162_v17  ;;  %v220_v22 = vsel %vm104_vm0, %v192_v18, 0.0  ;;  %v563_v15 = vld [vmem:[%s13841_s5 + $0x20] sm:$0xff]  ;;  %v569_v18 = vld [vmem:[%s13841_s5 + $0x50] sm:$0xff] }
 0x129   :  { %v134_v23 = vpop.xlane.xlu1 %133  ;;  %221 = vadd.xlane.f32.xlu1 %v220_v22  ;;  %v137_v25 = vpop.xlane.xlu0 %136  ;;  %v571_v22 = vld [vmem:[%s13842_s7] ss:$2 sm:$0x1f] }
 0x12a   :  { %v163_v26 = vmul.f32 0.03125, %v134_v23  ;;  %v164_v29 = vmul.f32 0.03125, %v137_v25  ;;  %v193_v30 = vmul.f32 %v11613_v19, %v11613_v19  ;;  %v194_v31 = vmul.f32 %v11616_v21, %v11616_v21  ;;  %v560_v25 = vld [vmem:[%s13841_s5 + $0x8] sm:$0xff] }
 0x12c   :  { %v11624_v32 = vsub.f32 %v11524_v13, %v163_v26  ;;  %v11627_v27 = vsub.f32 %v11527_v16, %v164_v29  ;;  %v223_v10 = vsel %vm104_vm0, %v193_v30, 0.0  ;;  %v226_v34 = vsel %vm104_vm0, %v194_v31, 0.0  ;;  %v358_v16 = vld [vmem:[%s13840_s3 + $0x18] sm:$0xff] }
 0x12d   :  { %224 = vadd.xlane.f32.xlu0 %v223_v10  ;;  %v140_v35 = vpop.xlane.xlu1 %139  ;;  %227 = vadd.xlane.f32.xlu1 %v226_v34  ;;  %v143_v36 = vpop.xlane.xlu0 %142 }
 0x12e   :  { %v165_v39 = vmul.f32 0.03125, %v140_v35  ;;  %v166_v40 = vmul.f32 0.03125, %v143_v36  ;;  %v195_v41 = vmul.f32 %v11624_v32, %v11624_v32  ;;  %v196_v13 = vmul.f32 %v11627_v27, %v11627_v27  ;;  %10144 = vmatprep.subr.mxu0 %v358_v16 }
 0x12f   :  { %10145 = vmatpush3.msra.mxu0 %v358_v16 }
 0x130   :  { %v11639_v42 = vsub.f32 %v11530_v20, %v165_v39  ;;  %v11642_v43 = vsub.f32 %v11537_v24, %v166_v40  ;;  %v229_v45 = vsel %vm104_vm0, %v195_v41, 0.0  ;;  %v232_v46 = vsel %vm104_vm0, %v196_v13, 0.0  ;;  %10146 = vmatprep.subr.mxu0 %v357_v47 }
 0x131   :  { %230 = vadd.xlane.f32.xlu0 %v229_v45  ;;  %v146_v49 = vpop.xlane.xlu1 %145  ;;  %233 = vadd.xlane.f32.xlu1 %v232_v46  ;;  %v149_v50 = vpop.xlane.xlu0 %148 }
 0x132   :  { %v167_v51 = vmul.f32 0.03125, %v146_v49  ;;  %v168_v52 = vmul.f32 0.03125, %v149_v50  ;;  %v197_v20 = vmul.f32 %v11639_v42, %v11639_v42  ;;  %v198_v24 = vmul.f32 %v11642_v43, %v11642_v43  ;;  %10147 = vmatpush3.msra.mxu0 %v357_v47  ;;  %v11715_v47 = vld [vmem:[%s13843_s2] ss:$0 sm:$0xff] }
 0x133   :  { %10148 = vmatprep.subr.mxu0 %v356_v54 }
 0x134   :  { %v11657_v55 = vsub.f32 %v11545_v28, %v167_v51  ;;  %v11660_v56 = vsub.f32 %v11555_v33, %v168_v52  ;;  %v235_v57 = vsel %vm104_vm0, %v197_v20, 0.0  ;;  %v238_v59 = vsel %vm104_vm0, %v198_v24, 0.0  ;;  %10149 = vmatpush3.msra.mxu0 %v356_v54  ;;  %v11721_v52 = vld [vmem:[%s13843_s2 + $0x1] ss:$0 sm:$0xff] }
 0x135   :  { %236 = vadd.xlane.f32.xlu0 %v235_v57  ;;  %v152_v61 = vpop.xlane.xlu1 %151  ;;  %239 = vadd.xlane.f32.xlu1 %v238_v59  ;;  %v574_v62 = vpop.xlane.xlu0 %573 }
 0x136   :  { %v169_v0 = vmul.f32 0.03125, %v152_v61  ;;  %v575_v1 = vmul.f32 0.03125, %v574_v62  ;;  %v199_v28 = vmul.f32 %v11657_v55, %v11657_v55  ;;  %v200_v33 = vmul.f32 %v11660_v56, %v11660_v56  ;;  %10150 = vmatprep.subr.mxu0 %v355_v60 }
 0x137   :  { %10151 = vmatpush3.msra.mxu0 %v355_v60 }
 0x138   :  { %v11672_v2 = vsub.f32 %v11563_v37, %v169_v0  ;;  %v11675_v3 = vsub.f32 %v11568_v38, %v575_v1  ;;  %v241_v5 = vsel %vm104_vm0, %v199_v28, 0.0  ;;  %v244_v6 = vsel %vm104_vm0, %v200_v33, 0.0 }
 0x139   :  { %242 = vadd.xlane.f32.xlu0 %v241_v5  ;;  %245 = vadd.xlane.f32.xlu1 %v244_v6  ;;  %v586_v38 = vlaneseq }
 0x13a   :  { %v201_v7 = vmul.f32 %v11672_v2, %v11672_v2  ;;  %v577_v8 = vmul.f32 %v11675_v3, %v11675_v3 }
 0x13b   :  { %v587_v14 = vshrl.u32 %v586_v38, 7 }
 0x13c   :  { %v247_v11 = vsel %vm104_vm0, %v201_v7, 0.0  ;;  %v578_v37 = vsel %vm104_vm0, %v577_v8, 0.0 }
 0x13d   :  { %248 = vadd.xlane.f32.xlu0 %v247_v11  ;;  %579 = vadd.xlane.f32.xlu1 %v578_v37  ;;  %v11692_v17 = vsub.s32 0, %v587_v14 }
 0x13f   :  { %v11703_v23 = vrot.slane %v571_v22, %v11692_v17 }
 0x14e   :  { %612 = vrot.lane.b32.xlu1 %v566_v12, %s11433_s9 }
 0x152   :  { %610 = vrot.lane.b32.xlu1 %v563_v15, %s11433_s9 }
 0x153   :  { %614 = vrot.lane.b32.xlu0 %v569_v18, %s11433_s9 }
 0x156   :  { %608 = vrot.lane.b32.xlu1 %v560_v25, %s11433_s9 }
 0x157   :  { %592 = vrot.lane.b32.xlu0 %v11703_v23, %s11434_s18 }
 0x15b   :  { %596 = vrot.lane.b32.xlu0 %v571_v22, %s11435_s19 }
 0x19a   :  { %v204_v26 = vpop.xlane.xlu1 %203 }
 0x19b   :  { %v250_v29 = vmul.f32 0.03125, %v204_v26 }
 0x19d   :  { %v266_v30 = vadd.f32 1e-05, %v250_v29 }
 0x19e   :  { %v207_v31 = vpop.xlane.xlu0 %206 }
 0x19f   :  { %11216 = vrsqrt.f32 %v266_v30  ;;  %v251_v10 = vmul.f32 0.03125, %v207_v31 }
 0x1a1   :  { %v267_v34 = vadd.f32 1e-05, %v251_v10 }
 0x1a2   :  { %v210_v35 = vpop.xlane.xlu1 %209 }
 0x1a3   :  { %11218 = vrsqrt.f32 %v267_v34  ;;  %v252_v36 = vmul.f32 0.03125, %v210_v35 }
 0x1a5   :  { %v268_v39 = vadd.f32 1e-05, %v252_v36 }
 0x1a6   :  { %v213_v40 = vpop.xlane.xlu0 %212 }
 0x1a7   :  { %11220 = vrsqrt.f32 %v268_v39  ;;  %v253_v41 = vmul.f32 0.03125, %v213_v40 }
 0x1a9   :  { %v269_v13 = vadd.f32 1e-05, %v253_v41 }
 0x1aa   :  { %v216_v16 = vpop.xlane.xlu1 %215 }
 0x1ab   :  { %11222 = vrsqrt.f32 %v269_v13  ;;  %v254_v45 = vmul.f32 0.03125, %v216_v16 }
 0x1ac   :  { %v11217_v46 = vpop.eup %11216 }
 0x1ad   :  { %v270_v49 = vadd.f32 1e-05, %v254_v45  ;;  %v298_v50 = vmul.f32 %v11217_v46, %v11576_v44 }
 0x1ae   :  { %v219_v51 = vpop.xlane.xlu0 %218 }
 0x1af   :  { %11224 = vrsqrt.f32 %v270_v49  ;;  %v255_v20 = vmul.f32 0.03125, %v219_v51  ;;  %v318_v24 = vmul.f32 %v11715_v47, %v298_v50 }
 0x1b0   :  { %v11219_v54 = vpop.eup %11218 }
 0x1b1   :  { %v271_v57 = vadd.f32 1e-05, %v255_v20  ;;  %v11725_v59 = vadd.f32 %v11721_v52, %v318_v24  ;;  %v299_v60 = vmul.f32 %v11219_v54, %v11580_v48 }
 0x1b2   :  { %v222_v61 = vpop.xlane.xlu1 %221 }
 0x1b3   :  { %11226 = vrsqrt.f32 %v271_v57  ;;  %v256_v44 = vmul.f32 0.03125, %v222_v61  ;;  %10152 = vmatprep.mubr.msk.f32.mxu0 %vm104_vm0, %v11725_v59  ;;  %v319_v62 = vmul.f32 %v11715_v47, %v299_v60 }
 0x1b4   :  { %v11221_v0 = vpop.eup %11220 }
 0x1b5   :  { %v272_v1 = vadd.f32 1e-05, %v256_v44  ;;  %v11732_v28 = vadd.f32 %v11721_v52, %v319_v62  ;;  %v300_v33 = vmul.f32 %v11221_v0, %v11585_v53 }
 0x1b6   :  { %v228_v5 = vpop.xlane.xlu1 %227  ;;  %v225_v6 = vpop.xlane.xlu0 %224 }
 0x1b7   :  { %11228 = vrsqrt.f32 %v272_v1  ;;  %v258_v7 = vmul.f32 0.03125, %v228_v5  ;;  %v257_v48 = vmul.f32 0.03125, %v225_v6  ;;  %10153 = vmatmul.mubr.msk.f32.vlgmr.msra.gmra.mxu0 %vm104_vm0, %v11732_v28  ;;  %v320_v8 = vmul.f32 %v11715_v47, %v300_v33 }
 0x1b8   :  { %v11223_v11 = vpop.eup %11222 }
 0x1b9   :  { %v274_v37 = vadd.f32 1e-05, %v258_v7  ;;  %v273_v38 = vadd.f32 1e-05, %v257_v48  ;;  %v11739_v12 = vadd.f32 %v11721_v52, %v320_v8  ;;  %v301_v14 = vmul.f32 %v11223_v11, %v11590_v58 }
 0x1ba   :  { %v234_v15 = vpop.xlane.xlu1 %233  ;;  %v231_v53 = vpop.xlane.xlu0 %230 }
 0x1bb   :  { %11230 = vrsqrt.f32 %v274_v37  ;;  %v260_v18 = vmul.f32 0.03125, %v234_v15  ;;  %v259_v22 = vmul.f32 0.03125, %v231_v53  ;;  %10155 = vmatprep.mubr.msk.f32.mxu0 %vm104_vm0, %v11739_v12  ;;  %v321_v25 = vmul.f32 %v11715_v47, %v301_v14 }
 0x1bc   :  { %v11225_v26 = vpop.eup %11224  ;;  %11232 = vrsqrt.f32 %v273_v38 }
 0x1bd   :  { %v276_v29 = vadd.f32 1e-05, %v260_v18  ;;  %v275_v30 = vadd.f32 1e-05, %v259_v22  ;;  %v11746_v31 = vadd.f32 %v11721_v52, %v321_v25  ;;  %v302_v10 = vmul.f32 %v11225_v26, %v11595_v63 }
 0x1be   :  { %v240_v58 = vpop.xlane.xlu1 %239  ;;  %v237_v34 = vpop.xlane.xlu0 %236 }
 0x1bf   :  { %11234 = vrsqrt.f32 %v276_v29  ;;  %v262_v35 = vmul.f32 0.03125, %v240_v58  ;;  %v261_v36 = vmul.f32 0.03125, %v237_v34  ;;  %10156 = vmatmul.mubr.msk.f32.gmra.mxu0 %vm104_vm0, %v11746_v31  ;;  %v322_v39 = vmul.f32 %v11715_v47, %v302_v10 }
 0x1c0   :  { %v11227_v40 = vpop.eup %11226  ;;  %11236 = vrsqrt.f32 %v275_v30 }
 0x1c1   :  { %v278_v41 = vadd.f32 1e-05, %v262_v35  ;;  %v277_v13 = vadd.f32 1e-05, %v261_v36  ;;  %v11753_v16 = vadd.f32 %v11721_v52, %v322_v39  ;;  %v303_v45 = vmul.f32 %v11227_v40, %v11601_v4 }
 0x1c2   :  { %v246_v63 = vpop.xlane.xlu1 %245  ;;  %v243_v46 = vpop.xlane.xlu0 %242 }
 0x1c3   :  { %11238 = vrsqrt.f32 %v278_v41  ;;  %v264_v49 = vmul.f32 0.03125, %v246_v63  ;;  %v263_v50 = vmul.f32 0.03125, %v243_v46  ;;  %10158 = vmatprep.mubr.msk.f32.mxu0 %vm104_vm0, %v11753_v16  ;;  %v323_v51 = vmul.f32 %v11715_v47, %v303_v45 }
 0x1c4   :  { %v11229_v20 = vpop.eup %11228  ;;  %11240 = vrsqrt.f32 %v277_v13 }
 0x1c5   :  { %v280_v24 = vadd.f32 1e-05, %v264_v49  ;;  %v279_v54 = vadd.f32 1e-05, %v263_v50  ;;  %v11760_v57 = vadd.f32 %v11721_v52, %v323_v51  ;;  %v304_v60 = vmul.f32 %v11229_v20, %v11607_v9 }
 0x1c6   :  { %v580_v4 = vpop.xlane.xlu1 %579  ;;  %v249_v61 = vpop.xlane.xlu0 %248 }
 0x1c7   :  { %11242 = vrsqrt.f32 %v280_v24  ;;  %v581_v44 = vmul.f32 0.03125, %v580_v4  ;;  %v265_v62 = vmul.f32 0.03125, %v249_v61  ;;  %10159 = vmatmul.mubr.msk.f32.gmra.mxu0 %vm104_vm0, %v11760_v57  ;;  %v324_v0 = vmul.f32 %v11715_v47, %v304_v60 }
 0x1c8   :  { %v11231_v1 = vpop.eup %11230  ;;  %11244 = vrsqrt.f32 %v279_v54 }
 0x1c9   :  { %v11233_v33 = vpop.eup %11232  ;;  %v582_v5 = vadd.f32 1e-05, %v581_v44  ;;  %v281_v6 = vadd.f32 1e-05, %v265_v62  ;;  %v11767_v7 = vadd.f32 %v11721_v52, %v324_v0  ;;  %v306_v9 = vmul.f32 %v11231_v1, %v11616_v21  ;;  %v11847_v0 = vld [vmem:[%s13844_s4] ss:$0 sm:$0xff] }
 0x1ca   :  { %v305_v48 = vmul.f32 %v11233_v33, %v11613_v19  ;;  %v613_v8 = vpop.permute.xlu1 %612  ;;  %v615_v11 = vpop.permute.xlu0 %614  ;;  %s11438_s4 = smov 120  }
 0x1cb   :  { %11246 = vrsqrt.f32 %v582_v5  ;;  %10161 = vmatprep.mubr.msk.f32.mxu0 %vm104_vm0, %v11767_v7  ;;  %v326_v37 = vmul.f32 %v11715_v47, %v306_v9  ;;  %10176 = vmatprep.subr.mxu1 %v615_v11 }
 0x1cc   :  { %v11235_v38 = vpop.eup %11234  ;;  %11248 = vrsqrt.f32 %v281_v6  ;;  %v325_v14 = vmul.f32 %v11715_v47, %v305_v48  ;;  %10177 = vmatpush3.msra.mxu1 %v615_v11 }
 0x1cd   :  { %v11237_v15 = vpop.eup %11236  ;;  %v11776_v53 = vadd.f32 %v11721_v52, %v326_v37  ;;  %v308_v19 = vmul.f32 %v11235_v38, %v11627_v27  ;;  %10178 = vmatprep.subr.mxu1 %v613_v8 }
 0x1ce   :  { %v11780_v21 = vadd.f32 %v11721_v52, %v325_v14  ;;  %v307_v18 = vmul.f32 %v11237_v15, %v11624_v32  ;;  %v611_v22 = vpop.permute.xlu1 %610  ;;  %10179 = vmatpush3.msra.mxu1 %v613_v8 }
 0x1cf   :  { %13850 = vst [vmem:[#allocation2_spill] sm:$0xff] %v11776_v53  ;;  %v328_v25 = vmul.f32 %v11715_v47, %v308_v19  ;;  %10180 = vmatprep.subr.mxu1 %v611_v22 }
 0x1d0   :  { %v11239_v26 = vpop.eup %11238  ;;  %10162 = vmatmul.mubr.msk.f32.gmra.mxu0 %vm104_vm0, %v11780_v21  ;;  %v327_v29 = vmul.f32 %v11715_v47, %v307_v18  ;;  %10181 = vmatpush3.msra.mxu1 %v611_v22 }
 0x1d1   :  { %v11241_v30 = vpop.eup %11240  ;;  %10164 = vmatprep.mubr.msk.f32.mxu0 %vm104_vm0, %v11776_v53  ;;  %v11790_v27 = vadd.f32 %v11721_v52, %v328_v25  ;;  %v310_v32 = vmul.f32 %v11239_v26, %v11642_v43 }
 0x1d2   :  { %v11794_v10 = vadd.f32 %v11721_v52, %v327_v29  ;;  %v309_v58 = vmul.f32 %v11241_v30, %v11639_v42  ;;  %v609_v34 = vpop.permute.xlu1 %608 }
 0x1d3   :  { %v330_v35 = vmul.f32 %v11715_v47, %v310_v32  ;;  %10182 = vmatprep.subr.mxu1 %v609_v34 }
 0x1d4   :  { %v11243_v36 = vpop.eup %11242  ;;  %10165 = vmatmul.mubr.msk.f32.gmra.mxu0 %vm104_vm0, %v11794_v10  ;;  %v329_v39 = vmul.f32 %v11715_v47, %v309_v58  ;;  %10183 = vmatpush3.msra.mxu1 %v609_v34 }
 0x1d5   :  { %v11245_v40 = vpop.eup %11244  ;;  %10167 = vmatprep.mubr.msk.f32.mxu0 %vm104_vm0, %v11790_v27  ;;  %v11804_v43 = vadd.f32 %v11721_v52, %v330_v35  ;;  %v312_v42 = vmul.f32 %v11243_v36, %v11660_v56 }
 0x1d6   :  { %v11808_v41 = vadd.f32 %v11721_v52, %v329_v39  ;;  %v311_v13 = vmul.f32 %v11245_v40, %v11657_v55  ;;  %v593_v55 = vpop.permute.xlu0 %592 }
 0x1d7   :  { %v332_v45 = vmul.f32 %v11715_v47, %v312_v42 }
 0x1d8   :  { %v11247_v63 = vpop.eup %11246  ;;  %10168 = vmatmul.mubr.msk.f32.gmra.mxu0 %vm104_vm0, %v11808_v41  ;;  %v331_v46 = vmul.f32 %v11715_v47, %v311_v13 }
 0x1d9   :  { %v11249_v49 = vpop.eup %11248  ;;  %10170 = vmatprep.mubr.msk.f32.mxu0 %vm104_vm0, %v11804_v43  ;;  %v11818_v50 = vadd.f32 %v11721_v52, %v332_v45  ;;  %v584_v56 = vmul.f32 %v11247_v63, %v11675_v3 }
 0x1da   :  { %v11822_v51 = vadd.f32 %v11721_v52, %v331_v46  ;;  %v313_v20 = vmul.f32 %v11249_v49, %v11672_v2  ;;  %v13847_v2 = vmov 0.0   ;;  %v597_v26 = vpop.permute.xlu0 %596 }
 0x1db   :  { %v591_v24 = vmul.f32 %v11703_v23, %v584_v56  ;;  %10187 = vmatprep.subr.mxu0 %v13847_v2  ;;  %10206 = vmatprep.subr.mxu1 %v13847_v2  ;;  %v598_v58 = vrot.slane %v597_v26, 1 }
 0x1dc   :  { %10171 = vmatmul.mubr.msk.f32.gmra.mxu0 %vm104_vm0, %v11822_v51  ;;  %v333_v54 = vmul.f32 %v11715_v47, %v313_v20 }
 0x1dd   :  { %10173 = vmatprep.mubr.msk.f32.mxu0 %vm104_vm0, %v11818_v50  ;;  %v595_v60 = vadd.f32 %v593_v55, %v591_v24  ;;  %v602_v39 = vrot.slane %v598_v58, %v11692_v17 }
 0x1de   :  { %v11832_v4 = vadd.f32 %v11721_v52, %v333_v54 }
 0x1df   :  { %10184 = vmatprep.mubr.msk.f32.mxu1 %vm104_vm0, %v595_v60 }
 0x1e0   :  { %10174 = vmatmul.mubr.msk.f32.gmra.mxu0 %vm104_vm0, %v11832_v4  ;;  %10185 = vmatmul.mubr.msk.f32.vlgmr.msra.gmra.mxu1 %vm104_vm0, %v595_v60 }
 0x1e1   :  { %10203 = vmatprep.mubr.msk.f32.mxu0 %vm11437_vm1, %v13847_v2  ;;  %10222 = vmatprep.mubr.msk.f32.mxu1 %vm11437_vm1, %v13847_v2 }
 0x277   :  { %v10154_v3 = vpop.f32.mrf.mxu0 }
 0x278   :  { %v11906_v34 = vadd.f32 %v10154_v3, %v11847_v0 }
 0x279   :  { %v480_v47 = vpop.f32.mrf.mxu0 }
 0x27a   :  { %v11919_v42 = vadd.f32 %v11847_v0, %v480_v47 }
 0x27f   :  { %v10157_v52 = vpop.f32.mrf.mxu0 }
 0x280   :  { %v11877_v19 = vadd.f32 %v10157_v52, %v11847_v0 }
 0x281   :  { %v490_v61 = vpop.f32.mrf.mxu0 }
 0x282   :  { %v11894_v29 = vadd.f32 %v11847_v0, %v490_v61 }
 0x287   :  { %v10160_v44 = vpop.f32.mrf.mxu0 }
 0x288   :  { %v11861_v8 = vadd.f32 %v10160_v44, %v11847_v0 }
 0x289   :  { %v500_v62 = vpop.f32.mrf.mxu0 }
 0x28a   :  { %v11869_v38 = vadd.f32 %v11847_v0, %v500_v62 }
 0x290   :  { %v10163_v1 = vpop.f32.mrf.mxu0 }
 0x291   :  { %v11850_v33 = vadd.f32 %v10163_v1, %v11847_v0 }
 0x292   :  { %v510_v5 = vpop.f32.mrf.mxu0 }
 0x293   :  { %v11853_v6 = vadd.f32 %v11847_v0, %v510_v5  ;;  %10188 = vmatpush3.xpose.msk.msra.mxu0 %vm700_vm2, %v11850_v33 }
 0x294   :  { %v10166_v9 = vpop.f32.mrf.mxu0  ;;  %10189 = vmatprep.subr.mxu0 %v13847_v2 }
 0x295   :  { %930 = vrot.lane.b32.xlu0 %v11853_v6, %s11434_s18  ;;  %v11949_v49 = vadd.f32 %v10166_v9, %v11847_v0 }
 0x296   :  { %v520_v48 = vpop.f32.mrf.mxu0 }
 0x297   :  { %10190 = vmatpush3.xpose.msk.msra.mxu0 %vm700_vm2, %v11853_v6  ;;  %v11955_v55 = vadd.f32 %v11847_v0, %v520_v48 }
 0x298   :  { %v10169_v11 = vpop.f32.mrf.mxu0  ;;  %10191 = vmatprep.subr.mxu0 %v13847_v2 }
 0x299   :  { %928 = vrot.lane.b32.xlu0 %v11861_v8, %s11434_s18  ;;  %v11933_v63 = vadd.f32 %v10169_v11, %v11847_v0 }
 0x29a   :  { %v530_v37 = vpop.f32.mrf.mxu0 }
 0x29b   :  { %10192 = vmatpush3.xpose.msk.msra.mxu0 %vm700_vm2, %v11861_v8  ;;  %v11943_v46 = vadd.f32 %v11847_v0, %v530_v37 }
 0x29c   :  { %v10172_v14 = vpop.f32.mrf.mxu0  ;;  %10193 = vmatprep.subr.mxu0 %v13847_v2 }
 0x29d   :  { %926 = vrot.lane.b32.xlu0 %v11869_v38, %s11434_s18  ;;  %v11909_v35 = vadd.f32 %v10172_v14, %v11847_v0 }
 0x29e   :  { %v540_v15 = vpop.f32.mrf.mxu0 }
 0x29f   :  { %10194 = vmatpush3.xpose.msk.msra.mxu0 %vm700_vm2, %v11869_v38  ;;  %v11922_v13 = vadd.f32 %v11847_v0, %v540_v15 }
 0x2a0   :  { %v10175_v18 = vpop.f32.mrf.mxu0  ;;  %10195 = vmatprep.subr.mxu0 %v13847_v2  ;;  %v10186_v30 = vpop.f32.mrf.mxu1 }
 0x2a1   :  { %v11883_v22 = vadd.f32 %v10175_v18, %v11847_v0  ;;  %924 = vrot.lane.b32.xlu0 %v11877_v19, %s11434_s18  ;;  %v695_v56 = vadd.f32 %v10186_v30, %v602_v39 }
 0x2a2   :  { %v550_v25 = vpop.f32.mrf.mxu0  ;;  %v689_v36 = vpop.f32.mrf.mxu1 }
 0x2a3   :  { %10196 = vmatpush3.xpose.msk.msra.mxu0 %vm700_vm2, %v11877_v19  ;;  %10207 = vmatpush3.xpose.msk.msra.mxu1 %vm700_vm2, %v11883_v22  ;;  %v11897_v32 = vadd.f32 %v11847_v0, %v550_v25  ;;  %v690_v40 = vadd.f32 %v689_v36, %v602_v39  ;;  %v11959_v20 = vmul.f32 0.35355338, %v695_v56 }
 0x2a4   :  { %10197 = vmatprep.subr.mxu0 %v13847_v2  ;;  %10208 = vmatprep.subr.mxu1 %v13847_v2 }
 0x2a5   :  { %v11928_v45 = vmul.f32 0.35355338, %v690_v40 }
 0x2a7   :  { %10198 = vmatpush3.xpose.msk.msra.mxu0 %vm700_vm2, %v11894_v29  ;;  %10209 = vmatpush3.xpose.msk.msra.mxu1 %vm700_vm2, %v11897_v32 }
 0x2a8   :  { %10199 = vmatprep.subr.mxu0 %v13847_v2  ;;  %10210 = vmatprep.subr.mxu1 %v13847_v2 }
 0x2ab   :  { %10200 = vmatpush3.xpose.msk.msra.mxu0 %vm700_vm2, %v11906_v34  ;;  %10211 = vmatpush3.xpose.msk.msra.mxu1 %vm700_vm2, %v11909_v35 }
 0x2ac   :  { %10201 = vmatprep.subr.mxu0 %v13847_v2  ;;  %10212 = vmatprep.subr.mxu1 %v13847_v2 }
 0x2af   :  { %10202 = vmatpush3.xpose.msk.msra.mxu0 %vm700_vm2, %v11919_v42  ;;  %10213 = vmatpush3.xpose.msk.msra.mxu1 %vm700_vm2, %v11922_v13 }
 0x2b0   :  { %10214 = vmatprep.subr.mxu1 %v13847_v2  ;;  %10225 = vmatprep.subr.mxu0 %v13847_v2 }
 0x2b2   :  { %10204 = vmatmul.mubr.msk.f32.vlgmr.msra.gmra.mxu0 %vm700_vm2, %v11928_v45 }
 0x2b3   :  { %10215 = vmatpush3.xpose.msk.msra.mxu1 %vm700_vm2, %v11933_v63  ;;  %10241 = vmatprep.mubr.msk.f32.mxu0 %vm11437_vm1, %v13847_v2 }
 0x2b4   :  { %10216 = vmatprep.subr.mxu1 %v13847_v2 }
 0x2b7   :  { %10217 = vmatpush3.xpose.msk.msra.mxu1 %vm700_vm2, %v11943_v46 }
 0x2b8   :  { %10218 = vmatprep.subr.mxu1 %v13847_v2 }
 0x2bb   :  { %10219 = vmatpush3.xpose.msk.msra.mxu1 %vm700_vm2, %v11949_v49 }
 0x2bc   :  { %10220 = vmatprep.subr.mxu1 %v13847_v2 }
 0x2bf   :  { %10221 = vmatpush3.xpose.msk.msra.mxu1 %vm700_vm2, %v11955_v55 }
 0x2c0   :  { %10282 = vmatprep.subr.mxu1 %v13847_v2 }
 0x2c2   :  { %10223 = vmatmul.mubr.msk.f32.vlgmr.msra.gmra.mxu1 %vm700_vm2, %v11959_v20 }
 0x2c3   :  { %10298 = vmatprep.mubr.msk.f32.mxu1 %vm11437_vm1, %v13847_v2 }
 0x307   :  { %v931_v61 = vpop.permute.xlu0 %930 }
 0x30b   :  { %v929_v44 = vpop.permute.xlu0 %928 }
 0x30f   :  { %v927_v9 = vpop.permute.xlu0 %926 }
 0x313   :  { %v925_v11 = vpop.permute.xlu0 %924 }
 0x372   :  { %v794_v24 = vpop.f32.mrf.mxu0 }
 0x373   :  { %v896_v54 = vsel %vm895_vm3, %v794_v24, -inf }
 0x374   :  { %897 = vmax.xlane.f32.xlu1 %v896_v54  ;;  %v10205_v60 = vpop.f32.mrf.mxu0 }
 0x382   :  { %v891_v3 = vpop.f32.mrf.mxu1 }
 0x383   :  { %v899_v47 = vsel %vm895_vm3, %v891_v3, -inf }
 0x384   :  { %900 = vmax.xlane.f32.xlu0 %v899_v47  ;;  %v10224_v52 = vpop.f32.mrf.mxu1 }
 0x385   :  { %932 = vrot.lane.b32.xlu1 %v11850_v33, %s11434_s18 }
 0x389   :  { %1025 = vrot.lane.b32.xlu1 %v11909_v35, %s11434_s18 }
 0x38d   :  { %1015 = vrot.lane.b32.xlu1 %v11955_v55, %s11434_s18 }
 0x391   :  { %1234 = vrot.lane.b32.xlu1 %v11883_v22, %s11438_s4 }
 0x395   :  { %1232 = vrot.lane.b32.xlu1 %v11897_v32, %s11438_s4 }
 0x39a   :  { %922 = vrot.lane.b32.xlu0 %v11894_v29, %s11434_s18 }
 0x39e   :  { %920 = vrot.lane.b32.xlu0 %v11906_v34, %s11434_s18 }
 0x3a2   :  { %918 = vrot.lane.b32.xlu0 %v11919_v42, %s11434_s18 }
 0x3a6   :  { %1029 = vrot.lane.b32.xlu0 %v11883_v22, %s11434_s18 }
 0x3aa   :  { %1027 = vrot.lane.b32.xlu0 %v11897_v32, %s11434_s18 }
 0x3ae   :  { %1023 = vrot.lane.b32.xlu0 %v11922_v13, %s11434_s18 }
 0x3fd   :  { %v898_v62 = vpop.xlane.xlu1 %897 }
 0x3fe   :  { %v902_v0 = vsub.f32 %v794_v24, %v898_v62 }
 0x400   :  { %v904_v1 = vmul.f32 1.442695, %v902_v0 }
 0x401   :  { %v933_v5 = vpop.permute.xlu1 %932 }
 0x402   :  { %11250 = vpow2.f32 %v904_v1  ;;  %10226 = vmatpush3.msra.mxu0 %v933_v5 }
 0x403   :  { %10227 = vmatprep.subr.mxu0 %v13847_v2 }
 0x404   :  { %10228 = vmatpush3.msra.mxu0 %v931_v61 }
 0x405   :  { %v11991_v48 = vpop.permute.xlu1 %1025  ;;  %10229 = vmatprep.subr.mxu0 %v13847_v2 }
 0x406   :  { %10230 = vmatpush3.msra.mxu0 %v929_v44 }
 0x407   :  { %10231 = vmatprep.subr.mxu0 %v13847_v2 }
 0x408   :  { %10232 = vmatpush3.msra.mxu0 %v927_v9 }
 0x409   :  { %v11995_v37 = vpop.permute.xlu1 %1015  ;;  %10233 = vmatprep.subr.mxu0 %v13847_v2 }
 0x40a   :  { %10234 = vmatpush3.msra.mxu0 %v925_v11 }
 0x40b   :  { %10235 = vmatprep.subr.mxu0 %v13847_v2 }
 0x40d   :  { %v1235_v14 = vpop.permute.xlu1 %1234  ;;  %v901_v15 = vpop.xlane.xlu0 %900 }
 0x40e   :  { %v903_v18 = vsub.f32 %v891_v3, %v901_v15  ;;  %10283 = vmatpush3.xpose.msk.msra.mxu1 %vm700_vm2, %v1235_v14 }
 0x40f   :  { %v11251_v25 = vpop.eup %11250  ;;  %10284 = vmatprep.subr.mxu1 %v13847_v2 }
 0x410   :  { %v906_v26 = vmul.f32 1.442695, %v903_v18  ;;  %v908_v30 = vsel %vm895_vm3, %v11251_v25, 0.0 }
 0x411   :  { %909 = vadd.xlane.f32.xlu0 %v908_v30  ;;  %v1233_v58 = vpop.permute.xlu1 %1232  ;;  %v923_v36 = vpop.permute.xlu0 %922 }
 0x412   :  { %11252 = vpow2.f32 %v906_v26  ;;  %10236 = vmatpush3.msra.mxu0 %v923_v36  ;;  %10285 = vmatpush3.xpose.msk.msra.mxu1 %vm700_vm2, %v1233_v58 }
 0x413   :  { %10237 = vmatprep.subr.mxu0 %v13847_v2  ;;  %10286 = vmatprep.subr.mxu1 %v13847_v2 }
 0x415   :  { %v921_v39 = vpop.permute.xlu0 %920 }
 0x416   :  { %10238 = vmatpush3.msra.mxu0 %v921_v39 }
 0x417   :  { %10239 = vmatprep.subr.mxu0 %v13847_v2 }
 0x419   :  { %v919_v40 = vpop.permute.xlu0 %918 }
 0x41a   :  { %10240 = vmatpush3.msra.mxu0 %v919_v40 }
 0x41b   :  { %10244 = vmatprep.subr.mxu0 %v13847_v2 }
 0x41d   :  { %v1030_v54 = vpop.permute.xlu0 %1029 }
 0x41f   :  { %v12007_v56 = vpop.eup %11252 }
 0x420   :  { %v911_v24 = vsel %vm895_vm3, %v12007_v56, 0.0 }
 0x421   :  { %912 = vadd.xlane.f32.xlu1 %v911_v24  ;;  %v1028_v60 = vpop.permute.xlu0 %1027 }
 0x425   :  { %v1024_v3 = vpop.permute.xlu0 %1023 }
 0x427   :  { %1021 = vrot.lane.b32.xlu0 %v11933_v63, %s11434_s18 }
 0x42b   :  { %1019 = vrot.lane.b32.xlu0 %v11943_v46, %s11434_s18 }
 0x42f   :  { %1017 = vrot.lane.b32.xlu0 %v11949_v49, %s11434_s18 }
 0x432   :  { %1230 = vrot.lane.b32.xlu1 %v11909_v35, %s11438_s4 }
 0x433   :  { %1128 = vrot.lane.b32.xlu0 %v11850_v33, %s11438_s4 }
 0x436   :  { %1228 = vrot.lane.b32.xlu1 %v11922_v13, %s11438_s4 }
 0x437   :  { %1126 = vrot.lane.b32.xlu0 %v11853_v6, %s11438_s4 }
 0x43a   :  { %1226 = vrot.lane.b32.xlu1 %v11933_v63, %s11438_s4 }
 0x43b   :  { %1124 = vrot.lane.b32.xlu0 %v11861_v8, %s11438_s4 }
 0x43e   :  { %1224 = vrot.lane.b32.xlu1 %v11943_v46, %s11438_s4 }
 0x43f   :  { %1122 = vrot.lane.b32.xlu0 %v11869_v38, %s11438_s4 }
 0x442   :  { %1222 = vrot.lane.b32.xlu1 %v11949_v49, %s11438_s4 }
 0x443   :  { %1120 = vrot.lane.b32.xlu0 %v11877_v19, %s11438_s4 }
 0x446   :  { %1220 = vrot.lane.b32.xlu1 %v11955_v55, %s11438_s4 }
 0x447   :  { %1118 = vrot.lane.b32.xlu0 %v11894_v29, %s11438_s4 }
 0x44a   :  { %1218 = vrot.lane.b32.xlu1 %v11959_v20, %s11438_s4 }
 0x44b   :  { %1116 = vrot.lane.b32.xlu0 %v11906_v34, %s11438_s4 }
 0x44f   :  { %1114 = vrot.lane.b32.xlu0 %v11919_v42, %s11438_s4 }
 0x453   :  { %1112 = vrot.lane.b32.xlu0 %v11928_v45, %s11438_s4 }
 0x49a   :  { %v910_v47 = vpop.xlane.xlu0 %909 }
 0x49b   :  { %11254 = vrcp.f32 %v910_v47 }
 0x49e   :  { %v1022_v52 = vpop.permute.xlu0 %1021 }
 0x4a2   :  { %v1020_v61 = vpop.permute.xlu0 %1019 }
 0x4a6   :  { %v1018_v44 = vpop.permute.xlu0 %1017 }
 0x4a8   :  { %v11255_v62 = vpop.eup %11254 }
 0x4a9   :  { %v915_v0 = vmul.f32 %v11255_v62, %v11251_v25 }
 0x4aa   :  { %v913_v1 = vpop.xlane.xlu1 %912  ;;  %v1129_v5 = vpop.permute.xlu0 %1128 }
 0x4ab   :  { %11256 = vrcp.f32 %v913_v1  ;;  %10242 = vmatmul.mubr.msk.f32.vlgmr.msra.gmra.mxu0 %vm895_vm3, %v915_v0 }
 0x4ac   :  { %10245 = vmatpush3.msra.mxu0 %v1030_v54  ;;  %10260 = vmatprep.mubr.msk.f32.mxu0 %vm11437_vm1, %v13847_v2 }
 0x4ad   :  { %10246 = vmatprep.subr.mxu0 %v13847_v2 }
 0x4ae   :  { %10247 = vmatpush3.msra.mxu0 %v1028_v60  ;;  %v1231_v9 = vpop.permute.xlu1 %1230  ;;  %v1127_v11 = vpop.permute.xlu0 %1126 }
 0x4af   :  { %10248 = vmatprep.subr.mxu0 %v13847_v2  ;;  %10287 = vmatpush3.xpose.msk.msra.mxu1 %vm700_vm2, %v1231_v9 }
 0x4b0   :  { %10249 = vmatpush3.msra.mxu0 %v11991_v48  ;;  %10288 = vmatprep.subr.mxu1 %v13847_v2 }
 0x4b1   :  { %10250 = vmatprep.subr.mxu0 %v13847_v2 }
 0x4b2   :  { %10251 = vmatpush3.msra.mxu0 %v1024_v3  ;;  %v1229_v14 = vpop.permute.xlu1 %1228  ;;  %v1125_v15 = vpop.permute.xlu0 %1124 }
 0x4b3   :  { %10252 = vmatprep.subr.mxu0 %v13847_v2  ;;  %10289 = vmatpush3.xpose.msk.msra.mxu1 %vm700_vm2, %v1229_v14 }
 0x4b4   :  { %10253 = vmatpush3.msra.mxu0 %v1022_v52  ;;  %10290 = vmatprep.subr.mxu1 %v13847_v2 }
 0x4b5   :  { %10254 = vmatprep.subr.mxu0 %v13847_v2 }
 0x4b6   :  { %10255 = vmatpush3.msra.mxu0 %v1020_v61  ;;  %v1227_v18 = vpop.permute.xlu1 %1226  ;;  %v1123_v30 = vpop.permute.xlu0 %1122 }
 0x4b7   :  { %10256 = vmatprep.subr.mxu0 %v13847_v2  ;;  %10291 = vmatpush3.xpose.msk.msra.mxu1 %vm700_vm2, %v1227_v18 }
 0x4b8   :  { %v11257_v48 = vpop.eup %11256  ;;  %10257 = vmatpush3.msra.mxu0 %v1018_v44  ;;  %10292 = vmatprep.subr.mxu1 %v13847_v2 }
 0x4b9   :  { %10258 = vmatprep.subr.mxu0 %v13847_v2  ;;  %v917_v25 = vmul.f32 %v11257_v48, %v12007_v56 }
 0x4ba   :  { %10259 = vmatpush3.msra.mxu0 %v11995_v37  ;;  %v1225_v26 = vpop.permute.xlu1 %1224  ;;  %v1121_v37 = vpop.permute.xlu0 %1120 }
 0x4bb   :  { %10263 = vmatprep.subr.mxu0 %v13847_v2  ;;  %10261 = vmatmul.mubr.msk.f32.vlgmr.msra.gmra.mxu0 %vm895_vm3, %v917_v25 }
 0x4bc   :  { %10264 = vmatpush3.xpose.msk.msra.mxu0 %vm700_vm2, %v1129_v5  ;;  %10293 = vmatpush3.xpose.msk.msra.mxu1 %vm700_vm2, %v1225_v26 }
 0x4bd   :  { %10294 = vmatprep.subr.mxu1 %v13847_v2  ;;  %10265 = vmatprep.subr.mxu0 %v13847_v2 }
 0x4be   :  { %v1223_v58 = vpop.permute.xlu1 %1222  ;;  %10279 = vmatprep.mubr.msk.f32.mxu0 %vm11437_vm1, %v13847_v2  ;;  %v1119_v40 = vpop.permute.xlu0 %1118 }
 0x4c0   :  { %10266 = vmatpush3.xpose.msk.msra.mxu0 %vm700_vm2, %v1127_v11  ;;  %10295 = vmatpush3.xpose.msk.msra.mxu1 %vm700_vm2, %v1223_v58 }
 0x4c1   :  { %10296 = vmatprep.subr.mxu1 %v13847_v2  ;;  %10267 = vmatprep.subr.mxu0 %v13847_v2 }
 0x4c2   :  { %v1221_v36 = vpop.permute.xlu1 %1220  ;;  %v1117_v56 = vpop.permute.xlu0 %1116 }
 0x4c4   :  { %10268 = vmatpush3.xpose.msk.msra.mxu0 %vm700_vm2, %v1125_v15  ;;  %10297 = vmatpush3.xpose.msk.msra.mxu1 %vm700_vm2, %v1221_v36 }
 0x4c5   :  { %10269 = vmatprep.subr.mxu0 %v13847_v2  ;;  %10320 = vmatprep.subr.mxu1 %v13847_v2 }
 0x4c6   :  { %v1219_v39 = vpop.permute.xlu1 %1218  ;;  %v1115_v24 = vpop.permute.xlu0 %1114 }
 0x4c7   :  { %10299 = vmatmul.mubr.msk.f32.vlgmr.msra.gmra.mxu1 %vm700_vm2, %v1219_v39 }
 0x4c8   :  { %10270 = vmatpush3.xpose.msk.msra.mxu0 %vm700_vm2, %v1123_v30  ;;  %10336 = vmatprep.mubr.msk.f32.mxu1 %vm11437_vm1, %v13847_v2 }
 0x4c9   :  { %10271 = vmatprep.subr.mxu0 %v13847_v2 }
 0x4ca   :  { %v1113_v54 = vpop.permute.xlu0 %1112 }
 0x4cc   :  { %10272 = vmatpush3.xpose.msk.msra.mxu0 %vm700_vm2, %v1121_v37 }
 0x4cd   :  { %10273 = vmatprep.subr.mxu0 %v13847_v2 }
 0x4d0   :  { %10274 = vmatpush3.xpose.msk.msra.mxu0 %vm700_vm2, %v1119_v40 }
 0x4d1   :  { %10275 = vmatprep.subr.mxu0 %v13847_v2 }
 0x4d4   :  { %10276 = vmatpush3.xpose.msk.msra.mxu0 %vm700_vm2, %v1117_v56 }
 0x4d5   :  { %10277 = vmatprep.subr.mxu0 %v13847_v2 }
 0x4d8   :  { %10278 = vmatpush3.xpose.msk.msra.mxu0 %vm700_vm2, %v1115_v24 }
 0x4d9   :  { %10301 = vmatprep.subr.mxu0 %v13847_v2 }
 0x4db   :  { %10280 = vmatmul.mubr.msk.f32.vlgmr.msra.gmra.mxu0 %vm700_vm2, %v1113_v54 }
 0x4dc   :  { %10317 = vmatprep.mubr.msk.f32.mxu0 %vm11437_vm1, %v13847_v2 }
 0x56b   :  { %v12100_v60 = vpop.f32.mrf.mxu0 }
 0x56d   :  { %v10243_v3 = vpop.f32.mrf.mxu0 }
 0x57b   :  { %v12102_v47 = vpop.f32.mrf.mxu0 }
 0x57d   :  { %v10262_v52 = vpop.f32.mrf.mxu0 }
 0x587   :  { %v1320_v61 = vpop.f32.mrf.mxu1 }
 0x588   :  { %v1327_v44 = vsel %vm895_vm3, %v1320_v61, -inf }
 0x589   :  { %1328 = vmax.xlane.f32.xlu1 %v1327_v44  ;;  %v10300_v62 = vpop.f32.mrf.mxu1 }
 0x59a   :  { %1360 = vrot.lane.b32.xlu1 %v11850_v33, %s11439_s25 }
 0x59b   :  { %v1214_v0 = vpop.f32.mrf.mxu0 }
 0x59c   :  { %v1324_v1 = vsel %vm895_vm3, %v1214_v0, -inf }
 0x59d   :  { %1325 = vmax.xlane.f32.xlu0 %v1324_v1  ;;  %v10281_v5 = vpop.f32.mrf.mxu0 }
 0x59e   :  { %1358 = vrot.lane.b32.xlu1 %v11853_v6, %s11439_s25 }
 0x5a2   :  { %1455 = vrot.lane.b32.xlu1 %v11897_v32, %s11439_s25 }
 0x5a6   :  { %1453 = vrot.lane.b32.xlu1 %v11909_v35, %s11439_s25 }
 0x5aa   :  { %1451 = vrot.lane.b32.xlu1 %v11922_v13, %s11439_s25 }
 0x5ae   :  { %1449 = vrot.lane.b32.xlu1 %v11933_v63, %s11439_s25 }
 0x5b2   :  { %1447 = vrot.lane.b32.xlu1 %v11943_v46, %s11439_s25 }
 0x5b6   :  { %1445 = vrot.lane.b32.xlu1 %v11949_v49, %s11439_s25 }
 0x5ba   :  { %1443 = vrot.lane.b32.xlu1 %v11955_v55, %s11439_s25 }
 0x5be   :  { %1824 = vrot.lane.b32.xlu1 %v11883_v22, %s11440_s26 }
 0x5c2   :  { %1822 = vrot.lane.b32.xlu1 %v11897_v32, %s11440_s26 }
 0x5c6   :  { %1820 = vrot.lane.b32.xlu1 %v11909_v35, %s11440_s26 }
 0x5ca   :  { %1818 = vrot.lane.b32.xlu1 %v11922_v13, %s11440_s26 }
 0x5ce   :  { %1816 = vrot.lane.b32.xlu1 %v11933_v63, %s11440_s26 }
 0x5d2   :  { %1814 = vrot.lane.b32.xlu1 %v11943_v46, %s11440_s26 }
 0x5d6   :  { %1812 = vrot.lane.b32.xlu1 %v11949_v49, %s11440_s26 }
 0x5da   :  { %1810 = vrot.lane.b32.xlu1 %v11955_v55, %s11440_s26 }
 0x5de   :  { %1808 = vrot.lane.b32.xlu1 %v11959_v20, %s11440_s26 }
 0x612   :  { %v1329_v9 = vpop.xlane.xlu1 %1328 }
 0x613   :  { %v1331_v11 = vsub.f32 %v1320_v61, %v1329_v9 }
 0x615   :  { %v1334_v14 = vmul.f32 1.442695, %v1331_v11 }
 0x616   :  { %v1361_v15 = vpop.permute.xlu1 %1360 }
 0x617   :  { %11258 = vpow2.f32 %v1334_v14  ;;  %10302 = vmatpush3.msra.mxu0 %v1361_v15 }
 0x618   :  { %10303 = vmatprep.subr.mxu0 %v13847_v2 }
 0x61a   :  { %v1359_v18 = vpop.permute.xlu1 %1358 }
 0x61b   :  { %10304 = vmatpush3.msra.mxu0 %v1359_v18 }
 0x61c   :  { %10305 = vmatprep.subr.mxu0 %v13847_v2 }
 0x61e   :  { %v1456_v39 = vpop.permute.xlu1 %1455 }
 0x622   :  { %v1454_v40 = vpop.permute.xlu1 %1453 }
 0x624   :  { %v11259_v48 = vpop.eup %11258 }
 0x625   :  { %v1339_v25 = vsel %vm895_vm3, %v11259_v48, 0.0 }
 0x626   :  { %1340 = vadd.xlane.f32.xlu0 %v1339_v25  ;;  %v1326_v26 = vpop.xlane.xlu0 %1325  ;;  %v1452_v56 = vpop.permute.xlu1 %1451 }
 0x627   :  { %v1330_v30 = vsub.f32 %v1214_v0, %v1326_v26 }
 0x629   :  { %v1332_v58 = vmul.f32 1.442695, %v1330_v30 }
 0x62a   :  { %v1450_v24 = vpop.permute.xlu1 %1449 }
 0x62b   :  { %11260 = vpow2.f32 %v1332_v58 }
 0x62e   :  { %v1448_v52 = vpop.permute.xlu1 %1447 }
 0x632   :  { %v1446_v44 = vpop.permute.xlu1 %1445 }
 0x636   :  { %v1444_v5 = vpop.permute.xlu1 %1443 }
 0x638   :  { %v12157_v37 = vpop.eup %11260 }
 0x639   :  { %v1336_v36 = vsel %vm895_vm3, %v12157_v37, 0.0 }
 0x63c   :  { %1457 = vrot.lane.b32.xlu0 %v11883_v22, %s11439_s25 }
 0x640   :  { %1356 = vrot.lane.b32.xlu0 %v11861_v8, %s11439_s25 }
 0x644   :  { %1354 = vrot.lane.b32.xlu0 %v11869_v38, %s11439_s25 }
 0x648   :  { %1352 = vrot.lane.b32.xlu0 %v11877_v19, %s11439_s25 }
 0x64c   :  { %1350 = vrot.lane.b32.xlu0 %v11894_v29, %s11439_s25 }
 0x650   :  { %1348 = vrot.lane.b32.xlu0 %v11906_v34, %s11439_s25 }
 0x66f   :  { %1337 = vadd.xlane.f32.xlu0 %v1336_v36 }
 0x685   :  { %1346 = vrot.lane.b32.xlu0 %v11919_v42, %s11439_s25 }
 0x689   :  { %1718 = vrot.lane.b32.xlu0 %v11850_v33, %s11440_s26 }
 0x68d   :  { %1716 = vrot.lane.b32.xlu0 %v11853_v6, %s11440_s26 }
 0x691   :  { %1714 = vrot.lane.b32.xlu0 %v11861_v8, %s11440_s26 }
 0x695   :  { %1712 = vrot.lane.b32.xlu0 %v11869_v38, %s11440_s26 }
 0x699   :  { %1710 = vrot.lane.b32.xlu0 %v11877_v19, %s11440_s26 }
 0x69d   :  { %1708 = vrot.lane.b32.xlu0 %v11894_v29, %s11440_s26 }
 0x6a1   :  { %1706 = vrot.lane.b32.xlu0 %v11906_v34, %s11440_s26 }
 0x6a5   :  { %1704 = vrot.lane.b32.xlu0 %v11919_v42, %s11440_s26 }
 0x6a9   :  { %1702 = vrot.lane.b32.xlu0 %v11928_v45, %s11440_s26 }
 0x6af   :  { %v1341_v54 = vpop.xlane.xlu0 %1340 }
 0x6b0   :  { %11262 = vrcp.f32 %v1341_v54 }
 0x6b3   :  { %v1458_v3 = vpop.permute.xlu0 %1457 }
 0x6b4   :  { %10321 = vmatpush3.msra.mxu1 %v1458_v3  ;;  %v12224_v3 = vld [vmem:[%s13841_s5 + $0x10] sm:$0xff] }
 0x6b5   :  { %10322 = vmatprep.subr.mxu1 %v13847_v2 }
 0x6b6   :  { %10323 = vmatpush3.msra.mxu1 %v1456_v39 }
 0x6b7   :  { %10324 = vmatprep.subr.mxu1 %v13847_v2  ;;  %v1357_v61 = vpop.permute.xlu0 %1356 }
 0x6b8   :  { %10306 = vmatpush3.msra.mxu0 %v1357_v61  ;;  %10325 = vmatpush3.msra.mxu1 %v1454_v40 }
 0x6b9   :  { %10326 = vmatprep.subr.mxu1 %v13847_v2  ;;  %10307 = vmatprep.subr.mxu0 %v13847_v2 }
 0x6ba   :  { %10327 = vmatpush3.msra.mxu1 %v1452_v56 }
 0x6bb   :  { %10328 = vmatprep.subr.mxu1 %v13847_v2  ;;  %v1355_v62 = vpop.permute.xlu0 %1354 }
 0x6bc   :  { %10308 = vmatpush3.msra.mxu0 %v1355_v62  ;;  %10329 = vmatpush3.msra.mxu1 %v1450_v24 }
 0x6bd   :  { %10330 = vmatprep.subr.mxu1 %v13847_v2  ;;  %10309 = vmatprep.subr.mxu0 %v13847_v2  ;;  %v11263_v0 = vpop.eup %11262 }
 0x6be   :  { %10331 = vmatpush3.msra.mxu1 %v1448_v52  ;;  %v1345_v9 = vmul.f32 %v11263_v0, %v11259_v48  ;;  %v564_v48 = vld [vmem:[%s13841_s5 + $0x28] sm:$0xff] }
 0x6bf   :  { %10332 = vmatprep.subr.mxu1 %v13847_v2  ;;  %v1353_v1 = vpop.permute.xlu0 %1352 }
 0x6c0   :  { %10310 = vmatpush3.msra.mxu0 %v1353_v1  ;;  %10333 = vmatpush3.msra.mxu1 %v1446_v44  ;;  %v1825_v44 = vpop.permute.xlu1 %1824 }
 0x6c1   :  { %10334 = vmatprep.subr.mxu1 %v13847_v2  ;;  %10311 = vmatprep.subr.mxu0 %v13847_v2 }
 0x6c2   :  { %10335 = vmatpush3.msra.mxu1 %v1444_v5 }
 0x6c3   :  { %10337 = vmatmul.mubr.msk.f32.vlgmr.msra.gmra.mxu1 %vm895_vm3, %v1345_v9  ;;  %v1351_v11 = vpop.permute.xlu0 %1350  ;;  %10339 = vmatprep.subr.mxu1 %v564_v48 }
 0x6c4   :  { %10312 = vmatpush3.msra.mxu0 %v1351_v11  ;;  %10340 = vmatpush3.msra.mxu1 %v564_v48  ;;  %v1823_v62 = vpop.permute.xlu1 %1822 }
 0x6c5   :  { %10313 = vmatprep.subr.mxu0 %v13847_v2  ;;  %10344 = vmatprep.subr.mxu1 %v12224_v3 }
 0x6c7   :  { %v1349_v14 = vpop.permute.xlu0 %1348 }
 0x6c8   :  { %10314 = vmatpush3.msra.mxu0 %v1349_v14  ;;  %v1821_v1 = vpop.permute.xlu1 %1820 }
 0x6c9   :  { %10315 = vmatprep.subr.mxu0 %v13847_v2 }
 0x6cc   :  { %v1819_v9 = vpop.permute.xlu1 %1818 }
 0x6d0   :  { %v1817_v11 = vpop.permute.xlu1 %1816 }
 0x6f8   :  { %v1338_v15 = vpop.xlane.xlu0 %1337 }
 0x6f9   :  { %11264 = vrcp.f32 %v1338_v15 }
 0x6fc   :  { %v1347_v18 = vpop.permute.xlu0 %1346 }
 0x6fd   :  { %10316 = vmatpush3.msra.mxu0 %v1347_v18 }
 0x6fe   :  { %10349 = vmatprep.subr.mxu0 %v13847_v2 }
 0x700   :  { %v1719_v25 = vpop.permute.xlu0 %1718 }
 0x704   :  { %v1717_v26 = vpop.permute.xlu0 %1716 }
 0x706   :  { %v11265_v30 = vpop.eup %11264 }
 0x707   :  { %v1343_v58 = vmul.f32 %v11265_v30, %v12157_v37 }
 0x708   :  { %v1715_v36 = vpop.permute.xlu0 %1714 }
 0x709   :  { %10318 = vmatmul.mubr.msk.f32.vlgmr.msra.gmra.mxu0 %vm895_vm3, %v1343_v58 }
 0x70a   :  { %10350 = vmatpush3.xpose.msk.msra.mxu0 %vm700_vm2, %v1719_v25  ;;  %10365 = vmatprep.mubr.msk.f32.mxu0 %vm11437_vm1, %v13847_v2 }
 0x70b   :  { %10351 = vmatprep.subr.mxu0 %v13847_v2 }
 0x70c   :  { %v1713_v39 = vpop.permute.xlu0 %1712 }
 0x70e   :  { %10352 = vmatpush3.xpose.msk.msra.mxu0 %vm700_vm2, %v1717_v26 }
 0x70f   :  { %10353 = vmatprep.subr.mxu0 %v13847_v2 }
 0x710   :  { %v1711_v40 = vpop.permute.xlu0 %1710 }
 0x712   :  { %10354 = vmatpush3.xpose.msk.msra.mxu0 %vm700_vm2, %v1715_v36 }
 0x713   :  { %10355 = vmatprep.subr.mxu0 %v13847_v2 }
 0x714   :  { %v1709_v37 = vpop.permute.xlu0 %1708 }
 0x716   :  { %10356 = vmatpush3.xpose.msk.msra.mxu0 %vm700_vm2, %v1713_v39 }
 0x717   :  { %10357 = vmatprep.subr.mxu0 %v13847_v2 }
 0x718   :  { %v1707_v56 = vpop.permute.xlu0 %1706 }
 0x71a   :  { %10358 = vmatpush3.xpose.msk.msra.mxu0 %vm700_vm2, %v1711_v40 }
 0x71b   :  { %10359 = vmatprep.subr.mxu0 %v13847_v2 }
 0x71c   :  { %v1705_v24 = vpop.permute.xlu0 %1704 }
 0x71e   :  { %10360 = vmatpush3.xpose.msk.msra.mxu0 %vm700_vm2, %v1709_v37 }
 0x71f   :  { %10361 = vmatprep.subr.mxu0 %v13847_v2 }
 0x720   :  { %v1703_v54 = vpop.permute.xlu0 %1702 }
 0x722   :  { %10362 = vmatpush3.xpose.msk.msra.mxu0 %vm700_vm2, %v1707_v56 }
 0x723   :  { %10363 = vmatprep.subr.mxu0 %v13847_v2 }
 0x726   :  { %10364 = vmatpush3.xpose.msk.msra.mxu0 %vm700_vm2, %v1705_v24 }
 0x727   :  { %10387 = vmatprep.subr.mxu0 %v13847_v2 }
 0x729   :  { %10366 = vmatmul.mubr.msk.f32.vlgmr.msra.gmra.mxu0 %vm700_vm2, %v1703_v54 }
 0x72a   :  { %10403 = vmatprep.mubr.msk.f32.mxu0 %vm11437_vm1, %v13847_v2 }
 0x783   :  { %v1536_v52 = vpop.f32.mrf.mxu1 }
 0x785   :  { %v10338_v61 = vpop.f32.mrf.mxu1 }
 0x7c9   :  { %v1439_v0 = vpop.f32.mrf.mxu0 }
 0x7ca   :  { %10341 = vmatprep.mubr.msk.f32.mxu1 %vm700_vm2, %v1439_v0 }
 0x7cb   :  { %v10319_v5 = vpop.f32.mrf.mxu0  ;;  %10342 = vmatmul.mubr.msk.f32.vlgmr.msra.gmra.mxu1 %vm700_vm2, %v1536_v52 }
 0x7cc   :  { %10345 = vmatpush3.msra.mxu1 %v12224_v3  ;;  %10346 = vmatprep.mubr.msk.f32.mxu1 %vm700_vm2, %v12100_v60  ;;  %v1815_v60 = vpop.permute.xlu1 %1814 }
 0x7cd   :  { %10368 = vmatprep.subr.mxu1 %v13847_v2 }
 0x7cf   :  { %10347 = vmatmul.mubr.msk.f32.vlgmr.msra.gmra.mxu1 %vm700_vm2, %v12102_v47 }
 0x7d0   :  { %10369 = vmatpush3.xpose.msk.msra.mxu1 %vm700_vm2, %v1825_v44  ;;  %10384 = vmatprep.mubr.msk.f32.mxu1 %vm11437_vm1, %v13847_v2  ;;  %v1813_v47 = vpop.permute.xlu1 %1812 }
 0x7d1   :  { %10370 = vmatprep.subr.mxu1 %v13847_v2 }
 0x7d4   :  { %10371 = vmatpush3.xpose.msk.msra.mxu1 %vm700_vm2, %v1823_v62  ;;  %v1811_v14 = vpop.permute.xlu1 %1810 }
 0x7d5   :  { %10372 = vmatprep.subr.mxu1 %v13847_v2 }
 0x7d8   :  { %10373 = vmatpush3.xpose.msk.msra.mxu1 %vm700_vm2, %v1821_v1  ;;  %v1809_v26 = vpop.permute.xlu1 %1808 }
 0x7d9   :  { %10374 = vmatprep.subr.mxu1 %v13847_v2 }
 0x7dc   :  { %10375 = vmatpush3.xpose.msk.msra.mxu1 %vm700_vm2, %v1819_v9 }
 0x7dd   :  { %10376 = vmatprep.subr.mxu1 %v13847_v2 }
 0x7e0   :  { %10377 = vmatpush3.xpose.msk.msra.mxu1 %vm700_vm2, %v1817_v11 }
 0x7e1   :  { %10378 = vmatprep.subr.mxu1 %v13847_v2 }
 0x7e4   :  { %10379 = vmatpush3.xpose.msk.msra.mxu1 %vm700_vm2, %v1815_v60 }
 0x7e5   :  { %10380 = vmatprep.subr.mxu1 %v13847_v2 }
 0x7e8   :  { %10381 = vmatpush3.xpose.msk.msra.mxu1 %vm700_vm2, %v1813_v47 }
 0x7e9   :  { %v1804_v15 = vpop.f32.mrf.mxu0  ;;  %10382 = vmatprep.subr.mxu1 %v13847_v2 }
 0x7ea   :  { %v1914_v18 = vsel %vm895_vm3, %v1804_v15, -inf }
 0x7eb   :  { %1915 = vmax.xlane.f32.xlu0 %v1914_v18  ;;  %v10367_v25 = vpop.f32.mrf.mxu0 }
 0x7ec   :  { %10383 = vmatpush3.xpose.msk.msra.mxu1 %vm700_vm2, %v1811_v14 }
 0x7ed   :  { %10406 = vmatprep.subr.mxu1 %v13847_v2 }
 0x7ef   :  { %10385 = vmatmul.mubr.msk.f32.vlgmr.msra.gmra.mxu1 %vm700_vm2, %v1809_v26 }
 0x7f0   :  { %10422 = vmatprep.mubr.msk.f32.mxu1 %vm11437_vm1, %v13847_v2 }
 0x874   :  { %v1916_v48 = vpop.xlane.xlu0 %1915 }
 0x875   :  { %v1920_v30 = vsub.f32 %v1804_v15, %v1916_v48 }
 0x877   :  { %v1922_v58 = vmul.f32 1.442695, %v1920_v30 }
 0x879   :  { %11266 = vpow2.f32 %v1922_v58 }
 0x886   :  { %v12257_v36 = vpop.eup %11266 }
 0x887   :  { %v1926_v39 = vsel %vm895_vm3, %v12257_v36, 0.0 }
 0x888   :  { %1927 = vadd.xlane.f32.xlu0 %v1926_v39 }
 0x88b   :  { %v10343_v40 = vpop.f32.mrf.mxu1 }
 0x88d   :  { %v1612_v37 = vpop.f32.mrf.mxu1 }
 0x88f   :  { %v10348_v56 = vpop.f32.mrf.mxu1 }
 0x890   :  { %v12261_v24 = vadd.f32 %v10348_v56, %v10343_v40 }
 0x891   :  { %v1693_v54 = vpop.f32.mrf.mxu1 }
 0x892   :  { %v12263_v52 = vadd.f32 %v1693_v54, %v1612_v37 }
 0x89e   :  { %2047 = vrot.lane.b32.xlu0 %v11883_v22, %s11441_s30 }
 0x8a2   :  { %1946 = vrot.lane.b32.xlu0 %v11861_v8, %s11441_s30 }
 0x8a6   :  { %1944 = vrot.lane.b32.xlu0 %v11869_v38, %s11441_s30 }
 0x8aa   :  { %1942 = vrot.lane.b32.xlu0 %v11877_v19, %s11441_s30 }
 0x8ae   :  { %1940 = vrot.lane.b32.xlu0 %v11894_v29, %s11441_s30 }
 0x8af   :  { %v1910_v61 = vpop.f32.mrf.mxu1 }
 0x8b0   :  { %v1917_v44 = vsel %vm895_vm3, %v1910_v61, -inf }
 0x8b1   :  { %1918 = vmax.xlane.f32.xlu1 %v1917_v44  ;;  %v10386_v62 = vpop.f32.mrf.mxu1 }
 0x8b2   :  { %1938 = vrot.lane.b32.xlu0 %v11906_v34, %s11441_s30 }
 0x8c2   :  { %1950 = vrot.lane.b32.xlu1 %v11850_v33, %s11441_s30 }
 0x8c6   :  { %1948 = vrot.lane.b32.xlu1 %v11853_v6, %s11441_s30 }
 0x8ca   :  { %2045 = vrot.lane.b32.xlu1 %v11897_v32, %s11441_s30 }
 0x8ce   :  { %2043 = vrot.lane.b32.xlu1 %v11909_v35, %s11441_s30 }
 0x8d2   :  { %2041 = vrot.lane.b32.xlu1 %v11922_v13, %s11441_s30 }
 0x8d6   :  { %2039 = vrot.lane.b32.xlu1 %v11933_v63, %s11441_s30 }
 0x8da   :  { %2037 = vrot.lane.b32.xlu1 %v11943_v46, %s11441_s30 }
 0x8de   :  { %2035 = vrot.lane.b32.xlu1 %v11949_v49, %s11441_s30 }
 0x8e2   :  { %2033 = vrot.lane.b32.xlu1 %v11955_v55, %s11441_s30 }
 0x8e6   :  { %2335 = vrot.lane.b32.xlu1 %v11883_v22, %s11442_s10 }
 0x8ea   :  { %2333 = vrot.lane.b32.xlu1 %v11897_v32, %s11442_s10 }
 0x8ee   :  { %2331 = vrot.lane.b32.xlu1 %v11909_v35, %s11442_s10 }
 0x8f2   :  { %2329 = vrot.lane.b32.xlu1 %v11922_v13, %s11442_s10 }
 0x8f6   :  { %2327 = vrot.lane.b32.xlu1 %v11933_v63, %s11442_s10 }
 0x8fa   :  { %2325 = vrot.lane.b32.xlu1 %v11943_v46, %s11442_s10 }
 0x8fe   :  { %2323 = vrot.lane.b32.xlu1 %v11949_v49, %s11442_s10 }
 0x902   :  { %2321 = vrot.lane.b32.xlu1 %v11955_v55, %s11442_s10 }
 0x906   :  { %2319 = vrot.lane.b32.xlu1 %v11959_v20, %s11442_s10 }
 0x911   :  { %v1928_v0 = vpop.xlane.xlu0 %1927 }
 0x915   :  { %v2048_v1 = vpop.permute.xlu0 %2047 }
 0x916   :  { %10407 = vmatpush3.msra.mxu1 %v2048_v1 }
 0x917   :  { %10408 = vmatprep.subr.mxu1 %v13847_v2 }
 0x919   :  { %v1947_v5 = vpop.permute.xlu0 %1946 }
 0x91d   :  { %v1945_v9 = vpop.permute.xlu0 %1944 }
 0x921   :  { %v1943_v15 = vpop.permute.xlu0 %1942 }
 0x925   :  { %v1941_v20 = vpop.permute.xlu0 %1940 }
 0x929   :  { %v1939_v30 = vpop.permute.xlu0 %1938 }
 0x93a   :  { %v1919_v11 = vpop.xlane.xlu1 %1918 }
 0x93b   :  { %v1921_v60 = vsub.f32 %v1910_v61, %v1919_v11 }
 0x93d   :  { %v1924_v47 = vmul.f32 1.442695, %v1921_v60 }
 0x93e   :  { %v1951_v14 = vpop.permute.xlu1 %1950 }
 0x93f   :  { %11268 = vpow2.f32 %v1924_v47  ;;  %10388 = vmatpush3.msra.mxu0 %v1951_v14 }
 0x940   :  { %10389 = vmatprep.subr.mxu0 %v13847_v2  ;;  %11270 = vrcp.f32 %v1928_v0 }
 0x942   :  { %v1949_v18 = vpop.permute.xlu1 %1948 }
 0x943   :  { %10390 = vmatpush3.msra.mxu0 %v1949_v18 }
 0x944   :  { %10391 = vmatprep.subr.mxu0 %v13847_v2 }
 0x945   :  { %10392 = vmatpush3.msra.mxu0 %v1947_v5 }
 0x946   :  { %v2046_v25 = vpop.permute.xlu1 %2045  ;;  %10393 = vmatprep.subr.mxu0 %v13847_v2 }
 0x947   :  { %10394 = vmatpush3.msra.mxu0 %v1945_v9  ;;  %10409 = vmatpush3.msra.mxu1 %v2046_v25 }
 0x948   :  { %10395 = vmatprep.subr.mxu0 %v13847_v2  ;;  %10410 = vmatprep.subr.mxu1 %v13847_v2 }
 0x949   :  { %10396 = vmatpush3.msra.mxu0 %v1943_v15 }
 0x94a   :  { %v2044_v26 = vpop.permute.xlu1 %2043  ;;  %10397 = vmatprep.subr.mxu0 %v13847_v2 }
 0x94b   :  { %10398 = vmatpush3.msra.mxu0 %v1941_v20  ;;  %10411 = vmatpush3.msra.mxu1 %v2044_v26  ;;  %v12377_v20 = vld [vmem:[%s13841_s5 + $0x40] sm:$0xff] }
 0x94c   :  { %v11269_v48 = vpop.eup %11268  ;;  %10399 = vmatprep.subr.mxu0 %v13847_v2  ;;  %10412 = vmatprep.subr.mxu1 %v13847_v2 }
 0x94d   :  { %10400 = vmatpush3.msra.mxu0 %v1939_v30  ;;  %v1929_v58 = vsel %vm895_vm3, %v11269_v48, 0.0  ;;  %v11271_v44 = vpop.eup %11270 }
 0x94e   :  { %v2042_v39 = vpop.permute.xlu1 %2041  ;;  %1930 = vadd.xlane.f32.xlu0 %v1929_v58  ;;  %10401 = vmatprep.subr.mxu0 %v13847_v2  ;;  %v1933_v1 = vmul.f32 %v11271_v44, %v12257_v36 }
 0x94f   :  { %10413 = vmatpush3.msra.mxu1 %v2042_v39 }
 0x950   :  { %10414 = vmatprep.subr.mxu1 %v13847_v2 }
 0x952   :  { %v2040_v40 = vpop.permute.xlu1 %2039 }
 0x953   :  { %10415 = vmatpush3.msra.mxu1 %v2040_v40 }
 0x954   :  { %10416 = vmatprep.subr.mxu1 %v13847_v2 }
 0x956   :  { %v2038_v37 = vpop.permute.xlu1 %2037 }
 0x957   :  { %10417 = vmatpush3.msra.mxu1 %v2038_v37 }
 0x958   :  { %10418 = vmatprep.subr.mxu1 %v13847_v2 }
 0x95a   :  { %v2036_v56 = vpop.permute.xlu1 %2035 }
 0x95b   :  { %10419 = vmatpush3.msra.mxu1 %v2036_v56 }
 0x95c   :  { %10420 = vmatprep.subr.mxu1 %v13847_v2 }
 0x95e   :  { %v2034_v54 = vpop.permute.xlu1 %2033 }
 0x95f   :  { %10421 = vmatpush3.msra.mxu1 %v2034_v54 }
 0x960   :  { %10430 = vmatprep.subr.mxu1 %v13847_v2 }
 0x962   :  { %v2336_v25 = vpop.permute.xlu1 %2335 }
 0x964   :  { %1936 = vrot.lane.b32.xlu0 %v11919_v42, %s11441_s30 }
 0x968   :  { %2229 = vrot.lane.b32.xlu0 %v11850_v33, %s11442_s10 }
 0x96c   :  { %2227 = vrot.lane.b32.xlu0 %v11853_v6, %s11442_s10 }
 0x970   :  { %2225 = vrot.lane.b32.xlu0 %v11861_v8, %s11442_s10 }
 0x974   :  { %2223 = vrot.lane.b32.xlu0 %v11869_v38, %s11442_s10 }
 0x978   :  { %2221 = vrot.lane.b32.xlu0 %v11877_v19, %s11442_s10 }
 0x97c   :  { %2219 = vrot.lane.b32.xlu0 %v11894_v29, %s11442_s10 }
 0x980   :  { %2217 = vrot.lane.b32.xlu0 %v11906_v34, %s11442_s10 }
 0x984   :  { %2215 = vrot.lane.b32.xlu0 %v11919_v42, %s11442_s10 }
 0x988   :  { %2213 = vrot.lane.b32.xlu0 %v11928_v45, %s11442_s10 }
 0x9d7   :  { %v1931_v61 = vpop.xlane.xlu0 %1930 }
 0x9d8   :  { %11272 = vrcp.f32 %v1931_v61 }
 0x9db   :  { %v1937_v62 = vpop.permute.xlu0 %1936 }
 0x9dc   :  { %10402 = vmatpush3.msra.mxu0 %v1937_v62 }
 0x9dd   :  { %10404 = vmatmul.mubr.msk.f32.vlgmr.msra.gmra.mxu0 %vm895_vm3, %v1933_v1  ;;  %10425 = vmatprep.subr.mxu0 %v12377_v20 }
 0x9de   :  { %10426 = vmatpush3.msra.mxu0 %v12377_v20 }
 0x9df   :  { %v2230_v5 = vpop.permute.xlu0 %2229  ;;  %10449 = vmatprep.subr.mxu0 %v13847_v2 }
 0x9e3   :  { %v2228_v9 = vpop.permute.xlu0 %2227 }
 0x9e5   :  { %v11273_v11 = vpop.eup %11272 }
 0x9e6   :  { %v1935_v60 = vmul.f32 %v11273_v11, %v11269_v48  ;;  %v2334_v48 = vpop.permute.xlu1 %2333 }
 0x9e7   :  { %v2226_v47 = vpop.permute.xlu0 %2225 }
 0x9e8   :  { %10423 = vmatmul.mubr.msk.f32.vlgmr.msra.gmra.mxu1 %vm895_vm3, %v1935_v60 }
 0x9e9   :  { %10431 = vmatpush3.xpose.msk.msra.mxu1 %vm700_vm2, %v2230_v5  ;;  %10446 = vmatprep.mubr.msk.f32.mxu1 %vm11437_vm1, %v13847_v2 }
 0x9ea   :  { %10432 = vmatprep.subr.mxu1 %v13847_v2  ;;  %v2332_v58 = vpop.permute.xlu1 %2331 }
 0x9eb   :  { %v2224_v45 = vpop.permute.xlu0 %2223 }
 0x9ed   :  { %10433 = vmatpush3.xpose.msk.msra.mxu1 %vm700_vm2, %v2228_v9 }
 0x9ee   :  { %10434 = vmatprep.subr.mxu1 %v13847_v2  ;;  %v2330_v40 = vpop.permute.xlu1 %2329 }
 0x9ef   :  { %v2222_v36 = vpop.permute.xlu0 %2221 }
 0x9f1   :  { %10435 = vmatpush3.xpose.msk.msra.mxu1 %vm700_vm2, %v2226_v47 }
 0x9f2   :  { %10436 = vmatprep.subr.mxu1 %v13847_v2  ;;  %v2328_v56 = vpop.permute.xlu1 %2327 }
 0x9f3   :  { %v2220_v0 = vpop.permute.xlu0 %2219 }
 0x9f5   :  { %10437 = vmatpush3.xpose.msk.msra.mxu1 %vm700_vm2, %v2224_v45 }
 0x9f6   :  { %10438 = vmatprep.subr.mxu1 %v13847_v2  ;;  %v2326_v54 = vpop.permute.xlu1 %2325 }
 0x9f7   :  { %v2218_v14 = vpop.permute.xlu0 %2217 }
 0x9f9   :  { %10439 = vmatpush3.xpose.msk.msra.mxu1 %vm700_vm2, %v2222_v36 }
 0x9fa   :  { %10440 = vmatprep.subr.mxu1 %v13847_v2  ;;  %v2324_v61 = vpop.permute.xlu1 %2323 }
 0x9fb   :  { %v2216_v15 = vpop.permute.xlu0 %2215 }
 0x9fd   :  { %10441 = vmatpush3.xpose.msk.msra.mxu1 %vm700_vm2, %v2220_v0 }
 0x9fe   :  { %10442 = vmatprep.subr.mxu1 %v13847_v2  ;;  %v2322_v44 = vpop.permute.xlu1 %2321 }
 0x9ff   :  { %v2214_v18 = vpop.permute.xlu0 %2213 }
 0xa01   :  { %10443 = vmatpush3.xpose.msk.msra.mxu1 %vm700_vm2, %v2218_v14 }
 0xa02   :  { %10444 = vmatprep.subr.mxu1 %v13847_v2  ;;  %v2320_v62 = vpop.permute.xlu1 %2319 }
 0xa05   :  { %10445 = vmatpush3.xpose.msk.msra.mxu1 %vm700_vm2, %v2216_v15 }
 0xa06   :  { %10468 = vmatprep.subr.mxu1 %v13847_v2 }
 0xa08   :  { %10447 = vmatmul.mubr.msk.f32.vlgmr.msra.gmra.mxu1 %vm700_vm2, %v2214_v18 }
 0xa09   :  { %10484 = vmatprep.mubr.msk.f32.mxu1 %vm11437_vm1, %v13847_v2 }
 0xa9d   :  { %v2029_v26 = vpop.f32.mrf.mxu0 }
 0xa9e   :  { %10427 = vmatprep.mubr.msk.f32.mxu0 %vm700_vm2, %v2029_v26 }
 0xa9f   :  { %v10405_v30 = vpop.f32.mrf.mxu0 }
 0xaa8   :  { %v2126_v39 = vpop.f32.mrf.mxu1 }
 0xaa9   :  { %10428 = vmatmul.mubr.msk.f32.vlgmr.msra.gmra.mxu0 %vm700_vm2, %v2126_v39 }
 0xaaa   :  { %10450 = vmatpush3.xpose.msk.msra.mxu0 %vm700_vm2, %v2336_v25  ;;  %v10424_v37 = vpop.f32.mrf.mxu1  ;;  %10465 = vmatprep.mubr.msk.f32.mxu0 %vm11437_vm1, %v13847_v2 }
 0xaab   :  { %10451 = vmatprep.subr.mxu0 %v13847_v2 }
 0xaae   :  { %10452 = vmatpush3.xpose.msk.msra.mxu0 %vm700_vm2, %v2334_v48 }
 0xaaf   :  { %10453 = vmatprep.subr.mxu0 %v13847_v2 }
 0xab2   :  { %10454 = vmatpush3.xpose.msk.msra.mxu0 %vm700_vm2, %v2332_v58 }
 0xab3   :  { %10455 = vmatprep.subr.mxu0 %v13847_v2 }
 0xab6   :  { %10456 = vmatpush3.xpose.msk.msra.mxu0 %vm700_vm2, %v2330_v40 }
 0xab7   :  { %10457 = vmatprep.subr.mxu0 %v13847_v2 }
 0xaba   :  { %10458 = vmatpush3.xpose.msk.msra.mxu0 %vm700_vm2, %v2328_v56 }
 0xabb   :  { %10459 = vmatprep.subr.mxu0 %v13847_v2 }
 0xabe   :  { %10460 = vmatpush3.xpose.msk.msra.mxu0 %vm700_vm2, %v2326_v54 }
 0xabf   :  { %10461 = vmatprep.subr.mxu0 %v13847_v2 }
 0xac2   :  { %10462 = vmatpush3.xpose.msk.msra.mxu0 %vm700_vm2, %v2324_v61 }
 0xac3   :  { %10463 = vmatprep.subr.mxu0 %v13847_v2 }
 0xac6   :  { %10464 = vmatpush3.xpose.msk.msra.mxu0 %vm700_vm2, %v2322_v44 }
 0xac7   :  { %10487 = vmatprep.subr.mxu0 %v13847_v2 }
 0xac8   :  { %v2315_v1 = vpop.f32.mrf.mxu1 }
 0xac9   :  { %10466 = vmatmul.mubr.msk.f32.vlgmr.msra.gmra.mxu0 %vm700_vm2, %v2320_v62  ;;  %v2425_v5 = vsel %vm895_vm3, %v2315_v1, -inf }
 0xaca   :  { %2426 = vmax.xlane.f32.xlu0 %v2425_v5  ;;  %v10448_v9 = vpop.f32.mrf.mxu1  ;;  %10503 = vmatprep.mubr.msk.f32.mxu0 %vm11437_vm1, %v13847_v2 }
 0xb53   :  { %v2427_v11 = vpop.xlane.xlu0 %2426 }
 0xb54   :  { %v2431_v60 = vsub.f32 %v2315_v1, %v2427_v11 }
 0xb56   :  { %v2433_v47 = vmul.f32 1.442695, %v2431_v60 }
 0xb58   :  { %11274 = vpow2.f32 %v2433_v47 }
 0xb65   :  { %v12406_v45 = vpop.eup %11274 }
 0xb66   :  { %v2437_v36 = vsel %vm895_vm3, %v12406_v45, 0.0 }
 0xb67   :  { %2438 = vadd.xlane.f32.xlu0 %v2437_v36 }
 0xb69   :  { %v10429_v0 = vpop.f32.mrf.mxu0 }
 0xb6a   :  { %v12411_v14 = vadd.f32 %v10429_v0, %v12261_v24 }
 0xb6b   :  { %v2202_v15 = vpop.f32.mrf.mxu0 }
 0xb6c   :  { %v12414_v18 = vadd.f32 %v2202_v15, %v12263_v52 }
 0xb7d   :  { %2558 = vrot.lane.b32.xlu0 %v11883_v22, %s11443_s13 }
 0xb81   :  { %2457 = vrot.lane.b32.xlu0 %v11861_v8, %s11443_s13 }
 0xb85   :  { %2455 = vrot.lane.b32.xlu0 %v11869_v38, %s11443_s13 }
 0xb89   :  { %2453 = vrot.lane.b32.xlu0 %v11877_v19, %s11443_s13  ;;  %v2421_v25 = vpop.f32.mrf.mxu0 }
 0xb8a   :  { %v2428_v24 = vsel %vm895_vm3, %v2421_v25, -inf }
 0xb8b   :  { %2429 = vmax.xlane.f32.xlu1 %v2428_v24  ;;  %v10467_v26 = vpop.f32.mrf.mxu0  ;;  %v12470_v24 = vld [vmem:[%s13842_s7] ss:$2 sm:$0x1f] }
 0xb8d   :  { %2451 = vrot.lane.b32.xlu0 %v11894_v29, %s11443_s13 }
 0xb91   :  { %2449 = vrot.lane.b32.xlu0 %v11906_v34, %s11443_s13 }
 0xb9c   :  { %2461 = vrot.lane.b32.xlu1 %v11850_v33, %s11443_s13 }
 0xba0   :  { %2459 = vrot.lane.b32.xlu1 %v11853_v6, %s11443_s13 }
 0xba4   :  { %2556 = vrot.lane.b32.xlu1 %v11897_v32, %s11443_s13 }
 0xba8   :  { %2554 = vrot.lane.b32.xlu1 %v11909_v35, %s11443_s13 }
 0xbac   :  { %2552 = vrot.lane.b32.xlu1 %v11922_v13, %s11443_s13 }
 0xbb0   :  { %2550 = vrot.lane.b32.xlu1 %v11933_v63, %s11443_s13 }
 0xbb4   :  { %2548 = vrot.lane.b32.xlu1 %v11943_v46, %s11443_s13 }
 0xbb8   :  { %2546 = vrot.lane.b32.xlu1 %v11949_v49, %s11443_s13 }
 0xbbc   :  { %2544 = vrot.lane.b32.xlu1 %v11955_v55, %s11443_s13 }
 0xbf0   :  { %v2439_v52 = vpop.xlane.xlu0 %2438 }
 0xbf4   :  { %v2559_v48 = vpop.permute.xlu0 %2558 }
 0xbf5   :  { %10488 = vmatpush3.msra.mxu0 %v2559_v48 }
 0xbf6   :  { %10489 = vmatprep.subr.mxu0 %v13847_v2 }
 0xbf8   :  { %v2458_v30 = vpop.permute.xlu0 %2457 }
 0xbfc   :  { %v2456_v58 = vpop.permute.xlu0 %2455 }
 0xc00   :  { %v2454_v54 = vpop.permute.xlu0 %2453 }
 0xc04   :  { %v2452_v44 = vpop.permute.xlu0 %2451 }
 0xc08   :  { %v2450_v9 = vpop.permute.xlu0 %2449 }
 0xc14   :  { %v2430_v39 = vpop.xlane.xlu1 %2429 }
 0xc15   :  { %v2432_v40 = vsub.f32 %v2421_v25, %v2430_v39  ;;  %v11418_v25 = vld [vmem:[%s13841_s5 + $0x50] sm:$0xff] }
 0xc17   :  { %v2435_v37 = vmul.f32 1.442695, %v2432_v40 }
 0xc18   :  { %v2462_v56 = vpop.permute.xlu1 %2461 }
 0xc19   :  { %11276 = vpow2.f32 %v2435_v37  ;;  %10469 = vmatpush3.msra.mxu1 %v2462_v56  ;;  %v11420_v37 = vld [vmem:[%s13841_s5 + $0x38] sm:$0xff] }
 0xc1a   :  { %10470 = vmatprep.subr.mxu1 %v13847_v2  ;;  %11278 = vrcp.f32 %v2439_v52  ;;  %v11421_v52 = vld [vmem:[%s13841_s5 + $0x20] sm:$0xff]  ;;  %v12490_v56 = vld [vmem:[%s13841_s5 + $0x58] sm:$0xff] }
 0xc1c   :  { %v2460_v61 = vpop.permute.xlu1 %2459 }
 0xc1d   :  { %10471 = vmatpush3.msra.mxu1 %v2460_v61 }
 0xc1e   :  { %10472 = vmatprep.subr.mxu1 %v13847_v2 }
 0xc1f   :  { %10473 = vmatpush3.msra.mxu1 %v2458_v30 }
 0xc20   :  { %10474 = vmatprep.subr.mxu1 %v13847_v2  ;;  %v2557_v62 = vpop.permute.xlu1 %2556 }
 0xc21   :  { %10475 = vmatpush3.msra.mxu1 %v2456_v58  ;;  %10490 = vmatpush3.msra.mxu0 %v2557_v62 }
 0xc22   :  { %10476 = vmatprep.subr.mxu1 %v13847_v2  ;;  %10491 = vmatprep.subr.mxu0 %v13847_v2 }
 0xc23   :  { %10477 = vmatpush3.msra.mxu1 %v2454_v54 }
 0xc24   :  { %10478 = vmatprep.subr.mxu1 %v13847_v2  ;;  %v2555_v1 = vpop.permute.xlu1 %2554 }
 0xc25   :  { %10479 = vmatpush3.msra.mxu1 %v2452_v44  ;;  %10492 = vmatpush3.msra.mxu0 %v2555_v1 }
 0xc26   :  { %v11277_v5 = vpop.eup %11276  ;;  %10480 = vmatprep.subr.mxu1 %v13847_v2  ;;  %10493 = vmatprep.subr.mxu0 %v13847_v2 }
 0xc27   :  { %10481 = vmatpush3.msra.mxu1 %v2450_v9  ;;  %v2440_v11 = vsel %vm895_vm3, %v11277_v5, 0.0  ;;  %v11279_v48 = vpop.eup %11278 }
 0xc28   :  { %2441 = vadd.xlane.f32.xlu0 %v2440_v11  ;;  %v2553_v60 = vpop.permute.xlu1 %2552  ;;  %10482 = vmatprep.subr.mxu1 %v13847_v2  ;;  %v2444_v58 = vmul.f32 %v11279_v48, %v12406_v45  ;;  %v11422_v45 = vld [vmem:[%s13841_s5 + $0x8] sm:$0xff] }
 0xc29   :  { %10494 = vmatpush3.msra.mxu0 %v2553_v60 }
 0xc2a   :  { %10495 = vmatprep.subr.mxu0 %v13847_v2 }
 0xc2c   :  { %v2551_v47 = vpop.permute.xlu1 %2550 }
 0xc2d   :  { %10496 = vmatpush3.msra.mxu0 %v2551_v47 }
 0xc2e   :  { %10497 = vmatprep.subr.mxu0 %v13847_v2 }
 0xc30   :  { %v2549_v36 = vpop.permute.xlu1 %2548 }
 0xc31   :  { %10498 = vmatpush3.msra.mxu0 %v2549_v36 }
 0xc32   :  { %10499 = vmatprep.subr.mxu0 %v13847_v2 }
 0xc34   :  { %v2547_v0 = vpop.permute.xlu1 %2546 }
 0xc35   :  { %10500 = vmatpush3.msra.mxu0 %v2547_v0 }
 0xc36   :  { %10501 = vmatprep.subr.mxu0 %v13847_v2 }
 0xc38   :  { %v2545_v15 = vpop.permute.xlu1 %2544 }
 0xc39   :  { %10502 = vmatpush3.msra.mxu0 %v2545_v15  ;;  %v11423_v15 = vld [vmem:[%s13839_s1] sm:$0xff]  ;;  %s11444_s1 = smov 56  }
 0xc3a   :  { %10511 = vmatprep.subr.mxu0 %v11418_v25 }
 0xc3e   :  { %2447 = vrot.lane.b32.xlu0 %v11919_v42, %s11443_s13 }
 0xc42   :  { %2724 = vrot.lane.b32.xlu0 %v12470_v24, %s11433_s9 }
 0xcb1   :  { %v2442_v26 = vpop.xlane.xlu0 %2441 }
 0xcb2   :  { %11280 = vrcp.f32 %v2442_v26 }
 0xcb5   :  { %v2448_v30 = vpop.permute.xlu0 %2447 }
 0xcb6   :  { %10483 = vmatpush3.msra.mxu1 %v2448_v30 }
 0xcb7   :  { %10485 = vmatmul.mubr.msk.f32.vlgmr.msra.gmra.mxu1 %vm895_vm3, %v2444_v58  ;;  %10506 = vmatprep.subr.mxu1 %v12490_v56 }
 0xcb8   :  { %10507 = vmatpush3.msra.mxu1 %v12490_v56 }
 0xcb9   :  { %10522 = vmatprep.subr.mxu1 %v13847_v2  ;;  %v12499_v1 = vpop.permute.xlu0 %2724 }
 0xcbf   :  { %v11281_v39 = vpop.eup %11280 }
 0xcc0   :  { %v2446_v40 = vmul.f32 %v11281_v39, %v11277_v5  ;;  %v2726_v5 = vrot.slane %v12499_v1, 1 }
 0xcc2   :  { %10504 = vmatmul.mubr.msk.f32.vlgmr.msra.gmra.mxu0 %vm895_vm3, %v2446_v40  ;;  %v2730_v9 = vrot.slane %v2726_v5, %v11692_v17 }
 0xcc3   :  { %10512 = vmatpush3.msra.mxu0 %v11418_v25 }
 0xcc4   :  { %10513 = vmatprep.subr.mxu0 %v11420_v37 }
 0xcc5   :  { %10514 = vmatpush3.msra.mxu0 %v11420_v37 }
 0xcc6   :  { %10515 = vmatprep.subr.mxu0 %v11421_v52 }
 0xcc7   :  { %10516 = vmatpush3.msra.mxu0 %v11421_v52 }
 0xcc8   :  { %10517 = vmatprep.subr.mxu0 %v11422_v45 }
 0xcc9   :  { %10518 = vmatpush3.msra.mxu0 %v11422_v45 }
 0xcca   :  { %10532 = vmatprep.subr.mxu0 %v13847_v2 }
 0xd77   :  { %v2540_v54 = vpop.f32.mrf.mxu1 }
 0xd78   :  { %10508 = vmatprep.mubr.msk.f32.mxu1 %vm700_vm2, %v2540_v54 }
 0xd79   :  { %v10486_v61 = vpop.f32.mrf.mxu1 }
 0xd82   :  { %v2637_v44 = vpop.f32.mrf.mxu0 }
 0xd83   :  { %10509 = vmatmul.mubr.msk.f32.vlgmr.msra.gmra.mxu1 %vm700_vm2, %v2637_v44 }
 0xd84   :  { %v10505_v62 = vpop.f32.mrf.mxu0  ;;  %10524 = vmatprep.mubr.msk.f32.mxu1 %vm11437_vm1, %v13847_v2 }
 0xe43   :  { %v10510_v11 = vpop.f32.mrf.mxu1 }
 0xe44   :  { %v2723_v60 = vadd.f32 %v10510_v11, %v12411_v14 }
 0xe45   :  { %v2713_v47 = vpop.f32.mrf.mxu1 }
 0xe46   :  { %v2733_v36 = vadd.f32 %v2730_v9, %v2723_v60  ;;  %v2722_v0 = vadd.f32 %v2713_v47, %v12414_v18 }
 0xe48   :  { %v12508_v25 = vadd.f32 %v11423_v15, %v2733_v36  ;;  %v2732_v26 = vadd.f32 %v2730_v9, %v2722_v0 }
 0xe4a   :  { %v12510_v48 = vadd.f32 %v11423_v15, %v2732_v26  ;;  %v2739_v30 = vsel %vm104_vm0, %v12508_v25, 0.0 }
 0xe4b   :  { %2740 = vadd.xlane.f32.xlu0 %v2739_v30 }
 0xe4c   :  { %v2736_v14 = vsel %vm104_vm0, %v12510_v48, 0.0 }
 0xe4d   :  { %2737 = vadd.xlane.f32.xlu1 %v2736_v14 }
 0xed4   :  { %v2741_v58 = vpop.xlane.xlu0 %2740 }
 0xed5   :  { %v2743_v39 = vmul.f32 0.03125, %v2741_v58 }
 0xed6   :  { %v2738_v18 = vpop.xlane.xlu1 %2737 }
 0xed7   :  { %v2745_v40 = vsub.f32 %v12508_v25, %v2743_v39  ;;  %v2742_v37 = vmul.f32 0.03125, %v2738_v18 }
 0xed9   :  { %v2744_v52 = vsub.f32 %v12510_v48, %v2742_v37  ;;  %v2747_v45 = vmul.f32 %v2745_v40, %v2745_v40 }
 0xedb   :  { %v2751_v54 = vsel %vm104_vm0, %v2747_v45, 0.0  ;;  %v2746_v61 = vmul.f32 %v2744_v52, %v2744_v52 }
 0xedc   :  { %2752 = vadd.xlane.f32.xlu1 %v2751_v54 }
 0xedd   :  { %v2748_v44 = vsel %vm104_vm0, %v2746_v61, 0.0 }
 0xede   :  { %2749 = vadd.xlane.f32.xlu0 %v2748_v44 }
 0xeed   :  { %2767 = vrot.lane.b32.xlu1 %v11703_v23, %s11433_s9 }
 0xef4   :  { %2762 = vrot.lane.b32.xlu0 %v11703_v23, %s11435_s19  ;;  %v2772_v23 = vrot.slane %v12470_v24, 2 }
 0xef6   :  { %v2776_v45 = vrot.slane %v2772_v23, %v11692_v17 }
 0xf65   :  { %v2753_v62 = vpop.xlane.xlu1 %2752 }
 0xf66   :  { %v2755_v5 = vmul.f32 0.03125, %v2753_v62 }
 0xf67   :  { %v2750_v9 = vpop.xlane.xlu0 %2749 }
 0xf68   :  { %v2757_v11 = vadd.f32 1e-05, %v2755_v5  ;;  %v2754_v60 = vmul.f32 0.03125, %v2750_v9 }
 0xf69   :  { %v2768_v39 = vpop.permute.xlu1 %2767 }
 0xf6a   :  { %11282 = vrsqrt.f32 %v2757_v11  ;;  %v2756_v47 = vadd.f32 1e-05, %v2754_v60 }
 0xf6b   :  { %v2763_v0 = vpop.permute.xlu0 %2762 }
 0xf6c   :  { %11284 = vrsqrt.f32 %v2756_v47 }
 0xf77   :  { %v11283_v36 = vpop.eup %11282 }
 0xf78   :  { %v2761_v15 = vmul.f32 %v11283_v36, %v2745_v40 }
 0xf79   :  { %v11285_v26 = vpop.eup %11284 }
 0xf7a   :  { %v2760_v30 = vmul.f32 %v11285_v26, %v2744_v52  ;;  %v2766_v14 = vmul.f32 %v2763_v0, %v2761_v15 }
 0xf7c   :  { %v2765_v58 = vmul.f32 %v2763_v0, %v2760_v30  ;;  %v2771_v37 = vadd.f32 %v2768_v39, %v2766_v14 }
 0xf7e   :  { %v2770_v18 = vadd.f32 %v2768_v39, %v2765_v58 }
 0xf80   :  { %10519 = vmatprep.mubr.msk.f32.mxu0 %vm104_vm0, %v2770_v18 }
 0xf81   :  { %10520 = vmatmul.mubr.msk.f32.vlgmr.msra.gmra.mxu0 %vm104_vm0, %v2771_v37 }
 0xf82   :  { %10534 = vmatprep.mubr.msk.f32.mxu0 %vm11437_vm1, %v13847_v2 }
0x1041   :  { %v10521_v54 = vpop.f32.mrf.mxu0 }
0x1042   :  { %v12530_v40 = vadd.f32 %v10521_v54, %v2776_v45 }
0x1043   :  { %v2850_v52 = vpop.f32.mrf.mxu0 }
0x1044   :  { %v12532_v61 = vadd.f32 %v2850_v52, %v2776_v45  ;;  %2940 = vrot.lane.b32.xlu0 %v12530_v40, %s11434_s18  ;;  %v12549_v9 = vmul.f32 0.35355338, %v12530_v40 }
0x1046   :  { %2862 = vrot.lane.b32.xlu1 %v12532_v61, %s11434_s18  ;;  %v12540_v62 = vmul.f32 0.35355338, %v12532_v61 }
0x10b6   :  { %v2941_v5 = vpop.permute.xlu0 %2940 }
0x10b8   :  { %v2863_v44 = vpop.permute.xlu1 %2862 }
0x10b9   :  { %10523 = vmatpush3.xpose.msk.msra.mxu1 %vm700_vm2, %v2863_v44 }
0x10ba   :  { %10527 = vmatprep.subr.mxu1 %v13847_v2 }
0x10bc   :  { %10525 = vmatmul.mubr.msk.f32.vlgmr.msra.gmra.mxu1 %vm700_vm2, %v12540_v62 }
0x10bd   :  { %10528 = vmatpush3.xpose.msk.msra.mxu1 %vm700_vm2, %v2941_v5  ;;  %10529 = vmatprep.mubr.msk.f32.mxu1 %vm11437_vm1, %v13847_v2 }
0x10be   :  { %10537 = vmatprep.subr.mxu1 %v13847_v2 }
0x10c0   :  { %10530 = vmatmul.mubr.msk.f32.vlgmr.msra.gmra.mxu1 %vm700_vm2, %v12549_v9 }
0x10c1   :  { %10539 = vmatprep.mubr.msk.f32.mxu1 %vm11437_vm1, %v13847_v2 }
0x117c   :  { %v2935_v11 = vpop.f32.mrf.mxu1 }
0x117d   :  { %v3017_v60 = vsel %vm700_vm2, %v2935_v11, -inf }
0x117e   :  { %3018 = vmax.xlane.f32.xlu1 %v3017_v60  ;;  %v10526_v47 = vpop.f32.mrf.mxu1 }
0x1180   :  { %v3013_v36 = vpop.f32.mrf.mxu1 }
0x1181   :  { %v3020_v0 = vsel %vm700_vm2, %v3013_v36, -inf }
0x1182   :  { %3021 = vmax.xlane.f32.xlu0 %v3020_v0  ;;  %v10531_v15 = vpop.f32.mrf.mxu1 }
0x118f   :  { %3115 = vrot.lane.b32.xlu1 %v12530_v40, %s11435_s19 }
0x1193   :  { %3193 = vrot.lane.b32.xlu1 %v12532_v61, %s11439_s25 }
0x1198   :  { %3039 = vrot.lane.b32.xlu0 %v12532_v61, %s11435_s19 }
0x1207   :  { %v3019_v26 = vpop.xlane.xlu1 %3018 }
0x1208   :  { %v3023_v30 = vsub.f32 %v2935_v11, %v3019_v26 }
0x120a   :  { %v3025_v14 = vmul.f32 1.442695, %v3023_v30 }
0x120b   :  { %v3116_v58 = vpop.permute.xlu1 %3115  ;;  %v3022_v39 = vpop.xlane.xlu0 %3021 }
0x120c   :  { %11286 = vpow2.f32 %v3025_v14  ;;  %v3024_v18 = vsub.f32 %v3013_v36, %v3022_v39  ;;  %10538 = vmatpush3.msra.mxu1 %v3116_v58 }
0x120d   :  { %10547 = vmatprep.subr.mxu1 %v13847_v2 }
0x120e   :  { %v3027_v37 = vmul.f32 1.442695, %v3024_v18 }
0x120f   :  { %v3040_v23 = vpop.permute.xlu0 %3039  ;;  %v3194_v5 = vpop.permute.xlu1 %3193 }
0x1210   :  { %11288 = vpow2.f32 %v3027_v37  ;;  %10533 = vmatpush3.msra.mxu0 %v3040_v23 }
0x1211   :  { %10542 = vmatprep.subr.mxu0 %v13847_v2 }
0x1219   :  { %v11287_v45 = vpop.eup %11286 }
0x121a   :  { %v3029_v54 = vsel %vm700_vm2, %v11287_v45, 0.0 }
0x121b   :  { %3030 = vadd.xlane.f32.xlu0 %v3029_v54 }
0x121d   :  { %v11289_v52 = vpop.eup %11288 }
0x121e   :  { %v3032_v44 = vsel %vm700_vm2, %v11289_v52, 0.0 }
0x121f   :  { %3033 = vadd.xlane.f32.xlu1 %v3032_v44 }
0x1230   :  { %3191 = vrot.lane.b32.xlu1 %v12540_v62, %s11438_s4 }
0x1231   :  { %3271 = vrot.lane.b32.xlu0 %v12530_v40, %s11439_s25 }
0x1235   :  { %3269 = vrot.lane.b32.xlu0 %v12549_v9, %s11438_s4 }
0x12a4   :  { %v3031_v11 = vpop.xlane.xlu0 %3030 }
0x12a5   :  { %11290 = vrcp.f32 %v3031_v11 }
0x12a8   :  { %v3034_v60 = vpop.xlane.xlu1 %3033  ;;  %v3272_v15 = vpop.permute.xlu0 %3271 }
0x12a9   :  { %11292 = vrcp.f32 %v3034_v60 }
0x12ac   :  { %v3192_v30 = vpop.permute.xlu1 %3191  ;;  %v3270_v14 = vpop.permute.xlu0 %3269 }
0x12b2   :  { %v11291_v47 = vpop.eup %11290 }
0x12b3   :  { %v3036_v36 = vmul.f32 %v11291_v47, %v11287_v45 }
0x12b5   :  { %10535 = vmatmul.mubr.msk.f32.vlgmr.msra.gmra.mxu0 %vm700_vm2, %v3036_v36 }
0x12b6   :  { %v11293_v0 = vpop.eup %11292  ;;  %10543 = vmatpush3.xpose.msk.msra.mxu0 %vm700_vm2, %v3194_v5  ;;  %10544 = vmatprep.mubr.msk.f32.mxu0 %vm11437_vm1, %v13847_v2 }
0x12b7   :  { %v3038_v26 = vmul.f32 %v11293_v0, %v11289_v52  ;;  %10552 = vmatprep.subr.mxu0 %v13847_v2 }
0x12b9   :  { %10540 = vmatmul.mubr.msk.f32.vlgmr.msra.gmra.mxu1 %vm700_vm2, %v3038_v26  ;;  %10545 = vmatmul.mubr.msk.f32.vlgmr.msra.gmra.mxu0 %vm700_vm2, %v3192_v30 }
0x12ba   :  { %10548 = vmatpush3.xpose.msk.msra.mxu1 %vm700_vm2, %v3272_v15  ;;  %10549 = vmatprep.mubr.msk.f32.mxu1 %vm11437_vm1, %v13847_v2 }
0x12bb   :  { %10557 = vmatprep.subr.mxu1 %v13847_v2  ;;  %10554 = vmatprep.mubr.msk.f32.mxu0 %vm11437_vm1, %v13847_v2 }
0x12bd   :  { %10550 = vmatmul.mubr.msk.f32.vlgmr.msra.gmra.mxu1 %vm700_vm2, %v3270_v14 }
0x12be   :  { %10559 = vmatprep.mubr.msk.f32.mxu1 %vm11437_vm1, %v13847_v2 }
0x1375   :  { %v3111_v58 = vpop.f32.mrf.mxu0 }
0x1377   :  { %v10536_v39 = vpop.f32.mrf.mxu0 }
0x1379   :  { %v3187_v18 = vpop.f32.mrf.mxu1  ;;  %v3265_v37 = vpop.f32.mrf.mxu0 }
0x137a   :  { %v3347_v23 = vsel %vm700_vm2, %v3265_v37, -inf }
0x137b   :  { %3348 = vmax.xlane.f32.xlu1 %v3347_v23  ;;  %v10541_v45 = vpop.f32.mrf.mxu1  ;;  %v10546_v54 = vpop.f32.mrf.mxu0 }
0x137d   :  { %v3343_v52 = vpop.f32.mrf.mxu1 }
0x137e   :  { %v3350_v44 = vsel %vm700_vm2, %v3343_v52, -inf }
0x137f   :  { %3351 = vmax.xlane.f32.xlu0 %v3350_v44  ;;  %v10551_v5 = vpop.f32.mrf.mxu1 }
0x1404   :  { %v3349_v11 = vpop.xlane.xlu1 %3348 }
0x1405   :  { %v3353_v60 = vsub.f32 %v3265_v37, %v3349_v11  ;;  %v11424_v37 = vld [vmem:[%s13841_s5 + $0x28] sm:$0xff] }
0x1407   :  { %v3355_v47 = vmul.f32 1.442695, %v3353_v60 }
0x1408   :  { %v3352_v36 = vpop.xlane.xlu0 %3351 }
0x1409   :  { %11294 = vpow2.f32 %v3355_v47  ;;  %v3354_v0 = vsub.f32 %v3343_v52, %v3352_v36 }
0x140b   :  { %v3357_v15 = vmul.f32 1.442695, %v3354_v0 }
0x140d   :  { %11296 = vpow2.f32 %v3357_v15 }
0x1416   :  { %v11295_v26 = vpop.eup %11294 }
0x1417   :  { %v3359_v30 = vsel %vm700_vm2, %v11295_v26, 0.0 }
0x1418   :  { %3360 = vadd.xlane.f32.xlu0 %v3359_v30 }
0x141a   :  { %v11297_v14 = vpop.eup %11296 }
0x141b   :  { %v3362_v39 = vsel %vm700_vm2, %v11297_v14, 0.0 }
0x141c   :  { %3363 = vadd.xlane.f32.xlu1 %v3362_v39 }
0x142d   :  { %3445 = vrot.lane.b32.xlu1 %v12530_v40, %s11444_s1 }
0x142e   :  { %3369 = vrot.lane.b32.xlu0 %v12532_v61, %s11444_s1 }
0x1431   :  { %3522 = vrot.lane.b32.xlu1 %v11424_v37, %s11434_s18 }
0x1432   :  { %3607 = vrot.lane.b32.xlu0 %v12224_v3, %s11434_s18 }
0x1435   :  { %3693 = vrot.lane.b32.xlu1 %v12532_v61, %s11441_s30 }
0x1436   :  { %3771 = vrot.lane.b32.xlu0 %v12530_v40, %s11441_s30 }
0x1439   :  { %3691 = vrot.lane.b32.xlu1 %v12540_v62, %s11440_s26 }
0x143a   :  { %3769 = vrot.lane.b32.xlu0 %v12549_v9, %s11440_s26 }
0x14a1   :  { %v3361_v23 = vpop.xlane.xlu0 %3360 }
0x14a2   :  { %11298 = vrcp.f32 %v3361_v23 }
0x14a5   :  { %v3364_v45 = vpop.xlane.xlu1 %3363  ;;  %v3370_v54 = vpop.permute.xlu0 %3369 }
0x14a6   :  { %11300 = vrcp.f32 %v3364_v45  ;;  %10553 = vmatpush3.msra.mxu0 %v3370_v54 }
0x14a9   :  { %v3446_v52 = vpop.permute.xlu1 %3445  ;;  %v3608_v3 = vpop.permute.xlu0 %3607 }
0x14aa   :  { %10558 = vmatpush3.msra.mxu1 %v3446_v52 }
0x14ab   :  { %10567 = vmatprep.subr.mxu1 %v3608_v3 }
0x14ad   :  { %v3523_v44 = vpop.permute.xlu1 %3522  ;;  %v3772_v36 = vpop.permute.xlu0 %3771 }
0x14ae   :  { %10562 = vmatprep.subr.mxu0 %v3523_v44 }
0x14af   :  { %v11299_v5 = vpop.eup %11298 }
0x14b0   :  { %v3366_v11 = vmul.f32 %v11299_v5, %v11295_v26 }
0x14b1   :  { %v3770_v0 = vpop.permute.xlu0 %3769 }
0x14b2   :  { %10555 = vmatmul.mubr.msk.f32.vlgmr.msra.gmra.mxu0 %vm700_vm2, %v3366_v11 }
0x14b3   :  { %v11301_v60 = vpop.eup %11300  ;;  %10563 = vmatpush3.msra.mxu0 %v3523_v44 }
0x14b4   :  { %v3368_v47 = vmul.f32 %v11301_v60, %v11297_v14  ;;  %10572 = vmatprep.subr.mxu0 %v13847_v2 }
0x14b6   :  { %10560 = vmatmul.mubr.msk.f32.vlgmr.msra.gmra.mxu1 %vm700_vm2, %v3368_v47 }
0x14b7   :  { %10569 = vmatprep.mubr.msk.f32.mxu1 %vm700_vm2, %v3111_v58  ;;  %10568 = vmatpush3.msra.mxu1 %v3608_v3  ;;  %v3694_v58 = vpop.permute.xlu1 %3693 }
0x14b8   :  { %10577 = vmatprep.subr.mxu1 %v13847_v2 }
0x14ba   :  { %10570 = vmatmul.mubr.msk.f32.vlgmr.msra.gmra.mxu1 %vm700_vm2, %v3187_v18 }
0x14bb   :  { %10578 = vmatpush3.xpose.msk.msra.mxu1 %vm700_vm2, %v3772_v36  ;;  %10579 = vmatprep.mubr.msk.f32.mxu1 %vm11437_vm1, %v13847_v2  ;;  %v3692_v14 = vpop.permute.xlu1 %3691 }
0x14bc   :  { %10587 = vmatprep.subr.mxu1 %v13847_v2 }
0x14be   :  { %10580 = vmatmul.mubr.msk.f32.vlgmr.msra.gmra.mxu1 %vm700_vm2, %v3770_v0 }
0x14bf   :  { %10589 = vmatprep.mubr.msk.f32.mxu1 %vm11437_vm1, %v13847_v2 }
0x1572   :  { %v3441_v15 = vpop.f32.mrf.mxu0 }
0x1573   :  { %10564 = vmatprep.mubr.msk.f32.mxu0 %vm700_vm2, %v3441_v15 }
0x1574   :  { %v10556_v26 = vpop.f32.mrf.mxu0 }
0x1576   :  { %v3517_v30 = vpop.f32.mrf.mxu1 }
0x1577   :  { %10565 = vmatmul.mubr.msk.f32.vlgmr.msra.gmra.mxu0 %vm700_vm2, %v3517_v30 }
0x1578   :  { %10573 = vmatpush3.xpose.msk.msra.mxu0 %vm700_vm2, %v3694_v58  ;;  %v10561_v18 = vpop.f32.mrf.mxu1  ;;  %10574 = vmatprep.mubr.msk.f32.mxu0 %vm11437_vm1, %v13847_v2 }
0x1579   :  { %10582 = vmatprep.subr.mxu0 %v13847_v2 }
0x157a   :  { %v12631_v39 = vpop.f32.mrf.mxu1 }
0x157b   :  { %10575 = vmatmul.mubr.msk.f32.vlgmr.msra.gmra.mxu0 %vm700_vm2, %v3692_v14 }
0x157c   :  { %v12634_v37 = vpop.f32.mrf.mxu1  ;;  %10584 = vmatprep.mubr.msk.f32.mxu0 %vm11437_vm1, %v13847_v2 }
0x157e   :  { %v3843_v23 = vpop.f32.mrf.mxu1 }
0x157f   :  { %v3850_v45 = vsel %vm700_vm2, %v3843_v23, -inf }
0x1580   :  { %3851 = vmax.xlane.f32.xlu0 %v3850_v45  ;;  %v10581_v54 = vpop.f32.mrf.mxu1 }
0x1609   :  { %v3852_v52 = vpop.xlane.xlu0 %3851 }
0x160a   :  { %v3854_v3 = vsub.f32 %v3843_v23, %v3852_v52 }
0x160c   :  { %v3857_v44 = vmul.f32 1.442695, %v3854_v3 }
0x160e   :  { %11302 = vpow2.f32 %v3857_v44 }
0x161b   :  { %v11303_v36 = vpop.eup %11302 }
0x161c   :  { %v3862_v15 = vsel %vm700_vm2, %v11303_v36, 0.0 }
0x1637   :  { %v12639_v5 = vpop.f32.mrf.mxu0 }
0x1639   :  { %v12641_v11 = vpop.f32.mrf.mxu0 }
0x163b   :  { %v3765_v60 = vpop.f32.mrf.mxu0 }
0x163c   :  { %v3847_v47 = vsel %vm700_vm2, %v3765_v60, -inf }
0x163d   :  { %3848 = vmax.xlane.f32.xlu1 %v3847_v47  ;;  %v10576_v0 = vpop.f32.mrf.mxu0 }
0x1641   :  { %3863 = vadd.xlane.f32.xlu1 %v3862_v15 }
0x1652   :  { %3945 = vrot.lane.b32.xlu1 %v12530_v40, %s11445_s14 }
0x1656   :  { %4022 = vrot.lane.b32.xlu1 %v12377_v20, %s11434_s18 }
0x165a   :  { %4188 = vrot.lane.b32.xlu1 %v12530_v40, %s11443_s13 }
0x165e   :  { %4186 = vrot.lane.b32.xlu1 %v12549_v9, %s11442_s10 }
0x16c6   :  { %v3849_v58 = vpop.xlane.xlu1 %3848 }
0x16c7   :  { %v3853_v26 = vsub.f32 %v3765_v60, %v3849_v58 }
0x16c9   :  { %v3855_v30 = vmul.f32 1.442695, %v3853_v26 }
0x16ca   :  { %v3864_v18 = vpop.xlane.xlu1 %3863 }
0x16cb   :  { %11304 = vpow2.f32 %v3855_v30 }
0x16cc   :  { %11306 = vrcp.f32 %v3864_v18 }
0x16ce   :  { %v3946_v14 = vpop.permute.xlu1 %3945 }
0x16cf   :  { %10588 = vmatpush3.msra.mxu1 %v3946_v14 }
0x16d0   :  { %10597 = vmatprep.subr.mxu1 %v13847_v2 }
0x16d2   :  { %v4023_v3 = vpop.permute.xlu1 %4022 }
0x16d6   :  { %v4189_v30 = vpop.permute.xlu1 %4188 }
0x16d8   :  { %v11305_v23 = vpop.eup %11304 }
0x16d9   :  { %v11307_v45 = vpop.eup %11306  ;;  %v3859_v20 = vsel %vm700_vm2, %v11305_v23, 0.0 }
0x16da   :  { %3860 = vadd.xlane.f32.xlu0 %v3859_v20  ;;  %v3868_v54 = vmul.f32 %v11307_v45, %v11303_v36 }
0x16dc   :  { %10590 = vmatmul.mubr.msk.f32.vlgmr.msra.gmra.mxu1 %vm700_vm2, %v3868_v54 }
0x16dd   :  { %10599 = vmatprep.mubr.msk.f32.mxu1 %vm11437_vm1, %v13847_v2 }
0x16f0   :  { %3869 = vrot.lane.b32.xlu0 %v12532_v61, %s11445_s14 }
0x16f4   :  { %4110 = vrot.lane.b32.xlu0 %v12532_v61, %s11443_s13 }
0x16f8   :  { %4108 = vrot.lane.b32.xlu0 %v12540_v62, %s11442_s10 }
0x1763   :  { %v3861_v9 = vpop.xlane.xlu0 %3860 }
0x1764   :  { %11308 = vrcp.f32 %v3861_v9 }
0x1767   :  { %v3870_v52 = vpop.permute.xlu0 %3869 }
0x1768   :  { %10583 = vmatpush3.msra.mxu0 %v3870_v52 }
0x1769   :  { %10592 = vmatprep.subr.mxu0 %v4023_v3 }
0x176b   :  { %v4111_v44 = vpop.permute.xlu0 %4110 }
0x176c   :  { %10598 = vmatpush3.xpose.msk.msra.mxu1 %vm700_vm2, %v4111_v44 }
0x176d   :  { %10607 = vmatprep.subr.mxu1 %v13847_v2 }
0x176f   :  { %v4109_v60 = vpop.permute.xlu0 %4108 }
0x1770   :  { %10600 = vmatmul.mubr.msk.f32.vlgmr.msra.gmra.mxu1 %vm700_vm2, %v4109_v60  ;;  %v3683_v60 = vadd.f32 %v12634_v37, %v12641_v11 }
0x1771   :  { %v11309_v47 = vpop.eup %11308  ;;  %10609 = vmatprep.mubr.msk.f32.mxu1 %vm11437_vm1, %v13847_v2 }
0x1772   :  { %v3866_v36 = vmul.f32 %v11309_v47, %v11305_v23  ;;  %v4187_v23 = vpop.permute.xlu1 %4186 }
0x1774   :  { %10585 = vmatmul.mubr.msk.f32.vlgmr.msra.gmra.mxu0 %vm700_vm2, %v3866_v36 }
0x1775   :  { %10593 = vmatpush3.msra.mxu0 %v4023_v3  ;;  %v3688_v3 = vadd.f32 %v12631_v39, %v12639_v5 }
0x1776   :  { %10602 = vmatprep.subr.mxu0 %v13847_v2 }
0x179c   :  { %v4017_v62 = vpop.f32.mrf.mxu1 }
0x179e   :  { %v10591_v0 = vpop.f32.mrf.mxu1 }
0x1830   :  { %v4182_v15 = vpop.f32.mrf.mxu1 }
0x1831   :  { %v4264_v58 = vsel %vm700_vm2, %v4182_v15, -inf }
0x1832   :  { %4265 = vmax.xlane.f32.xlu0 %v4264_v58  ;;  %v10601_v26 = vpop.f32.mrf.mxu1 }
0x1834   :  { %v3941_v18 = vpop.f32.mrf.mxu0 }
0x1835   :  { %10594 = vmatprep.mubr.msk.f32.mxu0 %vm700_vm2, %v3941_v18 }
0x1836   :  { %v10586_v14 = vpop.f32.mrf.mxu0  ;;  %10595 = vmatmul.mubr.msk.f32.vlgmr.msra.gmra.mxu0 %vm700_vm2, %v4017_v62 }
0x1837   :  { %10603 = vmatpush3.xpose.msk.msra.mxu0 %vm700_vm2, %v4189_v30  ;;  %10604 = vmatprep.mubr.msk.f32.mxu0 %vm11437_vm1, %v13847_v2 }
0x1838   :  { %10612 = vmatprep.subr.mxu0 %v13847_v2 }
0x183a   :  { %10605 = vmatmul.mubr.msk.f32.vlgmr.msra.gmra.mxu0 %vm700_vm2, %v4187_v23 }
0x183b   :  { %10614 = vmatprep.mubr.msk.f32.mxu0 %vm11437_vm1, %v13847_v2 }
0x18bb   :  { %v4266_v45 = vpop.xlane.xlu0 %4265 }
0x18bc   :  { %v4270_v20 = vsub.f32 %v4182_v15, %v4266_v45 }
0x18be   :  { %v4272_v54 = vmul.f32 1.442695, %v4270_v20 }
0x18c0   :  { %11310 = vpow2.f32 %v4272_v54 }
0x18cd   :  { %v11311_v9 = vpop.eup %11310 }
0x18ce   :  { %v4276_v52 = vsel %vm700_vm2, %v11311_v9, 0.0 }
0x18cf   :  { %4277 = vadd.xlane.f32.xlu0 %v4276_v52 }
0x18f6   :  { %v10596_v44 = vpop.f32.mrf.mxu0 }
0x18f7   :  { %v4107_v47 = vadd.f32 %v10596_v44, %v3688_v3 }
0x18f8   :  { %v4097_v36 = vpop.f32.mrf.mxu0 }
0x18f9   :  { %v4106_v62 = vadd.f32 %v4097_v36, %v3683_v60 }
0x18fa   :  { %v4260_v0 = vpop.f32.mrf.mxu0 }
0x18fb   :  { %v4267_v58 = vsel %vm700_vm2, %v4260_v0, -inf }
0x18fc   :  { %4268 = vmax.xlane.f32.xlu1 %v4267_v58  ;;  %v10606_v15 = vpop.f32.mrf.mxu0 }
0x190d   :  { %4286 = vrot.lane.b32.xlu1 %v12532_v61, %s11446_s15 }
0x1911   :  { %4439 = vrot.lane.b32.xlu1 %v12490_v56, %s11434_s18 }
0x1958   :  { %v4278_v39 = vpop.xlane.xlu0 %4277 }
0x1959   :  { %11312 = vrcp.f32 %v4278_v39 }
0x1966   :  { %v11313_v26 = vpop.eup %11312 }
0x1967   :  { %v4283_v18 = vmul.f32 %v11313_v26, %v11311_v9 }
0x1985   :  { %v4269_v5 = vpop.xlane.xlu1 %4268 }
0x1986   :  { %v4271_v37 = vsub.f32 %v4260_v0, %v4269_v5 }
0x1988   :  { %v4274_v11 = vmul.f32 1.442695, %v4271_v37 }
0x1989   :  { %v4287_v30 = vpop.permute.xlu1 %4286 }
0x198a   :  { %11314 = vpow2.f32 %v4274_v11  ;;  %10608 = vmatpush3.msra.mxu1 %v4287_v30 }
0x198b   :  { %10610 = vmatmul.mubr.msk.f32.vlgmr.msra.gmra.mxu1 %vm700_vm2, %v4283_v18 }
0x198d   :  { %v4440_v56 = vpop.permute.xlu1 %4439 }
0x198e   :  { %10617 = vmatprep.subr.mxu1 %v4440_v56 }
0x198f   :  { %10618 = vmatpush3.msra.mxu1 %v4440_v56 }
0x1997   :  { %v11315_v14 = vpop.eup %11314 }
0x1998   :  { %v4279_v23 = vsel %vm700_vm2, %v11315_v14, 0.0 }
0x1999   :  { %4280 = vadd.xlane.f32.xlu0 %v4279_v23 }
0x19af   :  { %4362 = vrot.lane.b32.xlu0 %v12530_v40, %s11446_s15  ;;  %v4525_v40 = vrot.slane %v12499_v1, 2 }
0x19b1   :  { %v4529_v0 = vrot.slane %v4525_v40, %v11692_v17  ;;  %v559_v40 = vld [vmem:[%s13841_s5] sm:$0xff] }
0x1a22   :  { %v4281_v61 = vpop.xlane.xlu0 %4280 }
0x1a23   :  { %11316 = vrcp.f32 %v4281_v61 }
0x1a26   :  { %v4363_v45 = vpop.permute.xlu0 %4362 }
0x1a27   :  { %10613 = vmatpush3.msra.mxu0 %v4363_v45  ;;  %v9466_v45 = vld [vmem:[%s13841_s5 + $0x98] sm:$0xff] }
0x1a30   :  { %v11317_v20 = vpop.eup %11316 }
0x1a31   :  { %v4285_v54 = vmul.f32 %v11317_v20, %v11315_v14  ;;  %v12723_v20 = vld [vmem:[%s13842_s7 + $0x1] ss:$2 sm:$0x1f] }
0x1a33   :  { %10615 = vmatmul.mubr.msk.f32.vlgmr.msra.gmra.mxu0 %vm700_vm2, %v4285_v54  ;;  %v9463_v54 = vld [vmem:[%s13841_s5 + $0x80] sm:$0xff] }
0x1a4b   :  { %v4358_v9 = vpop.f32.mrf.mxu1 }
0x1a4c   :  { %10619 = vmatprep.mubr.msk.f32.mxu1 %vm700_vm2, %v4358_v9  ;;  %v568_v9 = vld [vmem:[%s13841_s5 + $0x48] sm:$0xff] }
0x1a4d   :  { %v10611_v52 = vpop.f32.mrf.mxu1  ;;  %10622 = vmatprep.subr.mxu0 %v568_v9 }
0x1a4e   :  { %10623 = vmatpush3.msra.mxu0 %v568_v9  ;;  %v565_v52 = vld [vmem:[%s13841_s5 + $0x30] sm:$0xff] }
0x1a4f   :  { %10624 = vmatprep.subr.mxu0 %v565_v52 }
0x1a50   :  { %10625 = vmatpush3.msra.mxu0 %v565_v52  ;;  %v4735_v52 = vld [vmem:[%s13845_s6 + $0x78] sm:$0xff] }
0x1a51   :  { %10633 = vmatprep.subr.mxu1 %v4735_v52 }
0x1af3   :  { %v4434_v3 = vpop.f32.mrf.mxu0 }
0x1af4   :  { %10620 = vmatmul.mubr.msk.f32.vlgmr.msra.gmra.mxu1 %vm700_vm2, %v4434_v3  ;;  %v12737_v3 = vrot.slane %v12723_v20, %v11692_v17 }
0x1af5   :  { %v10616_v44 = vpop.f32.mrf.mxu0  ;;  %10634 = vmatpush3.msra.mxu1 %v4735_v52 }
0x1af6   :  { %v562_v44 = vld [vmem:[%s13841_s5 + $0x18] sm:$0xff] }
0x1af7   :  { %10626 = vmatprep.subr.mxu0 %v562_v44 }
0x1af8   :  { %10627 = vmatpush3.msra.mxu0 %v562_v44  ;;  %v4732_v44 = vld [vmem:[%s13845_s6 + $0x60] sm:$0xff] }
0x1af9   :  { %10628 = vmatprep.subr.mxu0 %v559_v40 }
0x1afa   :  { %10629 = vmatpush3.msra.mxu0 %v559_v40  ;;  %v4731_v40 = vld [vmem:[%s13845_s6 + $0x58] sm:$0xff] }
0x1bb4   :  { %v10621_v60 = vpop.f32.mrf.mxu1 }
0x1bb5   :  { %v4524_v36 = vadd.f32 %v10621_v60, %v4107_v47  ;;  %v9460_v60 = vld [vmem:[%s13841_s5 + $0x68] sm:$0xff] }
0x1bb6   :  { %v4514_v58 = vpop.f32.mrf.mxu1 }
0x1bb7   :  { %v4532_v15 = vadd.f32 %v4529_v0, %v4524_v36  ;;  %v4523_v39 = vadd.f32 %v4514_v58, %v4106_v62 }
0x1bb9   :  { %v12701_v5 = vadd.f32 %v4532_v15, %v12508_v25  ;;  %v4531_v26 = vadd.f32 %v4529_v0, %v4523_v39 }
0x1bbb   :  { %v12704_v37 = vadd.f32 %v4531_v26, %v12510_v48  ;;  %v4538_v11 = vsel %vm104_vm0, %v12701_v5, 0.0 }
0x1bbc   :  { %4539 = vadd.xlane.f32.xlu0 %v4538_v11  ;;  %v4561_v11 = vrot.slane %v12470_v24, 1 }
0x1bbd   :  { %v4535_v1 = vsel %vm104_vm0, %v12704_v37, 0.0 }
0x1bbe   :  { %4536 = vadd.xlane.f32.xlu1 %v4535_v1 }
0x1c45   :  { %v4540_v47 = vpop.xlane.xlu0 %4539 }
0x1c46   :  { %v4542_v30 = vmul.f32 0.03125, %v4540_v47 }
0x1c47   :  { %v4537_v18 = vpop.xlane.xlu1 %4536 }
0x1c48   :  { %v4544_v62 = vsub.f32 %v12701_v5, %v4542_v30  ;;  %v4541_v14 = vmul.f32 0.03125, %v4537_v18  ;;  %v4565_v30 = vrot.slane %v4561_v11, %v11692_v17  ;;  %v4723_v11 = vld [vmem:[%s13845_s6 + $0x18] sm:$0xff] }
0x1c4a   :  { %v4543_v25 = vsub.f32 %v12704_v37, %v4541_v14  ;;  %v4546_v23 = vmul.f32 %v4544_v62, %v4544_v62 }
0x1c4c   :  { %v4550_v48 = vsel %vm104_vm0, %v4546_v23, 0.0  ;;  %v4545_v56 = vmul.f32 %v4543_v25, %v4543_v25 }
0x1c4d   :  { %4551 = vadd.xlane.f32.xlu1 %v4550_v48 }
0x1c4e   :  { %v4547_v61 = vsel %vm104_vm0, %v4545_v56, 0.0 }
0x1c4f   :  { %4548 = vadd.xlane.f32.xlu0 %v4547_v61 }
0x1c65   :  { %4569 = vrot.lane.b32.xlu0 %v12470_v24, %s11434_s18 }
0x1c69   :  { %4891 = vrot.lane.b32.xlu0 %v9466_v45, %s11433_s9 }
0x1c6d   :  { %4889 = vrot.lane.b32.xlu0 %v9463_v54, %s11433_s9 }
0x1c71   :  { %4870 = vrot.lane.b32.xlu0 %v12737_v3, %s11434_s18 }
0x1c75   :  { %4887 = vrot.lane.b32.xlu0 %v9460_v60, %s11433_s9  ;;  %v4730_v60 = vld [vmem:[%s13845_s6 + $0x50] sm:$0xff] }
0x1c79   :  { %4994 = vrot.lane.b32.xlu0 %v11853_v6, %s11435_s19 }
0x1c7d   :  { %4990 = vrot.lane.b32.xlu0 %v11869_v38, %s11435_s19 }
0x1c81   :  { %5101 = vrot.lane.b32.xlu0 %v11883_v22, %s11435_s19 }
0x1c85   :  { %5099 = vrot.lane.b32.xlu0 %v11897_v32, %s11435_s19 }
0x1c89   :  { %4984 = vrot.lane.b32.xlu0 %v11906_v34, %s11435_s19 }
0x1c8d   :  { %4982 = vrot.lane.b32.xlu0 %v11919_v42, %s11435_s19 }
0x1c91   :  { %5093 = vrot.lane.b32.xlu0 %v11933_v63, %s11435_s19 }
0x1c95   :  { %5089 = vrot.lane.b32.xlu0 %v11949_v49, %s11435_s19 }
0x1c99   :  { %5228 = vrot.lane.b32.xlu0 %v11850_v33, %s11433_s9 }
0x1cd6   :  { %v4552_v36 = vpop.xlane.xlu1 %4551 }
0x1cd7   :  { %v4554_v0 = vmul.f32 0.03125, %v4552_v36  ;;  %v4729_v36 = vld [vmem:[%s13845_s6 + $0x48] sm:$0xff] }
0x1cd8   :  { %v4549_v58 = vpop.xlane.xlu0 %4548 }
0x1cd9   :  { %v4556_v15 = vadd.f32 1e-05, %v4554_v0  ;;  %v4553_v39 = vmul.f32 0.03125, %v4549_v58  ;;  %v4728_v0 = vld [vmem:[%s13845_s6 + $0x40] sm:$0xff]  ;;  %v4727_v58 = vld [vmem:[%s13845_s6 + $0x38] sm:$0xff] }
0x1cdb   :  { %11318 = vrsqrt.f32 %v4556_v15  ;;  %v4555_v26 = vadd.f32 1e-05, %v4553_v39  ;;  %v4726_v15 = vld [vmem:[%s13845_s6 + $0x30] sm:$0xff]  ;;  %v4725_v39 = vld [vmem:[%s13845_s6 + $0x28] sm:$0xff] }
0x1cdc   :  { %v4570_v1 = vpop.permute.xlu0 %4569 }
0x1cdd   :  { %11320 = vrsqrt.f32 %v4555_v26  ;;  %v4571_v18 = vrot.slane %v4570_v1, 1  ;;  %v4724_v26 = vld [vmem:[%s13845_s6 + $0x20] sm:$0xff]  ;;  %v4722_v1 = vld [vmem:[%s13845_s6 + $0x10] sm:$0xff] }
0x1cdf   :  { %v4575_v61 = vrot.slane %v4571_v18, %v11692_v17  ;;  %v4579_v18 = vrot.slane %v12470_v24, 3 }
0x1ce8   :  { %v11319_v47 = vpop.eup %11318 }
0x1ce9   :  { %v4560_v14 = vmul.f32 %v11319_v47, %v4544_v62  ;;  %v4734_v62 = vld [vmem:[%s13845_s6 + $0x70] sm:$0xff]  ;;  %v4721_v47 = vld [vmem:[%s13845_s6 + $0x8] sm:$0xff] }
0x1cea   :  { %v11321_v23 = vpop.eup %11320  ;;  %10635 = vmatprep.subr.mxu1 %v4734_v62 }
0x1ceb   :  { %v4559_v48 = vmul.f32 %v11321_v23, %v4543_v25  ;;  %v4568_v56 = vmul.f32 %v4565_v30, %v4560_v14  ;;  %10636 = vmatpush3.msra.mxu1 %v4734_v62  ;;  %v4733_v25 = vld [vmem:[%s13845_s6 + $0x68] sm:$0xff]  ;;  %v4583_v14 = vrot.slane %v4579_v18, %v11692_v17 }
0x1cec   :  { %10637 = vmatprep.subr.mxu1 %v4733_v25 }
0x1ced   :  { %v4567_v45 = vmul.f32 %v4565_v30, %v4559_v48  ;;  %v4578_v9 = vadd.f32 %v4575_v61, %v4568_v56  ;;  %10638 = vmatpush3.msra.mxu1 %v4733_v25  ;;  %v4720_v30 = vld [vmem:[%s13845_s6] sm:$0xff] }
0x1cee   :  { %10639 = vmatprep.subr.mxu1 %v4732_v44 }
0x1cef   :  { %v4577_v54 = vadd.f32 %v4575_v61, %v4567_v45  ;;  %10640 = vmatpush3.msra.mxu1 %v4732_v44 }
0x1cf0   :  { %10641 = vmatprep.subr.mxu1 %v4731_v40 }
0x1cf1   :  { %10630 = vmatprep.mubr.msk.f32.mxu0 %vm104_vm0, %v4577_v54  ;;  %10642 = vmatpush3.msra.mxu1 %v4731_v40 }
0x1cf2   :  { %10631 = vmatmul.mubr.msk.f32.vlgmr.msra.gmra.mxu0 %vm104_vm0, %v4578_v9  ;;  %10643 = vmatprep.subr.mxu1 %v4730_v60 }
0x1cf3   :  { %10644 = vmatpush3.msra.mxu1 %v4730_v60 }
0x1cf4   :  { %10645 = vmatprep.subr.mxu1 %v4729_v36 }
0x1cf5   :  { %10646 = vmatpush3.msra.mxu1 %v4729_v36  ;;  %v12825_v36 = vpop.permute.xlu0 %4891 }
0x1cf6   :  { %10647 = vmatprep.subr.mxu1 %v4728_v0 }
0x1cf7   :  { %10648 = vmatpush3.msra.mxu1 %v4728_v0 }
0x1cf8   :  { %10649 = vmatprep.subr.mxu1 %v4727_v58 }
0x1cf9   :  { %10650 = vmatpush3.msra.mxu1 %v4727_v58 }
0x1cfa   :  { %10651 = vmatprep.subr.mxu1 %v4726_v15 }
0x1cfb   :  { %10652 = vmatpush3.msra.mxu1 %v4726_v15 }
0x1cfc   :  { %10653 = vmatprep.subr.mxu1 %v4725_v39 }
0x1cfd   :  { %10654 = vmatpush3.msra.mxu1 %v4725_v39  ;;  %v12827_v39 = vpop.permute.xlu0 %4889 }
0x1cfe   :  { %10655 = vmatprep.subr.mxu1 %v4724_v26 }
0x1cff   :  { %10656 = vmatpush3.msra.mxu1 %v4724_v26 }
0x1d00   :  { %10657 = vmatprep.subr.mxu1 %v4723_v11 }
0x1d01   :  { %10658 = vmatpush3.msra.mxu1 %v4723_v11 }
0x1d02   :  { %10659 = vmatprep.subr.mxu1 %v4722_v1 }
0x1d03   :  { %10660 = vmatpush3.msra.mxu1 %v4722_v1 }
0x1d04   :  { %10661 = vmatprep.subr.mxu1 %v4721_v47 }
0x1d05   :  { %10662 = vmatpush3.msra.mxu1 %v4721_v47 }
0x1d06   :  { %10663 = vmatprep.subr.mxu1 %v4720_v30 }
0x1d07   :  { %10664 = vmatpush3.msra.mxu1 %v4720_v30 }
0x1d08   :  { %10698 = vmatprep.subr.mxu1 %v13847_v2 }
0x1db2   :  { %v10632_v23 = vpop.f32.mrf.mxu0 }
0x1db3   :  { %v4663_v48 = vadd.f32 %v10632_v23, %v4583_v14 }
0x1db4   :  { %v4657_v56 = vpop.f32.mrf.mxu0 }
0x1db5   :  { %v4669_v61 = vmul.f32 0.70710677, %v4663_v48  ;;  %v4658_v45 = vadd.f32 %v4657_v56, %v4583_v14  ;;  %v12829_v56 = vpop.permute.xlu0 %4870 }
0x1db7   :  { %v4675_v54 = vand.u32 2147483647, %v4669_v61  ;;  %v4668_v9 = vmul.f32 0.70710677, %v4658_v45  ;;  %vm4671_vm4 = vcmp.ge.f32.partialorder %v4669_v61, 0.0  ;;  %v4667_v61 = vmul.f32 0.5, %v4663_v48 }
0x1db8   :  { %v11425_v48 = vld [vmem:[%s13842_s7] ss:$2 sm:$0x1f] }
0x1db9   :  { %v4677_v52 = vmul.f32 0.3275911, %v4675_v54  ;;  %v4674_v62 = vand.u32 2147483647, %v4668_v9  ;;  %v4703_v60 = vsub.f32 0.0, %v4675_v54  ;;  %vm4670_vm5 = vcmp.ge.f32.partialorder %v4668_v9, 0.0 }
0x1dba   :  { %v13851_v9 = vmov 0.0  }
0x1dbb   :  { %v4679_v25 = vadd.f32 1.0, %v4677_v52  ;;  %v4676_v44 = vmul.f32 0.3275911, %v4674_v62  ;;  %v4702_v24 = vsub.f32 0.0, %v4674_v62  ;;  %v4705_v0 = vmul.f32 %v4703_v60, %v4675_v54  ;;  %v12831_v60 = vpop.permute.xlu0 %4887 }
0x1dbd   :  { %11322 = vrcp.f32 %v4679_v25  ;;  %v4678_v40 = vadd.f32 1.0, %v4676_v44  ;;  %v4704_v15 = vmul.f32 %v4702_v24, %v4674_v62  ;;  %v4708_v11 = vmul.f32 1.442695, %v4705_v0 }
0x1dbf   :  { %11324 = vrcp.f32 %v4678_v40  ;;  %v4706_v30 = vmul.f32 1.442695, %v4704_v15 }
0x1dc0   :  { %11326 = vpow2.f32 %v4708_v11  ;;  %v12833_v11 = vpop.permute.xlu0 %4994 }
0x1dc1   :  { %11328 = vpow2.f32 %v4706_v30 }
0x1dca   :  { %v11323_v58 = vpop.eup %11322 }
0x1dcb   :  { %v4685_v26 = vmul.f32 1.0614054, %v11323_v58 }
0x1dcc   :  { %v11325_v1 = vpop.eup %11324 }
0x1dcd   :  { %v4687_v47 = vadd.f32 -1.4531521, %v4685_v26  ;;  %v4684_v18 = vmul.f32 1.0614054, %v11325_v1  ;;  %v11327_v53 = vpop.eup %11326 }
0x1dce   :  { %v11329_v30 = vpop.eup %11328 }
0x1dcf   :  { %v4689_v14 = vmul.f32 %v11323_v58, %v4687_v47  ;;  %v4686_v23 = vadd.f32 -1.4531521, %v4684_v18 }
0x1dd1   :  { %v4691_v52 = vadd.f32 1.4214138, %v4689_v14  ;;  %v4688_v25 = vmul.f32 %v11325_v1, %v4686_v23 }
0x1dd3   :  { %v4693_v44 = vmul.f32 %v11323_v58, %v4691_v52  ;;  %v4690_v54 = vadd.f32 1.4214138, %v4688_v25  ;;  %v11447_v52 = vmov -1.0  }
0x1dd4   :  { %v4673_v25 = vsel %vm4671_vm4, 1.0, %v11447_v52 }
0x1dd5   :  { %v4695_v40 = vadd.f32 -0.28449672, %v4693_v44  ;;  %v4692_v62 = vmul.f32 %v11325_v1, %v4690_v54 }
0x1dd7   :  { %v4697_v24 = vmul.f32 %v11323_v58, %v4695_v40  ;;  %v4694_v0 = vadd.f32 -0.28449672, %v4692_v62  ;;  %v12836_v62 = vpop.permute.xlu0 %4990 }
0x1dd9   :  { %v4699_v2 = vadd.f32 0.2548296, %v4697_v24  ;;  %v4696_v26 = vmul.f32 %v11325_v1, %v4694_v0  ;;  %v4666_v0 = vmul.f32 0.5, %v4658_v45  ;;  %v4813_v45 = vrot.slane %v11425_v48, 4 }
0x1ddb   :  { %v4701_v15 = vmul.f32 %v11323_v58, %v4699_v2  ;;  %v4698_v47 = vadd.f32 0.2548296, %v4696_v26  ;;  %v4672_v2 = vsel %vm4670_vm5, 1.0, %v11447_v52 }
0x1ddd   :  { %v4711_v18 = vmul.f32 %v11327_v53, %v4701_v15  ;;  %v4700_v14 = vmul.f32 %v11325_v1, %v4698_v47  ;;  %v5102_v1 = vpop.permute.xlu0 %5101 }
0x1ddf   :  { %v4713_v23 = vsub.f32 1.0, %v4711_v18  ;;  %v4710_v44 = vmul.f32 %v11329_v30, %v4700_v14 }
0x1de1   :  { %v4715_v54 = vmul.f32 %v4713_v23, %v4673_v25  ;;  %v4712_v40 = vsub.f32 1.0, %v4710_v44  ;;  %v5100_v47 = vpop.permute.xlu0 %5099  ;;  %v4817_v23 = vrot.slane %v4813_v45, %v11692_v17 }
0x1de3   :  { %v4714_v58 = vmul.f32 %v4712_v40, %v4672_v2  ;;  %v4717_v24 = vadd.f32 1.0, %v4715_v54 }
0x1de5   :  { %v4716_v26 = vadd.f32 1.0, %v4714_v58  ;;  %v4719_v15 = vmul.f32 %v4717_v24, %v4667_v61 }
0x1de7   :  { %v4718_v53 = vmul.f32 %v4716_v26, %v4666_v0 }
0x1de9   :  { %10665 = vmatprep.mubr.f32.mxu1 %v4718_v53 }
0x1dea   :  { %10666 = vmatmul.mubr.f32.vlgmr.msra.gmra.mxu1 %v4719_v15 }
0x1deb   :  { %10699 = vmatpush3.xpose.msk.msra.mxu1 %vm700_vm2, %v5102_v1  ;;  %10714 = vmatprep.mubr.msk.f32.mxu1 %vm11437_vm1, %v13851_v9 }
0x1dec   :  { %10700 = vmatprep.subr.mxu1 %v13851_v9 }
0x1def   :  { %10701 = vmatpush3.xpose.msk.msra.mxu1 %vm700_vm2, %v5100_v47  ;;  %v9469_v47 = vld [vmem:[%s13841_s5 + $0xb0] sm:$0xff] }
0x1df0   :  { %10702 = vmatprep.subr.mxu1 %v13851_v9 }
0x1eaa   :  { %v10667_v18 = vpop.f32.mrf.mxu1 }
0x1eab   :  { %v4812_v30 = vadd.f32 %v10667_v18, %v12701_v5 }
0x1eac   :  { %v4802_v14 = vpop.f32.mrf.mxu1 }
0x1ead   :  { %v4811_v25 = vadd.f32 %v4802_v14, %v12704_v37  ;;  %v12853_v54 = vadd.f32 %v4817_v23, %v4812_v30 }
0x1eaf   :  { %v12851_v44 = vadd.f32 %v4817_v23, %v4811_v25  ;;  %v4839_v2 = vsel %vm104_vm0, %v12853_v54, 0.0 }
0x1eb1   :  { %v4836_v40 = vsel %vm104_vm0, %v12851_v44, 0.0 }
0x1eb2   :  { %4837 = vadd.xlane.f32.xlu1 %v4836_v40 }
0x1eb6   :  { %4840 = vadd.xlane.f32.xlu1 %v4839_v2 }
0x1f3b   :  { %v4838_v58 = vpop.xlane.xlu1 %4837 }
0x1f3c   :  { %v4842_v24 = vmul.f32 0.03125, %v4838_v58 }
0x1f3e   :  { %v4844_v26 = vsub.f32 %v12851_v44, %v4842_v24 }
0x1f3f   :  { %v4841_v0 = vpop.xlane.xlu1 %4840 }
0x1f40   :  { %v4843_v5 = vmul.f32 0.03125, %v4841_v0  ;;  %v4846_v1 = vmul.f32 %v4844_v26, %v4844_v26 }
0x1f42   :  { %v4845_v37 = vsub.f32 %v12853_v54, %v4843_v5  ;;  %v4848_v15 = vsel %vm104_vm0, %v4846_v1, 0.0 }
0x1f44   :  { %v4847_v61 = vmul.f32 %v4845_v37, %v4845_v37 }
0x1f46   :  { %v4851_v53 = vsel %vm104_vm0, %v4847_v61, 0.0 }
0x1f47   :  { %4852 = vadd.xlane.f32.xlu1 %v4851_v53 }
0x1f4b   :  { %4849 = vadd.xlane.f32.xlu1 %v4848_v15 }
0x1f5c   :  { %4893 = vrot.lane.b32.xlu1 %v9469_v47, %s11433_s9 }
0x1f60   :  { %4996 = vrot.lane.b32.xlu1 %v11850_v33, %s11435_s19 }
0x1f64   :  { %4992 = vrot.lane.b32.xlu1 %v11861_v8, %s11435_s19 }
0x1f68   :  { %4988 = vrot.lane.b32.xlu1 %v11877_v19, %s11435_s19 }
0x1f6c   :  { %4986 = vrot.lane.b32.xlu1 %v11894_v29, %s11435_s19 }
0x1f70   :  { %4875 = vrot.lane.b32.xlu1 %v12723_v20, %s11435_s19 }
0x1f74   :  { %5097 = vrot.lane.b32.xlu1 %v11909_v35, %s11435_s19 }
0x1f78   :  { %5095 = vrot.lane.b32.xlu1 %v11922_v13, %s11435_s19 }
0x1f7c   :  { %5091 = vrot.lane.b32.xlu1 %v11943_v46, %s11435_s19 }
0x1f80   :  { %5087 = vrot.lane.b32.xlu1 %v11955_v55, %s11435_s19 }
0x1fd0   :  { %v4853_v48 = vpop.xlane.xlu1 %4852 }
0x1fd1   :  { %v4855_v45 = vmul.f32 0.03125, %v4853_v48 }
0x1fd3   :  { %v4857_v18 = vadd.f32 1e-05, %v4855_v45 }
0x1fd4   :  { %v4850_v14 = vpop.xlane.xlu1 %4849 }
0x1fd5   :  { %11330 = vrsqrt.f32 %v4857_v18  ;;  %v4854_v30 = vmul.f32 0.03125, %v4850_v14 }
0x1fd7   :  { %v4856_v23 = vadd.f32 1e-05, %v4854_v30 }
0x1fd8   :  { %v4894_v20 = vpop.permute.xlu1 %4893 }
0x1fd9   :  { %11332 = vrsqrt.f32 %v4856_v23  ;;  %10668 = vmatprep.subr.mxu0 %v4894_v20 }
0x1fda   :  { %10669 = vmatpush3.msra.mxu0 %v4894_v20 }
0x1fdb   :  { %10670 = vmatprep.subr.mxu0 %v12825_v36 }
0x1fdc   :  { %v4997_v25 = vpop.permute.xlu1 %4996  ;;  %10671 = vmatpush3.msra.mxu0 %v12825_v36 }
0x1fdd   :  { %10672 = vmatprep.subr.mxu0 %v12827_v39 }
0x1fde   :  { %10673 = vmatpush3.msra.mxu0 %v12827_v39  ;;  %v4985_v39 = vpop.permute.xlu0 %4984 }
0x1fdf   :  { %10674 = vmatprep.subr.mxu0 %v12831_v60 }
0x1fe0   :  { %v4993_v40 = vpop.permute.xlu1 %4992  ;;  %10675 = vmatpush3.msra.mxu0 %v12831_v60 }
0x1fe1   :  { %10679 = vmatprep.subr.mxu0 %v13851_v9 }
0x1fe2   :  { %v11331_v2 = vpop.eup %11330 }
0x1fe3   :  { %v4861_v24 = vmul.f32 %v11331_v2, %v4845_v37 }
0x1fe4   :  { %v4989_v58 = vpop.permute.xlu1 %4988 }
0x1fe5   :  { %v4869_v53 = vmul.f32 %v12737_v3, %v4861_v24 }
0x1fe6   :  { %v11333_v0 = vpop.eup %11332 }
0x1fe7   :  { %v4860_v5 = vmul.f32 %v11333_v0, %v4844_v26  ;;  %v4874_v47 = vadd.f32 %v12829_v56, %v4869_v53  ;;  %v4983_v26 = vpop.permute.xlu0 %4982 }
0x1fe8   :  { %v4987_v61 = vpop.permute.xlu1 %4986 }
0x1fe9   :  { %v4868_v36 = vmul.f32 %v12737_v3, %v4860_v5 }
0x1feb   :  { %v4873_v1 = vadd.f32 %v12829_v56, %v4868_v36  ;;  %v5094_v37 = vpop.permute.xlu0 %5093 }
0x1fec   :  { %v4876_v15 = vpop.permute.xlu1 %4875 }
0x1fed   :  { %10676 = vmatprep.mubr.msk.f32.mxu0 %vm104_vm0, %v4873_v1 }
0x1fee   :  { %10677 = vmatmul.mubr.msk.f32.vlgmr.msra.gmra.mxu0 %vm104_vm0, %v4874_v47 }
0x1fef   :  { %10680 = vmatpush3.xpose.msk.msra.mxu0 %vm700_vm2, %v4997_v25  ;;  %10695 = vmatprep.mubr.msk.f32.mxu0 %vm11437_vm1, %v13851_v9  ;;  %v5090_v48 = vpop.permute.xlu0 %5089 }
0x1ff0   :  { %v5098_v60 = vpop.permute.xlu1 %5097  ;;  %10681 = vmatprep.subr.mxu0 %v13851_v9 }
0x1ff1   :  { %10703 = vmatpush3.xpose.msk.msra.mxu1 %vm700_vm2, %v5098_v60 }
0x1ff2   :  { %10704 = vmatprep.subr.mxu1 %v13851_v9 }
0x1ff3   :  { %10682 = vmatpush3.xpose.msk.msra.mxu0 %vm700_vm2, %v12833_v11  ;;  %v5229_v2 = vpop.permute.xlu0 %5228 }
0x1ff4   :  { %v5096_v56 = vpop.permute.xlu1 %5095  ;;  %10683 = vmatprep.subr.mxu0 %v13851_v9 }
0x1ff5   :  { %10705 = vmatpush3.xpose.msk.msra.mxu1 %vm700_vm2, %v5096_v56 }
0x1ff6   :  { %10706 = vmatprep.subr.mxu1 %v13851_v9 }
0x1ff7   :  { %10684 = vmatpush3.xpose.msk.msra.mxu0 %vm700_vm2, %v4993_v40 }
0x1ff8   :  { %10685 = vmatprep.subr.mxu0 %v13851_v9  ;;  %v5092_v11 = vpop.permute.xlu1 %5091 }
0x1ff9   :  { %10707 = vmatpush3.xpose.msk.msra.mxu1 %vm700_vm2, %v5094_v37 }
0x1ffa   :  { %10708 = vmatprep.subr.mxu1 %v13851_v9 }
0x1ffb   :  { %10686 = vmatpush3.xpose.msk.msra.mxu0 %vm700_vm2, %v12836_v62  ;;  %v4877_v62 = vrot.slane %v4876_v15, 1 }
0x1ffc   :  { %10687 = vmatprep.subr.mxu0 %v13851_v9  ;;  %v5088_v45 = vpop.permute.xlu1 %5087 }
0x1ffd   :  { %10709 = vmatpush3.xpose.msk.msra.mxu1 %vm700_vm2, %v5092_v11  ;;  %v4881_v18 = vrot.slane %v4877_v62, %v11692_v17 }
0x1ffe   :  { %10710 = vmatprep.subr.mxu1 %v13851_v9 }
0x1fff   :  { %10688 = vmatpush3.xpose.msk.msra.mxu0 %vm700_vm2, %v4989_v58 }
0x2000   :  { %10689 = vmatprep.subr.mxu0 %v13851_v9 }
0x2001   :  { %10711 = vmatpush3.xpose.msk.msra.mxu1 %vm700_vm2, %v5090_v48 }
0x2002   :  { %10712 = vmatprep.subr.mxu1 %v13851_v9 }
0x2003   :  { %10690 = vmatpush3.xpose.msk.msra.mxu0 %vm700_vm2, %v4987_v61 }
0x2004   :  { %10691 = vmatprep.subr.mxu0 %v13851_v9 }
0x2005   :  { %10713 = vmatpush3.xpose.msk.msra.mxu1 %vm700_vm2, %v5088_v45 }
0x2006   :  { %10755 = vmatprep.subr.mxu1 %v13851_v9 }
0x2007   :  { %10692 = vmatpush3.xpose.msk.msra.mxu0 %vm700_vm2, %v4985_v39 }
0x2008   :  { %10693 = vmatprep.subr.mxu0 %v13851_v9 }
0x200b   :  { %10694 = vmatpush3.xpose.msk.msra.mxu0 %vm700_vm2, %v4983_v26 }
0x200c   :  { %10717 = vmatprep.subr.mxu0 %v13851_v9 }
0x20ae   :  { %v10678_v14 = vpop.f32.mrf.mxu0 }
0x20af   :  { %v4977_v30 = vadd.f32 %v10678_v14, %v4881_v18 }
0x20b0   :  { %v4971_v23 = vpop.f32.mrf.mxu0 }
0x20b1   :  { %v12931_v20 = vmul.f32 0.35355338, %v4977_v30  ;;  %v4972_v25 = vadd.f32 %v4971_v23, %v4881_v18 }
0x20b3   :  { %v12933_v40 = vmul.f32 0.35355338, %v4972_v25  ;;  %10715 = vmatmul.mubr.msk.f32.vlgmr.msra.gmra.mxu1 %vm700_vm2, %v12931_v20 }
0x20b4   :  { %10771 = vmatprep.mubr.msk.f32.mxu1 %vm11437_vm1, %v13851_v9 }
0x20b5   :  { %10696 = vmatmul.mubr.msk.f32.vlgmr.msra.gmra.mxu0 %vm700_vm2, %v12933_v40 }
0x20b6   :  { %10718 = vmatpush3.msra.mxu0 %v5229_v2  ;;  %10733 = vmatprep.mubr.msk.f32.mxu0 %vm11437_vm1, %v13851_v9 }
0x20b7   :  { %10719 = vmatprep.subr.mxu0 %v13851_v9 }
0x2173   :  { %v5188_v58 = vpop.f32.mrf.mxu1 }
0x2174   :  { %v5195_v24 = vsel %vm895_vm3, %v5188_v58, -inf }
0x2175   :  { %v5083_v0 = vpop.f32.mrf.mxu0  ;;  %5196 = vmax.xlane.f32.xlu1 %v5195_v24  ;;  %v10716_v5 = vpop.f32.mrf.mxu1 }
0x2176   :  { %v5192_v61 = vsel %vm895_vm3, %v5083_v0, -inf }
0x2177   :  { %5193 = vmax.xlane.f32.xlu0 %v5192_v61  ;;  %v10697_v53 = vpop.f32.mrf.mxu0 }
0x2186   :  { %5226 = vrot.lane.b32.xlu1 %v11853_v6, %s11433_s9 }
0x218a   :  { %5319 = vrot.lane.b32.xlu1 %v11922_v13, %s11433_s9 }
0x218d   :  { %5224 = vrot.lane.b32.xlu0 %v11861_v8, %s11433_s9 }
0x2191   :  { %5222 = vrot.lane.b32.xlu0 %v11869_v38, %s11433_s9 }
0x2195   :  { %5220 = vrot.lane.b32.xlu0 %v11877_v19, %s11433_s9 }
0x2199   :  { %5218 = vrot.lane.b32.xlu0 %v11894_v29, %s11433_s9 }
0x219d   :  { %5216 = vrot.lane.b32.xlu0 %v11906_v34, %s11433_s9 }
0x21a1   :  { %5214 = vrot.lane.b32.xlu0 %v11919_v42, %s11433_s9 }
0x21a5   :  { %5325 = vrot.lane.b32.xlu0 %v11883_v22, %s11433_s9 }
0x21a9   :  { %5323 = vrot.lane.b32.xlu0 %v11897_v32, %s11433_s9 }
0x21ad   :  { %5321 = vrot.lane.b32.xlu0 %v11909_v35, %s11433_s9 }
0x21b1   :  { %5317 = vrot.lane.b32.xlu0 %v11933_v63, %s11433_s9 }
0x21fe   :  { %v5197_v36 = vpop.xlane.xlu1 %5196 }
0x21ff   :  { %v5199_v1 = vsub.f32 %v5188_v58, %v5197_v36 }
0x2200   :  { %v5194_v39 = vpop.xlane.xlu0 %5193 }
0x2201   :  { %v5202_v15 = vmul.f32 1.442695, %v5199_v1  ;;  %v5198_v47 = vsub.f32 %v5083_v0, %v5194_v39 }
0x2202   :  { %v5227_v60 = vpop.permute.xlu1 %5226 }
0x2203   :  { %11334 = vpow2.f32 %v5202_v15  ;;  %v5200_v26 = vmul.f32 1.442695, %v5198_v47  ;;  %10720 = vmatpush3.msra.mxu0 %v5227_v60 }
0x2204   :  { %v5225_v56 = vpop.permute.xlu0 %5224  ;;  %10721 = vmatprep.subr.mxu0 %v13851_v9 }
0x2205   :  { %11336 = vpow2.f32 %v5200_v26  ;;  %10722 = vmatpush3.msra.mxu0 %v5225_v56 }
0x2206   :  { %10723 = vmatprep.subr.mxu0 %v13851_v9  ;;  %v5320_v24 = vpop.permute.xlu1 %5319 }
0x2208   :  { %v5223_v37 = vpop.permute.xlu0 %5222 }
0x2209   :  { %10724 = vmatpush3.msra.mxu0 %v5223_v37 }
0x220a   :  { %10725 = vmatprep.subr.mxu0 %v13851_v9 }
0x220c   :  { %v5221_v11 = vpop.permute.xlu0 %5220 }
0x220d   :  { %10726 = vmatpush3.msra.mxu0 %v5221_v11 }
0x220e   :  { %10727 = vmatprep.subr.mxu0 %v13851_v9 }
0x2210   :  { %v12974_v48 = vpop.eup %11334  ;;  %v5219_v45 = vpop.permute.xlu0 %5218 }
0x2211   :  { %10728 = vmatpush3.msra.mxu0 %v5219_v45  ;;  %v5207_v62 = vsel %vm895_vm3, %v12974_v48, 0.0 }
0x2212   :  { %v11337_v18 = vpop.eup %11336  ;;  %5208 = vadd.xlane.f32.xlu1 %v5207_v62  ;;  %10729 = vmatprep.subr.mxu0 %v13851_v9 }
0x2213   :  { %v5204_v14 = vsel %vm895_vm3, %v11337_v18, 0.0 }
0x2214   :  { %5205 = vadd.xlane.f32.xlu0 %v5204_v14  ;;  %v5217_v30 = vpop.permute.xlu0 %5216 }
0x2215   :  { %10730 = vmatpush3.msra.mxu0 %v5217_v30 }
0x2216   :  { %10731 = vmatprep.subr.mxu0 %v13851_v9 }
0x2218   :  { %v5215_v23 = vpop.permute.xlu0 %5214 }
0x2219   :  { %10732 = vmatpush3.msra.mxu0 %v5215_v23 }
0x221a   :  { %10736 = vmatprep.subr.mxu0 %v13851_v9 }
0x221c   :  { %v5326_v25 = vpop.permute.xlu0 %5325 }
0x2220   :  { %v5324_v2 = vpop.permute.xlu0 %5323 }
0x2223   :  { %5424 = vrot.lane.b32.xlu1 %v11850_v33, %s11444_s1 }
0x2224   :  { %v5322_v58 = vpop.permute.xlu0 %5321 }
0x2227   :  { %5422 = vrot.lane.b32.xlu1 %v11853_v6, %s11444_s1 }
0x2228   :  { %v5318_v0 = vpop.permute.xlu0 %5317 }
0x222a   :  { %5315 = vrot.lane.b32.xlu0 %v11943_v46, %s11433_s9 }
0x222b   :  { %5420 = vrot.lane.b32.xlu1 %v11861_v8, %s11444_s1 }
0x222e   :  { %5313 = vrot.lane.b32.xlu0 %v11949_v49, %s11433_s9 }
0x222f   :  { %5418 = vrot.lane.b32.xlu1 %v11869_v38, %s11444_s1 }
0x2232   :  { %5311 = vrot.lane.b32.xlu0 %v11955_v55, %s11433_s9 }
0x2233   :  { %5416 = vrot.lane.b32.xlu1 %v11877_v19, %s11444_s1 }
0x2236   :  { %5530 = vrot.lane.b32.xlu0 %v11883_v22, %s11444_s1 }
0x2237   :  { %5414 = vrot.lane.b32.xlu1 %v11894_v29, %s11444_s1 }
0x223a   :  { %5528 = vrot.lane.b32.xlu0 %v11897_v32, %s11444_s1 }
0x223b   :  { %5412 = vrot.lane.b32.xlu1 %v11906_v34, %s11444_s1 }
0x223e   :  { %5526 = vrot.lane.b32.xlu0 %v11909_v35, %s11444_s1 }
0x223f   :  { %5410 = vrot.lane.b32.xlu1 %v11919_v42, %s11444_s1 }
0x2242   :  { %5524 = vrot.lane.b32.xlu0 %v11922_v13, %s11444_s1 }
0x2243   :  { %5408 = vrot.lane.b32.xlu1 %v12933_v40, %s11438_s4 }
0x2246   :  { %5522 = vrot.lane.b32.xlu0 %v11933_v63, %s11444_s1 }
0x224a   :  { %5520 = vrot.lane.b32.xlu0 %v11943_v46, %s11444_s1 }
0x224e   :  { %5518 = vrot.lane.b32.xlu0 %v11949_v49, %s11444_s1 }
0x2252   :  { %5516 = vrot.lane.b32.xlu0 %v11955_v55, %s11444_s1 }
0x2256   :  { %5514 = vrot.lane.b32.xlu0 %v12931_v20, %s11438_s4 }
0x229b   :  { %v5209_v5 = vpop.xlane.xlu1 %5208 }
0x229d   :  { %v5206_v61 = vpop.xlane.xlu0 %5205 }
0x229e   :  { %11338 = vrcp.f32 %v5206_v61 }
0x229f   :  { %v5425_v53 = vpop.permute.xlu1 %5424  ;;  %11340 = vrcp.f32 %v5209_v5 }
0x22a0   :  { %10756 = vmatpush3.xpose.msk.msra.mxu1 %vm700_vm2, %v5425_v53 }
0x22a1   :  { %v5316_v36 = vpop.permute.xlu0 %5315  ;;  %10757 = vmatprep.subr.mxu1 %v13851_v9 }
0x22a3   :  { %v5423_v1 = vpop.permute.xlu1 %5422 }
0x22a4   :  { %10758 = vmatpush3.xpose.msk.msra.mxu1 %vm700_vm2, %v5423_v1 }
0x22a5   :  { %v5314_v39 = vpop.permute.xlu0 %5313  ;;  %10759 = vmatprep.subr.mxu1 %v13851_v9 }
0x22a7   :  { %v5421_v15 = vpop.permute.xlu1 %5420 }
0x22a8   :  { %10760 = vmatpush3.xpose.msk.msra.mxu1 %vm700_vm2, %v5421_v15 }
0x22a9   :  { %v5312_v47 = vpop.permute.xlu0 %5311  ;;  %10761 = vmatprep.subr.mxu1 %v13851_v9 }
0x22ab   :  { %v11339_v60 = vpop.eup %11338  ;;  %v5419_v26 = vpop.permute.xlu1 %5418 }
0x22ac   :  { %10762 = vmatpush3.xpose.msk.msra.mxu1 %vm700_vm2, %v5419_v26  ;;  %v5211_v56 = vmul.f32 %v11339_v60, %v11337_v18  ;;  %v11341_v14 = vpop.eup %11340 }
0x22ad   :  { %v5531_v37 = vpop.permute.xlu0 %5530  ;;  %10763 = vmatprep.subr.mxu1 %v13851_v9 }
0x22ae   :  { %10734 = vmatmul.mubr.msk.f32.vlgmr.msra.gmra.mxu0 %vm895_vm3, %v5211_v56 }
0x22af   :  { %10737 = vmatpush3.msra.mxu0 %v5326_v25  ;;  %v5417_v11 = vpop.permute.xlu1 %5416  ;;  %10752 = vmatprep.mubr.msk.f32.mxu0 %vm11437_vm1, %v13851_v9  ;;  %v5213_v25 = vmul.f32 %v11341_v14, %v12974_v48 }
0x22b0   :  { %10738 = vmatprep.subr.mxu0 %v13851_v9  ;;  %10764 = vmatpush3.xpose.msk.msra.mxu1 %vm700_vm2, %v5417_v11 }
0x22b1   :  { %10739 = vmatpush3.msra.mxu0 %v5324_v2  ;;  %10765 = vmatprep.subr.mxu1 %v13851_v9  ;;  %v5529_v45 = vpop.permute.xlu0 %5528 }
0x22b2   :  { %10740 = vmatprep.subr.mxu0 %v13851_v9 }
0x22b3   :  { %10741 = vmatpush3.msra.mxu0 %v5322_v58  ;;  %v5415_v62 = vpop.permute.xlu1 %5414 }
0x22b4   :  { %10742 = vmatprep.subr.mxu0 %v13851_v9  ;;  %10766 = vmatpush3.xpose.msk.msra.mxu1 %vm700_vm2, %v5415_v62 }
0x22b5   :  { %10743 = vmatpush3.msra.mxu0 %v5320_v24  ;;  %10767 = vmatprep.subr.mxu1 %v13851_v9  ;;  %v5527_v30 = vpop.permute.xlu0 %5526 }
0x22b6   :  { %10744 = vmatprep.subr.mxu0 %v13851_v9 }
0x22b7   :  { %10745 = vmatpush3.msra.mxu0 %v5318_v0  ;;  %v5413_v18 = vpop.permute.xlu1 %5412 }
0x22b8   :  { %10746 = vmatprep.subr.mxu0 %v13851_v9  ;;  %10768 = vmatpush3.xpose.msk.msra.mxu1 %vm700_vm2, %v5413_v18 }
0x22b9   :  { %10747 = vmatpush3.msra.mxu0 %v5316_v36  ;;  %10769 = vmatprep.subr.mxu1 %v13851_v9  ;;  %v5525_v2 = vpop.permute.xlu0 %5524 }
0x22ba   :  { %10748 = vmatprep.subr.mxu0 %v13851_v9 }
0x22bb   :  { %10749 = vmatpush3.msra.mxu0 %v5314_v39  ;;  %v5411_v23 = vpop.permute.xlu1 %5410 }
0x22bc   :  { %10750 = vmatprep.subr.mxu0 %v13851_v9  ;;  %10770 = vmatpush3.xpose.msk.msra.mxu1 %vm700_vm2, %v5411_v23 }
0x22bd   :  { %10751 = vmatpush3.msra.mxu0 %v5312_v47  ;;  %10793 = vmatprep.subr.mxu1 %v13851_v9  ;;  %v5523_v48 = vpop.permute.xlu0 %5522 }
0x22be   :  { %10753 = vmatmul.mubr.msk.f32.vlgmr.msra.gmra.mxu0 %vm895_vm3, %v5213_v25  ;;  %10774 = vmatprep.subr.mxu0 %v13851_v9 }
0x22bf   :  { %10775 = vmatpush3.xpose.msk.msra.mxu0 %vm700_vm2, %v5531_v37  ;;  %v5409_v58 = vpop.permute.xlu1 %5408  ;;  %10790 = vmatprep.mubr.msk.f32.mxu0 %vm11437_vm1, %v13851_v9 }
0x22c0   :  { %10772 = vmatmul.mubr.msk.f32.vlgmr.msra.gmra.mxu1 %vm700_vm2, %v5409_v58  ;;  %10776 = vmatprep.subr.mxu0 %v13851_v9 }
0x22c1   :  { %10809 = vmatprep.mubr.msk.f32.mxu1 %vm11437_vm1, %v13851_v9  ;;  %v5521_v24 = vpop.permute.xlu0 %5520 }
0x22c3   :  { %10777 = vmatpush3.xpose.msk.msra.mxu0 %vm700_vm2, %v5529_v45 }
0x22c4   :  { %10778 = vmatprep.subr.mxu0 %v13851_v9 }
0x22c5   :  { %v5519_v0 = vpop.permute.xlu0 %5518 }
0x22c7   :  { %10779 = vmatpush3.xpose.msk.msra.mxu0 %vm700_vm2, %v5527_v30 }
0x22c8   :  { %10780 = vmatprep.subr.mxu0 %v13851_v9 }
0x22c9   :  { %v5517_v5 = vpop.permute.xlu0 %5516 }
0x22cb   :  { %10781 = vmatpush3.xpose.msk.msra.mxu0 %vm700_vm2, %v5525_v2 }
0x22cc   :  { %10782 = vmatprep.subr.mxu0 %v13851_v9 }
0x22cd   :  { %v5515_v61 = vpop.permute.xlu0 %5514 }
0x22cf   :  { %10783 = vmatpush3.xpose.msk.msra.mxu0 %vm700_vm2, %v5523_v48 }
0x22d0   :  { %10784 = vmatprep.subr.mxu0 %v13851_v9 }
0x22d3   :  { %10785 = vmatpush3.xpose.msk.msra.mxu0 %vm700_vm2, %v5521_v24 }
0x22d4   :  { %10786 = vmatprep.subr.mxu0 %v13851_v9 }
0x22d7   :  { %10787 = vmatpush3.xpose.msk.msra.mxu0 %vm700_vm2, %v5519_v0 }
0x22d8   :  { %10788 = vmatprep.subr.mxu0 %v13851_v9 }
0x22db   :  { %10789 = vmatpush3.xpose.msk.msra.mxu0 %vm700_vm2, %v5517_v5 }
0x22dc   :  { %10812 = vmatprep.subr.mxu0 %v13851_v9 }
0x22de   :  { %10791 = vmatmul.mubr.msk.f32.vlgmr.msra.gmra.mxu0 %vm700_vm2, %v5515_v61 }
0x22df   :  { %10828 = vmatprep.mubr.msk.f32.mxu0 %vm11437_vm1, %v13851_v9 }
0x236e   :  { %v13077_v53 = vpop.f32.mrf.mxu0 }
0x2370   :  { %v10735_v36 = vpop.f32.mrf.mxu0 }
0x237e   :  { %v13079_v1 = vpop.f32.mrf.mxu0 }
0x2380   :  { %v10754_v39 = vpop.f32.mrf.mxu0  ;;  %v5510_v15 = vpop.f32.mrf.mxu1 }
0x2381   :  { %v5620_v47 = vsel %vm895_vm3, %v5510_v15, -inf }
0x2382   :  { %5621 = vmax.xlane.f32.xlu1 %v5620_v47  ;;  %v10773_v60 = vpop.f32.mrf.mxu1 }
0x2393   :  { %5656 = vrot.lane.b32.xlu1 %v11850_v33, %s11448_s29 }
0x2397   :  { %5654 = vrot.lane.b32.xlu1 %v11853_v6, %s11448_s29 }
0x239b   :  { %5751 = vrot.lane.b32.xlu1 %v11897_v32, %s11448_s29 }
0x239e   :  { %v5616_v26 = vpop.f32.mrf.mxu0 }
0x239f   :  { %v5623_v56 = vsel %vm895_vm3, %v5616_v26, -inf  ;;  %5652 = vrot.lane.b32.xlu1 %v11861_v8, %s11448_s29 }
0x23a0   :  { %5624 = vmax.xlane.f32.xlu0 %v5623_v56  ;;  %v10792_v37 = vpop.f32.mrf.mxu0 }
0x23a3   :  { %5650 = vrot.lane.b32.xlu1 %v11869_v38, %s11448_s29 }
0x23a7   :  { %5648 = vrot.lane.b32.xlu1 %v11877_v19, %s11448_s29 }
0x23ab   :  { %5646 = vrot.lane.b32.xlu1 %v11894_v29, %s11448_s29 }
0x23af   :  { %5644 = vrot.lane.b32.xlu1 %v11906_v34, %s11448_s29 }
0x23b3   :  { %5642 = vrot.lane.b32.xlu1 %v11919_v42, %s11448_s29 }
0x23b7   :  { %6014 = vrot.lane.b32.xlu1 %v11850_v33, %s11445_s14 }
0x23bb   :  { %6012 = vrot.lane.b32.xlu1 %v11853_v6, %s11445_s14 }
0x23bf   :  { %6010 = vrot.lane.b32.xlu1 %v11861_v8, %s11445_s14 }
0x23c3   :  { %6008 = vrot.lane.b32.xlu1 %v11869_v38, %s11445_s14 }
0x23c7   :  { %6006 = vrot.lane.b32.xlu1 %v11877_v19, %s11445_s14 }
0x23cb   :  { %6004 = vrot.lane.b32.xlu1 %v11894_v29, %s11445_s14 }
0x23cf   :  { %6002 = vrot.lane.b32.xlu1 %v11906_v34, %s11445_s14 }
0x23d3   :  { %6000 = vrot.lane.b32.xlu1 %v11919_v42, %s11445_s14 }
0x23d7   :  { %5998 = vrot.lane.b32.xlu1 %v12933_v40, %s11440_s26 }
0x240b   :  { %v5622_v11 = vpop.xlane.xlu1 %5621 }
0x240c   :  { %v5626_v45 = vsub.f32 %v5510_v15, %v5622_v11 }
0x240e   :  { %v5628_v62 = vmul.f32 1.442695, %v5626_v45 }
0x240f   :  { %v5657_v18 = vpop.permute.xlu1 %5656 }
0x2410   :  { %11342 = vpow2.f32 %v5628_v62  ;;  %10794 = vmatpush3.msra.mxu1 %v5657_v18 }
0x2411   :  { %10795 = vmatprep.subr.mxu1 %v13851_v9 }
0x2413   :  { %v5655_v14 = vpop.permute.xlu1 %5654 }
0x2414   :  { %10796 = vmatpush3.msra.mxu1 %v5655_v14 }
0x2415   :  { %10797 = vmatprep.subr.mxu1 %v13851_v9 }
0x2417   :  { %v5752_v30 = vpop.permute.xlu1 %5751 }
0x241b   :  { %v5653_v23 = vpop.permute.xlu1 %5652 }
0x241c   :  { %10798 = vmatpush3.msra.mxu1 %v5653_v23 }
0x241d   :  { %v11343_v25 = vpop.eup %11342  ;;  %10799 = vmatprep.subr.mxu1 %v13851_v9 }
0x241e   :  { %v5632_v2 = vsel %vm895_vm3, %v11343_v25, 0.0 }
0x241f   :  { %5633 = vadd.xlane.f32.xlu0 %v5632_v2  ;;  %v5651_v58 = vpop.permute.xlu1 %5650  ;;  %v9464_v2 = vld [vmem:[%s13841_s5 + $0x88] sm:$0xff] }
0x2420   :  { %10800 = vmatpush3.msra.mxu1 %v5651_v58 }
0x2421   :  { %10801 = vmatprep.subr.mxu1 %v13851_v9 }
0x2423   :  { %v5649_v48 = vpop.permute.xlu1 %5648 }
0x2424   :  { %10802 = vmatpush3.msra.mxu1 %v5649_v48 }
0x2425   :  { %10803 = vmatprep.subr.mxu1 %v13851_v9 }
0x2427   :  { %v5647_v24 = vpop.permute.xlu1 %5646 }
0x2428   :  { %10804 = vmatpush3.msra.mxu1 %v5647_v24 }
0x2429   :  { %10805 = vmatprep.subr.mxu1 %v13851_v9  ;;  %v5625_v61 = vpop.xlane.xlu0 %5624 }
0x242a   :  { %v5627_v36 = vsub.f32 %v5616_v26, %v5625_v61 }
0x242b   :  { %v5645_v0 = vpop.permute.xlu1 %5644 }
0x242c   :  { %10806 = vmatpush3.msra.mxu1 %v5645_v0  ;;  %v5630_v39 = vmul.f32 1.442695, %v5627_v36 }
0x242d   :  { %10807 = vmatprep.subr.mxu1 %v13851_v9 }
0x242e   :  { %11344 = vpow2.f32 %v5630_v39 }
0x242f   :  { %v5643_v5 = vpop.permute.xlu1 %5642 }
0x2430   :  { %10808 = vmatpush3.msra.mxu1 %v5643_v5 }
0x2431   :  { %10831 = vmatprep.subr.mxu1 %v9464_v2 }
0x2435   :  { %5753 = vrot.lane.b32.xlu0 %v11883_v22, %s11448_s29 }
0x2439   :  { %5749 = vrot.lane.b32.xlu0 %v11909_v35, %s11448_s29 }
0x243b   :  { %v11345_v15 = vpop.eup %11344 }
0x243c   :  { %v5635_v47 = vsel %vm895_vm3, %v11345_v15, 0.0 }
0x243d   :  { %5747 = vrot.lane.b32.xlu0 %v11922_v13, %s11448_s29 }
0x2441   :  { %5745 = vrot.lane.b32.xlu0 %v11933_v63, %s11448_s29 }
0x2445   :  { %5743 = vrot.lane.b32.xlu0 %v11943_v46, %s11448_s29 }
0x2449   :  { %5741 = vrot.lane.b32.xlu0 %v11949_v49, %s11448_s29 }
0x2468   :  { %5636 = vadd.xlane.f32.xlu0 %v5635_v47 }
0x247e   :  { %5739 = vrot.lane.b32.xlu0 %v11955_v55, %s11448_s29 }
0x2482   :  { %6120 = vrot.lane.b32.xlu0 %v11883_v22, %s11445_s14 }
0x2486   :  { %6118 = vrot.lane.b32.xlu0 %v11897_v32, %s11445_s14 }
0x248a   :  { %6116 = vrot.lane.b32.xlu0 %v11909_v35, %s11445_s14 }
0x248e   :  { %6114 = vrot.lane.b32.xlu0 %v11922_v13, %s11445_s14 }
0x2492   :  { %6112 = vrot.lane.b32.xlu0 %v11933_v63, %s11445_s14 }
0x2496   :  { %6110 = vrot.lane.b32.xlu0 %v11943_v46, %s11445_s14 }
0x249a   :  { %6108 = vrot.lane.b32.xlu0 %v11949_v49, %s11445_s14 }
0x249e   :  { %6106 = vrot.lane.b32.xlu0 %v11955_v55, %s11445_s14 }
0x24a2   :  { %6104 = vrot.lane.b32.xlu0 %v12931_v20, %s11440_s26 }
0x24a8   :  { %v5634_v60 = vpop.xlane.xlu0 %5633 }
0x24a9   :  { %11346 = vrcp.f32 %v5634_v60  ;;  %v13197_v60 = vld [vmem:[%s13841_s5 + $0x70] sm:$0xff] }
0x24ac   :  { %v5754_v26 = vpop.permute.xlu0 %5753 }
0x24ad   :  { %10813 = vmatpush3.msra.mxu0 %v5754_v26 }
0x24ae   :  { %10814 = vmatprep.subr.mxu0 %v13851_v9 }
0x24af   :  { %10815 = vmatpush3.msra.mxu0 %v5752_v30 }
0x24b0   :  { %v5750_v56 = vpop.permute.xlu0 %5749  ;;  %10816 = vmatprep.subr.mxu0 %v13851_v9 }
0x24b1   :  { %10817 = vmatpush3.msra.mxu0 %v5750_v56 }
0x24b2   :  { %10818 = vmatprep.subr.mxu0 %v13851_v9 }
0x24b4   :  { %v5748_v37 = vpop.permute.xlu0 %5747 }
0x24b5   :  { %10819 = vmatpush3.msra.mxu0 %v5748_v37  ;;  %v6015_v37 = vpop.permute.xlu1 %6014 }
0x24b6   :  { %v11347_v11 = vpop.eup %11346  ;;  %10820 = vmatprep.subr.mxu0 %v13851_v9 }
0x24b7   :  { %v5639_v45 = vmul.f32 %v11347_v11, %v11343_v25 }
0x24b8   :  { %v5746_v62 = vpop.permute.xlu0 %5745 }
0x24b9   :  { %10810 = vmatmul.mubr.msk.f32.vlgmr.msra.gmra.mxu1 %vm895_vm3, %v5639_v45  ;;  %10821 = vmatpush3.msra.mxu0 %v5746_v62  ;;  %v6013_v11 = vpop.permute.xlu1 %6012 }
0x24ba   :  { %10822 = vmatprep.subr.mxu0 %v13851_v9  ;;  %10832 = vmatpush3.msra.mxu1 %v9464_v2 }
0x24bb   :  { %10836 = vmatprep.subr.mxu1 %v13197_v60 }
0x24bc   :  { %v5744_v18 = vpop.permute.xlu0 %5743 }
0x24bd   :  { %10823 = vmatpush3.msra.mxu0 %v5744_v18  ;;  %v6011_v45 = vpop.permute.xlu1 %6010 }
0x24be   :  { %10824 = vmatprep.subr.mxu0 %v13851_v9 }
0x24c0   :  { %v5742_v14 = vpop.permute.xlu0 %5741 }
0x24c1   :  { %10825 = vmatpush3.msra.mxu0 %v5742_v14  ;;  %v6009_v14 = vpop.permute.xlu1 %6008 }
0x24c2   :  { %10826 = vmatprep.subr.mxu0 %v13851_v9 }
0x24f1   :  { %v5637_v30 = vpop.xlane.xlu0 %5636 }
0x24f2   :  { %11348 = vrcp.f32 %v5637_v30  ;;  %v6007_v30 = vpop.permute.xlu1 %6006 }
0x24f5   :  { %v5740_v23 = vpop.permute.xlu0 %5739 }
0x24f6   :  { %10827 = vmatpush3.msra.mxu0 %v5740_v23 }
0x24f7   :  { %10860 = vmatprep.subr.mxu0 %v13851_v9 }
0x24f9   :  { %v6121_v25 = vpop.permute.xlu0 %6120 }
0x24fd   :  { %v6119_v58 = vpop.permute.xlu0 %6118 }
0x24ff   :  { %v11349_v48 = vpop.eup %11348 }
0x2500   :  { %v5641_v24 = vmul.f32 %v11349_v48, %v11345_v15 }
0x2501   :  { %v6117_v0 = vpop.permute.xlu0 %6116 }
0x2502   :  { %10829 = vmatmul.mubr.msk.f32.vlgmr.msra.gmra.mxu0 %vm895_vm3, %v5641_v24 }
0x2503   :  { %10861 = vmatpush3.xpose.msk.msra.mxu0 %vm700_vm2, %v6121_v25  ;;  %10876 = vmatprep.mubr.msk.f32.mxu0 %vm11437_vm1, %v13851_v9 }
0x2504   :  { %10862 = vmatprep.subr.mxu0 %v13851_v9 }
0x2505   :  { %v6115_v5 = vpop.permute.xlu0 %6114 }
0x2507   :  { %10863 = vmatpush3.xpose.msk.msra.mxu0 %vm700_vm2, %v6119_v58 }
0x2508   :  { %10864 = vmatprep.subr.mxu0 %v13851_v9 }
0x2509   :  { %v6113_v61 = vpop.permute.xlu0 %6112 }
0x250b   :  { %10865 = vmatpush3.xpose.msk.msra.mxu0 %vm700_vm2, %v6117_v0 }
0x250c   :  { %10866 = vmatprep.subr.mxu0 %v13851_v9 }
0x250d   :  { %v6111_v36 = vpop.permute.xlu0 %6110 }
0x250f   :  { %10867 = vmatpush3.xpose.msk.msra.mxu0 %vm700_vm2, %v6115_v5 }
0x2510   :  { %10868 = vmatprep.subr.mxu0 %v13851_v9 }
0x2511   :  { %v6109_v39 = vpop.permute.xlu0 %6108 }
0x2513   :  { %10869 = vmatpush3.xpose.msk.msra.mxu0 %vm700_vm2, %v6113_v61 }
0x2514   :  { %10870 = vmatprep.subr.mxu0 %v13851_v9 }
0x2515   :  { %v6107_v15 = vpop.permute.xlu0 %6106 }
0x2517   :  { %10871 = vmatpush3.xpose.msk.msra.mxu0 %vm700_vm2, %v6111_v36 }
0x2518   :  { %10872 = vmatprep.subr.mxu0 %v13851_v9 }
0x2519   :  { %v6105_v47 = vpop.permute.xlu0 %6104 }
0x251b   :  { %10873 = vmatpush3.xpose.msk.msra.mxu0 %vm700_vm2, %v6109_v39 }
0x251c   :  { %10874 = vmatprep.subr.mxu0 %v13851_v9 }
0x251f   :  { %10875 = vmatpush3.xpose.msk.msra.mxu0 %vm700_vm2, %v6107_v15 }
0x2520   :  { %10898 = vmatprep.subr.mxu0 %v13851_v9 }
0x2522   :  { %10877 = vmatmul.mubr.msk.f32.vlgmr.msra.gmra.mxu0 %vm700_vm2, %v6105_v47 }
0x2523   :  { %10914 = vmatprep.mubr.msk.f32.mxu0 %vm11437_vm1, %v13851_v9 }
0x2579   :  { %v5735_v26 = vpop.f32.mrf.mxu1 }
0x257a   :  { %10833 = vmatprep.mubr.msk.f32.mxu1 %vm700_vm2, %v5735_v26 }
0x257b   :  { %v10811_v56 = vpop.f32.mrf.mxu1 }
0x25c2   :  { %v5832_v62 = vpop.f32.mrf.mxu0 }
0x25c3   :  { %10834 = vmatmul.mubr.msk.f32.vlgmr.msra.gmra.mxu1 %vm700_vm2, %v5832_v62 }
0x25c4   :  { %v10830_v18 = vpop.f32.mrf.mxu0  ;;  %10837 = vmatpush3.msra.mxu1 %v13197_v60  ;;  %10838 = vmatprep.mubr.msk.f32.mxu1 %vm700_vm2, %v13077_v53  ;;  %v6005_v53 = vpop.permute.xlu1 %6004 }
0x25c5   :  { %10841 = vmatprep.subr.mxu1 %v13851_v9 }
0x25c7   :  { %10839 = vmatmul.mubr.msk.f32.vlgmr.msra.gmra.mxu1 %vm700_vm2, %v13079_v1 }
0x25c8   :  { %10842 = vmatpush3.xpose.msk.msra.mxu1 %vm700_vm2, %v6015_v37  ;;  %10857 = vmatprep.mubr.msk.f32.mxu1 %vm11437_vm1, %v13851_v9  ;;  %v6003_v1 = vpop.permute.xlu1 %6002 }
0x25c9   :  { %10843 = vmatprep.subr.mxu1 %v13851_v9 }
0x25cc   :  { %10844 = vmatpush3.xpose.msk.msra.mxu1 %vm700_vm2, %v6013_v11  ;;  %v6001_v23 = vpop.permute.xlu1 %6000 }
0x25cd   :  { %10845 = vmatprep.subr.mxu1 %v13851_v9 }
0x25d0   :  { %10846 = vmatpush3.xpose.msk.msra.mxu1 %vm700_vm2, %v6011_v45  ;;  %v5999_v48 = vpop.permute.xlu1 %5998 }
0x25d1   :  { %10847 = vmatprep.subr.mxu1 %v13851_v9 }
0x25d4   :  { %10848 = vmatpush3.xpose.msk.msra.mxu1 %vm700_vm2, %v6009_v14 }
0x25d5   :  { %10849 = vmatprep.subr.mxu1 %v13851_v9 }
0x25d8   :  { %10850 = vmatpush3.xpose.msk.msra.mxu1 %vm700_vm2, %v6007_v30 }
0x25d9   :  { %10851 = vmatprep.subr.mxu1 %v13851_v9 }
0x25dc   :  { %10852 = vmatpush3.xpose.msk.msra.mxu1 %vm700_vm2, %v6005_v53 }
0x25dd   :  { %10853 = vmatprep.subr.mxu1 %v13851_v9 }
0x25e0   :  { %10854 = vmatpush3.xpose.msk.msra.mxu1 %vm700_vm2, %v6003_v1 }
0x25e1   :  { %10855 = vmatprep.subr.mxu1 %v13851_v9 }
0x25e2   :  { %v6206_v25 = vpop.f32.mrf.mxu0 }
0x25e3   :  { %v6213_v2 = vsel %vm895_vm3, %v6206_v25, -inf }
0x25e4   :  { %6214 = vmax.xlane.f32.xlu0 %v6213_v2  ;;  %10856 = vmatpush3.xpose.msk.msra.mxu1 %vm700_vm2, %v6001_v23  ;;  %v10878_v58 = vpop.f32.mrf.mxu0 }
0x25e5   :  { %10879 = vmatprep.subr.mxu1 %v13851_v9 }
0x25e7   :  { %10858 = vmatmul.mubr.msk.f32.vlgmr.msra.gmra.mxu1 %vm700_vm2, %v5999_v48 }
0x25e8   :  { %10895 = vmatprep.mubr.msk.f32.mxu1 %vm11437_vm1, %v13851_v9 }
0x266d   :  { %v6215_v24 = vpop.xlane.xlu0 %6214 }
0x266e   :  { %v6217_v0 = vsub.f32 %v6206_v25, %v6215_v24 }
0x2670   :  { %v6220_v5 = vmul.f32 1.442695, %v6217_v0 }
0x2672   :  { %11350 = vpow2.f32 %v6220_v5 }
0x267f   :  { %v13230_v61 = vpop.eup %11350 }
0x2680   :  { %v6225_v36 = vsel %vm895_vm3, %v13230_v61, 0.0 }
0x2681   :  { %6226 = vadd.xlane.f32.xlu0 %v6225_v36 }
0x2683   :  { %v10835_v39 = vpop.f32.mrf.mxu1 }
0x2685   :  { %v5908_v15 = vpop.f32.mrf.mxu1 }
0x2687   :  { %v10840_v47 = vpop.f32.mrf.mxu1 }
0x2688   :  { %v13234_v26 = vadd.f32 %v10840_v47, %v10835_v39 }
0x2689   :  { %v5989_v56 = vpop.f32.mrf.mxu1 }
0x268a   :  { %v13236_v37 = vadd.f32 %v5989_v56, %v5908_v15 }
0x2697   :  { %6343 = vrot.lane.b32.xlu0 %v11883_v22, %s11449_s17 }
0x269b   :  { %6339 = vrot.lane.b32.xlu0 %v11909_v35, %s11449_s17 }
0x269f   :  { %6337 = vrot.lane.b32.xlu0 %v11922_v13, %s11449_s17 }
0x26a3   :  { %6335 = vrot.lane.b32.xlu0 %v11933_v63, %s11449_s17 }
0x26a7   :  { %6333 = vrot.lane.b32.xlu0 %v11943_v46, %s11449_s17  ;;  %v6100_v11 = vpop.f32.mrf.mxu1 }
0x26a8   :  { %v6210_v45 = vsel %vm895_vm3, %v6100_v11, -inf }
0x26a9   :  { %6211 = vmax.xlane.f32.xlu1 %v6210_v45  ;;  %v10859_v62 = vpop.f32.mrf.mxu1 }
0x26ab   :  { %6331 = vrot.lane.b32.xlu0 %v11949_v49, %s11449_s17 }
0x26ba   :  { %6246 = vrot.lane.b32.xlu1 %v11850_v33, %s11449_s17 }
0x26be   :  { %6244 = vrot.lane.b32.xlu1 %v11853_v6, %s11449_s17 }
0x26c2   :  { %6341 = vrot.lane.b32.xlu1 %v11897_v32, %s11449_s17 }
0x26c6   :  { %6242 = vrot.lane.b32.xlu1 %v11861_v8, %s11449_s17 }
0x26ca   :  { %6240 = vrot.lane.b32.xlu1 %v11869_v38, %s11449_s17 }
0x26ce   :  { %6238 = vrot.lane.b32.xlu1 %v11877_v19, %s11449_s17 }
0x26d2   :  { %6236 = vrot.lane.b32.xlu1 %v11894_v29, %s11449_s17 }
0x26d6   :  { %6234 = vrot.lane.b32.xlu1 %v11906_v34, %s11449_s17 }
0x26da   :  { %6232 = vrot.lane.b32.xlu1 %v11919_v42, %s11449_s17 }
0x26de   :  { %6525 = vrot.lane.b32.xlu1 %v11850_v33, %s11446_s15 }
0x26e2   :  { %6523 = vrot.lane.b32.xlu1 %v11853_v6, %s11446_s15 }
0x26e6   :  { %6521 = vrot.lane.b32.xlu1 %v11861_v8, %s11446_s15 }
0x26ea   :  { %6519 = vrot.lane.b32.xlu1 %v11869_v38, %s11446_s15 }
0x26ee   :  { %6517 = vrot.lane.b32.xlu1 %v11877_v19, %s11446_s15 }
0x26f2   :  { %6515 = vrot.lane.b32.xlu1 %v11894_v29, %s11446_s15 }
0x26f6   :  { %6513 = vrot.lane.b32.xlu1 %v11906_v34, %s11446_s15 }
0x26fa   :  { %6511 = vrot.lane.b32.xlu1 %v11919_v42, %s11446_s15 }
0x26fe   :  { %6509 = vrot.lane.b32.xlu1 %v12933_v40, %s11442_s10 }
0x270a   :  { %v6227_v18 = vpop.xlane.xlu0 %6226 }
0x270e   :  { %v6344_v14 = vpop.permute.xlu0 %6343 }
0x270f   :  { %10899 = vmatpush3.msra.mxu0 %v6344_v14 }
0x2710   :  { %10900 = vmatprep.subr.mxu0 %v13851_v9 }
0x2712   :  { %v6340_v30 = vpop.permute.xlu0 %6339 }
0x2716   :  { %v6338_v25 = vpop.permute.xlu0 %6337 }
0x271a   :  { %v6336_v48 = vpop.permute.xlu0 %6335 }
0x271e   :  { %v6334_v24 = vpop.permute.xlu0 %6333 }
0x2722   :  { %v6332_v15 = vpop.permute.xlu0 %6331 }
0x2732   :  { %v6212_v53 = vpop.xlane.xlu1 %6211 }
0x2733   :  { %v6216_v1 = vsub.f32 %v6100_v11, %v6212_v53 }
0x2735   :  { %v6218_v23 = vmul.f32 1.442695, %v6216_v1 }
0x2736   :  { %v6247_v2 = vpop.permute.xlu1 %6246 }
0x2737   :  { %11352 = vpow2.f32 %v6218_v23  ;;  %10880 = vmatpush3.msra.mxu1 %v6247_v2 }
0x2738   :  { %10881 = vmatprep.subr.mxu1 %v13851_v9  ;;  %11354 = vrcp.f32 %v6227_v18 }
0x273a   :  { %v6245_v58 = vpop.permute.xlu1 %6244 }
0x273b   :  { %10882 = vmatpush3.msra.mxu1 %v6245_v58 }
0x273c   :  { %10883 = vmatprep.subr.mxu1 %v13851_v9 }
0x273e   :  { %v6342_v40 = vpop.permute.xlu1 %6341 }
0x273f   :  { %10901 = vmatpush3.msra.mxu0 %v6342_v40 }
0x2740   :  { %10902 = vmatprep.subr.mxu0 %v13851_v9 }
0x2741   :  { %10903 = vmatpush3.msra.mxu0 %v6340_v30 }
0x2742   :  { %10904 = vmatprep.subr.mxu0 %v13851_v9  ;;  %v6243_v0 = vpop.permute.xlu1 %6242 }
0x2743   :  { %10884 = vmatpush3.msra.mxu1 %v6243_v0  ;;  %10905 = vmatpush3.msra.mxu0 %v6338_v25  ;;  %v13350_v0 = vld [vmem:[%s13841_s5 + $0xa0] sm:$0xff] }
0x2744   :  { %v11353_v5 = vpop.eup %11352  ;;  %10906 = vmatprep.subr.mxu0 %v13851_v9  ;;  %10885 = vmatprep.subr.mxu1 %v13851_v9 }
0x2745   :  { %10907 = vmatpush3.msra.mxu0 %v6336_v48  ;;  %v6222_v36 = vsel %vm895_vm3, %v11353_v5, 0.0  ;;  %v11355_v14 = vpop.eup %11354 }
0x2746   :  { %6223 = vadd.xlane.f32.xlu0 %v6222_v36  ;;  %10908 = vmatprep.subr.mxu0 %v13851_v9  ;;  %v6241_v39 = vpop.permute.xlu1 %6240  ;;  %v6231_v53 = vmul.f32 %v11355_v14, %v13230_v61 }
0x2747   :  { %10886 = vmatpush3.msra.mxu1 %v6241_v39  ;;  %10909 = vmatpush3.msra.mxu0 %v6334_v24 }
0x2748   :  { %10910 = vmatprep.subr.mxu0 %v13851_v9  ;;  %10887 = vmatprep.subr.mxu1 %v13851_v9 }
0x2749   :  { %10911 = vmatpush3.msra.mxu0 %v6332_v15 }
0x274a   :  { %v6239_v47 = vpop.permute.xlu1 %6238  ;;  %10912 = vmatprep.subr.mxu0 %v13851_v9 }
0x274b   :  { %10888 = vmatpush3.msra.mxu1 %v6239_v47 }
0x274c   :  { %10889 = vmatprep.subr.mxu1 %v13851_v9 }
0x274e   :  { %v6237_v56 = vpop.permute.xlu1 %6236 }
0x274f   :  { %10890 = vmatpush3.msra.mxu1 %v6237_v56 }
0x2750   :  { %10891 = vmatprep.subr.mxu1 %v13851_v9 }
0x2752   :  { %v6235_v11 = vpop.permute.xlu1 %6234 }
0x2753   :  { %10892 = vmatpush3.msra.mxu1 %v6235_v11 }
0x2754   :  { %10893 = vmatprep.subr.mxu1 %v13851_v9 }
0x2756   :  { %v6233_v45 = vpop.permute.xlu1 %6232 }
0x2757   :  { %10894 = vmatpush3.msra.mxu1 %v6233_v45 }
0x2758   :  { %10917 = vmatprep.subr.mxu1 %v13350_v0 }
0x275c   :  { %6329 = vrot.lane.b32.xlu0 %v11955_v55, %s11449_s17 }
0x2760   :  { %6631 = vrot.lane.b32.xlu0 %v11883_v22, %s11446_s15 }
0x2764   :  { %6629 = vrot.lane.b32.xlu0 %v11897_v32, %s11446_s15 }
0x2768   :  { %6627 = vrot.lane.b32.xlu0 %v11909_v35, %s11446_s15 }
0x276c   :  { %6625 = vrot.lane.b32.xlu0 %v11922_v13, %s11446_s15 }
0x2770   :  { %6623 = vrot.lane.b32.xlu0 %v11933_v63, %s11446_s15 }
0x2774   :  { %6621 = vrot.lane.b32.xlu0 %v11943_v46, %s11446_s15 }
0x2778   :  { %6619 = vrot.lane.b32.xlu0 %v11949_v49, %s11446_s15 }
0x277c   :  { %6617 = vrot.lane.b32.xlu0 %v11955_v55, %s11446_s15 }
0x2780   :  { %6615 = vrot.lane.b32.xlu0 %v12931_v20, %s11442_s10 }
0x27cf   :  { %v6224_v62 = vpop.xlane.xlu0 %6223 }
0x27d0   :  { %11356 = vrcp.f32 %v6224_v62 }
0x27d3   :  { %v6330_v30 = vpop.permute.xlu0 %6329 }
0x27d4   :  { %10913 = vmatpush3.msra.mxu0 %v6330_v30 }
0x27d5   :  { %10915 = vmatmul.mubr.msk.f32.vlgmr.msra.gmra.mxu0 %vm895_vm3, %v6231_v53  ;;  %10941 = vmatprep.subr.mxu0 %v13851_v9 }
0x27d6   :  { %10957 = vmatprep.mubr.msk.f32.mxu0 %vm11437_vm1, %v13851_v9 }
0x27d7   :  { %v6632_v1 = vpop.permute.xlu0 %6631 }
0x27d8   :  { %10942 = vmatpush3.xpose.msk.msra.mxu0 %vm700_vm2, %v6632_v1 }
0x27d9   :  { %10943 = vmatprep.subr.mxu0 %v13851_v9 }
0x27db   :  { %v6630_v20 = vpop.permute.xlu0 %6629 }
0x27dc   :  { %10944 = vmatpush3.xpose.msk.msra.mxu0 %vm700_vm2, %v6630_v20 }
0x27dd   :  { %v11357_v18 = vpop.eup %11356  ;;  %10945 = vmatprep.subr.mxu0 %v13851_v9 }
0x27de   :  { %v6229_v61 = vmul.f32 %v11357_v18, %v11353_v5  ;;  %v6526_v5 = vpop.permute.xlu1 %6525 }
0x27df   :  { %v6628_v23 = vpop.permute.xlu0 %6627 }
0x27e0   :  { %10896 = vmatmul.mubr.msk.f32.vlgmr.msra.gmra.mxu1 %vm895_vm3, %v6229_v61  ;;  %10946 = vmatpush3.xpose.msk.msra.mxu0 %vm700_vm2, %v6628_v23 }
0x27e1   :  { %10947 = vmatprep.subr.mxu0 %v13851_v9  ;;  %10918 = vmatpush3.msra.mxu1 %v13350_v0 }
0x27e2   :  { %10922 = vmatprep.subr.mxu1 %v13851_v9  ;;  %v6524_v39 = vpop.permute.xlu1 %6523 }
0x27e3   :  { %v6626_v25 = vpop.permute.xlu0 %6625 }
0x27e4   :  { %10948 = vmatpush3.xpose.msk.msra.mxu0 %vm700_vm2, %v6626_v25 }
0x27e5   :  { %10949 = vmatprep.subr.mxu0 %v13851_v9 }
0x27e6   :  { %v6522_v47 = vpop.permute.xlu1 %6521 }
0x27e7   :  { %v6624_v2 = vpop.permute.xlu0 %6623 }
0x27e8   :  { %10950 = vmatpush3.xpose.msk.msra.mxu0 %vm700_vm2, %v6624_v2 }
0x27e9   :  { %10951 = vmatprep.subr.mxu0 %v13851_v9 }
0x27ea   :  { %v6520_v45 = vpop.permute.xlu1 %6519 }
0x27eb   :  { %v6622_v58 = vpop.permute.xlu0 %6621 }
0x27ec   :  { %10952 = vmatpush3.xpose.msk.msra.mxu0 %vm700_vm2, %v6622_v58 }
0x27ed   :  { %10953 = vmatprep.subr.mxu0 %v13851_v9 }
0x27ee   :  { %v6518_v62 = vpop.permute.xlu1 %6517 }
0x27ef   :  { %v6620_v48 = vpop.permute.xlu0 %6619 }
0x27f0   :  { %10954 = vmatpush3.xpose.msk.msra.mxu0 %vm700_vm2, %v6620_v48 }
0x27f1   :  { %10955 = vmatprep.subr.mxu0 %v13851_v9 }
0x27f2   :  { %v6516_v14 = vpop.permute.xlu1 %6515 }
0x27f3   :  { %v6618_v40 = vpop.permute.xlu0 %6617 }
0x27f4   :  { %10956 = vmatpush3.xpose.msk.msra.mxu0 %vm700_vm2, %v6618_v40 }
0x27f5   :  { %10979 = vmatprep.subr.mxu0 %v13851_v9 }
0x27f6   :  { %v6514_v30 = vpop.permute.xlu1 %6513 }
0x27f7   :  { %v6616_v24 = vpop.permute.xlu0 %6615 }
0x27f8   :  { %10958 = vmatmul.mubr.msk.f32.vlgmr.msra.gmra.mxu0 %vm700_vm2, %v6616_v24 }
0x27f9   :  { %10995 = vmatprep.mubr.msk.f32.mxu0 %vm11437_vm1, %v13851_v9 }
0x27fa   :  { %v6512_v18 = vpop.permute.xlu1 %6511 }
0x27fe   :  { %v6510_v61 = vpop.permute.xlu1 %6509 }
0x2895   :  { %v6422_v36 = vpop.f32.mrf.mxu0 }
0x2897   :  { %v10916_v15 = vpop.f32.mrf.mxu0 }
0x28a0   :  { %v6325_v56 = vpop.f32.mrf.mxu1 }
0x28a1   :  { %10919 = vmatprep.mubr.msk.f32.mxu1 %vm700_vm2, %v6325_v56 }
0x28a2   :  { %v10897_v11 = vpop.f32.mrf.mxu1  ;;  %10920 = vmatmul.mubr.msk.f32.vlgmr.msra.gmra.mxu1 %vm700_vm2, %v6422_v36 }
0x28a3   :  { %10923 = vmatpush3.xpose.msk.msra.mxu1 %vm700_vm2, %v6526_v5  ;;  %10938 = vmatprep.mubr.msk.f32.mxu1 %vm11437_vm1, %v13851_v9 }
0x28a4   :  { %10924 = vmatprep.subr.mxu1 %v13851_v9 }
0x28a7   :  { %10925 = vmatpush3.xpose.msk.msra.mxu1 %vm700_vm2, %v6524_v39 }
0x28a8   :  { %10926 = vmatprep.subr.mxu1 %v13851_v9 }
0x28ab   :  { %10927 = vmatpush3.xpose.msk.msra.mxu1 %vm700_vm2, %v6522_v47 }
0x28ac   :  { %10928 = vmatprep.subr.mxu1 %v13851_v9 }
0x28af   :  { %10929 = vmatpush3.xpose.msk.msra.mxu1 %vm700_vm2, %v6520_v45 }
0x28b0   :  { %10930 = vmatprep.subr.mxu1 %v13851_v9 }
0x28b3   :  { %10931 = vmatpush3.xpose.msk.msra.mxu1 %vm700_vm2, %v6518_v62 }
0x28b4   :  { %10932 = vmatprep.subr.mxu1 %v13851_v9 }
0x28b7   :  { %10933 = vmatpush3.xpose.msk.msra.mxu1 %vm700_vm2, %v6516_v14 }
0x28b8   :  { %v6717_v53 = vpop.f32.mrf.mxu0  ;;  %10934 = vmatprep.subr.mxu1 %v13851_v9 }
0x28b9   :  { %v6724_v1 = vsel %vm895_vm3, %v6717_v53, -inf }
0x28ba   :  { %6725 = vmax.xlane.f32.xlu0 %v6724_v1  ;;  %v10959_v20 = vpop.f32.mrf.mxu0 }
0x28bb   :  { %10935 = vmatpush3.xpose.msk.msra.mxu1 %vm700_vm2, %v6514_v30 }
0x28bc   :  { %10936 = vmatprep.subr.mxu1 %v13851_v9 }
0x28bf   :  { %10937 = vmatpush3.xpose.msk.msra.mxu1 %vm700_vm2, %v6512_v18  ;;  %v11427_v18 = vld [vmem:[%s13841_s5 + $0xb0] sm:$0xff] }
0x28c0   :  { %10960 = vmatprep.subr.mxu1 %v13851_v9 }
0x28c2   :  { %10939 = vmatmul.mubr.msk.f32.vlgmr.msra.gmra.mxu1 %vm700_vm2, %v6510_v61  ;;  %v11429_v61 = vld [vmem:[%s13841_s5 + $0x80] sm:$0xff] }
0x28c3   :  { %10976 = vmatprep.mubr.msk.f32.mxu1 %vm11437_vm1, %v13851_v9 }
0x2943   :  { %v6726_v23 = vpop.xlane.xlu0 %6725 }
0x2944   :  { %v6728_v25 = vsub.f32 %v6717_v53, %v6726_v23  ;;  %v11430_v23 = vld [vmem:[%s13841_s5 + $0x68] sm:$0xff] }
0x2946   :  { %v6731_v2 = vmul.f32 1.442695, %v6728_v25 }
0x2948   :  { %11358 = vpow2.f32 %v6731_v2 }
0x2955   :  { %v13379_v58 = vpop.eup %11358 }
0x2956   :  { %v6736_v48 = vsel %vm895_vm3, %v13379_v58, 0.0 }
0x2957   :  { %6737 = vadd.xlane.f32.xlu0 %v6736_v48 }
0x2962   :  { %v10921_v40 = vpop.f32.mrf.mxu1 }
0x2963   :  { %v13384_v24 = vadd.f32 %v10921_v40, %v13234_v26 }
0x2964   :  { %v6498_v5 = vpop.f32.mrf.mxu1 }
0x2965   :  { %v13387_v36 = vadd.f32 %v6498_v5, %v13236_v37 }
0x296d   :  { %6854 = vrot.lane.b32.xlu0 %v11883_v22, %s11450_s21 }
0x2971   :  { %6850 = vrot.lane.b32.xlu0 %v11909_v35, %s11450_s21 }
0x2975   :  { %6848 = vrot.lane.b32.xlu0 %v11922_v13, %s11450_s21 }
0x2979   :  { %6846 = vrot.lane.b32.xlu0 %v11933_v63, %s11450_s21 }
0x297d   :  { %6844 = vrot.lane.b32.xlu0 %v11943_v46, %s11450_s21 }
0x2981   :  { %6842 = vrot.lane.b32.xlu0 %v11949_v49, %s11450_s21 }
0x2982   :  { %v6611_v26 = vpop.f32.mrf.mxu1 }
0x2983   :  { %v6721_v37 = vsel %vm895_vm3, %v6611_v26, -inf }
0x2984   :  { %6722 = vmax.xlane.f32.xlu1 %v6721_v37  ;;  %v10940_v22 = vpop.f32.mrf.mxu1 }
0x2995   :  { %6757 = vrot.lane.b32.xlu1 %v11850_v33, %s11450_s21  ;;  %v13423_v33 = vld [vmem:[%s13842_s7 + $0x1] ss:$2 sm:$0x1f] }
0x2999   :  { %6755 = vrot.lane.b32.xlu1 %v11853_v6, %s11450_s21 }
0x299d   :  { %6852 = vrot.lane.b32.xlu1 %v11897_v32, %s11450_s21 }
0x29a1   :  { %6753 = vrot.lane.b32.xlu1 %v11861_v8, %s11450_s21 }
0x29a5   :  { %6751 = vrot.lane.b32.xlu1 %v11869_v38, %s11450_s21 }
0x29a9   :  { %6749 = vrot.lane.b32.xlu1 %v11877_v19, %s11450_s21 }
0x29ad   :  { %6747 = vrot.lane.b32.xlu1 %v11894_v29, %s11450_s21 }
0x29b1   :  { %6745 = vrot.lane.b32.xlu1 %v11906_v34, %s11450_s21 }
0x29b5   :  { %6743 = vrot.lane.b32.xlu1 %v11919_v42, %s11450_s21 }
0x29b9   :  { %7020 = vrot.lane.b32.xlu1 %v13423_v33, %s11433_s9 }
0x29e0   :  { %v6738_v6 = vpop.xlane.xlu0 %6737 }
0x29e4   :  { %v6855_v8 = vpop.permute.xlu0 %6854 }
0x29e5   :  { %10980 = vmatpush3.msra.mxu0 %v6855_v8 }
0x29e6   :  { %10981 = vmatprep.subr.mxu0 %v13851_v9 }
0x29e8   :  { %v6851_v38 = vpop.permute.xlu0 %6850 }
0x29ec   :  { %v6849_v34 = vpop.permute.xlu0 %6848 }
0x29f0   :  { %v6847_v13 = vpop.permute.xlu0 %6846 }
0x29f4   :  { %v6845_v46 = vpop.permute.xlu0 %6844 }
0x29f8   :  { %v6843_v56 = vpop.permute.xlu0 %6842 }
0x2a0d   :  { %v6723_v19 = vpop.xlane.xlu1 %6722 }
0x2a0e   :  { %v6727_v29 = vsub.f32 %v6611_v26, %v6723_v19 }
0x2a10   :  { %v6729_v32 = vmul.f32 1.442695, %v6727_v29 }
0x2a11   :  { %v6758_v35 = vpop.permute.xlu1 %6757 }
0x2a12   :  { %11360 = vpow2.f32 %v6729_v32  ;;  %10961 = vmatpush3.msra.mxu1 %v6758_v35 }
0x2a13   :  { %10962 = vmatprep.subr.mxu1 %v13851_v9  ;;  %11362 = vrcp.f32 %v6738_v6 }
0x2a15   :  { %v6756_v42 = vpop.permute.xlu1 %6755 }
0x2a16   :  { %10963 = vmatpush3.msra.mxu1 %v6756_v42 }
0x2a17   :  { %10964 = vmatprep.subr.mxu1 %v13851_v9 }
0x2a19   :  { %v6853_v63 = vpop.permute.xlu1 %6852 }
0x2a1a   :  { %10982 = vmatpush3.msra.mxu0 %v6853_v63 }
0x2a1b   :  { %10983 = vmatprep.subr.mxu0 %v13851_v9 }
0x2a1c   :  { %10984 = vmatpush3.msra.mxu0 %v6851_v38 }
0x2a1d   :  { %10985 = vmatprep.subr.mxu0 %v13851_v9  ;;  %v6754_v49 = vpop.permute.xlu1 %6753 }
0x2a1e   :  { %10965 = vmatpush3.msra.mxu1 %v6754_v49  ;;  %10986 = vmatpush3.msra.mxu0 %v6849_v34 }
0x2a1f   :  { %v11361_v39 = vpop.eup %11360  ;;  %10987 = vmatprep.subr.mxu0 %v13851_v9  ;;  %10966 = vmatprep.subr.mxu1 %v13851_v9 }
0x2a20   :  { %10988 = vmatpush3.msra.mxu0 %v6847_v13  ;;  %v6733_v15 = vsel %vm895_vm3, %v11361_v39, 0.0  ;;  %v11363_v53 = vpop.eup %11362 }
0x2a21   :  { %6734 = vadd.xlane.f32.xlu0 %v6733_v15  ;;  %10989 = vmatprep.subr.mxu0 %v13851_v9  ;;  %v6752_v47 = vpop.permute.xlu1 %6751  ;;  %v6742_v20 = vmul.f32 %v11363_v53, %v13379_v58  ;;  %v13463_v58 = vld [vmem:[%s13841_s5 + $0xb8] sm:$0xff] }
0x2a22   :  { %10967 = vmatpush3.msra.mxu1 %v6752_v47  ;;  %10990 = vmatpush3.msra.mxu0 %v6845_v46 }
0x2a23   :  { %10991 = vmatprep.subr.mxu0 %v13851_v9  ;;  %10968 = vmatprep.subr.mxu1 %v13851_v9 }
0x2a24   :  { %10992 = vmatpush3.msra.mxu0 %v6843_v56 }
0x2a25   :  { %v6750_v11 = vpop.permute.xlu1 %6749  ;;  %10993 = vmatprep.subr.mxu0 %v13851_v9 }
0x2a26   :  { %10969 = vmatpush3.msra.mxu1 %v6750_v11 }
0x2a27   :  { %10970 = vmatprep.subr.mxu1 %v13851_v9 }
0x2a29   :  { %v6748_v45 = vpop.permute.xlu1 %6747 }
0x2a2a   :  { %10971 = vmatpush3.msra.mxu1 %v6748_v45 }
0x2a2b   :  { %10972 = vmatprep.subr.mxu1 %v13851_v9 }
0x2a2d   :  { %v6746_v62 = vpop.permute.xlu1 %6745 }
0x2a2e   :  { %10973 = vmatpush3.msra.mxu1 %v6746_v62 }
0x2a2f   :  { %10974 = vmatprep.subr.mxu1 %v13851_v9 }
0x2a31   :  { %v6744_v14 = vpop.permute.xlu1 %6743 }
0x2a32   :  { %10975 = vmatpush3.msra.mxu1 %v6744_v14 }
0x2a33   :  { %10998 = vmatprep.subr.mxu1 %v13463_v58 }
0x2a35   :  { %v13472_v37 = vpop.permute.xlu1 %7020 }
0x2a36   :  { %v7022_v22 = vrot.slane %v13472_v37, 1 }
0x2a37   :  { %6840 = vrot.lane.b32.xlu0 %v11955_v55, %s11450_s21  ;;  %v11428_v55 = vld [vmem:[%s13841_s5 + $0x98] sm:$0xff] }
0x2a38   :  { %v7026_v6 = vrot.slane %v7022_v22, %v11692_v17 }
0x2aaa   :  { %v6735_v30 = vpop.xlane.xlu0 %6734 }
0x2aab   :  { %11364 = vrcp.f32 %v6735_v30 }
0x2aae   :  { %v6841_v1 = vpop.permute.xlu0 %6840 }
0x2aaf   :  { %10994 = vmatpush3.msra.mxu0 %v6841_v1 }
0x2ab0   :  { %10996 = vmatmul.mubr.msk.f32.vlgmr.msra.gmra.mxu0 %vm895_vm3, %v6742_v20  ;;  %11003 = vmatprep.subr.mxu0 %v11427_v18 }
0x2ab1   :  { %11004 = vmatpush3.msra.mxu0 %v11427_v18 }
0x2ab2   :  { %11005 = vmatprep.subr.mxu0 %v11428_v55 }
0x2ab3   :  { %11006 = vmatpush3.msra.mxu0 %v11428_v55 }
0x2ab4   :  { %11007 = vmatprep.subr.mxu0 %v11429_v61 }
0x2ab5   :  { %11008 = vmatpush3.msra.mxu0 %v11429_v61 }
0x2ab6   :  { %11009 = vmatprep.subr.mxu0 %v11430_v23 }
0x2ab7   :  { %11010 = vmatpush3.msra.mxu0 %v11430_v23 }
0x2ab8   :  { %v11365_v25 = vpop.eup %11364  ;;  %11024 = vmatprep.subr.mxu0 %v13851_v9 }
0x2ab9   :  { %v6740_v2 = vmul.f32 %v11365_v25, %v11361_v39 }
0x2abb   :  { %10977 = vmatmul.mubr.msk.f32.vlgmr.msra.gmra.mxu1 %vm895_vm3, %v6740_v2 }
0x2abc   :  { %10999 = vmatpush3.msra.mxu1 %v13463_v58 }
0x2abd   :  { %11014 = vmatprep.subr.mxu1 %v13851_v9 }
0x2b70   :  { %v6933_v48 = vpop.f32.mrf.mxu0 }
0x2b72   :  { %v10997_v40 = vpop.f32.mrf.mxu0 }
0x2b73   :  { %v7068_v40 = vrot.slane %v13423_v33, 2 }
0x2b7b   :  { %v6836_v5 = vpop.f32.mrf.mxu1 }
0x2b7c   :  { %11000 = vmatprep.mubr.msk.f32.mxu1 %vm700_vm2, %v6836_v5 }
0x2b7d   :  { %v10978_v26 = vpop.f32.mrf.mxu1  ;;  %11001 = vmatmul.mubr.msk.f32.vlgmr.msra.gmra.mxu1 %vm700_vm2, %v6933_v48 }
0x2b7e   :  { %11016 = vmatprep.mubr.msk.f32.mxu1 %vm11437_vm1, %v13851_v9  ;;  %v7072_v26 = vrot.slane %v7068_v40, %v11692_v17 }
0x2c3d   :  { %v11002_v8 = vpop.f32.mrf.mxu1 }
0x2c3e   :  { %v7019_v38 = vadd.f32 %v11002_v8, %v13384_v24 }
0x2c3f   :  { %v7009_v19 = vpop.f32.mrf.mxu1 }
0x2c40   :  { %v7029_v29 = vadd.f32 %v7026_v6, %v7019_v38  ;;  %v7018_v32 = vadd.f32 %v7009_v19, %v13387_v36 }
0x2c42   :  { %v13479_v34 = vadd.f32 %v7029_v29, %v12853_v54  ;;  %v7028_v35 = vadd.f32 %v7026_v6, %v7018_v32 }
0x2c44   :  { %v13482_v42 = vadd.f32 %v7028_v35, %v12851_v44  ;;  %v7035_v13 = vsel %vm104_vm0, %v13479_v34, 0.0 }
0x2c45   :  { %7036 = vadd.xlane.f32.xlu1 %v7035_v13 }
0x2c46   :  { %v7032_v63 = vsel %vm104_vm0, %v13482_v42, 0.0 }
0x2c47   :  { %7033 = vadd.xlane.f32.xlu0 %v7032_v63 }
0x2c56   :  { %7063 = vrot.lane.b32.xlu1 %v12737_v3, %s11433_s9 }
0x2cce   :  { %v7037_v24 = vpop.xlane.xlu1 %7036 }
0x2ccf   :  { %v7039_v36 = vmul.f32 0.03125, %v7037_v24 }
0x2cd0   :  { %v7034_v46 = vpop.xlane.xlu0 %7033 }
0x2cd1   :  { %v7038_v54 = vmul.f32 0.03125, %v7034_v46  ;;  %v7041_v49 = vsub.f32 %v13479_v34, %v7039_v36 }
0x2cd2   :  { %v7064_v55 = vpop.permute.xlu1 %7063 }
0x2cd3   :  { %v7040_v44 = vsub.f32 %v13482_v42, %v7038_v54  ;;  %v7043_v47 = vmul.f32 %v7041_v49, %v7041_v49 }
0x2cd5   :  { %v7042_v39 = vmul.f32 %v7040_v44, %v7040_v44  ;;  %v7047_v56 = vsel %vm104_vm0, %v7043_v47, 0.0 }
0x2cd7   :  { %v7044_v15 = vsel %vm104_vm0, %v7042_v39, 0.0 }
0x2cd8   :  { %7045 = vadd.xlane.f32.xlu0 %v7044_v15 }
0x2cdc   :  { %7048 = vadd.xlane.f32.xlu0 %v7047_v56 }
0x2cf2   :  { %7058 = vrot.lane.b32.xlu0 %v12737_v3, %s11435_s19 }
0x2d61   :  { %v7046_v11 = vpop.xlane.xlu0 %7045 }
0x2d62   :  { %v7050_v45 = vmul.f32 0.03125, %v7046_v11 }
0x2d64   :  { %v7052_v62 = vadd.f32 1e-05, %v7050_v45 }
0x2d65   :  { %v7049_v14 = vpop.xlane.xlu0 %7048 }
0x2d66   :  { %11366 = vrsqrt.f32 %v7052_v62  ;;  %v7051_v30 = vmul.f32 0.03125, %v7049_v14 }
0x2d68   :  { %v7053_v53 = vadd.f32 1e-05, %v7051_v30 }
0x2d69   :  { %v7059_v20 = vpop.permute.xlu0 %7058 }
0x2d6a   :  { %11368 = vrsqrt.f32 %v7053_v53 }
0x2d73   :  { %v11367_v1 = vpop.eup %11366 }
0x2d74   :  { %v7056_v18 = vmul.f32 %v11367_v1, %v7040_v44 }
0x2d76   :  { %v7061_v61 = vmul.f32 %v7059_v20, %v7056_v18 }
0x2d77   :  { %v11369_v23 = vpop.eup %11368 }
0x2d78   :  { %v7057_v25 = vmul.f32 %v11369_v23, %v7041_v49  ;;  %v7066_v2 = vadd.f32 %v7064_v55, %v7061_v61 }
0x2d7a   :  { %v7062_v48 = vmul.f32 %v7059_v20, %v7057_v25  ;;  %11011 = vmatprep.mubr.msk.f32.mxu0 %vm104_vm0, %v7066_v2 }
0x2d7c   :  { %v7067_v3 = vadd.f32 %v7064_v55, %v7062_v48 }
0x2d7e   :  { %11012 = vmatmul.mubr.msk.f32.vlgmr.msra.gmra.mxu0 %vm104_vm0, %v7067_v3 }
0x2d7f   :  { %11026 = vmatprep.mubr.msk.f32.mxu0 %vm11437_vm1, %v13851_v9 }
0x2e3e   :  { %v11013_v5 = vpop.f32.mrf.mxu0 }
0x2e3f   :  { %v13506_v8 = vadd.f32 %v11013_v5, %v7072_v26 }
0x2e40   :  { %v7146_v22 = vpop.f32.mrf.mxu0 }
0x2e41   :  { %v13502_v6 = vadd.f32 %v7146_v22, %v7072_v26  ;;  %v13521_v32 = vmul.f32 0.35355338, %v13506_v8 }
0x2e43   :  { %7158 = vrot.lane.b32.xlu1 %v13502_v6, %s11434_s18  ;;  %v13513_v19 = vmul.f32 0.35355338, %v13502_v6 }
0x2e47   :  { %7236 = vrot.lane.b32.xlu1 %v13506_v8, %s11434_s18 }
0x2eb5   :  { %v7159_v38 = vpop.permute.xlu1 %7158 }
0x2eb6   :  { %11015 = vmatpush3.xpose.msk.msra.mxu1 %vm700_vm2, %v7159_v38 }
0x2eb7   :  { %11019 = vmatprep.subr.mxu1 %v13851_v9 }
0x2eb9   :  { %v7237_v29 = vpop.permute.xlu1 %7236  ;;  %11017 = vmatmul.mubr.msk.f32.vlgmr.msra.gmra.mxu1 %vm700_vm2, %v13513_v19 }
0x2eba   :  { %11020 = vmatpush3.xpose.msk.msra.mxu1 %vm700_vm2, %v7237_v29  ;;  %11021 = vmatprep.mubr.msk.f32.mxu1 %vm11437_vm1, %v13851_v9 }
0x2ebb   :  { %11029 = vmatprep.subr.mxu1 %v13851_v9 }
0x2ebd   :  { %11022 = vmatmul.mubr.msk.f32.vlgmr.msra.gmra.mxu1 %vm700_vm2, %v13521_v32 }
0x2ebe   :  { %11031 = vmatprep.mubr.msk.f32.mxu1 %vm11437_vm1, %v13851_v9 }
0x2f79   :  { %v7231_v35 = vpop.f32.mrf.mxu1 }
0x2f7a   :  { %v7313_v13 = vsel %vm700_vm2, %v7231_v35, -inf }
0x2f7b   :  { %7314 = vmax.xlane.f32.xlu0 %v7313_v13  ;;  %v11018_v63 = vpop.f32.mrf.mxu1 }
0x2f7d   :  { %v7309_v24 = vpop.f32.mrf.mxu1 }
0x2f7e   :  { %v7316_v36 = vsel %vm700_vm2, %v7309_v24, -inf }
0x2f7f   :  { %7317 = vmax.xlane.f32.xlu1 %v7316_v36  ;;  %v11023_v46 = vpop.f32.mrf.mxu1 }
0x2f90   :  { %7411 = vrot.lane.b32.xlu1 %v13506_v8, %s11435_s19 }
0x2f91   :  { %7335 = vrot.lane.b32.xlu0 %v13502_v6, %s11435_s19 }
0x2f94   :  { %7489 = vrot.lane.b32.xlu1 %v13502_v6, %s11439_s25 }
0x2f98   :  { %7567 = vrot.lane.b32.xlu1 %v13506_v8, %s11439_s25 }
0x2f9c   :  { %7565 = vrot.lane.b32.xlu1 %v13521_v32, %s11438_s4 }
0x3004   :  { %v7315_v54 = vpop.xlane.xlu0 %7314 }
0x3005   :  { %v7319_v49 = vsub.f32 %v7231_v35, %v7315_v54 }
0x3007   :  { %v7321_v44 = vmul.f32 1.442695, %v7319_v49 }
0x3008   :  { %v7336_v39 = vpop.permute.xlu0 %7335  ;;  %v7318_v15 = vpop.xlane.xlu1 %7317 }
0x3009   :  { %11370 = vpow2.f32 %v7321_v44  ;;  %v7320_v47 = vsub.f32 %v7309_v24, %v7318_v15  ;;  %11025 = vmatpush3.msra.mxu0 %v7336_v39  ;;  %v11431_v24 = vld [vmem:[%s13841_s5 + $0x88] sm:$0xff] }
0x300a   :  { %11034 = vmatprep.subr.mxu0 %v13851_v9 }
0x300b   :  { %v7323_v56 = vmul.f32 1.442695, %v7320_v47 }
0x300c   :  { %v7412_v11 = vpop.permute.xlu1 %7411 }
0x300d   :  { %11372 = vpow2.f32 %v7323_v56  ;;  %11030 = vmatpush3.msra.mxu1 %v7412_v11 }
0x300e   :  { %11039 = vmatprep.subr.mxu1 %v13851_v9 }
0x3010   :  { %v7490_v20 = vpop.permute.xlu1 %7489 }
0x3014   :  { %v7568_v23 = vpop.permute.xlu1 %7567 }
0x3016   :  { %v11371_v45 = vpop.eup %11370 }
0x3017   :  { %v7325_v62 = vsel %vm700_vm2, %v11371_v45, 0.0 }
0x3018   :  { %7326 = vadd.xlane.f32.xlu0 %v7325_v62  ;;  %v7566_v48 = vpop.permute.xlu1 %7565 }
0x301a   :  { %v11373_v14 = vpop.eup %11372 }
0x301b   :  { %v7328_v30 = vsel %vm700_vm2, %v11373_v14, 0.0 }
0x301c   :  { %7329 = vadd.xlane.f32.xlu0 %v7328_v30 }
0x3032   :  { %7487 = vrot.lane.b32.xlu0 %v13513_v19, %s11438_s4 }
0x30a1   :  { %v7327_v53 = vpop.xlane.xlu0 %7326 }
0x30a2   :  { %11374 = vrcp.f32 %v7327_v53 }
0x30a5   :  { %v7330_v1 = vpop.xlane.xlu0 %7329 }
0x30a6   :  { %11376 = vrcp.f32 %v7330_v1 }
0x30a9   :  { %v7488_v2 = vpop.permute.xlu0 %7487 }
0x30af   :  { %v11375_v18 = vpop.eup %11374 }
0x30b0   :  { %v7332_v55 = vmul.f32 %v11375_v18, %v11371_v45 }
0x30b2   :  { %11027 = vmatmul.mubr.msk.f32.vlgmr.msra.gmra.mxu0 %vm700_vm2, %v7332_v55 }
0x30b3   :  { %v11377_v61 = vpop.eup %11376  ;;  %11035 = vmatpush3.xpose.msk.msra.mxu0 %vm700_vm2, %v7490_v20  ;;  %11036 = vmatprep.mubr.msk.f32.mxu0 %vm11437_vm1, %v13851_v9 }
0x30b4   :  { %v7334_v25 = vmul.f32 %v11377_v61, %v11373_v14  ;;  %11044 = vmatprep.subr.mxu0 %v13851_v9 }
0x30b6   :  { %11032 = vmatmul.mubr.msk.f32.vlgmr.msra.gmra.mxu1 %vm700_vm2, %v7334_v25  ;;  %11037 = vmatmul.mubr.msk.f32.vlgmr.msra.gmra.mxu0 %vm700_vm2, %v7488_v2 }
0x30b7   :  { %11040 = vmatpush3.xpose.msk.msra.mxu1 %vm700_vm2, %v7568_v23  ;;  %11041 = vmatprep.mubr.msk.f32.mxu1 %vm11437_vm1, %v13851_v9 }
0x30b8   :  { %11049 = vmatprep.subr.mxu1 %v13851_v9  ;;  %11046 = vmatprep.mubr.msk.f32.mxu0 %vm11437_vm1, %v13851_v9 }
0x30ba   :  { %11042 = vmatmul.mubr.msk.f32.vlgmr.msra.gmra.mxu1 %vm700_vm2, %v7566_v48 }
0x30bb   :  { %11051 = vmatprep.mubr.msk.f32.mxu1 %vm11437_vm1, %v13851_v9 }
0x3172   :  { %v7407_v3 = vpop.f32.mrf.mxu0 }
0x3174   :  { %v11028_v40 = vpop.f32.mrf.mxu0 }
0x3176   :  { %v7483_v5 = vpop.f32.mrf.mxu1  ;;  %v7561_v26 = vpop.f32.mrf.mxu0 }
0x3177   :  { %v7643_v22 = vsel %vm700_vm2, %v7561_v26, -inf }
0x3178   :  { %7644 = vmax.xlane.f32.xlu0 %v7643_v22  ;;  %v11033_v38 = vpop.f32.mrf.mxu1  ;;  %v11038_v29 = vpop.f32.mrf.mxu0 }
0x317a   :  { %v7639_v35 = vpop.f32.mrf.mxu1 }
0x317b   :  { %v7646_v13 = vsel %vm700_vm2, %v7639_v35, -inf }
0x317c   :  { %7647 = vmax.xlane.f32.xlu1 %v7646_v13  ;;  %v11043_v63 = vpop.f32.mrf.mxu1 }
0x318d   :  { %7741 = vrot.lane.b32.xlu1 %v13506_v8, %s11444_s1 }
0x3191   :  { %7818 = vrot.lane.b32.xlu1 %v11431_v24, %s11434_s18 }
0x3195   :  { %7903 = vrot.lane.b32.xlu1 %v13197_v60, %s11434_s18 }
0x3199   :  { %8067 = vrot.lane.b32.xlu1 %v13506_v8, %s11441_s30 }
0x319d   :  { %8065 = vrot.lane.b32.xlu1 %v13521_v32, %s11440_s26 }
0x3201   :  { %v7645_v36 = vpop.xlane.xlu0 %7644 }
0x3202   :  { %v7649_v46 = vsub.f32 %v7561_v26, %v7645_v36 }
0x3204   :  { %v7651_v54 = vmul.f32 1.442695, %v7649_v46 }
0x3205   :  { %v7648_v49 = vpop.xlane.xlu1 %7647 }
0x3206   :  { %11378 = vpow2.f32 %v7651_v54  ;;  %v7650_v44 = vsub.f32 %v7639_v35, %v7648_v49 }
0x3208   :  { %v7653_v39 = vmul.f32 1.442695, %v7650_v44 }
0x3209   :  { %v7742_v15 = vpop.permute.xlu1 %7741 }
0x320a   :  { %11380 = vpow2.f32 %v7653_v39  ;;  %11050 = vmatpush3.msra.mxu1 %v7742_v15 }
0x320d   :  { %v7819_v47 = vpop.permute.xlu1 %7818 }
0x3211   :  { %v7904_v56 = vpop.permute.xlu1 %7903 }
0x3212   :  { %11059 = vmatprep.subr.mxu1 %v7904_v56 }
0x3213   :  { %v11379_v60 = vpop.eup %11378 }
0x3214   :  { %v7655_v11 = vsel %vm700_vm2, %v11379_v60, 0.0 }
0x3215   :  { %7656 = vadd.xlane.f32.xlu0 %v7655_v11  ;;  %v8068_v61 = vpop.permute.xlu1 %8067 }
0x3217   :  { %v11381_v45 = vpop.eup %11380 }
0x3218   :  { %v7658_v62 = vsel %vm700_vm2, %v11381_v45, 0.0 }
0x3219   :  { %7659 = vadd.xlane.f32.xlu0 %v7658_v62  ;;  %v8066_v23 = vpop.permute.xlu1 %8065 }
0x322f   :  { %7665 = vrot.lane.b32.xlu0 %v13502_v6, %s11444_s1 }
0x3233   :  { %7989 = vrot.lane.b32.xlu0 %v13502_v6, %s11441_s30 }
0x3237   :  { %7987 = vrot.lane.b32.xlu0 %v13513_v19, %s11440_s26 }
0x329e   :  { %v7657_v14 = vpop.xlane.xlu0 %7656 }
0x329f   :  { %11382 = vrcp.f32 %v7657_v14 }
0x32a2   :  { %v7660_v30 = vpop.xlane.xlu0 %7659 }
0x32a3   :  { %11384 = vrcp.f32 %v7660_v30 }
0x32a6   :  { %v7666_v53 = vpop.permute.xlu0 %7665 }
0x32a7   :  { %11045 = vmatpush3.msra.mxu0 %v7666_v53 }
0x32a8   :  { %11054 = vmatprep.subr.mxu0 %v7819_v47 }
0x32aa   :  { %v7990_v2 = vpop.permute.xlu0 %7989 }
0x32ac   :  { %v11383_v1 = vpop.eup %11382 }
0x32ad   :  { %v7662_v20 = vmul.f32 %v11383_v1, %v11379_v60 }
0x32af   :  { %11047 = vmatmul.mubr.msk.f32.vlgmr.msra.gmra.mxu0 %vm700_vm2, %v7662_v20 }
0x32b0   :  { %v11385_v18 = vpop.eup %11384  ;;  %11055 = vmatpush3.msra.mxu0 %v7819_v47 }
0x32b1   :  { %v7664_v55 = vmul.f32 %v11385_v18, %v11381_v45  ;;  %11064 = vmatprep.subr.mxu0 %v13851_v9 }
0x32b3   :  { %11052 = vmatmul.mubr.msk.f32.vlgmr.msra.gmra.mxu1 %vm700_vm2, %v7664_v55 }
0x32b4   :  { %11061 = vmatprep.mubr.msk.f32.mxu1 %vm700_vm2, %v7407_v3  ;;  %11060 = vmatpush3.msra.mxu1 %v7904_v56 }
0x32b5   :  { %11069 = vmatprep.subr.mxu1 %v13851_v9 }
0x32b7   :  { %11062 = vmatmul.mubr.msk.f32.vlgmr.msra.gmra.mxu1 %vm700_vm2, %v7483_v5  ;;  %v7988_v5 = vpop.permute.xlu0 %7987 }
0x32b8   :  { %11070 = vmatpush3.xpose.msk.msra.mxu1 %vm700_vm2, %v8068_v61  ;;  %11071 = vmatprep.mubr.msk.f32.mxu1 %vm11437_vm1, %v13851_v9 }
0x32b9   :  { %11079 = vmatprep.subr.mxu1 %v13851_v9 }
0x32bb   :  { %11072 = vmatmul.mubr.msk.f32.vlgmr.msra.gmra.mxu1 %vm700_vm2, %v8066_v23 }
0x32bc   :  { %11081 = vmatprep.mubr.msk.f32.mxu1 %vm11437_vm1, %v13851_v9 }
0x336f   :  { %v7737_v25 = vpop.f32.mrf.mxu0 }
0x3370   :  { %11056 = vmatprep.mubr.msk.f32.mxu0 %vm700_vm2, %v7737_v25 }
0x3371   :  { %v11048_v48 = vpop.f32.mrf.mxu0 }
0x3373   :  { %v7813_v3 = vpop.f32.mrf.mxu1 }
0x3374   :  { %11057 = vmatmul.mubr.msk.f32.vlgmr.msra.gmra.mxu0 %vm700_vm2, %v7813_v3 }
0x3375   :  { %11065 = vmatpush3.xpose.msk.msra.mxu0 %vm700_vm2, %v7990_v2  ;;  %v11053_v40 = vpop.f32.mrf.mxu1  ;;  %11066 = vmatprep.mubr.msk.f32.mxu0 %vm11437_vm1, %v13851_v9 }
0x3376   :  { %11074 = vmatprep.subr.mxu0 %v13851_v9 }
0x3377   :  { %v13603_v26 = vpop.f32.mrf.mxu1 }
0x3378   :  { %11067 = vmatmul.mubr.msk.f32.vlgmr.msra.gmra.mxu0 %vm700_vm2, %v7988_v5 }
0x3379   :  { %v13606_v22 = vpop.f32.mrf.mxu1  ;;  %11076 = vmatprep.mubr.msk.f32.mxu0 %vm11437_vm1, %v13851_v9 }
0x337b   :  { %v8139_v38 = vpop.f32.mrf.mxu1 }
0x337c   :  { %v8146_v29 = vsel %vm700_vm2, %v8139_v38, -inf }
0x337d   :  { %8147 = vmax.xlane.f32.xlu1 %v8146_v29  ;;  %v11073_v35 = vpop.f32.mrf.mxu1 }
0x338e   :  { %8241 = vrot.lane.b32.xlu1 %v13506_v8, %s11445_s14 }
0x3392   :  { %8318 = vrot.lane.b32.xlu1 %v13350_v0, %s11434_s18 }
0x3396   :  { %8406 = vrot.lane.b32.xlu1 %v13502_v6, %s11443_s13 }
0x339a   :  { %8404 = vrot.lane.b32.xlu1 %v13513_v19, %s11442_s10 }
0x3406   :  { %v8148_v13 = vpop.xlane.xlu1 %8147 }
0x3407   :  { %v8150_v24 = vsub.f32 %v8139_v38, %v8148_v13 }
0x3409   :  { %v8153_v36 = vmul.f32 1.442695, %v8150_v24 }
0x340a   :  { %v8242_v63 = vpop.permute.xlu1 %8241 }
0x340b   :  { %11080 = vmatpush3.msra.mxu1 %v8242_v63  ;;  %11386 = vpow2.f32 %v8153_v36 }
0x340c   :  { %11089 = vmatprep.subr.mxu1 %v13851_v9 }
0x340e   :  { %v8319_v11 = vpop.permute.xlu1 %8318 }
0x3412   :  { %v8407_v14 = vpop.permute.xlu1 %8406 }
0x3416   :  { %v8405_v1 = vpop.permute.xlu1 %8404 }
0x3418   :  { %v11387_v44 = vpop.eup %11386 }
0x3419   :  { %v8158_v19 = vsel %vm700_vm2, %v11387_v44, 0.0 }
0x3434   :  { %v13620_v46 = vpop.f32.mrf.mxu0 }
0x3435   :  { %v7984_v13 = vadd.f32 %v13603_v26, %v13620_v46 }
0x3436   :  { %v13622_v54 = vpop.f32.mrf.mxu0 }
0x3437   :  { %v7979_v24 = vadd.f32 %v13606_v22, %v13622_v54 }
0x3438   :  { %v8061_v49 = vpop.f32.mrf.mxu0 }
0x3439   :  { %v8143_v0 = vsel %vm700_vm2, %v8061_v49, -inf }
0x343a   :  { %8144 = vmax.xlane.f32.xlu0 %v8143_v0  ;;  %v11068_v39 = vpop.f32.mrf.mxu0 }
0x343e   :  { %8159 = vadd.xlane.f32.xlu0 %v8158_v19 }
0x34c3   :  { %v8145_v15 = vpop.xlane.xlu0 %8144 }
0x34c4   :  { %v8149_v47 = vsub.f32 %v8061_v49, %v8145_v15 }
0x34c6   :  { %v8151_v56 = vmul.f32 1.442695, %v8149_v47 }
0x34c7   :  { %v8160_v60 = vpop.xlane.xlu0 %8159 }
0x34c8   :  { %11388 = vpow2.f32 %v8151_v56 }
0x34c9   :  { %11390 = vrcp.f32 %v8160_v60 }
0x34d5   :  { %v11389_v45 = vpop.eup %11388 }
0x34d6   :  { %v11391_v62 = vpop.eup %11390  ;;  %v8155_v30 = vsel %vm700_vm2, %v11389_v45, 0.0 }
0x34d7   :  { %8156 = vadd.xlane.f32.xlu0 %v8155_v30  ;;  %v8164_v53 = vmul.f32 %v11391_v62, %v11387_v44 }
0x34d9   :  { %11082 = vmatmul.mubr.msk.f32.vlgmr.msra.gmra.mxu1 %vm700_vm2, %v8164_v53 }
0x34da   :  { %11090 = vmatpush3.xpose.msk.msra.mxu1 %vm700_vm2, %v8407_v14  ;;  %11091 = vmatprep.mubr.msk.f32.mxu1 %vm11437_vm1, %v13851_v9 }
0x34db   :  { %11099 = vmatprep.subr.mxu1 %v13851_v9 }
0x34dd   :  { %11092 = vmatmul.mubr.msk.f32.vlgmr.msra.gmra.mxu1 %vm700_vm2, %v8405_v1 }
0x34de   :  { %11101 = vmatprep.mubr.msk.f32.mxu1 %vm11437_vm1, %v13851_v9 }
0x34ed   :  { %8165 = vrot.lane.b32.xlu0 %v13502_v6, %s11445_s14 }
0x34f1   :  { %8484 = vrot.lane.b32.xlu0 %v13506_v8, %s11443_s13 }
0x34f5   :  { %8482 = vrot.lane.b32.xlu0 %v13521_v32, %s11442_s10 }
0x3560   :  { %v8157_v20 = vpop.xlane.xlu0 %8156 }
0x3561   :  { %11392 = vrcp.f32 %v8157_v20 }
0x3564   :  { %v8166_v18 = vpop.permute.xlu0 %8165 }
0x3565   :  { %11075 = vmatpush3.msra.mxu0 %v8166_v18 }
0x3566   :  { %11084 = vmatprep.subr.mxu0 %v8319_v11 }
0x3568   :  { %v8485_v5 = vpop.permute.xlu0 %8484 }
0x356e   :  { %v11393_v55 = vpop.eup %11392 }
0x356f   :  { %v8162_v61 = vmul.f32 %v11393_v55, %v11389_v45 }
0x3571   :  { %11077 = vmatmul.mubr.msk.f32.vlgmr.msra.gmra.mxu0 %vm700_vm2, %v8162_v61 }
0x3572   :  { %11085 = vmatpush3.msra.mxu0 %v8319_v11 }
0x3573   :  { %11094 = vmatprep.subr.mxu0 %v13851_v9 }
0x3599   :  { %v8313_v23 = vpop.f32.mrf.mxu1 }
0x359b   :  { %v11083_v25 = vpop.f32.mrf.mxu1 }
0x359d   :  { %v8478_v2 = vpop.f32.mrf.mxu1 }
0x359e   :  { %v8560_v48 = vsel %vm700_vm2, %v8478_v2, -inf }
0x359f   :  { %8561 = vmax.xlane.f32.xlu1 %v8560_v48  ;;  %v11093_v3 = vpop.f32.mrf.mxu1 }
0x35b0   :  { %8582 = vrot.lane.b32.xlu1 %v13502_v6, %s11446_s15  ;;  %v8483_v6 = vpop.permute.xlu0 %8482 }
0x35b4   :  { %8735 = vrot.lane.b32.xlu1 %v13463_v58, %s11434_s18 }
0x3628   :  { %v8562_v32 = vpop.xlane.xlu1 %8561 }
0x3629   :  { %v8566_v58 = vsub.f32 %v8478_v2, %v8562_v32 }
0x362b   :  { %v8568_v35 = vmul.f32 1.442695, %v8566_v58 }
0x362c   :  { %v8583_v40 = vpop.permute.xlu1 %8582 }
0x362d   :  { %11100 = vmatpush3.msra.mxu1 %v8583_v40  ;;  %11394 = vpow2.f32 %v8568_v35 }
0x3630   :  { %v8736_v62 = vpop.permute.xlu1 %8735 }
0x3631   :  { %v8237_v38 = vpop.f32.mrf.mxu0  ;;  %11109 = vmatprep.subr.mxu1 %v8736_v62 }
0x3632   :  { %11086 = vmatprep.mubr.msk.f32.mxu0 %vm700_vm2, %v8237_v38 }
0x3633   :  { %v11078_v29 = vpop.f32.mrf.mxu0  ;;  %11087 = vmatmul.mubr.msk.f32.vlgmr.msra.gmra.mxu0 %vm700_vm2, %v8313_v23 }
0x3634   :  { %11095 = vmatpush3.xpose.msk.msra.mxu0 %vm700_vm2, %v8485_v5  ;;  %11096 = vmatprep.mubr.msk.f32.mxu0 %vm11437_vm1, %v13851_v9 }
0x3635   :  { %11104 = vmatprep.subr.mxu0 %v13851_v9 }
0x3637   :  { %11097 = vmatmul.mubr.msk.f32.vlgmr.msra.gmra.mxu0 %vm700_vm2, %v8483_v6 }
0x3638   :  { %11106 = vmatprep.mubr.msk.f32.mxu0 %vm11437_vm1, %v13851_v9 }
0x363a   :  { %v11395_v19 = vpop.eup %11394 }
0x363b   :  { %v8572_v47 = vsel %vm700_vm2, %v11395_v19, 0.0 }
0x36f3   :  { %v11088_v63 = vpop.f32.mrf.mxu0 }
0x36f4   :  { %v8403_v36 = vadd.f32 %v11088_v63, %v7984_v13 }
0x36f5   :  { %v8393_v49 = vpop.f32.mrf.mxu0 }
0x36f6   :  { %v8402_v0 = vadd.f32 %v8393_v49, %v7979_v24 }
0x36f7   :  { %v8556_v44 = vpop.f32.mrf.mxu0 }
0x36f8   :  { %v8563_v39 = vsel %vm700_vm2, %v8556_v44, -inf }
0x36f9   :  { %8564 = vmax.xlane.f32.xlu0 %v8563_v39  ;;  %v11098_v15 = vpop.f32.mrf.mxu0  ;;  %v9462_v39 = vld [vmem:[%s13841_s5 + $0x78] sm:$0xff] }
0x36fd   :  { %8573 = vadd.xlane.f32.xlu0 %v8572_v47 }
0x3782   :  { %v8565_v56 = vpop.xlane.xlu0 %8564 }
0x3783   :  { %v8567_v60 = vsub.f32 %v8556_v44, %v8565_v56  ;;  %v9465_v44 = vld [vmem:[%s13841_s5 + $0x90] sm:$0xff] }
0x3785   :  { %v8570_v11 = vmul.f32 1.442695, %v8567_v60 }
0x3786   :  { %v8574_v26 = vpop.xlane.xlu0 %8573 }
0x3787   :  { %11396 = vpow2.f32 %v8570_v11 }
0x3788   :  { %11398 = vrcp.f32 %v8574_v26 }
0x3794   :  { %v11397_v46 = vpop.eup %11396 }
0x3795   :  { %v11399_v22 = vpop.eup %11398  ;;  %v8575_v54 = vsel %vm700_vm2, %v11397_v46, 0.0 }
0x3796   :  { %8576 = vadd.xlane.f32.xlu0 %v8575_v54  ;;  %v8579_v45 = vmul.f32 %v11399_v22, %v11395_v19  ;;  %v9459_v19 = vld [vmem:[%s13841_s5 + $0x60] sm:$0xff] }
0x3798   :  { %11102 = vmatmul.mubr.msk.f32.vlgmr.msra.gmra.mxu1 %vm700_vm2, %v8579_v45 }
0x3799   :  { %11110 = vmatpush3.msra.mxu1 %v8736_v62 }
0x37ac   :  { %8658 = vrot.lane.b32.xlu0 %v13506_v8, %s11446_s15  ;;  %v8821_v8 = vrot.slane %v13472_v37, 2 }
0x37ae   :  { %v8825_v25 = vrot.slane %v8821_v8, %v11692_v17  ;;  %v9604_v8 = vld [vmem:[%s13845_s6 + $0xb0] sm:$0xff] }
0x381f   :  { %v8577_v14 = vpop.xlane.xlu0 %8576 }
0x3820   :  { %11400 = vrcp.f32 %v8577_v14 }
0x3823   :  { %v8659_v30 = vpop.permute.xlu0 %8658 }
0x3824   :  { %11105 = vmatpush3.msra.mxu0 %v8659_v30 }
0x382d   :  { %v11401_v53 = vpop.eup %11400 }
0x382e   :  { %v8581_v1 = vmul.f32 %v11401_v53, %v11397_v46  ;;  %v8857_v46 = vrot.slane %v13423_v33, 1 }
0x3830   :  { %11107 = vmatmul.mubr.msk.f32.vlgmr.msra.gmra.mxu0 %vm700_vm2, %v8581_v1  ;;  %v8861_v45 = vrot.slane %v8857_v46, %v11692_v17 }
0x3858   :  { %v8654_v20 = vpop.f32.mrf.mxu1 }
0x3859   :  { %11111 = vmatprep.mubr.msk.f32.mxu1 %vm700_vm2, %v8654_v20 }
0x385a   :  { %v11103_v18 = vpop.f32.mrf.mxu1 }
0x38f0   :  { %v8730_v55 = vpop.f32.mrf.mxu0 }
0x38f1   :  { %11112 = vmatmul.mubr.msk.f32.vlgmr.msra.gmra.mxu1 %vm700_vm2, %v8730_v55 }
0x38f2   :  { %v11108_v61 = vpop.f32.mrf.mxu0 }
0x39b1   :  { %v11113_v23 = vpop.f32.mrf.mxu1 }
0x39b2   :  { %v8820_v2 = vadd.f32 %v11113_v23, %v8403_v36  ;;  %v9603_v23 = vld [vmem:[%s13845_s6 + $0xa8] sm:$0xff] }
0x39b3   :  { %v8810_v48 = vpop.f32.mrf.mxu1 }
0x39b4   :  { %v8828_v3 = vadd.f32 %v8825_v25, %v8820_v2  ;;  %v8819_v32 = vadd.f32 %v8810_v48, %v8402_v0  ;;  %v9468_v0 = vld [vmem:[%s13841_s5 + $0xa8] sm:$0xff]  ;;  %v9601_v2 = vld [vmem:[%s13845_s6 + $0x98] sm:$0xff]  ;;  %v9600_v48 = vld [vmem:[%s13845_s6 + $0x90] sm:$0xff] }
0x39b5   :  { %11114 = vmatprep.subr.mxu0 %v9468_v0 }
0x39b6   :  { %v13673_v40 = vadd.f32 %v8828_v3, %v13479_v34  ;;  %v8827_v5 = vadd.f32 %v8825_v25, %v8819_v32  ;;  %11115 = vmatpush3.msra.mxu0 %v9468_v0  ;;  %v9602_v25 = vld [vmem:[%s13845_s6 + $0xa0] sm:$0xff]  ;;  %v9599_v3 = vld [vmem:[%s13845_s6 + $0x88] sm:$0xff] }
0x39b7   :  { %11116 = vmatprep.subr.mxu0 %v9465_v44  ;;  %v9598_v32 = vld [vmem:[%s13845_s6 + $0x80] sm:$0xff] }
0x39b8   :  { %v13676_v38 = vadd.f32 %v8827_v5, %v13482_v42  ;;  %v8834_v29 = vsel %vm104_vm0, %v13673_v40, 0.0  ;;  %11117 = vmatpush3.msra.mxu0 %v9465_v44  ;;  %v13783_v5 = vld [vmem:[%s13842_s7 + $0x1] ss:$2 sm:$0x1f] }
0x39b9   :  { %8835 = vadd.xlane.f32.xlu0 %v8834_v29  ;;  %11118 = vmatprep.subr.mxu0 %v9462_v39  ;;  %v8875_v29 = vrot.slane %v13783_v5, 3 }
0x39ba   :  { %v8831_v37 = vsel %vm104_vm0, %v13676_v38, 0.0  ;;  %11119 = vmatpush3.msra.mxu0 %v9462_v39 }
0x39bb   :  { %8832 = vadd.xlane.f32.xlu1 %v8831_v37  ;;  %11120 = vmatprep.subr.mxu0 %v9459_v19  ;;  %v8879_v37 = vrot.slane %v8875_v29, %v11692_v17 }
0x39bc   :  { %11121 = vmatpush3.msra.mxu0 %v9459_v19 }
0x39bd   :  { %11160 = vmatprep.subr.mxu0 %v13851_v9 }
0x3a42   :  { %v8836_v6 = vpop.xlane.xlu0 %8835 }
0x3a43   :  { %v8838_v58 = vmul.f32 0.03125, %v8836_v6 }
0x3a44   :  { %v8833_v35 = vpop.xlane.xlu1 %8832 }
0x3a45   :  { %v8840_v13 = vsub.f32 %v13673_v40, %v8838_v58  ;;  %v8837_v63 = vmul.f32 0.03125, %v8833_v35 }
0x3a47   :  { %v8839_v34 = vsub.f32 %v13676_v38, %v8837_v63  ;;  %v8842_v24 = vmul.f32 %v8840_v13, %v8840_v13 }
0x3a49   :  { %v8846_v42 = vsel %vm104_vm0, %v8842_v24, 0.0  ;;  %v8841_v36 = vmul.f32 %v8839_v34, %v8839_v34 }
0x3a4a   :  { %8847 = vadd.xlane.f32.xlu1 %v8846_v42 }
0x3a4b   :  { %v8843_v49 = vsel %vm104_vm0, %v8841_v36, 0.0 }
0x3a4c   :  { %8844 = vadd.xlane.f32.xlu0 %v8843_v49 }
0x3a62   :  { %8865 = vrot.lane.b32.xlu0 %v13423_v33, %s11434_s18  ;;  %v9605_v33 = vld [vmem:[%s13845_s6 + $0xb8] sm:$0xff] }
0x3ad3   :  { %v8848_v15 = vpop.xlane.xlu1 %8847 }
0x3ad4   :  { %v8850_v47 = vmul.f32 0.03125, %v8848_v15 }
0x3ad5   :  { %v8845_v56 = vpop.xlane.xlu0 %8844 }
0x3ad6   :  { %v8852_v60 = vadd.f32 1e-05, %v8850_v47  ;;  %v8849_v11 = vmul.f32 0.03125, %v8845_v56 }
0x3ad8   :  { %11402 = vrsqrt.f32 %v8852_v60  ;;  %v8851_v26 = vadd.f32 1e-05, %v8849_v11 }
0x3ad9   :  { %v8866_v22 = vpop.permute.xlu0 %8865 }
0x3ada   :  { %11404 = vrsqrt.f32 %v8851_v26  ;;  %v8867_v62 = vrot.slane %v8866_v22, 1 }
0x3adc   :  { %v8871_v20 = vrot.slane %v8867_v62, %v11692_v17 }
0x3ae5   :  { %v11403_v54 = vpop.eup %11402 }
0x3ae6   :  { %v8856_v14 = vmul.f32 %v11403_v54, %v8840_v13 }
0x3ae7   :  { %v11405_v30 = vpop.eup %11404 }
0x3ae8   :  { %v8855_v53 = vmul.f32 %v11405_v30, %v8839_v34  ;;  %v8864_v1 = vmul.f32 %v8861_v45, %v8856_v14 }
0x3aea   :  { %v8863_v18 = vmul.f32 %v8861_v45, %v8855_v53  ;;  %v8874_v61 = vadd.f32 %v8871_v20, %v8864_v1 }
0x3aec   :  { %v8873_v55 = vadd.f32 %v8871_v20, %v8863_v18 }
0x3aee   :  { %11122 = vmatprep.mubr.msk.f32.mxu0 %vm104_vm0, %v8873_v55 }
0x3aef   :  { %11123 = vmatmul.mubr.msk.f32.vlgmr.msra.gmra.mxu0 %vm104_vm0, %v8874_v61 }
0x3af0   :  { %11161 = vmatpush3.xpose.msk.msra.mxu0 %vm104_vm0, %v11780_v21  ;;  %11176 = vmatprep.mubr.msk.f32.mxu0 %vm11437_vm1, %v13851_v9  ;;  %v9606_v21 = vld [vmem:[%s13845_s6 + $0xc0] sm:$0xff] }
0x3af1   :  { %11162 = vmatprep.subr.mxu0 %v13851_v9 }
0x3af4   :  { %11163 = vmatpush3.xpose.msk.msra.mxu0 %vm104_vm0, %v11767_v7  ;;  %v9607_v7 = vld [vmem:[%s13845_s6 + $0xc8] sm:$0xff] }
0x3af5   :  { %11164 = vmatprep.subr.mxu0 %v13851_v9 }
0x3af8   :  { %11165 = vmatpush3.xpose.msk.msra.mxu0 %vm104_vm0, %v11760_v57  ;;  %v9608_v57 = vld [vmem:[%s13845_s6 + $0xd0] sm:$0xff] }
0x3af9   :  { %11166 = vmatprep.subr.mxu0 %v13851_v9 }
0x3afc   :  { %11167 = vmatpush3.xpose.msk.msra.mxu0 %vm104_vm0, %v11753_v16  ;;  %v9613_v16 = vld [vmem:[%s13845_s6 + $0xf8] sm:$0xff] }
0x3afd   :  { %11168 = vmatprep.subr.mxu0 %v13851_v9  ;;  %11125 = vmatprep.subr.mxu1 %v9613_v16 }
0x3afe   :  { %11126 = vmatpush3.msra.mxu1 %v9613_v16 }
0x3b00   :  { %11169 = vmatpush3.xpose.msk.msra.mxu0 %vm104_vm0, %v11746_v31  ;;  %v9609_v31 = vld [vmem:[%s13845_s6 + $0xd8] sm:$0xff] }
0x3b01   :  { %11170 = vmatprep.subr.mxu0 %v13851_v9 }
0x3b04   :  { %11171 = vmatpush3.xpose.msk.msra.mxu0 %vm104_vm0, %v11739_v12  ;;  %v9612_v12 = vld [vmem:[%s13845_s6 + $0xf0] sm:$0xff] }
0x3b05   :  { %11172 = vmatprep.subr.mxu0 %v13851_v9  ;;  %11127 = vmatprep.subr.mxu1 %v9612_v12 }
0x3b06   :  { %11128 = vmatpush3.msra.mxu1 %v9612_v12 }
0x3b08   :  { %11173 = vmatpush3.xpose.msk.msra.mxu0 %vm104_vm0, %v11732_v28  ;;  %v9611_v28 = vld [vmem:[%s13845_s6 + $0xe8] sm:$0xff] }
0x3b09   :  { %11174 = vmatprep.subr.mxu0 %v13851_v9  ;;  %11129 = vmatprep.subr.mxu1 %v9611_v28 }
0x3b0a   :  { %11130 = vmatpush3.msra.mxu1 %v9611_v28 }
0x3b0c   :  { %11175 = vmatpush3.xpose.msk.msra.mxu0 %vm104_vm0, %v11725_v59  ;;  %v9610_v59 = vld [vmem:[%s13845_s6 + $0xe0] sm:$0xff] }
0x3b0d   :  { %11131 = vmatprep.subr.mxu1 %v9610_v59 }
0x3b0e   :  { %11132 = vmatpush3.msra.mxu1 %v9610_v59 }
0x3b0f   :  { %11133 = vmatprep.subr.mxu1 %v9609_v31 }
0x3b10   :  { %11134 = vmatpush3.msra.mxu1 %v9609_v31 }
0x3b11   :  { %11135 = vmatprep.subr.mxu1 %v9608_v57 }
0x3b12   :  { %11136 = vmatpush3.msra.mxu1 %v9608_v57 }
0x3b13   :  { %11137 = vmatprep.subr.mxu1 %v9607_v7 }
0x3b14   :  { %11138 = vmatpush3.msra.mxu1 %v9607_v7 }
0x3b15   :  { %11139 = vmatprep.subr.mxu1 %v9606_v21 }
0x3b16   :  { %11140 = vmatpush3.msra.mxu1 %v9606_v21 }
0x3b17   :  { %11141 = vmatprep.subr.mxu1 %v9605_v33 }
0x3b18   :  { %11142 = vmatpush3.msra.mxu1 %v9605_v33 }
0x3b19   :  { %11143 = vmatprep.subr.mxu1 %v9604_v8 }
0x3b1a   :  { %11144 = vmatpush3.msra.mxu1 %v9604_v8 }
0x3b1b   :  { %11145 = vmatprep.subr.mxu1 %v9603_v23 }
0x3b1c   :  { %11146 = vmatpush3.msra.mxu1 %v9603_v23 }
0x3b1d   :  { %11147 = vmatprep.subr.mxu1 %v9602_v25 }
0x3b1e   :  { %11148 = vmatpush3.msra.mxu1 %v9602_v25 }
0x3b1f   :  { %11149 = vmatprep.subr.mxu1 %v9601_v2 }
0x3b20   :  { %11150 = vmatpush3.msra.mxu1 %v9601_v2 }
0x3b21   :  { %11151 = vmatprep.subr.mxu1 %v9600_v48 }
0x3b22   :  { %11152 = vmatpush3.msra.mxu1 %v9600_v48 }
0x3b23   :  { %11153 = vmatprep.subr.mxu1 %v9599_v3 }
0x3b24   :  { %11154 = vmatpush3.msra.mxu1 %v9599_v3 }
0x3b25   :  { %11155 = vmatprep.subr.mxu1 %v9598_v32 }
0x3b26   :  { %11156 = vmatpush3.msra.mxu1 %v9598_v32 }
0x3b27   :  { %11179 = vmatprep.subr.mxu1 %v13851_v9 }
0x3baf   :  { %v11124_v6 = vpop.f32.mrf.mxu0 }
0x3bb0   :  { %v8959_v58 = vadd.f32 %v11124_v6, %v8879_v37 }
0x3bb1   :  { %v8953_v35 = vpop.f32.mrf.mxu0 }
0x3bb2   :  { %v8965_v13 = vmul.f32 0.70710677, %v8959_v58  ;;  %v8954_v63 = vadd.f32 %v8953_v35, %v8879_v37  ;;  %v8963_v6 = vmul.f32 0.5, %v8959_v58 }
0x3bb4   :  { %v8971_v34 = vand.u32 2147483647, %v8965_v13  ;;  %v8964_v24 = vmul.f32 0.70710677, %v8954_v63  ;;  %vm8967_vm6 = vcmp.ge.f32.partialorder %v8965_v13, 0.0  ;;  %v8962_v29 = vmul.f32 0.5, %v8954_v63 }
0x3bb5   :  { %v8969_v8 = vsel %vm8967_vm6, 1.0, %v11447_v52 }
0x3bb6   :  { %v8973_v42 = vmul.f32 0.3275911, %v8971_v34  ;;  %v8970_v36 = vand.u32 2147483647, %v8964_v24  ;;  %v8999_v39 = vsub.f32 0.0, %v8971_v34  ;;  %vm8966_vm7 = vcmp.ge.f32.partialorder %v8964_v24, 0.0 }
0x3bb7   :  { %v8968_v48 = vsel %vm8966_vm7, 1.0, %v11447_v52 }
0x3bb8   :  { %v8975_v49 = vadd.f32 1.0, %v8973_v42  ;;  %v8972_v0 = vmul.f32 0.3275911, %v8970_v36  ;;  %v8998_v19 = vsub.f32 0.0, %v8970_v36  ;;  %v9001_v15 = vmul.f32 %v8999_v39, %v8971_v34 }
0x3bba   :  { %11406 = vrcp.f32 %v8975_v49  ;;  %v8974_v44 = vadd.f32 1.0, %v8972_v0  ;;  %v9000_v56 = vmul.f32 %v8998_v19, %v8970_v36  ;;  %v9004_v11 = vmul.f32 1.442695, %v9001_v15 }
0x3bbc   :  { %11408 = vrcp.f32 %v8974_v44  ;;  %v9002_v22 = vmul.f32 1.442695, %v9000_v56 }
0x3bbd   :  { %11410 = vpow2.f32 %v9004_v11  ;;  %v9614_v11 = vld [vmem:[%s13843_s2 + $0x2] ss:$0 sm:$0xff] }
0x3bbe   :  { %11412 = vpow2.f32 %v9002_v22 }
0x3bc7   :  { %v11407_v47 = vpop.eup %11406 }
0x3bc8   :  { %v8981_v60 = vmul.f32 1.0614054, %v11407_v47 }
0x3bc9   :  { %v11409_v26 = vpop.eup %11408 }
0x3bca   :  { %v8983_v46 = vadd.f32 -1.4531521, %v8981_v60  ;;  %v8980_v54 = vmul.f32 1.0614054, %v11409_v26  ;;  %v11411_v59 = vpop.eup %11410 }
0x3bcb   :  { %v11413_v21 = vpop.eup %11412 }
0x3bcc   :  { %v8985_v45 = vmul.f32 %v11407_v47, %v8983_v46  ;;  %v8982_v62 = vadd.f32 -1.4531521, %v8980_v54  ;;  %v9615_v46 = vld [vmem:[%s13843_s2 + $0x3] ss:$0 sm:$0xff] }
0x3bce   :  { %v8987_v14 = vadd.f32 1.4214138, %v8985_v45  ;;  %v8984_v30 = vmul.f32 %v11409_v26, %v8982_v62 }
0x3bd0   :  { %v8989_v53 = vmul.f32 %v11407_v47, %v8987_v14  ;;  %v8986_v1 = vadd.f32 1.4214138, %v8984_v30 }
0x3bd2   :  { %v8991_v20 = vadd.f32 -0.28449672, %v8989_v53  ;;  %v8988_v18 = vmul.f32 %v11409_v26, %v8986_v1 }
0x3bd4   :  { %v8993_v55 = vmul.f32 %v11407_v47, %v8991_v20  ;;  %v8990_v61 = vadd.f32 -0.28449672, %v8988_v18 }
0x3bd6   :  { %v8995_v16 = vadd.f32 0.2548296, %v8993_v55  ;;  %v8992_v12 = vmul.f32 %v11409_v26, %v8990_v61 }
0x3bd8   :  { %v8997_v28 = vmul.f32 %v11407_v47, %v8995_v16  ;;  %v8994_v31 = vadd.f32 0.2548296, %v8992_v12 }
0x3bda   :  { %v9007_v57 = vmul.f32 %v11411_v59, %v8997_v28  ;;  %v8996_v7 = vmul.f32 %v11409_v26, %v8994_v31 }
0x3bdc   :  { %v9009_v33 = vsub.f32 1.0, %v9007_v57  ;;  %v9006_v23 = vmul.f32 %v11413_v21, %v8996_v7 }
0x3bde   :  { %v9011_v25 = vmul.f32 %v9009_v33, %v8969_v8  ;;  %v9008_v2 = vsub.f32 1.0, %v9006_v23 }
0x3be0   :  { %v9010_v3 = vmul.f32 %v9008_v2, %v8968_v48  ;;  %v9013_v32 = vadd.f32 1.0, %v9011_v25 }
0x3be2   :  { %v9012_v37 = vadd.f32 1.0, %v9010_v3  ;;  %v9015_v34 = vmul.f32 %v9013_v32, %v8963_v6 }
0x3be4   :  { %v9014_v35 = vmul.f32 %v9012_v37, %v8962_v29 }
0x3be6   :  { %11157 = vmatprep.mubr.f32.mxu1 %v9014_v35 }
0x3be7   :  { %11158 = vmatmul.mubr.f32.vlgmr.msra.gmra.mxu1 %v9015_v34 }
0x3be8   :  { %11180 = vmatpush3.xpose.msk.msra.mxu1 %vm104_vm0, %v11832_v4  ;;  %11195 = vmatprep.mubr.msk.f32.mxu1 %vm11437_vm1, %v13851_v9 }
0x3be9   :  { %11181 = vmatprep.subr.mxu1 %v13851_v9 }
0x3bec   :  { %11182 = vmatpush3.xpose.msk.msra.mxu1 %vm104_vm0, %v11818_v50  ;;  %v13852_v50 = vld [vmem:[#allocation2_spill] sm:$0xff] }
0x3bed   :  { %11183 = vmatprep.subr.mxu1 %v13851_v9 }
0x3bf0   :  { %11184 = vmatpush3.xpose.msk.msra.mxu1 %vm104_vm0, %v11822_v51 }
0x3bf1   :  { %11185 = vmatprep.subr.mxu1 %v13851_v9 }
0x3bf4   :  { %11186 = vmatpush3.xpose.msk.msra.mxu1 %vm104_vm0, %v11804_v43  ;;  %v9110_v43 = vrot.slane %v13783_v5, 4 }
0x3bf5   :  { %11187 = vmatprep.subr.mxu1 %v13851_v9 }
0x3bf6   :  { %v9114_v52 = vrot.slane %v9110_v43, %v11692_v17 }
0x3bf8   :  { %11188 = vmatpush3.xpose.msk.msra.mxu1 %vm104_vm0, %v11808_v41 }
0x3bf9   :  { %11189 = vmatprep.subr.mxu1 %v13851_v9 }
0x3bfc   :  { %11190 = vmatpush3.xpose.msk.msra.mxu1 %vm104_vm0, %v11790_v27 }
0x3bfd   :  { %11191 = vmatprep.subr.mxu1 %v13851_v9 }
0x3c00   :  { %11192 = vmatpush3.xpose.msk.msra.mxu1 %vm104_vm0, %v11794_v10 }
0x3c01   :  { %11193 = vmatprep.subr.mxu1 %v13851_v9 }
0x3c04   :  { %11194 = vmatpush3.xpose.msk.msra.mxu1 %vm104_vm0, %v13852_v50 }
0x3ca7   :  { %v11159_v51 = vpop.f32.mrf.mxu1 }
0x3ca8   :  { %v9109_v41 = vadd.f32 %v11159_v51, %v13673_v40 }
0x3ca9   :  { %v9099_v4 = vpop.f32.mrf.mxu1 }
0x3caa   :  { %v9108_v27 = vadd.f32 %v9099_v4, %v13676_v38  ;;  %v9117_v13 = vadd.f32 %v9114_v52, %v9109_v41 }
0x3cac   :  { %v9116_v58 = vadd.f32 %v9114_v52, %v9108_v27  ;;  %v9123_v10 = vsel %vm104_vm0, %v9117_v13, 0.0 }
0x3cae   :  { %v9120_v63 = vsel %vm104_vm0, %v9116_v58, 0.0 }
0x3caf   :  { %9121 = vadd.xlane.f32.xlu1 %v9120_v63 }
0x3cb3   :  { %9124 = vadd.xlane.f32.xlu1 %v9123_v10 }
0x3d38   :  { %v9122_v9 = vpop.xlane.xlu1 %9121 }
0x3d39   :  { %v9126_v24 = vmul.f32 0.03125, %v9122_v9 }
0x3d3b   :  { %v9128_v42 = vsub.f32 %v9116_v58, %v9126_v24 }
0x3d3c   :  { %v9125_v5 = vpop.xlane.xlu1 %9124 }
0x3d3d   :  { %v9127_v36 = vmul.f32 0.03125, %v9125_v5  ;;  %v9130_v49 = vmul.f32 %v9128_v42, %v9128_v42 }
0x3d3f   :  { %v9129_v0 = vsub.f32 %v9117_v13, %v9127_v36  ;;  %v9132_v40 = vsel %vm104_vm0, %v9130_v49, 0.0 }
0x3d40   :  { %9133 = vadd.xlane.f32.xlu1 %v9132_v40 }
0x3d41   :  { %v9131_v17 = vmul.f32 %v9129_v0, %v9129_v0 }
0x3d43   :  { %v9135_v38 = vsel %vm104_vm0, %v9131_v17, 0.0 }
0x3d44   :  { %9136 = vadd.xlane.f32.xlu1 %v9135_v38 }
0x3dc9   :  { %v9134_v44 = vpop.xlane.xlu1 %9133 }
0x3dca   :  { %v9138_v39 = vmul.f32 0.03125, %v9134_v44 }
0x3dcc   :  { %v9140_v19 = vadd.f32 1e-05, %v9138_v39 }
0x3dcd   :  { %v9137_v15 = vpop.xlane.xlu1 %9136 }
0x3dce   :  { %11414 = vrsqrt.f32 %v9140_v19  ;;  %v9139_v47 = vmul.f32 0.03125, %v9137_v15 }
0x3dd0   :  { %v9141_v56 = vadd.f32 1e-05, %v9139_v47 }
0x3dd2   :  { %11416 = vrsqrt.f32 %v9141_v56 }
0x3ddb   :  { %v11415_v60 = vpop.eup %11414 }
0x3ddc   :  { %v9144_v26 = vmul.f32 %v11415_v60, %v9128_v42 }
0x3dde   :  { %v9150_v22 = vmul.f32 %v9614_v11, %v9144_v26 }
0x3ddf   :  { %v11417_v54 = vpop.eup %11416 }
0x3de0   :  { %v9145_v45 = vmul.f32 %v11417_v54, %v9129_v0  ;;  %v9156_v62 = vadd.f32 %v9615_v46, %v9150_v22 }
0x3de2   :  { %11177 = vmatmul.mubr.msk.f32.vlgmr.msra.gmra.mxu0 %vm104_vm0, %v9156_v62  ;;  %v9151_v14 = vmul.f32 %v9614_v11, %v9145_v45 }
0x3de4   :  { %v9157_v30 = vadd.f32 %v9615_v46, %v9151_v14 }
0x3de6   :  { %11196 = vmatmul.mubr.msk.f32.vlgmr.msra.gmra.mxu1 %vm104_vm0, %v9157_v30 }
0x3ea2   :  { %v9227_v53 = vpop.f32.mrf.mxu0 }
0x3ea3   :  { %9304 = vst.msk [vmem:[%s13846_s8] sm:$0xff] %vm895_vm3, %v9227_v53 }
0x3ea4   :  { %v11178_v1 = vpop.f32.mrf.mxu0 }
0x3ea6   :  { %v9300_v20 = vpop.f32.mrf.mxu1 }
0x3ea7   :  { %9305 = vst.msk [vmem:[%s13846_s8 + $0x8] sm:$0xff] %vm895_vm3, %v9300_v20 }
0x3ea8   :  { %v11197_v18 = vpop.f32.mrf.mxu1 }

</bundles_post_ra>
